<compile_context>
chip_gen: v6e
topology: v6e:2x2x1
jax: 0.10.0
libtpu: 0.0.40
codegen_flags: <defaults>
</compile_context>

<pallas_src>
import functools

import jax
import jax.numpy as jnp
from jax.experimental import pallas as pl
from jax.experimental.pallas import tpu as pltpu


def _round_up(x, m):
    return (x + m - 1) // m * m


# -----------------------------------------------------------------------------
# GEMM kernels: bf16 operands into the MXU, fp32 accumulation, per-channel
# sum / sum-of-squares side outputs (BatchNorm batch stats) in the epilogue.
# -----------------------------------------------------------------------------
def _gemm_k1_kernel(a_ref, b_ref, o_ref, *stats_refs, with_stats):
    # Single fat-K step: straight-line body, no scratch, no revisit branches.
    y = jnp.dot(a_ref[...], b_ref[...], preferred_element_type=jnp.float32)
    o_ref[...] = y.astype(o_ref.dtype)
    if with_stats:
        sum_ref, ssq_ref = stats_refs
        sum_ref[...] = jnp.sum(y, axis=0, keepdims=True)[None]
        ssq_ref[...] = jnp.sum(y * y, axis=0, keepdims=True)[None]


def _gemm_acc_kernel(a_ref, b_ref, o_ref, *rest, with_stats):
    if with_stats:
        sum_ref, ssq_ref, acc_ref = rest
    else:
        (acc_ref,) = rest

    @pl.when(pl.program_id(2) == 0)
    def _():
        acc_ref[...] = jnp.zeros_like(acc_ref)

    acc_ref[...] += jnp.dot(a_ref[...], b_ref[...],
                            preferred_element_type=jnp.float32)

    @pl.when(pl.program_id(2) == pl.num_programs(2) - 1)
    def _():
        y = acc_ref[...]
        o_ref[...] = y.astype(o_ref.dtype)
        if with_stats:
            sum_ref[...] = jnp.sum(y, axis=0, keepdims=True)[None]
            ssq_ref[...] = jnp.sum(y * y, axis=0, keepdims=True)[None]


def _gemm_dims(M, N, K):
    mp0 = _round_up(M, 16)
    if mp0 >= 256:
        MP, TM = _round_up(M, 256), 256
    else:
        MP, TM = mp0, mp0
    np0 = _round_up(N, 128)
    if np0 >= 256:
        NP, TN = _round_up(N, 256), 256
    else:
        NP, TN = np0, np0
    kp0 = _round_up(K, 128)
    if kp0 <= 2048:
        KP, TK = kp0, kp0            # single fat K step -> straight-line kernel
    else:
        KP, TK = _round_up(K, 512), 512
    return MP, NP, KP, TM, TN, TK


def gemm_stats(a, b, out_dtype=jnp.bfloat16):
    """a:(M,K) @ b:(K,N) -> (padded (MP,NP) output, per-col sum, per-col sumsq)."""
    M, K = a.shape
    K2, N = b.shape
    assert K == K2
    MP, NP, KP, TM, TN, TK = _gemm_dims(M, N, K)
    a_p = jnp.pad(a.astype(jnp.bfloat16), ((0, MP - M), (0, KP - K)))
    b_p = jnp.pad(b.astype(jnp.bfloat16), ((0, KP - K), (0, NP - N)))
    GM, GN, GK = MP // TM, NP // TN, KP // TK

    out_shape = [jax.ShapeDtypeStruct((MP, NP), out_dtype),
                 jax.ShapeDtypeStruct((GM, 1, NP), jnp.float32),
                 jax.ShapeDtypeStruct((GM, 1, NP), jnp.float32)]

    if GK == 1:
        grid = (GM, GN)
        in_specs = [pl.BlockSpec((TM, KP), lambda i, j: (i, 0)),
                    pl.BlockSpec((KP, TN), lambda i, j: (0, j))]
        out_specs = [pl.BlockSpec((TM, TN), lambda i, j: (i, j)),
                     pl.BlockSpec((1, 1, TN), lambda i, j: (i, 0, j)),
                     pl.BlockSpec((1, 1, TN), lambda i, j: (i, 0, j))]
        kernel = functools.partial(_gemm_k1_kernel, with_stats=True)
        scratch = ()
        sem = ("parallel", "parallel")
    else:
        grid = (GM, GN, GK)
        in_specs = [pl.BlockSpec((TM, TK), lambda i, j, k: (i, k)),
                    pl.BlockSpec((TK, TN), lambda i, j, k: (k, j))]
        out_specs = [pl.BlockSpec((TM, TN), lambda i, j, k: (i, j)),
                     pl.BlockSpec((1, 1, TN), lambda i, j, k: (i, 0, j)),
                     pl.BlockSpec((1, 1, TN), lambda i, j, k: (i, 0, j))]
        kernel = functools.partial(_gemm_acc_kernel, with_stats=True)
        scratch = (pltpu.VMEM((TM, TN), jnp.float32),)
        sem = ("parallel", "parallel", "arbitrary")

    y_pad, s1, s2 = pl.pallas_call(
        kernel,
        out_shape=out_shape,
        grid=grid,
        in_specs=in_specs,
        out_specs=out_specs,
        scratch_shapes=scratch,
        compiler_params=pltpu.CompilerParams(dimension_semantics=sem),
    )(a_p, b_p)

    ch_sum = jnp.sum(s1[:, 0, :N], axis=0)
    ch_ssq = jnp.sum(s2[:, 0, :N], axis=0)
    return y_pad, ch_sum, ch_ssq, (MP, NP)


# -----------------------------------------------------------------------------
# Conv as im2col + GEMM (optionally merged with a 1x1/stride-s downsample conv).
# -----------------------------------------------------------------------------
def _im2col(x_nhwc, kh, kw, stride, padding):
    n, h, w, cin = x_nhwc.shape
    ho = (h + 2 * padding - kh) // stride + 1
    wo = (w + 2 * padding - kw) // stride + 1
    # TODO(synk): build the patch tiles in-kernel from a VMEM-resident slab
    # (shifted pl.ds reads) instead of wrapper-side im2col; under jit the
    # pads/slices/concat below fuse into a few small XLA copies.
    xp = jnp.pad(x_nhwc, ((0, 0), (padding, padding), (padding, padding), (0, 0)))
    cols = []
    for i in range(kh):
        for j in range(kw):
            cols.append(xp[:, i::stride, j::stride, :][:, :ho, :wo, :])
    pm = jnp.concatenate(cols, axis=-1).reshape(n * ho * wo, kh * kw * cin)
    return pm, ho, wo


def conv_gemm(x_nhwc, w_oihw, stride, padding, extra_1x1_w=None):
    """KxK conv -> im2col + GEMM with fused BN-stat epilogue.

    When extra_1x1_w (the downsample 1x1/stride-s weight) is given, its columns
    are merged into the same GEMM (1x1/stride-s patch rows == center tap of the
    padded 3x3/stride-s conv), so a single pallas_call emits both outputs.
    """
    n, h, w, cin = x_nhwc.shape
    cout, cin2, kh, kw = w_oihw.shape
    assert cin == cin2
    pm, ho, wo = _im2col(x_nhwc, kh, kw, stride, padding)
    wm = jnp.transpose(w_oihw, (2, 3, 1, 0)).reshape(kh * kw * cin, cout)
    n_extra = 0
    if extra_1x1_w is not None:
        n_extra = extra_1x1_w.shape[0]
        center = (kh // 2) * kw + (kw // 2)
        wd = jnp.zeros((kh * kw * cin, n_extra), w_oihw.dtype)
        wd = wd.at[center * cin:(center + 1) * cin, :].set(
            extra_1x1_w.reshape(n_extra, cin).T)
        wm = jnp.concatenate([wm, wd], axis=1)
    M = n * ho * wo
    y_pad, ch_sum, ch_ssq, (MP, NP) = gemm_stats(pm, wm)
    meta = dict(M=M, MP=MP, NP=NP, n=n, ho=ho, wo=wo, cout=cout, n_extra=n_extra)
    return y_pad, ch_sum, ch_ssq, meta


# -----------------------------------------------------------------------------
# BatchNorm helpers (training-mode batch statistics, biased variance, eps=1e-5)
# -----------------------------------------------------------------------------
def bn_scale_shift(ch_sum, ch_ssq, count, gamma, beta, eps=1e-5):
    mean = ch_sum / count
    var = jnp.maximum(ch_ssq / count - mean * mean, 0.0)
    scale = gamma.astype(jnp.float32) * jax.lax.rsqrt(var + eps)
    shift = beta.astype(jnp.float32) - mean * scale
    return scale, shift


def _vec_pad(v, width):
    return jnp.pad(v, (0, width - v.shape[0])).reshape(1, width).astype(jnp.float32)


def _row_tile(MP):
    if MP <= 1024:
        return MP
    for cand in (1024, 512, 256, 128, 16):
        if MP % cand == 0:
            return cand
    return MP


# -----------------------------------------------------------------------------
# BN apply (+ReLU, +residual, +affine residual) row-tiled elementwise kernels
# -----------------------------------------------------------------------------
def _bn_kernel(x_ref, scale_ref, shift_ref, o_ref, *, relu):
    y = x_ref[...].astype(jnp.float32) * scale_ref[...] + shift_ref[...]
    if relu:
        y = jnp.maximum(y, 0.0)
    o_ref[...] = y.astype(o_ref.dtype)


def _bn_res_kernel(x_ref, r_ref, scale_ref, shift_ref, o_ref):
    y = (x_ref[...].astype(jnp.float32) * scale_ref[...] + shift_ref[...]
         + r_ref[...].astype(jnp.float32))
    o_ref[...] = jnp.maximum(y, 0.0).astype(o_ref.dtype)


def _bn_res_affine_kernel(x_ref, r_ref, scale_ref, shift_ref, rs_ref, rb_ref, o_ref):
    # residual BN (downsample branch) folded in as an affine: r*rs + rb
    y = (x_ref[...].astype(jnp.float32) * scale_ref[...] + shift_ref[...]
         + r_ref[...].astype(jnp.float32) * rs_ref[...] + rb_ref[...])
    o_ref[...] = jnp.maximum(y, 0.0).astype(o_ref.dtype)


def bn_apply(y_pad, scale_p, shift_p, relu=True,
             residual_pad=None, res_scale_p=None, res_shift_p=None):
    MP, NP = y_pad.shape
    TR = _row_tile(MP)
    grid = (MP // TR,)
    row = pl.BlockSpec((TR, NP), lambda i: (i, 0))
    vec = pl.BlockSpec((1, NP), lambda i: (0, 0))
    cp = pltpu.CompilerParams(dimension_semantics=("parallel",))
    out_shape = jax.ShapeDtypeStruct((MP, NP), jnp.bfloat16)
    if residual_pad is None:
        return pl.pallas_call(
            functools.partial(_bn_kernel, relu=relu),
            out_shape=out_shape, grid=grid,
            in_specs=[row, vec, vec], out_specs=row, compiler_params=cp,
        )(y_pad, scale_p, shift_p)
    if res_scale_p is None:
        return pl.pallas_call(
            _bn_res_kernel, out_shape=out_shape, grid=grid,
            in_specs=[row, row, vec, vec], out_specs=row, compiler_params=cp,
        )(y_pad, residual_pad, scale_p, shift_p)
    return pl.pallas_call(
        _bn_res_affine_kernel, out_shape=out_shape, grid=grid,
        in_specs=[row, row, vec, vec, vec, vec], out_specs=row, compiler_params=cp,
    )(y_pad, residual_pad, scale_p, shift_p, res_scale_p, res_shift_p)


# -----------------------------------------------------------------------------
# Stem: fused BN + ReLU + MaxPool(3x3, stride 2, pad 1) on the raw conv1 GEMM
# output, kept on the 128-lane padded channel layout (full-width vregs/stores).
# -----------------------------------------------------------------------------
_PAD_SENTINEL = -1e30   # spatial-pad marker in the raw slab (pre-BN)


def _bn_relu_max9_kernel(*refs):
    # refs: 9 raw tap views, scale, shift, out
    scale = refs[9][...]
    shift = refs[10][...]
    o_ref = refs[11]
    m = None
    for r in refs[:9]:
        x = r[...].astype(jnp.float32)
        # BN + ReLU per tap; spatial-pad cells (sentinel) contribute 0, which is
        # exact for max-pooling of a non-negative (post-ReLU) signal.
        v = jnp.where(x > 0.5 * _PAD_SENTINEL,
                      jnp.maximum(x * scale + shift, 0.0), 0.0)
        m = v if m is None else jnp.maximum(m, v)
    o_ref[...] = m.astype(o_ref.dtype)


def stem_bn_relu_maxpool(y_pad, meta, scale_p, shift_p):
    n, ho, wo, NP, M, cout = (meta["n"], meta["ho"], meta["wo"],
                              meta["NP"], meta["M"], meta["cout"])
    hp = (ho + 2 - 3) // 2 + 1
    wp = (wo + 2 - 3) // 2 + 1
    y_nhwc = y_pad[:M].reshape(n, ho, wo, NP)                 # raw (pre-BN) conv1 out
    xp = jnp.pad(y_nhwc, ((0, 0), (1, 1), (1, 1), (0, 0)),
                 constant_values=_PAD_SENTINEL)
    rows = n * hp * wp
    RP = _round_up(rows, 16)
    views = []
    for i in range(3):
        for j in range(3):
            v = xp[:, i::2, j::2, :][:, :hp, :wp, :].reshape(rows, NP)
            if RP > rows:
                v = jnp.pad(v, ((0, RP - rows), (0, 0)))
            views.append(v)
    TR = _row_tile(RP)
    row = pl.BlockSpec((TR, NP), lambda i: (i, 0))
    vec = pl.BlockSpec((1, NP), lambda i: (0, 0))
    out = pl.pallas_call(
        _bn_relu_max9_kernel,
        out_shape=jax.ShapeDtypeStruct((RP, NP), jnp.bfloat16),
        grid=(RP // TR,),
        in_specs=[row] * 9 + [vec, vec],
        out_specs=row,
        compiler_params=pltpu.CompilerParams(dimension_semantics=("parallel",)),
    )(*views, scale_p, shift_p)
    return out[:rows, :cout].reshape(n, hp, wp, cout)


# -----------------------------------------------------------------------------
# AdaptiveAvgPool2d((1,1)) + FC fused into one tiny kernel
# -----------------------------------------------------------------------------
def _pool_fc_kernel(x_ref, w_ref, b_ref, o_ref):
    x = x_ref[...].astype(jnp.float32)                        # (R, S, C)
    pooled = jnp.mean(x, axis=1)                              # (R, C)
    o_ref[...] = (jnp.dot(pooled, w_ref[...],
                          preferred_element_type=jnp.float32) + b_ref[...])


def pool_fc(x_nhwc, fc_w, fc_b):
    n, h, w, c = x_nhwc.shape
    ncls = fc_w.shape[0]
    R = _round_up(max(n, 8), 8)
    NPo = _round_up(ncls, 128)
    x3 = jnp.pad(x_nhwc.reshape(n, h * w, c), ((0, R - n), (0, 0), (0, 0)))
    wm = jnp.pad(jnp.transpose(fc_w).astype(jnp.float32), ((0, 0), (0, NPo - ncls)))
    bv = jnp.pad(fc_b.astype(jnp.float32), (0, NPo - ncls)).reshape(1, NPo)
    out = pl.pallas_call(
        _pool_fc_kernel,
        out_shape=jax.ShapeDtypeStruct((R, NPo), jnp.float32),
    )(x3, wm, bv)
    return out[:n, :ncls]


# -----------------------------------------------------------------------------
# BasicBlock (expansion = 1) and ResNet forward
# -----------------------------------------------------------------------------
def basic_block(x, p, stride):
    planes = p["conv1_w"].shape[0]
    has_ds = "down_w" in p
    extra = p["down_w"] if has_ds else None

    # conv1 (3x3, stride, pad 1); downsample 1x1 GEMM merged in when present.
    y1, sum1, ssq1, m1 = conv_gemm(x, p["conv1_w"], stride, 1, extra_1x1_w=extra)
    scale1, shift1 = bn_scale_shift(sum1[:planes], ssq1[:planes], m1["M"],
                                    p["bn1_g"], p["bn1_b"])
    w1 = _round_up(planes, 128)
    out1_pad = bn_apply(y1[:, :w1], _vec_pad(scale1, w1), _vec_pad(shift1, w1),
                        relu=True)
    out1 = out1_pad[:m1["M"], :planes].reshape(m1["n"], m1["ho"], m1["wo"], planes)

    # conv2 (3x3, stride 1, pad 1)
    y2, sum2, ssq2, m2 = conv_gemm(out1, p["conv2_w"], 1, 1)
    scale2, shift2 = bn_scale_shift(sum2[:planes], ssq2[:planes], m2["M"],
                                    p["bn2_g"], p["bn2_b"])
    NP2 = m2["NP"]

    if has_ds:
        # downsample output lives in columns [planes:2*planes) of the merged GEMM;
        # its BatchNorm is applied as an affine inside the residual-add kernel.
        scaled, shiftd = bn_scale_shift(sum1[planes:planes + planes],
                                        ssq1[planes:planes + planes],
                                        m1["M"], p["down_g"], p["down_b"])
        res_pad = y1[:m2["MP"], planes:planes + NP2]
        out_pad = bn_apply(y2, _vec_pad(scale2, NP2), _vec_pad(shift2, NP2),
                           relu=True, residual_pad=res_pad,
                           res_scale_p=_vec_pad(scaled, NP2),
                           res_shift_p=_vec_pad(shiftd, NP2))
    else:
        cin = x.shape[-1]
        res2d = x.reshape(m2["M"], cin).astype(jnp.bfloat16)
        res_pad = jnp.pad(res2d, ((0, m2["MP"] - m2["M"]), (0, NP2 - cin)))
        out_pad = bn_apply(y2, _vec_pad(scale2, NP2), _vec_pad(shift2, NP2),
                           relu=True, residual_pad=res_pad)

    return out_pad[:m2["M"], :planes].reshape(m2["n"], m2["ho"], m2["wo"], planes)


def init_params(key, layers=(1, 1, 1, 1), num_classes=10):
    keys = iter(jax.random.split(key, 128))

    def conv_w(cout, cin, k):
        return jax.random.normal(next(keys), (cout, cin, k, k), jnp.float32) * 0.05

    params = {
        "conv1_w": conv_w(64, 1, 7),
        "bn1_g": jnp.ones((64,), jnp.float32),
        "bn1_b": jnp.zeros((64,), jnp.float32),
    }
    inplanes = 64
    stages, stage_strides = [], []
    for planes, nblocks, stride in zip((64, 128, 256, 512), layers, (1, 2, 2, 2)):
        blocks, bstrides = [], []
        for bi in range(nblocks):
            s = stride if bi == 0 else 1
            p = {
                "conv1_w": conv_w(planes, inplanes, 3),
                "bn1_g": jnp.ones((planes,), jnp.float32),
                "bn1_b": jnp.zeros((planes,), jnp.float32),
                "conv2_w": conv_w(planes, planes, 3),
                "bn2_g": jnp.ones((planes,), jnp.float32),
                "bn2_b": jnp.zeros((planes,), jnp.float32),
            }
            if s != 1 or inplanes != planes:
                p["down_w"] = conv_w(planes, inplanes, 1)
                p["down_g"] = jnp.ones((planes,), jnp.float32)
                p["down_b"] = jnp.zeros((planes,), jnp.float32)
            inplanes = planes
            blocks.append(p)
            bstrides.append(s)
        stages.append(blocks)
        stage_strides.append(tuple(bstrides))
    params["layers"] = stages
    params["fc_w"] = jax.random.normal(next(keys), (num_classes, 512), jnp.float32) * 0.05
    params["fc_b"] = jnp.zeros((num_classes,), jnp.float32)
    return params, tuple(stage_strides)


def resnet_forward(params, x_nchw, strides, latent=False):
    # NCHW (PyTorch) -> NHWC (kernel layout); bf16 activations between kernels.
    x = jnp.transpose(x_nchw, (0, 2, 3, 1)).astype(jnp.bfloat16)

    # Stem: 7x7/s2/p3 conv GEMM (BN stats fused) -> fused BN + ReLU + 3x3/s2 maxpool.
    y0, sum0, ssq0, m0 = conv_gemm(x, params["conv1_w"], 2, 3)
    c0 = m0["cout"]
    scale0, shift0 = bn_scale_shift(sum0[:c0], ssq0[:c0], m0["M"],
                                    params["bn1_g"], params["bn1_b"])
    x = stem_bn_relu_maxpool(y0, m0, _vec_pad(scale0, m0["NP"]),
                             _vec_pad(shift0, m0["NP"]))

    pooled_output = None
    for li, (layer_params, layer_strides) in enumerate(
            zip(params["layers"], strides)):
        for p, s in zip(layer_params, layer_strides):
            x = basic_block(x, p, s)
        if latent and li == 2:
            pooled_output = jnp.transpose(x, (0, 3, 1, 2)).astype(jnp.float32)

    if latent:
        before_classifier_output = jnp.transpose(x, (0, 3, 1, 2)).astype(jnp.float32)

    final_output = pool_fc(x, params["fc_w"], params["fc_b"])

    if latent:
        return [pooled_output, before_classifier_output, final_output]
    return final_output


if __name__ == "__main__":
    key = jax.random.PRNGKey(0)
    kparam, kx = jax.random.split(key)
    params, strides = init_params(kparam, layers=(1, 1, 1, 1), num_classes=10)
    x = jax.random.normal(kx, (2, 1, 32, 32), jnp.float32)  # NCHW, 1 input channel

    fwd = jax.jit(functools.partial(resnet_forward, strides=strides, latent=False))
    out = fwd(params, x)
    jax.block_until_ready(out)
    assert out.shape == (2, 10)
    print("KERNEL_OK")
</pallas_src>

<mosaic_0001>
module attributes {stable_mosaic.version = 11 : i64} {
  func.func @_gemm_k1_kernel(%arg0: i32, %arg1: i32, %arg2: memref<256x128xbf16, #tpu.memory_space<vmem>>, %arg3: memref<128x128xbf16, #tpu.memory_space<vmem>>, %arg4: memref<256x128xbf16, #tpu.memory_space<vmem>>, %arg5: memref<1x1x128xf32, #tpu.memory_space<vmem>>, %arg6: memref<1x1x128xf32, #tpu.memory_space<vmem>>) attributes {dimension_semantics = [#tpu.dimension_semantics<parallel>, #tpu.dimension_semantics<parallel>], iteration_bounds = array<i64: 2, 1>, scalar_prefetch = 0 : i64, scratch_operands = 0 : i64, tpu.core_type = #tpu.core_type<tc>, window_params = [{transform_indices = @transform_0, window_bounds = array<i64: 256, 128>}, {transform_indices = @transform_1, window_bounds = array<i64: 128, 128>}, {transform_indices = @transform_2, window_bounds = array<i64: 256, 128>}, {transform_indices = @transform_3, window_bounds = array<i64: 1, 1, 128>}, {transform_indices = @transform_4, window_bounds = array<i64: 1, 1, 128>}]} {
    %c0 = arith.constant 0 : index
    %c0_0 = arith.constant 0 : index
    %0 = vector.load %arg2[%c0, %c0_0] : memref<256x128xbf16, #tpu.memory_space<vmem>>, vector<256x128xbf16>
    %c0_1 = arith.constant 0 : index
    %c0_2 = arith.constant 0 : index
    %1 = vector.load %arg3[%c0_1, %c0_2] : memref<128x128xbf16, #tpu.memory_space<vmem>>, vector<128x128xbf16>
    %cst = arith.constant dense<0.000000e+00> : vector<256x128xf32>
    %2 = tpu.matmul %0, %1, %cst {dimension_numbers = #tpu.dot_dimension_numbers<[1], [0], [0], [1], [0, 0, 1, 1], [], []>} : vector<256x128xbf16>, vector<128x128xbf16>, vector<256x128xf32> -> vector<256x128xf32>
    %3 = arith.truncf %2 : vector<256x128xf32> to vector<256x128xbf16>
    %c0_3 = arith.constant 0 : index
    %c0_4 = arith.constant 0 : index
    %4 = vector.load %arg4[%c0_3, %c0_4] : memref<256x128xbf16, #tpu.memory_space<vmem>>, vector<256x128xbf16>
    tpu.vector_store %arg4[%c0_3, %c0_4], %3 {strides = array<i32>} : memref<256x128xbf16, #tpu.memory_space<vmem>>, vector<256x128xbf16>,
    %cst_5 = arith.constant dense<0.000000e+00> : vector<128xf32>
    %5 = vector.multi_reduction <add>, %2, %cst_5 [0] : vector<256x128xf32> to vector<128xf32>
    %6 = vector.shape_cast %5 : vector<128xf32> to vector<1x128xf32>
    %7 = vector.shape_cast %6 : vector<1x128xf32> to vector<1x1x128xf32>
    %c0_6 = arith.constant 0 : index
    %c0_7 = arith.constant 0 : index
    %c0_8 = arith.constant 0 : index
    %8 = vector.load %arg5[%c0_6, %c0_7, %c0_8] : memref<1x1x128xf32, #tpu.memory_space<vmem>>, vector<1x1x128xf32>
    tpu.vector_store %arg5[%c0_6, %c0_7, %c0_8], %7 {strides = array<i32>} : memref<1x1x128xf32, #tpu.memory_space<vmem>>, vector<1x1x128xf32>,
    %9 = arith.mulf %2, %2 : vector<256x128xf32>
    %cst_9 = arith.constant dense<0.000000e+00> : vector<128xf32>
    %10 = vector.multi_reduction <add>, %9, %cst_9 [0] : vector<256x128xf32> to vector<128xf32>
    %11 = vector.shape_cast %10 : vector<128xf32> to vector<1x128xf32>
    %12 = vector.shape_cast %11 : vector<1x128xf32> to vector<1x1x128xf32>
    %c0_10 = arith.constant 0 : index
    %c0_11 = arith.constant 0 : index
    %c0_12 = arith.constant 0 : index
    %13 = vector.load %arg6[%c0_10, %c0_11, %c0_12] : memref<1x1x128xf32, #tpu.memory_space<vmem>>, vector<1x1x128xf32>
    tpu.vector_store %arg6[%c0_10, %c0_11, %c0_12], %12 {strides = array<i32>} : memref<1x1x128xf32, #tpu.memory_space<vmem>>, vector<1x1x128xf32>,
    return
  }
  func.func @transform_0(%arg0: i32, %arg1: i32) -> (i32, i32) {
    %c0_i32 = arith.constant 0 : i32
    %c0_i32_0 = arith.constant 0 : i32
    return %arg0, %c0_i32 : i32, i32
  }
  func.func @transform_1(%arg0: i32, %arg1: i32) -> (i32, i32) {
    %c0_i32 = arith.constant 0 : i32
    %c0_i32_0 = arith.constant 0 : i32
    return %c0_i32, %arg1 : i32, i32
  }
  func.func @transform_2(%arg0: i32, %arg1: i32) -> (i32, i32) {
    %c0_i32 = arith.constant 0 : i32
    return %arg0, %arg1 : i32, i32
  }
  func.func @transform_3(%arg0: i32, %arg1: i32) -> (i32, i32, i32) {
    %c0_i32 = arith.constant 0 : i32
    %c0_i32_0 = arith.constant 0 : i32
    return %arg0, %c0_i32, %arg1 : i32, i32, i32
  }
  func.func @transform_4(%arg0: i32, %arg1: i32) -> (i32, i32, i32) {
    %c0_i32 = arith.constant 0 : i32
    %c0_i32_0 = arith.constant 0 : i32
    return %arg0, %c0_i32, %arg1 : i32, i32, i32
  }
}

module attributes {stable_mosaic.version = 11 : i64} {
  func.func @_bn_relu_max9_kernel(%arg0: i32, %arg1: memref<128x128xbf16, #tpu.memory_space<vmem>>, %arg2: memref<128x128xbf16, #tpu.memory_space<vmem>>, %arg3: memref<128x128xbf16, #tpu.memory_space<vmem>>, %arg4: memref<128x128xbf16, #tpu.memory_space<vmem>>, %arg5: memref<128x128xbf16, #tpu.memory_space<vmem>>, %arg6: memref<128x128xbf16, #tpu.memory_space<vmem>>, %arg7: memref<128x128xbf16, #tpu.memory_space<vmem>>, %arg8: memref<128x128xbf16, #tpu.memory_space<vmem>>, %arg9: memref<128x128xbf16, #tpu.memory_space<vmem>>, %arg10: memref<1x128xf32, #tpu.memory_space<vmem>>, %arg11: memref<1x128xf32, #tpu.memory_space<vmem>>, %arg12: memref<128x128xbf16, #tpu.memory_space<vmem>>) attributes {dimension_semantics = [#tpu.dimension_semantics<parallel>], iteration_bounds = array<i64: 1>, scalar_prefetch = 0 : i64, scratch_operands = 0 : i64, tpu.core_type = #tpu.core_type<tc>, window_params = [{transform_indices = @transform_0, window_bounds = array<i64: 128, 128>}, {transform_indices = @transform_1, window_bounds = array<i64: 128, 128>}, {transform_indices = @transform_2, window_bounds = array<i64: 128, 128>}, {transform_indices = @transform_3, window_bounds = array<i64: 128, 128>}, {transform_indices = @transform_4, window_bounds = array<i64: 128, 128>}, {transform_indices = @transform_5, window_bounds = array<i64: 128, 128>}, {transform_indices = @transform_6, window_bounds = array<i64: 128, 128>}, {transform_indices = @transform_7, window_bounds = array<i64: 128, 128>}, {transform_indices = @transform_8, window_bounds = array<i64: 128, 128>}, {pipeline_mode = #tpu.pipeline_mode<synchronous>, transform_indices = @transform_9, window_bounds = array<i64: 1, 128>}, {pipeline_mode = #tpu.pipeline_mode<synchronous>, transform_indices = @transform_10, window_bounds = array<i64: 1, 128>}, {transform_indices = @transform_11, window_bounds = array<i64: 128, 128>}]} {
    %c0 = arith.constant 0 : index
    %c0_0 = arith.constant 0 : index
    %0 = vector.load %arg10[%c0, %c0_0] : memref<1x128xf32, #tpu.memory_space<vmem>>, vector<1x128xf32>
    %c0_1 = arith.constant 0 : index
    %c0_2 = arith.constant 0 : index
    %1 = vector.load %arg11[%c0_1, %c0_2] : memref<1x128xf32, #tpu.memory_space<vmem>>, vector<1x128xf32>
    %c0_3 = arith.constant 0 : index
    %c0_4 = arith.constant 0 : index
    %2 = vector.load %arg1[%c0_3, %c0_4] : memref<128x128xbf16, #tpu.memory_space<vmem>>, vector<128x128xbf16>
    %3 = arith.extf %2 : vector<128x128xbf16> to vector<128x128xf32>
    %cst = arith.constant -5.000000e+29 : f32
    %4 = vector.broadcast %cst : f32 to vector<128x128xf32>
    %5 = arith.cmpf ogt, %3, %4 : vector<128x128xf32>
    %6 = vector.broadcast %0 : vector<1x128xf32> to vector<128x128xf32>
    %7 = arith.mulf %3, %6 : vector<128x128xf32>
    %8 = vector.broadcast %1 : vector<1x128xf32> to vector<128x128xf32>
    %9 = arith.addf %7, %8 : vector<128x128xf32>
    %cst_5 = arith.constant 0.000000e+00 : f32
    %10 = vector.broadcast %cst_5 : f32 to vector<128x128xf32>
    %11 = arith.maximumf %9, %10 : vector<128x128xf32>
    %cst_6 = arith.constant 0.000000e+00 : f32
    %12 = vector.broadcast %cst_6 : f32 to vector<128x128xf32>
    %13 = arith.select %5, %11, %12 : vector<128x128xi1>, vector<128x128xf32>
    %c0_7 = arith.constant 0 : index
    %c0_8 = arith.constant 0 : index
    %14 = vector.load %arg2[%c0_7, %c0_8] : memref<128x128xbf16, #tpu.memory_space<vmem>>, vector<128x128xbf16>
    %15 = arith.extf %14 : vector<128x128xbf16> to vector<128x128xf32>
    %cst_9 = arith.constant -5.000000e+29 : f32
    %16 = vector.broadcast %cst_9 : f32 to vector<128x128xf32>
    %17 = arith.cmpf ogt, %15, %16 : vector<128x128xf32>
    %18 = vector.broadcast %0 : vector<1x128xf32> to vector<128x128xf32>
    %19 = arith.mulf %15, %18 : vector<128x128xf32>
    %20 = vector.broadcast %1 : vector<1x128xf32> to vector<128x128xf32>
    %21 = arith.addf %19, %20 : vector<128x128xf32>
    %cst_10 = arith.constant 0.000000e+00 : f32
    %22 = vector.broadcast %cst_10 : f32 to vector<128x128xf32>
    %23 = arith.maximumf %21, %22 : vector<128x128xf32>
    %cst_11 = arith.constant 0.000000e+00 : f32
    %24 = vector.broadcast %cst_11 : f32 to vector<128x128xf32>
    %25 = arith.select %17, %23, %24 : vector<128x128xi1>, vector<128x128xf32>
    %26 = arith.maximumf %13, %25 : vector<128x128xf32>
    %c0_12 = arith.constant 0 : index
    %c0_13 = arith.constant 0 : index
    %27 = vector.load %arg3[%c0_12, %c0_13] : memref<128x128xbf16, #tpu.memory_space<vmem>>, vector<128x128xbf16>
    %28 = arith.extf %27 : vector<128x128xbf16> to vector<128x128xf32>
    %cst_14 = arith.constant -5.000000e+29 : f32
    %29 = vector.broadcast %cst_14 : f32 to vector<128x128xf32>
    %30 = arith.cmpf ogt, %28, %29 : vector<128x128xf32>
    %31 = vector.broadcast %0 : vector<1x128xf32> to vector<128x128xf32>
    %32 = arith.mulf %28, %31 : vector<128x128xf32>
    %33 = vector.broadcast %1 : vector<1x128xf32> to vector<128x128xf32>
    %34 = arith.addf %32, %33 : vector<128x128xf32>
    %cst_15 = arith.constant 0.000000e+00 : f32
    %35 = vector.broadcast %cst_15 : f32 to vector<128x128xf32>
    %36 = arith.maximumf %34, %35 : vector<128x128xf32>
    %cst_16 = arith.constant 0.000000e+00 : f32
    %37 = vector.broadcast %cst_16 : f32 to vector<128x128xf32>
    %38 = arith.select %30, %36, %37 : vector<128x128xi1>, vector<128x128xf32>
    %39 = arith.maximumf %26, %38 : vector<128x128xf32>
    %c0_17 = arith.constant 0 : index
    %c0_18 = arith.constant 0 : index
    %40 = vector.load %arg4[%c0_17, %c0_18] : memref<128x128xbf16, #tpu.memory_space<vmem>>, vector<128x128xbf16>
    %41 = arith.extf %40 : vector<128x128xbf16> to vector<128x128xf32>
    %cst_19 = arith.constant -5.000000e+29 : f32
    %42 = vector.broadcast %cst_19 : f32 to vector<128x128xf32>
    %43 = arith.cmpf ogt, %41, %42 : vector<128x128xf32>
    %44 = vector.broadcast %0 : vector<1x128xf32> to vector<128x128xf32>
    %45 = arith.mulf %41, %44 : vector<128x128xf32>
    %46 = vector.broadcast %1 : vector<1x128xf32> to vector<128x128xf32>
    %47 = arith.addf %45, %46 : vector<128x128xf32>
    %cst_20 = arith.constant 0.000000e+00 : f32
    %48 = vector.broadcast %cst_20 : f32 to vector<128x128xf32>
    %49 = arith.maximumf %47, %48 : vector<128x128xf32>
    %cst_21 = arith.constant 0.000000e+00 : f32
    %50 = vector.broadcast %cst_21 : f32 to vector<128x128xf32>
    %51 = arith.select %43, %49, %50 : vector<128x128xi1>, vector<128x128xf32>
    %52 = arith.maximumf %39, %51 : vector<128x128xf32>
    %c0_22 = arith.constant 0 : index
    %c0_23 = arith.constant 0 : index
    %53 = vector.load %arg5[%c0_22, %c0_23] : memref<128x128xbf16, #tpu.memory_space<vmem>>, vector<128x128xbf16>
    %54 = arith.extf %53 : vector<128x128xbf16> to vector<128x128xf32>
    %cst_24 = arith.constant -5.000000e+29 : f32
    %55 = vector.broadcast %cst_24 : f32 to vector<128x128xf32>
    %56 = arith.cmpf ogt, %54, %55 : vector<128x128xf32>
    %57 = vector.broadcast %0 : vector<1x128xf32> to vector<128x128xf32>
    %58 = arith.mulf %54, %57 : vector<128x128xf32>
    %59 = vector.broadcast %1 : vector<1x128xf32> to vector<128x128xf32>
    %60 = arith.addf %58, %59 : vector<128x128xf32>
    %cst_25 = arith.constant 0.000000e+00 : f32
    %61 = vector.broadcast %cst_25 : f32 to vector<128x128xf32>
    %62 = arith.maximumf %60, %61 : vector<128x128xf32>
    %cst_26 = arith.constant 0.000000e+00 : f32
    %63 = vector.broadcast %cst_26 : f32 to vector<128x128xf32>
    %64 = arith.select %56, %62, %63 : vector<128x128xi1>, vector<128x128xf32>
    %65 = arith.maximumf %52, %64 : vector<128x128xf32>
    %c0_27 = arith.constant 0 : index
    %c0_28 = arith.constant 0 : index
    %66 = vector.load %arg6[%c0_27, %c0_28] : memref<128x128xbf16, #tpu.memory_space<vmem>>, vector<128x128xbf16>
    %67 = arith.extf %66 : vector<128x128xbf16> to vector<128x128xf32>
    %cst_29 = arith.constant -5.000000e+29 : f32
    %68 = vector.broadcast %cst_29 : f32 to vector<128x128xf32>
    %69 = arith.cmpf ogt, %67, %68 : vector<128x128xf32>
    %70 = vector.broadcast %0 : vector<1x128xf32> to vector<128x128xf32>
    %71 = arith.mulf %67, %70 : vector<128x128xf32>
    %72 = vector.broadcast %1 : vector<1x128xf32> to vector<128x128xf32>
    %73 = arith.addf %71, %72 : vector<128x128xf32>
    %cst_30 = arith.constant 0.000000e+00 : f32
    %74 = vector.broadcast %cst_30 : f32 to vector<128x128xf32>
    %75 = arith.maximumf %73, %74 : vector<128x128xf32>
    %cst_31 = arith.constant 0.000000e+00 : f32
    %76 = vector.broadcast %cst_31 : f32 to vector<128x128xf32>
    %77 = arith.select %69, %75, %76 : vector<128x128xi1>, vector<128x128xf32>
    %78 = arith.maximumf %65, %77 : vector<128x128xf32>
    %c0_32 = arith.constant 0 : index
    %c0_33 = arith.constant 0 : index
    %79 = vector.load %arg7[%c0_32, %c0_33] : memref<128x128xbf16, #tpu.memory_space<vmem>>, vector<128x128xbf16>
    %80 = arith.extf %79 : vector<128x128xbf16> to vector<128x128xf32>
    %cst_34 = arith.constant -5.000000e+29 : f32
    %81 = vector.broadcast %cst_34 : f32 to vector<128x128xf32>
    %82 = arith.cmpf ogt, %80, %81 : vector<128x128xf32>
    %83 = vector.broadcast %0 : vector<1x128xf32> to vector<128x128xf32>
    %84 = arith.mulf %80, %83 : vector<128x128xf32>
    %85 = vector.broadcast %1 : vector<1x128xf32> to vector<128x128xf32>
    %86 = arith.addf %84, %85 : vector<128x128xf32>
    %cst_35 = arith.constant 0.000000e+00 : f32
    %87 = vector.broadcast %cst_35 : f32 to vector<128x128xf32>
    %88 = arith.maximumf %86, %87 : vector<128x128xf32>
    %cst_36 = arith.constant 0.000000e+00 : f32
    %89 = vector.broadcast %cst_36 : f32 to vector<128x128xf32>
    %90 = arith.select %82, %88, %89 : vector<128x128xi1>, vector<128x128xf32>
    %91 = arith.maximumf %78, %90 : vector<128x128xf32>
    %c0_37 = arith.constant 0 : index
    %c0_38 = arith.constant 0 : index
    %92 = vector.load %arg8[%c0_37, %c0_38] : memref<128x128xbf16, #tpu.memory_space<vmem>>, vector<128x128xbf16>
    %93 = arith.extf %92 : vector<128x128xbf16> to vector<128x128xf32>
    %cst_39 = arith.constant -5.000000e+29 : f32
    %94 = vector.broadcast %cst_39 : f32 to vector<128x128xf32>
    %95 = arith.cmpf ogt, %93, %94 : vector<128x128xf32>
    %96 = vector.broadcast %0 : vector<1x128xf32> to vector<128x128xf32>
    %97 = arith.mulf %93, %96 : vector<128x128xf32>
    %98 = vector.broadcast %1 : vector<1x128xf32> to vector<128x128xf32>
    %99 = arith.addf %97, %98 : vector<128x128xf32>
    %cst_40 = arith.constant 0.000000e+00 : f32
    %100 = vector.broadcast %cst_40 : f32 to vector<128x128xf32>
    %101 = arith.maximumf %99, %100 : vector<128x128xf32>
    %cst_41 = arith.constant 0.000000e+00 : f32
    %102 = vector.broadcast %cst_41 : f32 to vector<128x128xf32>
    %103 = arith.select %95, %101, %102 : vector<128x128xi1>, vector<128x128xf32>
    %104 = arith.maximumf %91, %103 : vector<128x128xf32>
    %c0_42 = arith.constant 0 : index
    %c0_43 = arith.constant 0 : index
    %105 = vector.load %arg9[%c0_42, %c0_43] : memref<128x128xbf16, #tpu.memory_space<vmem>>, vector<128x128xbf16>
    %106 = arith.extf %105 : vector<128x128xbf16> to vector<128x128xf32>
    %cst_44 = arith.constant -5.000000e+29 : f32
    %107 = vector.broadcast %cst_44 : f32 to vector<128x128xf32>
    %108 = arith.cmpf ogt, %106, %107 : vector<128x128xf32>
    %109 = vector.broadcast %0 : vector<1x128xf32> to vector<128x128xf32>
    %110 = arith.mulf %106, %109 : vector<128x128xf32>
    %111 = vector.broadcast %1 : vector<1x128xf32> to vector<128x128xf32>
    %112 = arith.addf %110, %111 : vector<128x128xf32>
    %cst_45 = arith.constant 0.000000e+00 : f32
    %113 = vector.broadcast %cst_45 : f32 to vector<128x128xf32>
    %114 = arith.maximumf %112, %113 : vector<128x128xf32>
    %cst_46 = arith.constant 0.000000e+00 : f32
    %115 = vector.broadcast %cst_46 : f32 to vector<128x128xf32>
    %116 = arith.select %108, %114, %115 : vector<128x128xi1>, vector<128x128xf32>
    %117 = arith.maximumf %104, %116 : vector<128x128xf32>
    %118 = arith.truncf %117 : vector<128x128xf32> to vector<128x128xbf16>
    %c0_47 = arith.constant 0 : index
    %c0_48 = arith.constant 0 : index
    %119 = vector.load %arg12[%c0_47, %c0_48] : memref<128x128xbf16, #tpu.memory_space<vmem>>, vector<128x128xbf16>
    tpu.vector_store %arg12[%c0_47, %c0_48], %118 {strides = array<i32>} : memref<128x128xbf16, #tpu.memory_space<vmem>>, vector<128x128xbf16>,
    return
  }
  func.func @transform_0(%arg0: i32) -> (i32, i32) {
    %c0_i32 = arith.constant 0 : i32
    %c0_i32_0 = arith.constant 0 : i32
    return %arg0, %c0_i32 : i32, i32
  }
  func.func @transform_1(%arg0: i32) -> (i32, i32) {
    %c0_i32 = arith.constant 0 : i32
    %c0_i32_0 = arith.constant 0 : i32
    return %arg0, %c0_i32 : i32, i32
  }
  func.func @transform_2(%arg0: i32) -> (i32, i32) {
    %c0_i32 = arith.constant 0 : i32
    %c0_i32_0 = arith.constant 0 : i32
    return %arg0, %c0_i32 : i32, i32
  }
  func.func @transform_3(%arg0: i32) -> (i32, i32) {
    %c0_i32 = arith.constant 0 : i32
    %c0_i32_0 = arith.constant 0 : i32
    return %arg0, %c0_i32 : i32, i32
  }
  func.func @transform_4(%arg0: i32) -> (i32, i32) {
    %c0_i32 = arith.constant 0 : i32
    %c0_i32_0 = arith.constant 0 : i32
    return %arg0, %c0_i32 : i32, i32
  }
  func.func @transform_5(%arg0: i32) -> (i32, i32) {
    %c0_i32 = arith.constant 0 : i32
    %c0_i32_0 = arith.constant 0 : i32
    return %arg0, %c0_i32 : i32, i32
  }
  func.func @transform_6(%arg0: i32) -> (i32, i32) {
    %c0_i32 = arith.constant 0 : i32
    %c0_i32_0 = arith.constant 0 : i32
    return %arg0, %c0_i32 : i32, i32
  }
  func.func @transform_7(%arg0: i32) -> (i32, i32) {
    %c0_i32 = arith.constant 0 : i32
    %c0_i32_0 = arith.constant 0 : i32
    return %arg0, %c0_i32 : i32, i32
  }
  func.func @transform_8(%arg0: i32) -> (i32, i32) {
    %c0_i32 = arith.constant 0 : i32
    %c0_i32_0 = arith.constant 0 : i32
    return %arg0, %c0_i32 : i32, i32
  }
  func.func @transform_9(%arg0: i32) -> (i32, i32) {
    %c0_i32 = arith.constant 0 : i32
    %c0_i32_0 = arith.constant 0 : i32
    %c0_i32_1 = arith.constant 0 : i32
    return %c0_i32, %c0_i32_0 : i32, i32
  }
  func.func @transform_10(%arg0: i32) -> (i32, i32) {
    %c0_i32 = arith.constant 0 : i32
    %c0_i32_0 = arith.constant 0 : i32
    %c0_i32_1 = arith.constant 0 : i32
    return %c0_i32, %c0_i32_0 : i32, i32
  }
  func.func @transform_11(%arg0: i32) -> (i32, i32) {
    %c0_i32 = arith.constant 0 : i32
    %c0_i32_0 = arith.constant 0 : i32
    return %arg0, %c0_i32 : i32, i32
  }
}

module attributes {stable_mosaic.version = 11 : i64} {
  func.func @_gemm_k1_kernel(%arg0: i32, %arg1: i32, %arg2: memref<128x640xbf16, #tpu.memory_space<vmem>>, %arg3: memref<640x128xbf16, #tpu.memory_space<vmem>>, %arg4: memref<128x128xbf16, #tpu.memory_space<vmem>>, %arg5: memref<1x1x128xf32, #tpu.memory_space<vmem>>, %arg6: memref<1x1x128xf32, #tpu.memory_space<vmem>>) attributes {dimension_semantics = [#tpu.dimension_semantics<parallel>, #tpu.dimension_semantics<parallel>], iteration_bounds = array<i64: 1, 1>, scalar_prefetch = 0 : i64, scratch_operands = 0 : i64, tpu.core_type = #tpu.core_type<tc>, window_params = [{transform_indices = @transform_0, window_bounds = array<i64: 128, 640>}, {transform_indices = @transform_1, window_bounds = array<i64: 640, 128>}, {transform_indices = @transform_2, window_bounds = array<i64: 128, 128>}, {transform_indices = @transform_3, window_bounds = array<i64: 1, 1, 128>}, {transform_indices = @transform_4, window_bounds = array<i64: 1, 1, 128>}]} {
    %c0 = arith.constant 0 : index
    %c0_0 = arith.constant 0 : index
    %0 = vector.load %arg2[%c0, %c0_0] : memref<128x640xbf16, #tpu.memory_space<vmem>>, vector<128x640xbf16>
    %c0_1 = arith.constant 0 : index
    %c0_2 = arith.constant 0 : index
    %1 = vector.load %arg3[%c0_1, %c0_2] : memref<640x128xbf16, #tpu.memory_space<vmem>>, vector<640x128xbf16>
    %cst = arith.constant dense<0.000000e+00> : vector<128x128xf32>
    %2 = tpu.matmul %0, %1, %cst {dimension_numbers = #tpu.dot_dimension_numbers<[1], [0], [0], [1], [0, 0, 1, 1], [], []>} : vector<128x640xbf16>, vector<640x128xbf16>, vector<128x128xf32> -> vector<128x128xf32>
    %3 = arith.truncf %2 : vector<128x128xf32> to vector<128x128xbf16>
    %c0_3 = arith.constant 0 : index
    %c0_4 = arith.constant 0 : index
    %4 = vector.load %arg4[%c0_3, %c0_4] : memref<128x128xbf16, #tpu.memory_space<vmem>>, vector<128x128xbf16>
    tpu.vector_store %arg4[%c0_3, %c0_4], %3 {strides = array<i32>} : memref<128x128xbf16, #tpu.memory_space<vmem>>, vector<128x128xbf16>,
    %cst_5 = arith.constant dense<0.000000e+00> : vector<128xf32>
    %5 = vector.multi_reduction <add>, %2, %cst_5 [0] : vector<128x128xf32> to vector<128xf32>
    %6 = vector.shape_cast %5 : vector<128xf32> to vector<1x128xf32>
    %7 = vector.shape_cast %6 : vector<1x128xf32> to vector<1x1x128xf32>
    %c0_6 = arith.constant 0 : index
    %c0_7 = arith.constant 0 : index
    %c0_8 = arith.constant 0 : index
    %8 = vector.load %arg5[%c0_6, %c0_7, %c0_8] : memref<1x1x128xf32, #tpu.memory_space<vmem>>, vector<1x1x128xf32>
    tpu.vector_store %arg5[%c0_6, %c0_7, %c0_8], %7 {strides = array<i32>} : memref<1x1x128xf32, #tpu.memory_space<vmem>>, vector<1x1x128xf32>,
    %9 = arith.mulf %2, %2 : vector<128x128xf32>
    %cst_9 = arith.constant dense<0.000000e+00> : vector<128xf32>
    %10 = vector.multi_reduction <add>, %9, %cst_9 [0] : vector<128x128xf32> to vector<128xf32>
    %11 = vector.shape_cast %10 : vector<128xf32> to vector<1x128xf32>
    %12 = vector.shape_cast %11 : vector<1x128xf32> to vector<1x1x128xf32>
    %c0_10 = arith.constant 0 : index
    %c0_11 = arith.constant 0 : index
    %c0_12 = arith.constant 0 : index
    %13 = vector.load %arg6[%c0_10, %c0_11, %c0_12] : memref<1x1x128xf32, #tpu.memory_space<vmem>>, vector<1x1x128xf32>
    tpu.vector_store %arg6[%c0_10, %c0_11, %c0_12], %12 {strides = array<i32>} : memref<1x1x128xf32, #tpu.memory_space<vmem>>, vector<1x1x128xf32>,
    return
  }
  func.func @transform_0(%arg0: i32, %arg1: i32) -> (i32, i32) {
    %c0_i32 = arith.constant 0 : i32
    %c0_i32_0 = arith.constant 0 : i32
    return %arg0, %c0_i32 : i32, i32
  }
  func.func @transform_1(%arg0: i32, %arg1: i32) -> (i32, i32) {
    %c0_i32 = arith.constant 0 : i32
    %c0_i32_0 = arith.constant 0 : i32
    return %c0_i32, %arg1 : i32, i32
  }
  func.func @transform_2(%arg0: i32, %arg1: i32) -> (i32, i32) {
    %c0_i32 = arith.constant 0 : i32
    return %arg0, %arg1 : i32, i32
  }
  func.func @transform_3(%arg0: i32, %arg1: i32) -> (i32, i32, i32) {
    %c0_i32 = arith.constant 0 : i32
    %c0_i32_0 = arith.constant 0 : i32
    return %arg0, %c0_i32, %arg1 : i32, i32, i32
  }
  func.func @transform_4(%arg0: i32, %arg1: i32) -> (i32, i32, i32) {
    %c0_i32 = arith.constant 0 : i32
    %c0_i32_0 = arith.constant 0 : i32
    return %arg0, %c0_i32, %arg1 : i32, i32, i32
  }
}

module attributes {stable_mosaic.version = 11 : i64} {
  func.func @_bn_kernel(%arg0: i32, %arg1: memref<128x128xbf16, #tpu.memory_space<vmem>>, %arg2: memref<1x128xf32, #tpu.memory_space<vmem>>, %arg3: memref<1x128xf32, #tpu.memory_space<vmem>>, %arg4: memref<128x128xbf16, #tpu.memory_space<vmem>>) attributes {dimension_semantics = [#tpu.dimension_semantics<parallel>], iteration_bounds = array<i64: 1>, scalar_prefetch = 0 : i64, scratch_operands = 0 : i64, tpu.core_type = #tpu.core_type<tc>, window_params = [{transform_indices = @transform_0, window_bounds = array<i64: 128, 128>}, {pipeline_mode = #tpu.pipeline_mode<synchronous>, transform_indices = @transform_1, window_bounds = array<i64: 1, 128>}, {pipeline_mode = #tpu.pipeline_mode<synchronous>, transform_indices = @transform_2, window_bounds = array<i64: 1, 128>}, {transform_indices = @transform_3, window_bounds = array<i64: 128, 128>}]} {
    %c0 = arith.constant 0 : index
    %c0_0 = arith.constant 0 : index
    %0 = vector.load %arg1[%c0, %c0_0] : memref<128x128xbf16, #tpu.memory_space<vmem>>, vector<128x128xbf16>
    %1 = arith.extf %0 : vector<128x128xbf16> to vector<128x128xf32>
    %c0_1 = arith.constant 0 : index
    %c0_2 = arith.constant 0 : index
    %2 = vector.load %arg2[%c0_1, %c0_2] : memref<1x128xf32, #tpu.memory_space<vmem>>, vector<1x128xf32>
    %3 = vector.broadcast %2 : vector<1x128xf32> to vector<128x128xf32>
    %4 = arith.mulf %1, %3 : vector<128x128xf32>
    %c0_3 = arith.constant 0 : index
    %c0_4 = arith.constant 0 : index
    %5 = vector.load %arg3[%c0_3, %c0_4] : memref<1x128xf32, #tpu.memory_space<vmem>>, vector<1x128xf32>
    %6 = vector.broadcast %5 : vector<1x128xf32> to vector<128x128xf32>
    %7 = arith.addf %4, %6 : vector<128x128xf32>
    %cst = arith.constant 0.000000e+00 : f32
    %8 = vector.broadcast %cst : f32 to vector<128x128xf32>
    %9 = arith.maximumf %7, %8 : vector<128x128xf32>
    %10 = arith.truncf %9 : vector<128x128xf32> to vector<128x128xbf16>
    %c0_5 = arith.constant 0 : index
    %c0_6 = arith.constant 0 : index
    %11 = vector.load %arg4[%c0_5, %c0_6] : memref<128x128xbf16, #tpu.memory_space<vmem>>, vector<128x128xbf16>
    tpu.vector_store %arg4[%c0_5, %c0_6], %10 {strides = array<i32>} : memref<128x128xbf16, #tpu.memory_space<vmem>>, vector<128x128xbf16>,
    return
  }
  func.func @transform_0(%arg0: i32) -> (i32, i32) {
    %c0_i32 = arith.constant 0 : i32
    %c0_i32_0 = arith.constant 0 : i32
    return %arg0, %c0_i32 : i32, i32
  }
  func.func @transform_1(%arg0: i32) -> (i32, i32) {
    %c0_i32 = arith.constant 0 : i32
    %c0_i32_0 = arith.constant 0 : i32
    %c0_i32_1 = arith.constant 0 : i32
    return %c0_i32, %c0_i32_0 : i32, i32
  }
  func.func @transform_2(%arg0: i32) -> (i32, i32) {
    %c0_i32 = arith.constant 0 : i32
    %c0_i32_0 = arith.constant 0 : i32
    %c0_i32_1 = arith.constant 0 : i32
    return %c0_i32, %c0_i32_0 : i32, i32
  }
  func.func @transform_3(%arg0: i32) -> (i32, i32) {
    %c0_i32 = arith.constant 0 : i32
    %c0_i32_0 = arith.constant 0 : i32
    return %arg0, %c0_i32 : i32, i32
  }
}

module attributes {stable_mosaic.version = 11 : i64} {
  func.func @_bn_res_kernel(%arg0: i32, %arg1: memref<128x128xbf16, #tpu.memory_space<vmem>>, %arg2: memref<128x128xbf16, #tpu.memory_space<vmem>>, %arg3: memref<1x128xf32, #tpu.memory_space<vmem>>, %arg4: memref<1x128xf32, #tpu.memory_space<vmem>>, %arg5: memref<128x128xbf16, #tpu.memory_space<vmem>>) attributes {dimension_semantics = [#tpu.dimension_semantics<parallel>], iteration_bounds = array<i64: 1>, scalar_prefetch = 0 : i64, scratch_operands = 0 : i64, tpu.core_type = #tpu.core_type<tc>, window_params = [{transform_indices = @transform_0, window_bounds = array<i64: 128, 128>}, {transform_indices = @transform_1, window_bounds = array<i64: 128, 128>}, {pipeline_mode = #tpu.pipeline_mode<synchronous>, transform_indices = @transform_2, window_bounds = array<i64: 1, 128>}, {pipeline_mode = #tpu.pipeline_mode<synchronous>, transform_indices = @transform_3, window_bounds = array<i64: 1, 128>}, {transform_indices = @transform_4, window_bounds = array<i64: 128, 128>}]} {
    %c0 = arith.constant 0 : index
    %c0_0 = arith.constant 0 : index
    %0 = vector.load %arg1[%c0, %c0_0] : memref<128x128xbf16, #tpu.memory_space<vmem>>, vector<128x128xbf16>
    %1 = arith.extf %0 : vector<128x128xbf16> to vector<128x128xf32>
    %c0_1 = arith.constant 0 : index
    %c0_2 = arith.constant 0 : index
    %2 = vector.load %arg3[%c0_1, %c0_2] : memref<1x128xf32, #tpu.memory_space<vmem>>, vector<1x128xf32>
    %3 = vector.broadcast %2 : vector<1x128xf32> to vector<128x128xf32>
    %4 = arith.mulf %1, %3 : vector<128x128xf32>
    %c0_3 = arith.constant 0 : index
    %c0_4 = arith.constant 0 : index
    %5 = vector.load %arg4[%c0_3, %c0_4] : memref<1x128xf32, #tpu.memory_space<vmem>>, vector<1x128xf32>
    %6 = vector.broadcast %5 : vector<1x128xf32> to vector<128x128xf32>
    %7 = arith.addf %4, %6 : vector<128x128xf32>
    %c0_5 = arith.constant 0 : index
    %c0_6 = arith.constant 0 : index
    %8 = vector.load %arg2[%c0_5, %c0_6] : memref<128x128xbf16, #tpu.memory_space<vmem>>, vector<128x128xbf16>
    %9 = arith.extf %8 : vector<128x128xbf16> to vector<128x128xf32>
    %10 = arith.addf %7, %9 : vector<128x128xf32>
    %cst = arith.constant 0.000000e+00 : f32
    %11 = vector.broadcast %cst : f32 to vector<128x128xf32>
    %12 = arith.maximumf %10, %11 : vector<128x128xf32>
    %13 = arith.truncf %12 : vector<128x128xf32> to vector<128x128xbf16>
    %c0_7 = arith.constant 0 : index
    %c0_8 = arith.constant 0 : index
    %14 = vector.load %arg5[%c0_7, %c0_8] : memref<128x128xbf16, #tpu.memory_space<vmem>>, vector<128x128xbf16>
    tpu.vector_store %arg5[%c0_7, %c0_8], %13 {strides = array<i32>} : memref<128x128xbf16, #tpu.memory_space<vmem>>, vector<128x128xbf16>,
    return
  }
  func.func @transform_0(%arg0: i32) -> (i32, i32) {
    %c0_i32 = arith.constant 0 : i32
    %c0_i32_0 = arith.constant 0 : i32
    return %arg0, %c0_i32 : i32, i32
  }
  func.func @transform_1(%arg0: i32) -> (i32, i32) {
    %c0_i32 = arith.constant 0 : i32
    %c0_i32_0 = arith.constant 0 : i32
    return %arg0, %c0_i32 : i32, i32
  }
  func.func @transform_2(%arg0: i32) -> (i32, i32) {
    %c0_i32 = arith.constant 0 : i32
    %c0_i32_0 = arith.constant 0 : i32
    %c0_i32_1 = arith.constant 0 : i32
    return %c0_i32, %c0_i32_0 : i32, i32
  }
  func.func @transform_3(%arg0: i32) -> (i32, i32) {
    %c0_i32 = arith.constant 0 : i32
    %c0_i32_0 = arith.constant 0 : i32
    %c0_i32_1 = arith.constant 0 : i32
    return %c0_i32, %c0_i32_0 : i32, i32
  }
  func.func @transform_4(%arg0: i32) -> (i32, i32) {
    %c0_i32 = arith.constant 0 : i32
    %c0_i32_0 = arith.constant 0 : i32
    return %arg0, %c0_i32 : i32, i32
  }
}

module attributes {stable_mosaic.version = 11 : i64} {
  func.func @_gemm_k1_kernel(%arg0: i32, %arg1: i32, %arg2: memref<32x640xbf16, #tpu.memory_space<vmem>>, %arg3: memref<640x256xbf16, #tpu.memory_space<vmem>>, %arg4: memref<32x256xbf16, #tpu.memory_space<vmem>>, %arg5: memref<1x1x256xf32, #tpu.memory_space<vmem>>, %arg6: memref<1x1x256xf32, #tpu.memory_space<vmem>>) attributes {dimension_semantics = [#tpu.dimension_semantics<parallel>, #tpu.dimension_semantics<parallel>], iteration_bounds = array<i64: 1, 1>, scalar_prefetch = 0 : i64, scratch_operands = 0 : i64, tpu.core_type = #tpu.core_type<tc>, window_params = [{transform_indices = @transform_0, window_bounds = array<i64: 32, 640>}, {transform_indices = @transform_1, window_bounds = array<i64: 640, 256>}, {transform_indices = @transform_2, window_bounds = array<i64: 32, 256>}, {transform_indices = @transform_3, window_bounds = array<i64: 1, 1, 256>}, {transform_indices = @transform_4, window_bounds = array<i64: 1, 1, 256>}]} {
    %c0 = arith.constant 0 : index
    %c0_0 = arith.constant 0 : index
    %0 = vector.load %arg2[%c0, %c0_0] : memref<32x640xbf16, #tpu.memory_space<vmem>>, vector<32x640xbf16>
    %c0_1 = arith.constant 0 : index
    %c0_2 = arith.constant 0 : index
    %1 = vector.load %arg3[%c0_1, %c0_2] : memref<640x256xbf16, #tpu.memory_space<vmem>>, vector<640x256xbf16>
    %cst = arith.constant dense<0.000000e+00> : vector<32x256xf32>
    %2 = tpu.matmul %0, %1, %cst {dimension_numbers = #tpu.dot_dimension_numbers<[1], [0], [0], [1], [0, 0, 1, 1], [], []>} : vector<32x640xbf16>, vector<640x256xbf16>, vector<32x256xf32> -> vector<32x256xf32>
    %3 = arith.truncf %2 : vector<32x256xf32> to vector<32x256xbf16>
    %c0_3 = arith.constant 0 : index
    %c0_4 = arith.constant 0 : index
    %4 = vector.load %arg4[%c0_3, %c0_4] : memref<32x256xbf16, #tpu.memory_space<vmem>>, vector<32x256xbf16>
    tpu.vector_store %arg4[%c0_3, %c0_4], %3 {strides = array<i32>} : memref<32x256xbf16, #tpu.memory_space<vmem>>, vector<32x256xbf16>,
    %cst_5 = arith.constant dense<0.000000e+00> : vector<256xf32>
    %5 = vector.multi_reduction <add>, %2, %cst_5 [0] : vector<32x256xf32> to vector<256xf32>
    %6 = vector.shape_cast %5 : vector<256xf32> to vector<1x256xf32>
    %7 = vector.shape_cast %6 : vector<1x256xf32> to vector<1x1x256xf32>
    %c0_6 = arith.constant 0 : index
    %c0_7 = arith.constant 0 : index
    %c0_8 = arith.constant 0 : index
    %8 = vector.load %arg5[%c0_6, %c0_7, %c0_8] : memref<1x1x256xf32, #tpu.memory_space<vmem>>, vector<1x1x256xf32>
    tpu.vector_store %arg5[%c0_6, %c0_7, %c0_8], %7 {strides = array<i32>} : memref<1x1x256xf32, #tpu.memory_space<vmem>>, vector<1x1x256xf32>,
    %9 = arith.mulf %2, %2 : vector<32x256xf32>
    %cst_9 = arith.constant dense<0.000000e+00> : vector<256xf32>
    %10 = vector.multi_reduction <add>, %9, %cst_9 [0] : vector<32x256xf32> to vector<256xf32>
    %11 = vector.shape_cast %10 : vector<256xf32> to vector<1x256xf32>
    %12 = vector.shape_cast %11 : vector<1x256xf32> to vector<1x1x256xf32>
    %c0_10 = arith.constant 0 : index
    %c0_11 = arith.constant 0 : index
    %c0_12 = arith.constant 0 : index
    %13 = vector.load %arg6[%c0_10, %c0_11, %c0_12] : memref<1x1x256xf32, #tpu.memory_space<vmem>>, vector<1x1x256xf32>
    tpu.vector_store %arg6[%c0_10, %c0_11, %c0_12], %12 {strides = array<i32>} : memref<1x1x256xf32, #tpu.memory_space<vmem>>, vector<1x1x256xf32>,
    return
  }
  func.func @transform_0(%arg0: i32, %arg1: i32) -> (i32, i32) {
    %c0_i32 = arith.constant 0 : i32
    %c0_i32_0 = arith.constant 0 : i32
    return %arg0, %c0_i32 : i32, i32
  }
  func.func @transform_1(%arg0: i32, %arg1: i32) -> (i32, i32) {
    %c0_i32 = arith.constant 0 : i32
    %c0_i32_0 = arith.constant 0 : i32
    return %c0_i32, %arg1 : i32, i32
  }
  func.func @transform_2(%arg0: i32, %arg1: i32) -> (i32, i32) {
    %c0_i32 = arith.constant 0 : i32
    return %arg0, %arg1 : i32, i32
  }
  func.func @transform_3(%arg0: i32, %arg1: i32) -> (i32, i32, i32) {
    %c0_i32 = arith.constant 0 : i32
    %c0_i32_0 = arith.constant 0 : i32
    return %arg0, %c0_i32, %arg1 : i32, i32, i32
  }
  func.func @transform_4(%arg0: i32, %arg1: i32) -> (i32, i32, i32) {
    %c0_i32 = arith.constant 0 : i32
    %c0_i32_0 = arith.constant 0 : i32
    return %arg0, %c0_i32, %arg1 : i32, i32, i32
  }
}

module attributes {stable_mosaic.version = 11 : i64} {
  func.func @_bn_kernel(%arg0: i32, %arg1: memref<32x128xbf16, #tpu.memory_space<vmem>>, %arg2: memref<1x128xf32, #tpu.memory_space<vmem>>, %arg3: memref<1x128xf32, #tpu.memory_space<vmem>>, %arg4: memref<32x128xbf16, #tpu.memory_space<vmem>>) attributes {dimension_semantics = [#tpu.dimension_semantics<parallel>], iteration_bounds = array<i64: 1>, scalar_prefetch = 0 : i64, scratch_operands = 0 : i64, tpu.core_type = #tpu.core_type<tc>, window_params = [{transform_indices = @transform_0, window_bounds = array<i64: 32, 128>}, {pipeline_mode = #tpu.pipeline_mode<synchronous>, transform_indices = @transform_1, window_bounds = array<i64: 1, 128>}, {pipeline_mode = #tpu.pipeline_mode<synchronous>, transform_indices = @transform_2, window_bounds = array<i64: 1, 128>}, {transform_indices = @transform_3, window_bounds = array<i64: 32, 128>}]} {
    %c0 = arith.constant 0 : index
    %c0_0 = arith.constant 0 : index
    %0 = vector.load %arg1[%c0, %c0_0] : memref<32x128xbf16, #tpu.memory_space<vmem>>, vector<32x128xbf16>
    %1 = arith.extf %0 : vector<32x128xbf16> to vector<32x128xf32>
    %c0_1 = arith.constant 0 : index
    %c0_2 = arith.constant 0 : index
    %2 = vector.load %arg2[%c0_1, %c0_2] : memref<1x128xf32, #tpu.memory_space<vmem>>, vector<1x128xf32>
    %3 = vector.broadcast %2 : vector<1x128xf32> to vector<32x128xf32>
    %4 = arith.mulf %1, %3 : vector<32x128xf32>
    %c0_3 = arith.constant 0 : index
    %c0_4 = arith.constant 0 : index
    %5 = vector.load %arg3[%c0_3, %c0_4] : memref<1x128xf32, #tpu.memory_space<vmem>>, vector<1x128xf32>
    %6 = vector.broadcast %5 : vector<1x128xf32> to vector<32x128xf32>
    %7 = arith.addf %4, %6 : vector<32x128xf32>
    %cst = arith.constant 0.000000e+00 : f32
    %8 = vector.broadcast %cst : f32 to vector<32x128xf32>
    %9 = arith.maximumf %7, %8 : vector<32x128xf32>
    %10 = arith.truncf %9 : vector<32x128xf32> to vector<32x128xbf16>
    %c0_5 = arith.constant 0 : index
    %c0_6 = arith.constant 0 : index
    %11 = vector.load %arg4[%c0_5, %c0_6] : memref<32x128xbf16, #tpu.memory_space<vmem>>, vector<32x128xbf16>
    tpu.vector_store %arg4[%c0_5, %c0_6], %10 {strides = array<i32>} : memref<32x128xbf16, #tpu.memory_space<vmem>>, vector<32x128xbf16>,
    return
  }
  func.func @transform_0(%arg0: i32) -> (i32, i32) {
    %c0_i32 = arith.constant 0 : i32
    %c0_i32_0 = arith.constant 0 : i32
    return %arg0, %c0_i32 : i32, i32
  }
  func.func @transform_1(%arg0: i32) -> (i32, i32) {
    %c0_i32 = arith.constant 0 : i32
    %c0_i32_0 = arith.constant 0 : i32
    %c0_i32_1 = arith.constant 0 : i32
    return %c0_i32, %c0_i32_0 : i32, i32
  }
  func.func @transform_2(%arg0: i32) -> (i32, i32) {
    %c0_i32 = arith.constant 0 : i32
    %c0_i32_0 = arith.constant 0 : i32
    %c0_i32_1 = arith.constant 0 : i32
    return %c0_i32, %c0_i32_0 : i32, i32
  }
  func.func @transform_3(%arg0: i32) -> (i32, i32) {
    %c0_i32 = arith.constant 0 : i32
    %c0_i32_0 = arith.constant 0 : i32
    return %arg0, %c0_i32 : i32, i32
  }
}

module attributes {stable_mosaic.version = 11 : i64} {
  func.func @_gemm_k1_kernel(%arg0: i32, %arg1: i32, %arg2: memref<32x1152xbf16, #tpu.memory_space<vmem>>, %arg3: memref<1152x128xbf16, #tpu.memory_space<vmem>>, %arg4: memref<32x128xbf16, #tpu.memory_space<vmem>>, %arg5: memref<1x1x128xf32, #tpu.memory_space<vmem>>, %arg6: memref<1x1x128xf32, #tpu.memory_space<vmem>>) attributes {dimension_semantics = [#tpu.dimension_semantics<parallel>, #tpu.dimension_semantics<parallel>], iteration_bounds = array<i64: 1, 1>, scalar_prefetch = 0 : i64, scratch_operands = 0 : i64, tpu.core_type = #tpu.core_type<tc>, window_params = [{transform_indices = @transform_0, window_bounds = array<i64: 32, 1152>}, {transform_indices = @transform_1, window_bounds = array<i64: 1152, 128>}, {transform_indices = @transform_2, window_bounds = array<i64: 32, 128>}, {transform_indices = @transform_3, window_bounds = array<i64: 1, 1, 128>}, {transform_indices = @transform_4, window_bounds = array<i64: 1, 1, 128>}]} {
    %c0 = arith.constant 0 : index
    %c0_0 = arith.constant 0 : index
    %0 = vector.load %arg2[%c0, %c0_0] : memref<32x1152xbf16, #tpu.memory_space<vmem>>, vector<32x1152xbf16>
    %c0_1 = arith.constant 0 : index
    %c0_2 = arith.constant 0 : index
    %1 = vector.load %arg3[%c0_1, %c0_2] : memref<1152x128xbf16, #tpu.memory_space<vmem>>, vector<1152x128xbf16>
    %cst = arith.constant dense<0.000000e+00> : vector<32x128xf32>
    %2 = tpu.matmul %0, %1, %cst {dimension_numbers = #tpu.dot_dimension_numbers<[1], [0], [0], [1], [0, 0, 1, 1], [], []>} : vector<32x1152xbf16>, vector<1152x128xbf16>, vector<32x128xf32> -> vector<32x128xf32>
    %3 = arith.truncf %2 : vector<32x128xf32> to vector<32x128xbf16>
    %c0_3 = arith.constant 0 : index
    %c0_4 = arith.constant 0 : index
    %4 = vector.load %arg4[%c0_3, %c0_4] : memref<32x128xbf16, #tpu.memory_space<vmem>>, vector<32x128xbf16>
    tpu.vector_store %arg4[%c0_3, %c0_4], %3 {strides = array<i32>} : memref<32x128xbf16, #tpu.memory_space<vmem>>, vector<32x128xbf16>,
    %cst_5 = arith.constant dense<0.000000e+00> : vector<128xf32>
    %5 = vector.multi_reduction <add>, %2, %cst_5 [0] : vector<32x128xf32> to vector<128xf32>
    %6 = vector.shape_cast %5 : vector<128xf32> to vector<1x128xf32>
    %7 = vector.shape_cast %6 : vector<1x128xf32> to vector<1x1x128xf32>
    %c0_6 = arith.constant 0 : index
    %c0_7 = arith.constant 0 : index
    %c0_8 = arith.constant 0 : index
    %8 = vector.load %arg5[%c0_6, %c0_7, %c0_8] : memref<1x1x128xf32, #tpu.memory_space<vmem>>, vector<1x1x128xf32>
    tpu.vector_store %arg5[%c0_6, %c0_7, %c0_8], %7 {strides = array<i32>} : memref<1x1x128xf32, #tpu.memory_space<vmem>>, vector<1x1x128xf32>,
    %9 = arith.mulf %2, %2 : vector<32x128xf32>
    %cst_9 = arith.constant dense<0.000000e+00> : vector<128xf32>
    %10 = vector.multi_reduction <add>, %9, %cst_9 [0] : vector<32x128xf32> to vector<128xf32>
    %11 = vector.shape_cast %10 : vector<128xf32> to vector<1x128xf32>
    %12 = vector.shape_cast %11 : vector<1x128xf32> to vector<1x1x128xf32>
    %c0_10 = arith.constant 0 : index
    %c0_11 = arith.constant 0 : index
    %c0_12 = arith.constant 0 : index
    %13 = vector.load %arg6[%c0_10, %c0_11, %c0_12] : memref<1x1x128xf32, #tpu.memory_space<vmem>>, vector<1x1x128xf32>
    tpu.vector_store %arg6[%c0_10, %c0_11, %c0_12], %12 {strides = array<i32>} : memref<1x1x128xf32, #tpu.memory_space<vmem>>, vector<1x1x128xf32>,
    return
  }
  func.func @transform_0(%arg0: i32, %arg1: i32) -> (i32, i32) {
    %c0_i32 = arith.constant 0 : i32
    %c0_i32_0 = arith.constant 0 : i32
    return %arg0, %c0_i32 : i32, i32
  }
  func.func @transform_1(%arg0: i32, %arg1: i32) -> (i32, i32) {
    %c0_i32 = arith.constant 0 : i32
    %c0_i32_0 = arith.constant 0 : i32
    return %c0_i32, %arg1 : i32, i32
  }
  func.func @transform_2(%arg0: i32, %arg1: i32) -> (i32, i32) {
    %c0_i32 = arith.constant 0 : i32
    return %arg0, %arg1 : i32, i32
  }
  func.func @transform_3(%arg0: i32, %arg1: i32) -> (i32, i32, i32) {
    %c0_i32 = arith.constant 0 : i32
    %c0_i32_0 = arith.constant 0 : i32
    return %arg0, %c0_i32, %arg1 : i32, i32, i32
  }
  func.func @transform_4(%arg0: i32, %arg1: i32) -> (i32, i32, i32) {
    %c0_i32 = arith.constant 0 : i32
    %c0_i32_0 = arith.constant 0 : i32
    return %arg0, %c0_i32, %arg1 : i32, i32, i32
  }
}

module attributes {stable_mosaic.version = 11 : i64} {
  func.func @_bn_res_affine_kernel(%arg0: i32, %arg1: memref<32x128xbf16, #tpu.memory_space<vmem>>, %arg2: memref<32x128xbf16, #tpu.memory_space<vmem>>, %arg3: memref<1x128xf32, #tpu.memory_space<vmem>>, %arg4: memref<1x128xf32, #tpu.memory_space<vmem>>, %arg5: memref<1x128xf32, #tpu.memory_space<vmem>>, %arg6: memref<1x128xf32, #tpu.memory_space<vmem>>, %arg7: memref<32x128xbf16, #tpu.memory_space<vmem>>) attributes {dimension_semantics = [#tpu.dimension_semantics<parallel>], iteration_bounds = array<i64: 1>, scalar_prefetch = 0 : i64, scratch_operands = 0 : i64, tpu.core_type = #tpu.core_type<tc>, window_params = [{transform_indices = @transform_0, window_bounds = array<i64: 32, 128>}, {transform_indices = @transform_1, window_bounds = array<i64: 32, 128>}, {pipeline_mode = #tpu.pipeline_mode<synchronous>, transform_indices = @transform_2, window_bounds = array<i64: 1, 128>}, {pipeline_mode = #tpu.pipeline_mode<synchronous>, transform_indices = @transform_3, window_bounds = array<i64: 1, 128>}, {pipeline_mode = #tpu.pipeline_mode<synchronous>, transform_indices = @transform_4, window_bounds = array<i64: 1, 128>}, {pipeline_mode = #tpu.pipeline_mode<synchronous>, transform_indices = @transform_5, window_bounds = array<i64: 1, 128>}, {transform_indices = @transform_6, window_bounds = array<i64: 32, 128>}]} {
    %c0 = arith.constant 0 : index
    %c0_0 = arith.constant 0 : index
    %0 = vector.load %arg1[%c0, %c0_0] : memref<32x128xbf16, #tpu.memory_space<vmem>>, vector<32x128xbf16>
    %1 = arith.extf %0 : vector<32x128xbf16> to vector<32x128xf32>
    %c0_1 = arith.constant 0 : index
    %c0_2 = arith.constant 0 : index
    %2 = vector.load %arg3[%c0_1, %c0_2] : memref<1x128xf32, #tpu.memory_space<vmem>>, vector<1x128xf32>
    %3 = vector.broadcast %2 : vector<1x128xf32> to vector<32x128xf32>
    %4 = arith.mulf %1, %3 : vector<32x128xf32>
    %c0_3 = arith.constant 0 : index
    %c0_4 = arith.constant 0 : index
    %5 = vector.load %arg4[%c0_3, %c0_4] : memref<1x128xf32, #tpu.memory_space<vmem>>, vector<1x128xf32>
    %6 = vector.broadcast %5 : vector<1x128xf32> to vector<32x128xf32>
    %7 = arith.addf %4, %6 : vector<32x128xf32>
    %c0_5 = arith.constant 0 : index
    %c0_6 = arith.constant 0 : index
    %8 = vector.load %arg2[%c0_5, %c0_6] : memref<32x128xbf16, #tpu.memory_space<vmem>>, vector<32x128xbf16>
    %9 = arith.extf %8 : vector<32x128xbf16> to vector<32x128xf32>
    %c0_7 = arith.constant 0 : index
    %c0_8 = arith.constant 0 : index
    %10 = vector.load %arg5[%c0_7, %c0_8] : memref<1x128xf32, #tpu.memory_space<vmem>>, vector<1x128xf32>
    %11 = vector.broadcast %10 : vector<1x128xf32> to vector<32x128xf32>
    %12 = arith.mulf %9, %11 : vector<32x128xf32>
    %13 = arith.addf %7, %12 : vector<32x128xf32>
    %c0_9 = arith.constant 0 : index
    %c0_10 = arith.constant 0 : index
    %14 = vector.load %arg6[%c0_9, %c0_10] : memref<1x128xf32, #tpu.memory_space<vmem>>, vector<1x128xf32>
    %15 = vector.broadcast %14 : vector<1x128xf32> to vector<32x128xf32>
    %16 = arith.addf %13, %15 : vector<32x128xf32>
    %cst = arith.constant 0.000000e+00 : f32
    %17 = vector.broadcast %cst : f32 to vector<32x128xf32>
    %18 = arith.maximumf %16, %17 : vector<32x128xf32>
    %19 = arith.truncf %18 : vector<32x128xf32> to vector<32x128xbf16>
    %c0_11 = arith.constant 0 : index
    %c0_12 = arith.constant 0 : index
    %20 = vector.load %arg7[%c0_11, %c0_12] : memref<32x128xbf16, #tpu.memory_space<vmem>>, vector<32x128xbf16>
    tpu.vector_store %arg7[%c0_11, %c0_12], %19 {strides = array<i32>} : memref<32x128xbf16, #tpu.memory_space<vmem>>, vector<32x128xbf16>,
    return
  }
  func.func @transform_0(%arg0: i32) -> (i32, i32) {
    %c0_i32 = arith.constant 0 : i32
    %c0_i32_0 = arith.constant 0 : i32
    return %arg0, %c0_i32 : i32, i32
  }
  func.func @transform_1(%arg0: i32) -> (i32, i32) {
    %c0_i32 = arith.constant 0 : i32
    %c0_i32_0 = arith.constant 0 : i32
    return %arg0, %c0_i32 : i32, i32
  }
  func.func @transform_2(%arg0: i32) -> (i32, i32) {
    %c0_i32 = arith.constant 0 : i32
    %c0_i32_0 = arith.constant 0 : i32
    %c0_i32_1 = arith.constant 0 : i32
    return %c0_i32, %c0_i32_0 : i32, i32
  }
  func.func @transform_3(%arg0: i32) -> (i32, i32) {
    %c0_i32 = arith.constant 0 : i32
    %c0_i32_0 = arith.constant 0 : i32
    %c0_i32_1 = arith.constant 0 : i32
    return %c0_i32, %c0_i32_0 : i32, i32
  }
  func.func @transform_4(%arg0: i32) -> (i32, i32) {
    %c0_i32 = arith.constant 0 : i32
    %c0_i32_0 = arith.constant 0 : i32
    %c0_i32_1 = arith.constant 0 : i32
    return %c0_i32, %c0_i32_0 : i32, i32
  }
  func.func @transform_5(%arg0: i32) -> (i32, i32) {
    %c0_i32 = arith.constant 0 : i32
    %c0_i32_0 = arith.constant 0 : i32
    %c0_i32_1 = arith.constant 0 : i32
    return %c0_i32, %c0_i32_0 : i32, i32
  }
  func.func @transform_6(%arg0: i32) -> (i32, i32) {
    %c0_i32 = arith.constant 0 : i32
    %c0_i32_0 = arith.constant 0 : i32
    return %arg0, %c0_i32 : i32, i32
  }
}

module attributes {stable_mosaic.version = 11 : i64} {
  func.func @_gemm_k1_kernel(%arg0: i32, %arg1: i32, %arg2: memref<16x1152xbf16, #tpu.memory_space<vmem>>, %arg3: memref<1152x256xbf16, #tpu.memory_space<vmem>>, %arg4: memref<16x256xbf16, #tpu.memory_space<vmem>>, %arg5: memref<1x1x256xf32, #tpu.memory_space<vmem>>, %arg6: memref<1x1x256xf32, #tpu.memory_space<vmem>>) attributes {dimension_semantics = [#tpu.dimension_semantics<parallel>, #tpu.dimension_semantics<parallel>], iteration_bounds = array<i64: 1, 2>, scalar_prefetch = 0 : i64, scratch_operands = 0 : i64, tpu.core_type = #tpu.core_type<tc>, window_params = [{transform_indices = @transform_0, window_bounds = array<i64: 16, 1152>}, {transform_indices = @transform_1, window_bounds = array<i64: 1152, 256>}, {transform_indices = @transform_2, window_bounds = array<i64: 16, 256>}, {transform_indices = @transform_3, window_bounds = array<i64: 1, 1, 256>}, {transform_indices = @transform_4, window_bounds = array<i64: 1, 1, 256>}]} {
    %c0 = arith.constant 0 : index
    %c0_0 = arith.constant 0 : index
    %0 = vector.load %arg2[%c0, %c0_0] : memref<16x1152xbf16, #tpu.memory_space<vmem>>, vector<16x1152xbf16>
    %c0_1 = arith.constant 0 : index
    %c0_2 = arith.constant 0 : index
    %1 = vector.load %arg3[%c0_1, %c0_2] : memref<1152x256xbf16, #tpu.memory_space<vmem>>, vector<1152x256xbf16>
    %cst = arith.constant dense<0.000000e+00> : vector<16x256xf32>
    %2 = tpu.matmul %0, %1, %cst {dimension_numbers = #tpu.dot_dimension_numbers<[1], [0], [0], [1], [0, 0, 1, 1], [], []>} : vector<16x1152xbf16>, vector<1152x256xbf16>, vector<16x256xf32> -> vector<16x256xf32>
    %3 = arith.truncf %2 : vector<16x256xf32> to vector<16x256xbf16>
    %c0_3 = arith.constant 0 : index
    %c0_4 = arith.constant 0 : index
    %4 = vector.load %arg4[%c0_3, %c0_4] : memref<16x256xbf16, #tpu.memory_space<vmem>>, vector<16x256xbf16>
    tpu.vector_store %arg4[%c0_3, %c0_4], %3 {strides = array<i32>} : memref<16x256xbf16, #tpu.memory_space<vmem>>, vector<16x256xbf16>,
    %cst_5 = arith.constant dense<0.000000e+00> : vector<256xf32>
    %5 = vector.multi_reduction <add>, %2, %cst_5 [0] : vector<16x256xf32> to vector<256xf32>
    %6 = vector.shape_cast %5 : vector<256xf32> to vector<1x256xf32>
    %7 = vector.shape_cast %6 : vector<1x256xf32> to vector<1x1x256xf32>
    %c0_6 = arith.constant 0 : index
    %c0_7 = arith.constant 0 : index
    %c0_8 = arith.constant 0 : index
    %8 = vector.load %arg5[%c0_6, %c0_7, %c0_8] : memref<1x1x256xf32, #tpu.memory_space<vmem>>, vector<1x1x256xf32>
    tpu.vector_store %arg5[%c0_6, %c0_7, %c0_8], %7 {strides = array<i32>} : memref<1x1x256xf32, #tpu.memory_space<vmem>>, vector<1x1x256xf32>,
    %9 = arith.mulf %2, %2 : vector<16x256xf32>
    %cst_9 = arith.constant dense<0.000000e+00> : vector<256xf32>
    %10 = vector.multi_reduction <add>, %9, %cst_9 [0] : vector<16x256xf32> to vector<256xf32>
    %11 = vector.shape_cast %10 : vector<256xf32> to vector<1x256xf32>
    %12 = vector.shape_cast %11 : vector<1x256xf32> to vector<1x1x256xf32>
    %c0_10 = arith.constant 0 : index
    %c0_11 = arith.constant 0 : index
    %c0_12 = arith.constant 0 : index
    %13 = vector.load %arg6[%c0_10, %c0_11, %c0_12] : memref<1x1x256xf32, #tpu.memory_space<vmem>>, vector<1x1x256xf32>
    tpu.vector_store %arg6[%c0_10, %c0_11, %c0_12], %12 {strides = array<i32>} : memref<1x1x256xf32, #tpu.memory_space<vmem>>, vector<1x1x256xf32>,
    return
  }
  func.func @transform_0(%arg0: i32, %arg1: i32) -> (i32, i32) {
    %c0_i32 = arith.constant 0 : i32
    %c0_i32_0 = arith.constant 0 : i32
    return %arg0, %c0_i32 : i32, i32
  }
  func.func @transform_1(%arg0: i32, %arg1: i32) -> (i32, i32) {
    %c0_i32 = arith.constant 0 : i32
    %c0_i32_0 = arith.constant 0 : i32
    return %c0_i32, %arg1 : i32, i32
  }
  func.func @transform_2(%arg0: i32, %arg1: i32) -> (i32, i32) {
    %c0_i32 = arith.constant 0 : i32
    return %arg0, %arg1 : i32, i32
  }
  func.func @transform_3(%arg0: i32, %arg1: i32) -> (i32, i32, i32) {
    %c0_i32 = arith.constant 0 : i32
    %c0_i32_0 = arith.constant 0 : i32
    return %arg0, %c0_i32, %arg1 : i32, i32, i32
  }
  func.func @transform_4(%arg0: i32, %arg1: i32) -> (i32, i32, i32) {
    %c0_i32 = arith.constant 0 : i32
    %c0_i32_0 = arith.constant 0 : i32
    return %arg0, %c0_i32, %arg1 : i32, i32, i32
  }
}

module attributes {stable_mosaic.version = 11 : i64} {
  func.func @_bn_kernel(%arg0: i32, %arg1: memref<16x256xbf16, #tpu.memory_space<vmem>>, %arg2: memref<1x256xf32, #tpu.memory_space<vmem>>, %arg3: memref<1x256xf32, #tpu.memory_space<vmem>>, %arg4: memref<16x256xbf16, #tpu.memory_space<vmem>>) attributes {dimension_semantics = [#tpu.dimension_semantics<parallel>], iteration_bounds = array<i64: 1>, scalar_prefetch = 0 : i64, scratch_operands = 0 : i64, tpu.core_type = #tpu.core_type<tc>, window_params = [{transform_indices = @transform_0, window_bounds = array<i64: 16, 256>}, {pipeline_mode = #tpu.pipeline_mode<synchronous>, transform_indices = @transform_1, window_bounds = array<i64: 1, 256>}, {pipeline_mode = #tpu.pipeline_mode<synchronous>, transform_indices = @transform_2, window_bounds = array<i64: 1, 256>}, {transform_indices = @transform_3, window_bounds = array<i64: 16, 256>}]} {
    %c0 = arith.constant 0 : index
    %c0_0 = arith.constant 0 : index
    %0 = vector.load %arg1[%c0, %c0_0] : memref<16x256xbf16, #tpu.memory_space<vmem>>, vector<16x256xbf16>
    %1 = arith.extf %0 : vector<16x256xbf16> to vector<16x256xf32>
    %c0_1 = arith.constant 0 : index
    %c0_2 = arith.constant 0 : index
    %2 = vector.load %arg2[%c0_1, %c0_2] : memref<1x256xf32, #tpu.memory_space<vmem>>, vector<1x256xf32>
    %3 = vector.broadcast %2 : vector<1x256xf32> to vector<16x256xf32>
    %4 = arith.mulf %1, %3 : vector<16x256xf32>
    %c0_3 = arith.constant 0 : index
    %c0_4 = arith.constant 0 : index
    %5 = vector.load %arg3[%c0_3, %c0_4] : memref<1x256xf32, #tpu.memory_space<vmem>>, vector<1x256xf32>
    %6 = vector.broadcast %5 : vector<1x256xf32> to vector<16x256xf32>
    %7 = arith.addf %4, %6 : vector<16x256xf32>
    %cst = arith.constant 0.000000e+00 : f32
    %8 = vector.broadcast %cst : f32 to vector<16x256xf32>
    %9 = arith.maximumf %7, %8 : vector<16x256xf32>
    %10 = arith.truncf %9 : vector<16x256xf32> to vector<16x256xbf16>
    %c0_5 = arith.constant 0 : index
    %c0_6 = arith.constant 0 : index
    %11 = vector.load %arg4[%c0_5, %c0_6] : memref<16x256xbf16, #tpu.memory_space<vmem>>, vector<16x256xbf16>
    tpu.vector_store %arg4[%c0_5, %c0_6], %10 {strides = array<i32>} : memref<16x256xbf16, #tpu.memory_space<vmem>>, vector<16x256xbf16>,
    return
  }
  func.func @transform_0(%arg0: i32) -> (i32, i32) {
    %c0_i32 = arith.constant 0 : i32
    %c0_i32_0 = arith.constant 0 : i32
    return %arg0, %c0_i32 : i32, i32
  }
  func.func @transform_1(%arg0: i32) -> (i32, i32) {
    %c0_i32 = arith.constant 0 : i32
    %c0_i32_0 = arith.constant 0 : i32
    %c0_i32_1 = arith.constant 0 : i32
    return %c0_i32, %c0_i32_0 : i32, i32
  }
  func.func @transform_2(%arg0: i32) -> (i32, i32) {
    %c0_i32 = arith.constant 0 : i32
    %c0_i32_0 = arith.constant 0 : i32
    %c0_i32_1 = arith.constant 0 : i32
    return %c0_i32, %c0_i32_0 : i32, i32
  }
  func.func @transform_3(%arg0: i32) -> (i32, i32) {
    %c0_i32 = arith.constant 0 : i32
    %c0_i32_0 = arith.constant 0 : i32
    return %arg0, %c0_i32 : i32, i32
  }
}

module attributes {stable_mosaic.version = 11 : i64} {
  func.func @_gemm_acc_kernel(%arg0: i32, %arg1: i32, %arg2: i32, %arg3: memref<16x512xbf16, #tpu.memory_space<vmem>>, %arg4: memref<512x256xbf16, #tpu.memory_space<vmem>>, %arg5: memref<16x256xbf16, #tpu.memory_space<vmem>>, %arg6: memref<1x1x256xf32, #tpu.memory_space<vmem>>, %arg7: memref<1x1x256xf32, #tpu.memory_space<vmem>>, %arg8: memref<16x256xf32, #tpu.memory_space<vmem>>) attributes {dimension_semantics = [#tpu.dimension_semantics<parallel>, #tpu.dimension_semantics<parallel>, #tpu.dimension_semantics<arbitrary>], iteration_bounds = array<i64: 1, 1, 5>, scalar_prefetch = 0 : i64, scratch_operands = 1 : i64, tpu.core_type = #tpu.core_type<tc>, window_params = [{transform_indices = @transform_0, window_bounds = array<i64: 16, 512>}, {transform_indices = @transform_1, window_bounds = array<i64: 512, 256>}, {transform_indices = @transform_2, window_bounds = array<i64: 16, 256>}, {transform_indices = @transform_3, window_bounds = array<i64: 1, 1, 256>}, {transform_indices = @transform_4, window_bounds = array<i64: 1, 1, 256>}]} {
    %c0_i32 = arith.constant 0 : i32
    %0 = arith.cmpi eq, %arg2, %c0_i32 : i32
    %1 = arith.extui %0 : i1 to i32
    %c0_i32_0 = arith.constant 0 : i32
    %2 = arith.cmpi ne, %1, %c0_i32_0 : i32
    scf.if %2 {
      %cst_9 = arith.constant 0.000000e+00 : f32
      %12 = vector.broadcast %cst_9 : f32 to vector<16x256xf32>
      %c0_10 = arith.constant 0 : index
      %c0_11 = arith.constant 0 : index
      %13 = vector.load %arg8[%c0_10, %c0_11] : memref<16x256xf32, #tpu.memory_space<vmem>>, vector<16x256xf32>
      tpu.vector_store %arg8[%c0_10, %c0_11], %12 {strides = array<i32>} : memref<16x256xf32, #tpu.memory_space<vmem>>, vector<16x256xf32>,
    } else {
    }
    %c0 = arith.constant 0 : index
    %c0_1 = arith.constant 0 : index
    %3 = vector.load %arg8[%c0, %c0_1] : memref<16x256xf32, #tpu.memory_space<vmem>>, vector<16x256xf32>
    %c0_2 = arith.constant 0 : index
    %c0_3 = arith.constant 0 : index
    %4 = vector.load %arg3[%c0_2, %c0_3] : memref<16x512xbf16, #tpu.memory_space<vmem>>, vector<16x512xbf16>
    %c0_4 = arith.constant 0 : index
    %c0_5 = arith.constant 0 : index
    %5 = vector.load %arg4[%c0_4, %c0_5] : memref<512x256xbf16, #tpu.memory_space<vmem>>, vector<512x256xbf16>
    %cst = arith.constant dense<0.000000e+00> : vector<16x256xf32>
    %6 = tpu.matmul %4, %5, %cst {dimension_numbers = #tpu.dot_dimension_numbers<[1], [0], [0], [1], [0, 0, 1, 1], [], []>} : vector<16x512xbf16>, vector<512x256xbf16>, vector<16x256xf32> -> vector<16x256xf32>
    %7 = arith.addf %3, %6 : vector<16x256xf32>
    %c0_6 = arith.constant 0 : index
    %c0_7 = arith.constant 0 : index
    %8 = vector.load %arg8[%c0_6, %c0_7] : memref<16x256xf32, #tpu.memory_space<vmem>>, vector<16x256xf32>
    tpu.vector_store %arg8[%c0_6, %c0_7], %7 {strides = array<i32>} : memref<16x256xf32, #tpu.memory_space<vmem>>, vector<16x256xf32>,
    %c4_i32 = arith.constant 4 : i32
    %9 = arith.cmpi eq, %arg2, %c4_i32 : i32
    %10 = arith.extui %9 : i1 to i32
    %c0_i32_8 = arith.constant 0 : i32
    %11 = arith.cmpi ne, %10, %c0_i32_8 : i32
    scf.if %11 {
      %c0_9 = arith.constant 0 : index
      %c0_10 = arith.constant 0 : index
      %12 = vector.load %arg8[%c0_9, %c0_10] : memref<16x256xf32, #tpu.memory_space<vmem>>, vector<16x256xf32>
      %13 = arith.truncf %12 : vector<16x256xf32> to vector<16x256xbf16>
      %c0_11 = arith.constant 0 : index
      %c0_12 = arith.constant 0 : index
      %14 = vector.load %arg5[%c0_11, %c0_12] : memref<16x256xbf16, #tpu.memory_space<vmem>>, vector<16x256xbf16>
      tpu.vector_store %arg5[%c0_11, %c0_12], %13 {strides = array<i32>} : memref<16x256xbf16, #tpu.memory_space<vmem>>, vector<16x256xbf16>,
      %cst_13 = arith.constant dense<0.000000e+00> : vector<256xf32>
      %15 = vector.multi_reduction <add>, %12, %cst_13 [0] : vector<16x256xf32> to vector<256xf32>
      %16 = vector.shape_cast %15 : vector<256xf32> to vector<1x256xf32>
      %17 = vector.shape_cast %16 : vector<1x256xf32> to vector<1x1x256xf32>
      %c0_14 = arith.constant 0 : index
      %c0_15 = arith.constant 0 : index
      %c0_16 = arith.constant 0 : index
      %18 = vector.load %arg6[%c0_14, %c0_15, %c0_16] : memref<1x1x256xf32, #tpu.memory_space<vmem>>, vector<1x1x256xf32>
      tpu.vector_store %arg6[%c0_14, %c0_15, %c0_16], %17 {strides = array<i32>} : memref<1x1x256xf32, #tpu.memory_space<vmem>>, vector<1x1x256xf32>,
      %19 = arith.mulf %12, %12 : vector<16x256xf32>
      %cst_17 = arith.constant dense<0.000000e+00> : vector<256xf32>
      %20 = vector.multi_reduction <add>, %19, %cst_17 [0] : vector<16x256xf32> to vector<256xf32>
      %21 = vector.shape_cast %20 : vector<256xf32> to vector<1x256xf32>
      %22 = vector.shape_cast %21 : vector<1x256xf32> to vector<1x1x256xf32>
      %c0_18 = arith.constant 0 : index
      %c0_19 = arith.constant 0 : index
      %c0_20 = arith.constant 0 : index
      %23 = vector.load %arg7[%c0_18, %c0_19, %c0_20] : memref<1x1x256xf32, #tpu.memory_space<vmem>>, vector<1x1x256xf32>
      tpu.vector_store %arg7[%c0_18, %c0_19, %c0_20], %22 {strides = array<i32>} : memref<1x1x256xf32, #tpu.memory_space<vmem>>, vector<1x1x256xf32>,
    } else {
    }
    return
  }
  func.func @transform_0(%arg0: i32, %arg1: i32, %arg2: i32) -> (i32, i32) {
    %c0_i32 = arith.constant 0 : i32
    return %arg0, %arg2 : i32, i32
  }
  func.func @transform_1(%arg0: i32, %arg1: i32, %arg2: i32) -> (i32, i32) {
    %c0_i32 = arith.constant 0 : i32
    return %arg2, %arg1 : i32, i32
  }
  func.func @transform_2(%arg0: i32, %arg1: i32, %arg2: i32) -> (i32, i32) {
    %c0_i32 = arith.constant 0 : i32
    return %arg0, %arg1 : i32, i32
  }
  func.func @transform_3(%arg0: i32, %arg1: i32, %arg2: i32) -> (i32, i32, i32) {
    %c0_i32 = arith.constant 0 : i32
    %c0_i32_0 = arith.constant 0 : i32
    return %arg0, %c0_i32, %arg1 : i32, i32, i32
  }
  func.func @transform_4(%arg0: i32, %arg1: i32, %arg2: i32) -> (i32, i32, i32) {
    %c0_i32 = arith.constant 0 : i32
    %c0_i32_0 = arith.constant 0 : i32
    return %arg0, %c0_i32, %arg1 : i32, i32, i32
  }
}

module attributes {stable_mosaic.version = 11 : i64} {
  func.func @_bn_res_affine_kernel(%arg0: i32, %arg1: memref<16x256xbf16, #tpu.memory_space<vmem>>, %arg2: memref<16x256xbf16, #tpu.memory_space<vmem>>, %arg3: memref<1x256xf32, #tpu.memory_space<vmem>>, %arg4: memref<1x256xf32, #tpu.memory_space<vmem>>, %arg5: memref<1x256xf32, #tpu.memory_space<vmem>>, %arg6: memref<1x256xf32, #tpu.memory_space<vmem>>, %arg7: memref<16x256xbf16, #tpu.memory_space<vmem>>) attributes {dimension_semantics = [#tpu.dimension_semantics<parallel>], iteration_bounds = array<i64: 1>, scalar_prefetch = 0 : i64, scratch_operands = 0 : i64, tpu.core_type = #tpu.core_type<tc>, window_params = [{transform_indices = @transform_0, window_bounds = array<i64: 16, 256>}, {transform_indices = @transform_1, window_bounds = array<i64: 16, 256>}, {pipeline_mode = #tpu.pipeline_mode<synchronous>, transform_indices = @transform_2, window_bounds = array<i64: 1, 256>}, {pipeline_mode = #tpu.pipeline_mode<synchronous>, transform_indices = @transform_3, window_bounds = array<i64: 1, 256>}, {pipeline_mode = #tpu.pipeline_mode<synchronous>, transform_indices = @transform_4, window_bounds = array<i64: 1, 256>}, {pipeline_mode = #tpu.pipeline_mode<synchronous>, transform_indices = @transform_5, window_bounds = array<i64: 1, 256>}, {transform_indices = @transform_6, window_bounds = array<i64: 16, 256>}]} {
    %c0 = arith.constant 0 : index
    %c0_0 = arith.constant 0 : index
    %0 = vector.load %arg1[%c0, %c0_0] : memref<16x256xbf16, #tpu.memory_space<vmem>>, vector<16x256xbf16>
    %1 = arith.extf %0 : vector<16x256xbf16> to vector<16x256xf32>
    %c0_1 = arith.constant 0 : index
    %c0_2 = arith.constant 0 : index
    %2 = vector.load %arg3[%c0_1, %c0_2] : memref<1x256xf32, #tpu.memory_space<vmem>>, vector<1x256xf32>
    %3 = vector.broadcast %2 : vector<1x256xf32> to vector<16x256xf32>
    %4 = arith.mulf %1, %3 : vector<16x256xf32>
    %c0_3 = arith.constant 0 : index
    %c0_4 = arith.constant 0 : index
    %5 = vector.load %arg4[%c0_3, %c0_4] : memref<1x256xf32, #tpu.memory_space<vmem>>, vector<1x256xf32>
    %6 = vector.broadcast %5 : vector<1x256xf32> to vector<16x256xf32>
    %7 = arith.addf %4, %6 : vector<16x256xf32>
    %c0_5 = arith.constant 0 : index
    %c0_6 = arith.constant 0 : index
    %8 = vector.load %arg2[%c0_5, %c0_6] : memref<16x256xbf16, #tpu.memory_space<vmem>>, vector<16x256xbf16>
    %9 = arith.extf %8 : vector<16x256xbf16> to vector<16x256xf32>
    %c0_7 = arith.constant 0 : index
    %c0_8 = arith.constant 0 : index
    %10 = vector.load %arg5[%c0_7, %c0_8] : memref<1x256xf32, #tpu.memory_space<vmem>>, vector<1x256xf32>
    %11 = vector.broadcast %10 : vector<1x256xf32> to vector<16x256xf32>
    %12 = arith.mulf %9, %11 : vector<16x256xf32>
    %13 = arith.addf %7, %12 : vector<16x256xf32>
    %c0_9 = arith.constant 0 : index
    %c0_10 = arith.constant 0 : index
    %14 = vector.load %arg6[%c0_9, %c0_10] : memref<1x256xf32, #tpu.memory_space<vmem>>, vector<1x256xf32>
    %15 = vector.broadcast %14 : vector<1x256xf32> to vector<16x256xf32>
    %16 = arith.addf %13, %15 : vector<16x256xf32>
    %cst = arith.constant 0.000000e+00 : f32
    %17 = vector.broadcast %cst : f32 to vector<16x256xf32>
    %18 = arith.maximumf %16, %17 : vector<16x256xf32>
    %19 = arith.truncf %18 : vector<16x256xf32> to vector<16x256xbf16>
    %c0_11 = arith.constant 0 : index
    %c0_12 = arith.constant 0 : index
    %20 = vector.load %arg7[%c0_11, %c0_12] : memref<16x256xbf16, #tpu.memory_space<vmem>>, vector<16x256xbf16>
    tpu.vector_store %arg7[%c0_11, %c0_12], %19 {strides = array<i32>} : memref<16x256xbf16, #tpu.memory_space<vmem>>, vector<16x256xbf16>,
    return
  }
  func.func @transform_0(%arg0: i32) -> (i32, i32) {
    %c0_i32 = arith.constant 0 : i32
    %c0_i32_0 = arith.constant 0 : i32
    return %arg0, %c0_i32 : i32, i32
  }
  func.func @transform_1(%arg0: i32) -> (i32, i32) {
    %c0_i32 = arith.constant 0 : i32
    %c0_i32_0 = arith.constant 0 : i32
    return %arg0, %c0_i32 : i32, i32
  }
  func.func @transform_2(%arg0: i32) -> (i32, i32) {
    %c0_i32 = arith.constant 0 : i32
    %c0_i32_0 = arith.constant 0 : i32
    %c0_i32_1 = arith.constant 0 : i32
    return %c0_i32, %c0_i32_0 : i32, i32
  }
  func.func @transform_3(%arg0: i32) -> (i32, i32) {
    %c0_i32 = arith.constant 0 : i32
    %c0_i32_0 = arith.constant 0 : i32
    %c0_i32_1 = arith.constant 0 : i32
    return %c0_i32, %c0_i32_0 : i32, i32
  }
  func.func @transform_4(%arg0: i32) -> (i32, i32) {
    %c0_i32 = arith.constant 0 : i32
    %c0_i32_0 = arith.constant 0 : i32
    %c0_i32_1 = arith.constant 0 : i32
    return %c0_i32, %c0_i32_0 : i32, i32
  }
  func.func @transform_5(%arg0: i32) -> (i32, i32) {
    %c0_i32 = arith.constant 0 : i32
    %c0_i32_0 = arith.constant 0 : i32
    %c0_i32_1 = arith.constant 0 : i32
    return %c0_i32, %c0_i32_0 : i32, i32
  }
  func.func @transform_6(%arg0: i32) -> (i32, i32) {
    %c0_i32 = arith.constant 0 : i32
    %c0_i32_0 = arith.constant 0 : i32
    return %arg0, %c0_i32 : i32, i32
  }
}

module attributes {stable_mosaic.version = 11 : i64} {
  func.func @_gemm_acc_kernel(%arg0: i32, %arg1: i32, %arg2: i32, %arg3: memref<16x512xbf16, #tpu.memory_space<vmem>>, %arg4: memref<512x256xbf16, #tpu.memory_space<vmem>>, %arg5: memref<16x256xbf16, #tpu.memory_space<vmem>>, %arg6: memref<1x1x256xf32, #tpu.memory_space<vmem>>, %arg7: memref<1x1x256xf32, #tpu.memory_space<vmem>>, %arg8: memref<16x256xf32, #tpu.memory_space<vmem>>) attributes {dimension_semantics = [#tpu.dimension_semantics<parallel>, #tpu.dimension_semantics<parallel>, #tpu.dimension_semantics<arbitrary>], iteration_bounds = array<i64: 1, 4, 5>, scalar_prefetch = 0 : i64, scratch_operands = 1 : i64, tpu.core_type = #tpu.core_type<tc>, window_params = [{transform_indices = @transform_0, window_bounds = array<i64: 16, 512>}, {transform_indices = @transform_1, window_bounds = array<i64: 512, 256>}, {transform_indices = @transform_2, window_bounds = array<i64: 16, 256>}, {transform_indices = @transform_3, window_bounds = array<i64: 1, 1, 256>}, {transform_indices = @transform_4, window_bounds = array<i64: 1, 1, 256>}]} {
    %c0_i32 = arith.constant 0 : i32
    %0 = arith.cmpi eq, %arg2, %c0_i32 : i32
    %1 = arith.extui %0 : i1 to i32
    %c0_i32_0 = arith.constant 0 : i32
    %2 = arith.cmpi ne, %1, %c0_i32_0 : i32
    scf.if %2 {
      %cst_9 = arith.constant 0.000000e+00 : f32
      %12 = vector.broadcast %cst_9 : f32 to vector<16x256xf32>
      %c0_10 = arith.constant 0 : index
      %c0_11 = arith.constant 0 : index
      %13 = vector.load %arg8[%c0_10, %c0_11] : memref<16x256xf32, #tpu.memory_space<vmem>>, vector<16x256xf32>
      tpu.vector_store %arg8[%c0_10, %c0_11], %12 {strides = array<i32>} : memref<16x256xf32, #tpu.memory_space<vmem>>, vector<16x256xf32>,
    } else {
    }
    %c0 = arith.constant 0 : index
    %c0_1 = arith.constant 0 : index
    %3 = vector.load %arg8[%c0, %c0_1] : memref<16x256xf32, #tpu.memory_space<vmem>>, vector<16x256xf32>
    %c0_2 = arith.constant 0 : index
    %c0_3 = arith.constant 0 : index
    %4 = vector.load %arg3[%c0_2, %c0_3] : memref<16x512xbf16, #tpu.memory_space<vmem>>, vector<16x512xbf16>
    %c0_4 = arith.constant 0 : index
    %c0_5 = arith.constant 0 : index
    %5 = vector.load %arg4[%c0_4, %c0_5] : memref<512x256xbf16, #tpu.memory_space<vmem>>, vector<512x256xbf16>
    %cst = arith.constant dense<0.000000e+00> : vector<16x256xf32>
    %6 = tpu.matmul %4, %5, %cst {dimension_numbers = #tpu.dot_dimension_numbers<[1], [0], [0], [1], [0, 0, 1, 1], [], []>} : vector<16x512xbf16>, vector<512x256xbf16>, vector<16x256xf32> -> vector<16x256xf32>
    %7 = arith.addf %3, %6 : vector<16x256xf32>
    %c0_6 = arith.constant 0 : index
    %c0_7 = arith.constant 0 : index
    %8 = vector.load %arg8[%c0_6, %c0_7] : memref<16x256xf32, #tpu.memory_space<vmem>>, vector<16x256xf32>
    tpu.vector_store %arg8[%c0_6, %c0_7], %7 {strides = array<i32>} : memref<16x256xf32, #tpu.memory_space<vmem>>, vector<16x256xf32>,
    %c4_i32 = arith.constant 4 : i32
    %9 = arith.cmpi eq, %arg2, %c4_i32 : i32
    %10 = arith.extui %9 : i1 to i32
    %c0_i32_8 = arith.constant 0 : i32
    %11 = arith.cmpi ne, %10, %c0_i32_8 : i32
    scf.if %11 {
      %c0_9 = arith.constant 0 : index
      %c0_10 = arith.constant 0 : index
      %12 = vector.load %arg8[%c0_9, %c0_10] : memref<16x256xf32, #tpu.memory_space<vmem>>, vector<16x256xf32>
      %13 = arith.truncf %12 : vector<16x256xf32> to vector<16x256xbf16>
      %c0_11 = arith.constant 0 : index
      %c0_12 = arith.constant 0 : index
      %14 = vector.load %arg5[%c0_11, %c0_12] : memref<16x256xbf16, #tpu.memory_space<vmem>>, vector<16x256xbf16>
      tpu.vector_store %arg5[%c0_11, %c0_12], %13 {strides = array<i32>} : memref<16x256xbf16, #tpu.memory_space<vmem>>, vector<16x256xbf16>,
      %cst_13 = arith.constant dense<0.000000e+00> : vector<256xf32>
      %15 = vector.multi_reduction <add>, %12, %cst_13 [0] : vector<16x256xf32> to vector<256xf32>
      %16 = vector.shape_cast %15 : vector<256xf32> to vector<1x256xf32>
      %17 = vector.shape_cast %16 : vector<1x256xf32> to vector<1x1x256xf32>
      %c0_14 = arith.constant 0 : index
      %c0_15 = arith.constant 0 : index
      %c0_16 = arith.constant 0 : index
      %18 = vector.load %arg6[%c0_14, %c0_15, %c0_16] : memref<1x1x256xf32, #tpu.memory_space<vmem>>, vector<1x1x256xf32>
      tpu.vector_store %arg6[%c0_14, %c0_15, %c0_16], %17 {strides = array<i32>} : memref<1x1x256xf32, #tpu.memory_space<vmem>>, vector<1x1x256xf32>,
      %19 = arith.mulf %12, %12 : vector<16x256xf32>
      %cst_17 = arith.constant dense<0.000000e+00> : vector<256xf32>
      %20 = vector.multi_reduction <add>, %19, %cst_17 [0] : vector<16x256xf32> to vector<256xf32>
      %21 = vector.shape_cast %20 : vector<256xf32> to vector<1x256xf32>
      %22 = vector.shape_cast %21 : vector<1x256xf32> to vector<1x1x256xf32>
      %c0_18 = arith.constant 0 : index
      %c0_19 = arith.constant 0 : index
      %c0_20 = arith.constant 0 : index
      %23 = vector.load %arg7[%c0_18, %c0_19, %c0_20] : memref<1x1x256xf32, #tpu.memory_space<vmem>>, vector<1x1x256xf32>
      tpu.vector_store %arg7[%c0_18, %c0_19, %c0_20], %22 {strides = array<i32>} : memref<1x1x256xf32, #tpu.memory_space<vmem>>, vector<1x1x256xf32>,
    } else {
    }
    return
  }
  func.func @transform_0(%arg0: i32, %arg1: i32, %arg2: i32) -> (i32, i32) {
    %c0_i32 = arith.constant 0 : i32
    return %arg0, %arg2 : i32, i32
  }
  func.func @transform_1(%arg0: i32, %arg1: i32, %arg2: i32) -> (i32, i32) {
    %c0_i32 = arith.constant 0 : i32
    return %arg2, %arg1 : i32, i32
  }
  func.func @transform_2(%arg0: i32, %arg1: i32, %arg2: i32) -> (i32, i32) {
    %c0_i32 = arith.constant 0 : i32
    return %arg0, %arg1 : i32, i32
  }
  func.func @transform_3(%arg0: i32, %arg1: i32, %arg2: i32) -> (i32, i32, i32) {
    %c0_i32 = arith.constant 0 : i32
    %c0_i32_0 = arith.constant 0 : i32
    return %arg0, %c0_i32, %arg1 : i32, i32, i32
  }
  func.func @transform_4(%arg0: i32, %arg1: i32, %arg2: i32) -> (i32, i32, i32) {
    %c0_i32 = arith.constant 0 : i32
    %c0_i32_0 = arith.constant 0 : i32
    return %arg0, %c0_i32, %arg1 : i32, i32, i32
  }
}

module attributes {stable_mosaic.version = 11 : i64} {
  func.func @_bn_kernel(%arg0: i32, %arg1: memref<16x512xbf16, #tpu.memory_space<vmem>>, %arg2: memref<1x512xf32, #tpu.memory_space<vmem>>, %arg3: memref<1x512xf32, #tpu.memory_space<vmem>>, %arg4: memref<16x512xbf16, #tpu.memory_space<vmem>>) attributes {dimension_semantics = [#tpu.dimension_semantics<parallel>], iteration_bounds = array<i64: 1>, scalar_prefetch = 0 : i64, scratch_operands = 0 : i64, tpu.core_type = #tpu.core_type<tc>, window_params = [{transform_indices = @transform_0, window_bounds = array<i64: 16, 512>}, {pipeline_mode = #tpu.pipeline_mode<synchronous>, transform_indices = @transform_1, window_bounds = array<i64: 1, 512>}, {pipeline_mode = #tpu.pipeline_mode<synchronous>, transform_indices = @transform_2, window_bounds = array<i64: 1, 512>}, {transform_indices = @transform_3, window_bounds = array<i64: 16, 512>}]} {
    %c0 = arith.constant 0 : index
    %c0_0 = arith.constant 0 : index
    %0 = vector.load %arg1[%c0, %c0_0] : memref<16x512xbf16, #tpu.memory_space<vmem>>, vector<16x512xbf16>
    %1 = arith.extf %0 : vector<16x512xbf16> to vector<16x512xf32>
    %c0_1 = arith.constant 0 : index
    %c0_2 = arith.constant 0 : index
    %2 = vector.load %arg2[%c0_1, %c0_2] : memref<1x512xf32, #tpu.memory_space<vmem>>, vector<1x512xf32>
    %3 = vector.broadcast %2 : vector<1x512xf32> to vector<16x512xf32>
    %4 = arith.mulf %1, %3 : vector<16x512xf32>
    %c0_3 = arith.constant 0 : index
    %c0_4 = arith.constant 0 : index
    %5 = vector.load %arg3[%c0_3, %c0_4] : memref<1x512xf32, #tpu.memory_space<vmem>>, vector<1x512xf32>
    %6 = vector.broadcast %5 : vector<1x512xf32> to vector<16x512xf32>
    %7 = arith.addf %4, %6 : vector<16x512xf32>
    %cst = arith.constant 0.000000e+00 : f32
    %8 = vector.broadcast %cst : f32 to vector<16x512xf32>
    %9 = arith.maximumf %7, %8 : vector<16x512xf32>
    %10 = arith.truncf %9 : vector<16x512xf32> to vector<16x512xbf16>
    %c0_5 = arith.constant 0 : index
    %c0_6 = arith.constant 0 : index
    %11 = vector.load %arg4[%c0_5, %c0_6] : memref<16x512xbf16, #tpu.memory_space<vmem>>, vector<16x512xbf16>
    tpu.vector_store %arg4[%c0_5, %c0_6], %10 {strides = array<i32>} : memref<16x512xbf16, #tpu.memory_space<vmem>>, vector<16x512xbf16>,
    return
  }
  func.func @transform_0(%arg0: i32) -> (i32, i32) {
    %c0_i32 = arith.constant 0 : i32
    %c0_i32_0 = arith.constant 0 : i32
    return %arg0, %c0_i32 : i32, i32
  }
  func.func @transform_1(%arg0: i32) -> (i32, i32) {
    %c0_i32 = arith.constant 0 : i32
    %c0_i32_0 = arith.constant 0 : i32
    %c0_i32_1 = arith.constant 0 : i32
    return %c0_i32, %c0_i32_0 : i32, i32
  }
  func.func @transform_2(%arg0: i32) -> (i32, i32) {
    %c0_i32 = arith.constant 0 : i32
    %c0_i32_0 = arith.constant 0 : i32
    %c0_i32_1 = arith.constant 0 : i32
    return %c0_i32, %c0_i32_0 : i32, i32
  }
  func.func @transform_3(%arg0: i32) -> (i32, i32) {
    %c0_i32 = arith.constant 0 : i32
    %c0_i32_0 = arith.constant 0 : i32
    return %arg0, %c0_i32 : i32, i32
  }
}

module attributes {stable_mosaic.version = 11 : i64} {
  func.func @_gemm_acc_kernel(%arg0: i32, %arg1: i32, %arg2: i32, %arg3: memref<16x512xbf16, #tpu.memory_space<vmem>>, %arg4: memref<512x256xbf16, #tpu.memory_space<vmem>>, %arg5: memref<16x256xbf16, #tpu.memory_space<vmem>>, %arg6: memref<1x1x256xf32, #tpu.memory_space<vmem>>, %arg7: memref<1x1x256xf32, #tpu.memory_space<vmem>>, %arg8: memref<16x256xf32, #tpu.memory_space<vmem>>) attributes {dimension_semantics = [#tpu.dimension_semantics<parallel>, #tpu.dimension_semantics<parallel>, #tpu.dimension_semantics<arbitrary>], iteration_bounds = array<i64: 1, 2, 9>, scalar_prefetch = 0 : i64, scratch_operands = 1 : i64, tpu.core_type = #tpu.core_type<tc>, window_params = [{transform_indices = @transform_0, window_bounds = array<i64: 16, 512>}, {transform_indices = @transform_1, window_bounds = array<i64: 512, 256>}, {transform_indices = @transform_2, window_bounds = array<i64: 16, 256>}, {transform_indices = @transform_3, window_bounds = array<i64: 1, 1, 256>}, {transform_indices = @transform_4, window_bounds = array<i64: 1, 1, 256>}]} {
    %c0_i32 = arith.constant 0 : i32
    %0 = arith.cmpi eq, %arg2, %c0_i32 : i32
    %1 = arith.extui %0 : i1 to i32
    %c0_i32_0 = arith.constant 0 : i32
    %2 = arith.cmpi ne, %1, %c0_i32_0 : i32
    scf.if %2 {
      %cst_9 = arith.constant 0.000000e+00 : f32
      %12 = vector.broadcast %cst_9 : f32 to vector<16x256xf32>
      %c0_10 = arith.constant 0 : index
      %c0_11 = arith.constant 0 : index
      %13 = vector.load %arg8[%c0_10, %c0_11] : memref<16x256xf32, #tpu.memory_space<vmem>>, vector<16x256xf32>
      tpu.vector_store %arg8[%c0_10, %c0_11], %12 {strides = array<i32>} : memref<16x256xf32, #tpu.memory_space<vmem>>, vector<16x256xf32>,
    } else {
    }
    %c0 = arith.constant 0 : index
    %c0_1 = arith.constant 0 : index
    %3 = vector.load %arg8[%c0, %c0_1] : memref<16x256xf32, #tpu.memory_space<vmem>>, vector<16x256xf32>
    %c0_2 = arith.constant 0 : index
    %c0_3 = arith.constant 0 : index
    %4 = vector.load %arg3[%c0_2, %c0_3] : memref<16x512xbf16, #tpu.memory_space<vmem>>, vector<16x512xbf16>
    %c0_4 = arith.constant 0 : index
    %c0_5 = arith.constant 0 : index
    %5 = vector.load %arg4[%c0_4, %c0_5] : memref<512x256xbf16, #tpu.memory_space<vmem>>, vector<512x256xbf16>
    %cst = arith.constant dense<0.000000e+00> : vector<16x256xf32>
    %6 = tpu.matmul %4, %5, %cst {dimension_numbers = #tpu.dot_dimension_numbers<[1], [0], [0], [1], [0, 0, 1, 1], [], []>} : vector<16x512xbf16>, vector<512x256xbf16>, vector<16x256xf32> -> vector<16x256xf32>
    %7 = arith.addf %3, %6 : vector<16x256xf32>
    %c0_6 = arith.constant 0 : index
    %c0_7 = arith.constant 0 : index
    %8 = vector.load %arg8[%c0_6, %c0_7] : memref<16x256xf32, #tpu.memory_space<vmem>>, vector<16x256xf32>
    tpu.vector_store %arg8[%c0_6, %c0_7], %7 {strides = array<i32>} : memref<16x256xf32, #tpu.memory_space<vmem>>, vector<16x256xf32>,
    %c8_i32 = arith.constant 8 : i32
    %9 = arith.cmpi eq, %arg2, %c8_i32 : i32
    %10 = arith.extui %9 : i1 to i32
    %c0_i32_8 = arith.constant 0 : i32
    %11 = arith.cmpi ne, %10, %c0_i32_8 : i32
    scf.if %11 {
      %c0_9 = arith.constant 0 : index
      %c0_10 = arith.constant 0 : index
      %12 = vector.load %arg8[%c0_9, %c0_10] : memref<16x256xf32, #tpu.memory_space<vmem>>, vector<16x256xf32>
      %13 = arith.truncf %12 : vector<16x256xf32> to vector<16x256xbf16>
      %c0_11 = arith.constant 0 : index
      %c0_12 = arith.constant 0 : index
      %14 = vector.load %arg5[%c0_11, %c0_12] : memref<16x256xbf16, #tpu.memory_space<vmem>>, vector<16x256xbf16>
      tpu.vector_store %arg5[%c0_11, %c0_12], %13 {strides = array<i32>} : memref<16x256xbf16, #tpu.memory_space<vmem>>, vector<16x256xbf16>,
      %cst_13 = arith.constant dense<0.000000e+00> : vector<256xf32>
      %15 = vector.multi_reduction <add>, %12, %cst_13 [0] : vector<16x256xf32> to vector<256xf32>
      %16 = vector.shape_cast %15 : vector<256xf32> to vector<1x256xf32>
      %17 = vector.shape_cast %16 : vector<1x256xf32> to vector<1x1x256xf32>
      %c0_14 = arith.constant 0 : index
      %c0_15 = arith.constant 0 : index
      %c0_16 = arith.constant 0 : index
      %18 = vector.load %arg6[%c0_14, %c0_15, %c0_16] : memref<1x1x256xf32, #tpu.memory_space<vmem>>, vector<1x1x256xf32>
      tpu.vector_store %arg6[%c0_14, %c0_15, %c0_16], %17 {strides = array<i32>} : memref<1x1x256xf32, #tpu.memory_space<vmem>>, vector<1x1x256xf32>,
      %19 = arith.mulf %12, %12 : vector<16x256xf32>
      %cst_17 = arith.constant dense<0.000000e+00> : vector<256xf32>
      %20 = vector.multi_reduction <add>, %19, %cst_17 [0] : vector<16x256xf32> to vector<256xf32>
      %21 = vector.shape_cast %20 : vector<256xf32> to vector<1x256xf32>
      %22 = vector.shape_cast %21 : vector<1x256xf32> to vector<1x1x256xf32>
      %c0_18 = arith.constant 0 : index
      %c0_19 = arith.constant 0 : index
      %c0_20 = arith.constant 0 : index
      %23 = vector.load %arg7[%c0_18, %c0_19, %c0_20] : memref<1x1x256xf32, #tpu.memory_space<vmem>>, vector<1x1x256xf32>
      tpu.vector_store %arg7[%c0_18, %c0_19, %c0_20], %22 {strides = array<i32>} : memref<1x1x256xf32, #tpu.memory_space<vmem>>, vector<1x1x256xf32>,
    } else {
    }
    return
  }
  func.func @transform_0(%arg0: i32, %arg1: i32, %arg2: i32) -> (i32, i32) {
    %c0_i32 = arith.constant 0 : i32
    return %arg0, %arg2 : i32, i32
  }
  func.func @transform_1(%arg0: i32, %arg1: i32, %arg2: i32) -> (i32, i32) {
    %c0_i32 = arith.constant 0 : i32
    return %arg2, %arg1 : i32, i32
  }
  func.func @transform_2(%arg0: i32, %arg1: i32, %arg2: i32) -> (i32, i32) {
    %c0_i32 = arith.constant 0 : i32
    return %arg0, %arg1 : i32, i32
  }
  func.func @transform_3(%arg0: i32, %arg1: i32, %arg2: i32) -> (i32, i32, i32) {
    %c0_i32 = arith.constant 0 : i32
    %c0_i32_0 = arith.constant 0 : i32
    return %arg0, %c0_i32, %arg1 : i32, i32, i32
  }
  func.func @transform_4(%arg0: i32, %arg1: i32, %arg2: i32) -> (i32, i32, i32) {
    %c0_i32 = arith.constant 0 : i32
    %c0_i32_0 = arith.constant 0 : i32
    return %arg0, %c0_i32, %arg1 : i32, i32, i32
  }
}

module attributes {stable_mosaic.version = 11 : i64} {
  func.func @_bn_res_affine_kernel(%arg0: i32, %arg1: memref<16x512xbf16, #tpu.memory_space<vmem>>, %arg2: memref<16x512xbf16, #tpu.memory_space<vmem>>, %arg3: memref<1x512xf32, #tpu.memory_space<vmem>>, %arg4: memref<1x512xf32, #tpu.memory_space<vmem>>, %arg5: memref<1x512xf32, #tpu.memory_space<vmem>>, %arg6: memref<1x512xf32, #tpu.memory_space<vmem>>, %arg7: memref<16x512xbf16, #tpu.memory_space<vmem>>) attributes {dimension_semantics = [#tpu.dimension_semantics<parallel>], iteration_bounds = array<i64: 1>, scalar_prefetch = 0 : i64, scratch_operands = 0 : i64, tpu.core_type = #tpu.core_type<tc>, window_params = [{transform_indices = @transform_0, window_bounds = array<i64: 16, 512>}, {transform_indices = @transform_1, window_bounds = array<i64: 16, 512>}, {pipeline_mode = #tpu.pipeline_mode<synchronous>, transform_indices = @transform_2, window_bounds = array<i64: 1, 512>}, {pipeline_mode = #tpu.pipeline_mode<synchronous>, transform_indices = @transform_3, window_bounds = array<i64: 1, 512>}, {pipeline_mode = #tpu.pipeline_mode<synchronous>, transform_indices = @transform_4, window_bounds = array<i64: 1, 512>}, {pipeline_mode = #tpu.pipeline_mode<synchronous>, transform_indices = @transform_5, window_bounds = array<i64: 1, 512>}, {transform_indices = @transform_6, window_bounds = array<i64: 16, 512>}]} {
    %c0 = arith.constant 0 : index
    %c0_0 = arith.constant 0 : index
    %0 = vector.load %arg1[%c0, %c0_0] : memref<16x512xbf16, #tpu.memory_space<vmem>>, vector<16x512xbf16>
    %1 = arith.extf %0 : vector<16x512xbf16> to vector<16x512xf32>
    %c0_1 = arith.constant 0 : index
    %c0_2 = arith.constant 0 : index
    %2 = vector.load %arg3[%c0_1, %c0_2] : memref<1x512xf32, #tpu.memory_space<vmem>>, vector<1x512xf32>
    %3 = vector.broadcast %2 : vector<1x512xf32> to vector<16x512xf32>
    %4 = arith.mulf %1, %3 : vector<16x512xf32>
    %c0_3 = arith.constant 0 : index
    %c0_4 = arith.constant 0 : index
    %5 = vector.load %arg4[%c0_3, %c0_4] : memref<1x512xf32, #tpu.memory_space<vmem>>, vector<1x512xf32>
    %6 = vector.broadcast %5 : vector<1x512xf32> to vector<16x512xf32>
    %7 = arith.addf %4, %6 : vector<16x512xf32>
    %c0_5 = arith.constant 0 : index
    %c0_6 = arith.constant 0 : index
    %8 = vector.load %arg2[%c0_5, %c0_6] : memref<16x512xbf16, #tpu.memory_space<vmem>>, vector<16x512xbf16>
    %9 = arith.extf %8 : vector<16x512xbf16> to vector<16x512xf32>
    %c0_7 = arith.constant 0 : index
    %c0_8 = arith.constant 0 : index
    %10 = vector.load %arg5[%c0_7, %c0_8] : memref<1x512xf32, #tpu.memory_space<vmem>>, vector<1x512xf32>
    %11 = vector.broadcast %10 : vector<1x512xf32> to vector<16x512xf32>
    %12 = arith.mulf %9, %11 : vector<16x512xf32>
    %13 = arith.addf %7, %12 : vector<16x512xf32>
    %c0_9 = arith.constant 0 : index
    %c0_10 = arith.constant 0 : index
    %14 = vector.load %arg6[%c0_9, %c0_10] : memref<1x512xf32, #tpu.memory_space<vmem>>, vector<1x512xf32>
    %15 = vector.broadcast %14 : vector<1x512xf32> to vector<16x512xf32>
    %16 = arith.addf %13, %15 : vector<16x512xf32>
    %cst = arith.constant 0.000000e+00 : f32
    %17 = vector.broadcast %cst : f32 to vector<16x512xf32>
    %18 = arith.maximumf %16, %17 : vector<16x512xf32>
    %19 = arith.truncf %18 : vector<16x512xf32> to vector<16x512xbf16>
    %c0_11 = arith.constant 0 : index
    %c0_12 = arith.constant 0 : index
    %20 = vector.load %arg7[%c0_11, %c0_12] : memref<16x512xbf16, #tpu.memory_space<vmem>>, vector<16x512xbf16>
    tpu.vector_store %arg7[%c0_11, %c0_12], %19 {strides = array<i32>} : memref<16x512xbf16, #tpu.memory_space<vmem>>, vector<16x512xbf16>,
    return
  }
  func.func @transform_0(%arg0: i32) -> (i32, i32) {
    %c0_i32 = arith.constant 0 : i32
    %c0_i32_0 = arith.constant 0 : i32
    return %arg0, %c0_i32 : i32, i32
  }
  func.func @transform_1(%arg0: i32) -> (i32, i32) {
    %c0_i32 = arith.constant 0 : i32
    %c0_i32_0 = arith.constant 0 : i32
    return %arg0, %c0_i32 : i32, i32
  }
  func.func @transform_2(%arg0: i32) -> (i32, i32) {
    %c0_i32 = arith.constant 0 : i32
    %c0_i32_0 = arith.constant 0 : i32
    %c0_i32_1 = arith.constant 0 : i32
    return %c0_i32, %c0_i32_0 : i32, i32
  }
  func.func @transform_3(%arg0: i32) -> (i32, i32) {
    %c0_i32 = arith.constant 0 : i32
    %c0_i32_0 = arith.constant 0 : i32
    %c0_i32_1 = arith.constant 0 : i32
    return %c0_i32, %c0_i32_0 : i32, i32
  }
  func.func @transform_4(%arg0: i32) -> (i32, i32) {
    %c0_i32 = arith.constant 0 : i32
    %c0_i32_0 = arith.constant 0 : i32
    %c0_i32_1 = arith.constant 0 : i32
    return %c0_i32, %c0_i32_0 : i32, i32
  }
  func.func @transform_5(%arg0: i32) -> (i32, i32) {
    %c0_i32 = arith.constant 0 : i32
    %c0_i32_0 = arith.constant 0 : i32
    %c0_i32_1 = arith.constant 0 : i32
    return %c0_i32, %c0_i32_0 : i32, i32
  }
  func.func @transform_6(%arg0: i32) -> (i32, i32) {
    %c0_i32 = arith.constant 0 : i32
    %c0_i32_0 = arith.constant 0 : i32
    return %arg0, %c0_i32 : i32, i32
  }
}

module attributes {stable_mosaic.version = 11 : i64} {
  func.func @_pool_fc_kernel(%arg0: memref<8x1x512xbf16, #tpu.memory_space<vmem>>, %arg1: memref<512x128xf32, #tpu.memory_space<vmem>>, %arg2: memref<1x128xf32, #tpu.memory_space<vmem>>, %arg3: memref<8x128xf32, #tpu.memory_space<vmem>>) attributes {dimension_semantics = [], scalar_prefetch = 0 : i64, scratch_operands = 0 : i64, tpu.core_type = #tpu.core_type<tc>} {
    %c0 = arith.constant 0 : index
    %c0_0 = arith.constant 0 : index
    %c0_1 = arith.constant 0 : index
    %0 = vector.load %arg0[%c0, %c0_0, %c0_1] : memref<8x1x512xbf16, #tpu.memory_space<vmem>>, vector<8x1x512xbf16>
    %1 = arith.extf %0 : vector<8x1x512xbf16> to vector<8x1x512xf32>
    %cst = arith.constant dense<0.000000e+00> : vector<8x512xf32>
    %2 = vector.multi_reduction <add>, %1, %cst [1] : vector<8x1x512xf32> to vector<8x512xf32>
    %cst_2 = arith.constant 1.000000e+00 : f32
    %3 = vector.broadcast %cst_2 : f32 to vector<8x512xf32>
    %4 = arith.divf %2, %3 : vector<8x512xf32>
    %c0_3 = arith.constant 0 : index
    %c0_4 = arith.constant 0 : index
    %5 = vector.load %arg1[%c0_3, %c0_4] : memref<512x128xf32, #tpu.memory_space<vmem>>, vector<512x128xf32>
    %cst_5 = arith.constant dense<0.000000e+00> : vector<8x128xf32>
    %6 = tpu.matmul %4, %5, %cst_5 {dimension_numbers = #tpu.dot_dimension_numbers<[1], [0], [0], [1], [0, 0, 1, 1], [], []>} : vector<8x512xf32>, vector<512x128xf32>, vector<8x128xf32> -> vector<8x128xf32>
    %c0_6 = arith.constant 0 : index
    %c0_7 = arith.constant 0 : index
    %7 = vector.load %arg2[%c0_6, %c0_7] : memref<1x128xf32, #tpu.memory_space<vmem>>, vector<1x128xf32>
    %8 = vector.broadcast %7 : vector<1x128xf32> to vector<8x128xf32>
    %9 = arith.addf %6, %8 : vector<8x128xf32>
    %c0_8 = arith.constant 0 : index
    %c0_9 = arith.constant 0 : index
    %10 = vector.load %arg3[%c0_8, %c0_9] : memref<8x128xf32, #tpu.memory_space<vmem>>, vector<8x128xf32>
    tpu.vector_store %arg3[%c0_8, %c0_9], %9 {strides = array<i32>} : memref<8x128xf32, #tpu.memory_space<vmem>>, vector<8x128xf32>,
    return
  }
}

</mosaic_0001>

<bundles_post_ra>
// kernel: resnet_forward.19
= control target key start
LH: loop header
LB: loop body
LE: loop exit
PB: predicated region body
PF: predicated region fallthrough
CT: control target
= control target key end

     0   :  { %s1433_s15 = smov 0   ;;  %s1435_s16 = smov 0   ;;  %s1634_s0 = inlined_call_operand.vmem [shape: bf16[512,128], index: 0, kind: input, shape index: {}]   ;;  %s1635_s1 = inlined_call_operand.vmem [shape: bf16[128,128], index: 1, kind: input, shape index: {}]   ;;  %s1636_s2 = inlined_call_operand.vmem [shape: bf16[512,128], index: 2, kind: output, shape index: {0}]   ;;  %s1637_s3 = inlined_call_operand.vmem [shape: f32[2,1,128], index: 3, kind: output, shape index: {1}]   ;;  %s1638_s4 = inlined_call_operand.vmem [shape: f32[2,1,128], index: 4, kind: output, shape index: {2}]  }
   0x1   :  { %s1437_s17 = smov 0  }
   0x2 LB: > { %s27_s18 = sadd.s32 1, %s1402_s16  ;;  %p1058_p0 = scmp.ge.s32.totalorder %s1406_s17, 1  ;;  %s1406_s17 = sphi %s1437_s17, %s15_s17   ;;  %s1402_s16 = sphi %s1435_s16, %s1640_s16   ;;  %s1398_s15 = sphi %s1433_s15, %s1639_s15  }
   0x3   : > { %p29_p1 = scmp.ge.s32.totalorder %s27_s18, 2  ;;  %p195_p2 = scmp.lt.s32.totalorder %s1406_s17, 3 }
   0x5   : > { %s1642_s18 = smov (%p29_p1, %s27_s18), 0  ;;  %p196_p3 = pnand %p1058_p0, %p195_p2 }
   0x6   : > { %s1059_s21 = sshll.u32 (!%p196_p3), %s1398_s15, 5  ;;  %p259_p5 = scmp.lt.s32.totalorder (!%p196_p3), %s1398_s15, 1 }
   0x7   : > { %199 = sbr.rel (%p196_p3) target bundleno = 321 (0x141), region = 28  ;;  %p241_p4 = scmp.lt.s32.totalorder (!%p196_p3), %s1059_s21, 63 }
   0xc   : > { %v1360_v0 = vld [vmem:[%s1635_s1 + $0x38] sm:$0xff]   ;;  %v1361_v1 = vld [vmem:[%s1635_s1 + $0x30] sm:$0xff]   ;;  %s1644_s21 = smov (!%p241_p4, %s1059_s21), 63  ;;  %v1362_v2 = vld [vmem:[%s1635_s1 + $0x28] sm:$0xff]   ;;  %s1646_s15 = smov (!%p259_p5, %s1398_s15), 1 }
   0xd   : > { %1272 = vmatprep.subr.bf16.mxu0 %v1360_v0  ;;  %1320 = vmatprep.subr.bf16.mxu1 %v1360_v0  ;;  %s1060_s26 = sshll.u32 %s1644_s21, 2  ;;  %v1363_v3 = vld [vmem:[%s1635_s1 + $0x20] sm:$0xff]   ;;  %v1364_v5 = vld [vmem:[%s1635_s1 + $0x18] sm:$0xff]   ;;  %v1365_v6 = vld [vmem:[%s1635_s1 + $0x10] sm:$0xff]   ;;  %s264_s23 = scalar_lea.vmem %s1637_s3, %s1646_s15 }
   0xe   : > { %1273 = vmatpush3.bf16.msra.mxu0 %v1360_v0  ;;  %1328 = vmatpush3.bf16.msra.mxu1 %v1360_v0  ;;  %s1471_s29 = scalar_lea.vmem %s1634_s0, %s1060_s26  ;;  %v1366_v8 = vld [vmem:[%s1635_s1 + $0x8] sm:$0xff]   ;;  %v1367_v9 = vld [vmem:[%s1635_s1] sm:$0xff]   ;;  %s1513_s20 = scalar_lea.vmem %s1636_s2, %s1060_s26 }
   0xf   : > { %1274 = vmatprep.subr.bf16.mxu0 %v1361_v1  ;;  %1321 = vmatprep.subr.bf16.mxu1 %v1361_v1  ;;  %v1368_v4 = vld [vmem:[%s1471_s29] sm:$0xff]   ;;  %v1369_v10 = vld [vmem:[%s1471_s29 + $0x8] sm:$0xff]   ;;  %v1370_v12 = vld [vmem:[%s1471_s29 + $0x10] sm:$0xff]   ;;  %s270_s26 = scalar_lea.vmem %s1638_s4, %s1646_s15 }
  0x10   : > { %1288 = vmatprep.mubr.bf16.mxu0 %v1368_v4  ;;  %v1376_v7 = vld [vmem:[%s1471_s29 + $0x40] sm:$0xff]   ;;  %v1377_v11 = vld [vmem:[%s1471_s29 + $0x48] sm:$0xff]   ;;  %v1378_v13 = vld [vmem:[%s1471_s29 + $0x50] sm:$0xff]  }
  0x11   : > { %1304 = vmatprep.mubr.bf16.mxu1 %v1376_v7  ;;  %v1371_v14 = vld [vmem:[%s1471_s29 + $0x18] sm:$0xff]   ;;  %v1372_v16 = vld [vmem:[%s1471_s29 + $0x20] sm:$0xff]   ;;  %v1373_v18 = vld [vmem:[%s1471_s29 + $0x28] sm:$0xff]  }
  0x12   : > { %1275 = vmatpush3.bf16.msra.mxu0 %v1361_v1  ;;  %1329 = vmatpush3.bf16.msra.mxu1 %v1361_v1  ;;  %v1379_v15 = vld [vmem:[%s1471_s29 + $0x58] sm:$0xff]   ;;  %v1380_v17 = vld [vmem:[%s1471_s29 + $0x60] sm:$0xff]   ;;  %v1381_v19 = vld [vmem:[%s1471_s29 + $0x68] sm:$0xff]  }
  0x13   : > { %1276 = vmatprep.subr.bf16.mxu0 %v1362_v2  ;;  %1322 = vmatprep.subr.bf16.mxu1 %v1362_v2  ;;  %v1374_v20 = vld [vmem:[%s1471_s29 + $0x30] sm:$0xff]   ;;  %v1375_v22 = vld [vmem:[%s1471_s29 + $0x38] sm:$0xff]  }
  0x14   : > { %v1382_v21 = vld [vmem:[%s1471_s29 + $0x70] sm:$0xff]   ;;  %v1383_v23 = vld [vmem:[%s1471_s29 + $0x78] sm:$0xff]  }
  0x16   : > { %1277 = vmatpush3.bf16.msra.mxu0 %v1362_v2  ;;  %1330 = vmatpush3.bf16.msra.mxu1 %v1362_v2 }
  0x17   : > { %1278 = vmatprep.subr.bf16.mxu0 %v1363_v3  ;;  %1323 = vmatprep.subr.bf16.mxu1 %v1363_v3 }
  0x1a   : > { %1279 = vmatpush3.bf16.msra.mxu0 %v1363_v3  ;;  %1331 = vmatpush3.bf16.msra.mxu1 %v1363_v3 }
  0x1b   : > { %1280 = vmatprep.subr.bf16.mxu0 %v1364_v5  ;;  %1324 = vmatprep.subr.bf16.mxu1 %v1364_v5 }
  0x1e   : > { %1281 = vmatpush3.bf16.msra.mxu0 %v1364_v5  ;;  %1332 = vmatpush3.bf16.msra.mxu1 %v1364_v5 }
  0x1f   : > { %1282 = vmatprep.subr.bf16.mxu0 %v1365_v6  ;;  %1325 = vmatprep.subr.bf16.mxu1 %v1365_v6 }
  0x22   : > { %1283 = vmatpush3.bf16.msra.mxu0 %v1365_v6  ;;  %1333 = vmatpush3.bf16.msra.mxu1 %v1365_v6 }
  0x23   : > { %1284 = vmatprep.subr.bf16.mxu0 %v1366_v8  ;;  %1326 = vmatprep.subr.bf16.mxu1 %v1366_v8 }
  0x26   : > { %1285 = vmatpush3.bf16.msra.mxu0 %v1366_v8  ;;  %1334 = vmatpush3.bf16.msra.mxu1 %v1366_v8 }
  0x27   : > { %1286 = vmatprep.subr.bf16.mxu0 %v1367_v9  ;;  %1327 = vmatprep.subr.bf16.mxu1 %v1367_v9 }
  0x2a   : > { %1287 = vmatpush3.bf16.msra.mxu0 %v1367_v9  ;;  %1335 = vmatpush3.bf16.msra.mxu1 %v1367_v9 }
  0x2d   : > { %1289 = vmatmul.mubr.bf16.vlgmr.msra.gmra.mxu0 %v1369_v10  ;;  %1305 = vmatmul.mubr.bf16.vlgmr.msra.gmra.mxu1 %v1377_v11 }
  0x2e   : > { %1292 = vmatprep.mubr.bf16.mxu0 %v1370_v12  ;;  %1308 = vmatprep.mubr.bf16.mxu1 %v1378_v13 }
  0x35   : > { %1293 = vmatmul.mubr.bf16.gmra.mxu0 %v1371_v14  ;;  %1309 = vmatmul.mubr.bf16.gmra.mxu1 %v1379_v15 }
  0x36   : > { %1296 = vmatprep.mubr.bf16.mxu0 %v1372_v16  ;;  %1312 = vmatprep.mubr.bf16.mxu1 %v1380_v17 }
  0x3d   : > { %1297 = vmatmul.mubr.bf16.gmra.mxu0 %v1373_v18  ;;  %1313 = vmatmul.mubr.bf16.gmra.mxu1 %v1381_v19 }
  0x3e   : > { %1300 = vmatprep.mubr.bf16.mxu0 %v1374_v20  ;;  %1316 = vmatprep.mubr.bf16.mxu1 %v1382_v21 }
  0x45   : > { %1301 = vmatmul.mubr.bf16.gmra.mxu0 %v1375_v22  ;;  %1317 = vmatmul.mubr.bf16.gmra.mxu1 %v1383_v23 }
  0xed   : > { %v1290_v24 = vpop.f32.mrf.mxu0  ;;  %v1504_v25 = vpop.f32.mrf.mxu1 }
  0xee   : > { %v825_v41 = vmul.f32 %v1290_v24, %v1290_v24 }
  0xef   : > { %v498_v26 = vpop.f32.mrf.mxu0  ;;  %v1506_v27 = vpop.f32.mrf.mxu1 }
  0xf0   : > { %v823_v32 = vmul.f32 %v498_v26, %v498_v26 }
  0xf1   : > { %v1291_v28 = vpop.f32.mrf.mxu0  ;;  %v1515_v29 = vpop.f32.mrf.mxu1 }
  0xf2   : > { %v1161_v30 = vpack.c.bf16 %v1291_v28, %v1290_v24  ;;  %v1201_v31 = vpack.c.bf16 %v1515_v29, %v1504_v25  ;;  %v826_v46 = vmul.f32 %v1291_v28, %v1291_v28 }
  0xf3   : > { %v501_v33 = vpop.f32.mrf.mxu0  ;;  %v1519_v34 = vpop.f32.mrf.mxu1 }
  0xf4   : > { %1233 = vst [vmem:[%s1513_s20 + $0x8] sm:$0xff] %v1161_v30   ;;  %v1156_v35 = vpack.c.bf16 %v501_v33, %v498_v26  ;;  %v785_v36 = vadd.f32 %v501_v33, %v498_v26  ;;  %v824_v37 = vmul.f32 %v501_v33, %v501_v33  ;;  %1241 = vst [vmem:[%s1513_s20 + $0x48] sm:$0xff] %v1201_v31  }
  0xf5   : > { %v1196_v38 = vpack.c.bf16 %v1519_v34, %v1506_v27  ;;  %v1294_v39 = vpop.f32.mrf.mxu0  ;;  %v1525_v40 = vpop.f32.mrf.mxu1 }
  0xf6   : > { %1157 = vst [vmem:[%s1513_s20] sm:$0xff] %v1156_v35   ;;  %v786_v42 = vadd.f32 %v1290_v24, %v785_v36  ;;  %v855_v43 = vadd.f32 %v824_v37, %v823_v32  ;;  %v829_v1 = vmul.f32 %v1294_v39, %v1294_v39 }
  0xf7   : > { %1240 = vst [vmem:[%s1513_s20 + $0x40] sm:$0xff] %v1196_v38   ;;  %v514_v44 = vpop.f32.mrf.mxu0  ;;  %v1529_v45 = vpop.f32.mrf.mxu1 }
  0xf8   : > { %v856_v47 = vadd.f32 %v855_v43, %v825_v41  ;;  %v787_v48 = vadd.f32 %v1291_v28, %v786_v42  ;;  %v827_v52 = vmul.f32 %v514_v44, %v514_v44 }
  0xf9   : > { %v1295_v49 = vpop.f32.mrf.mxu0  ;;  %v1531_v50 = vpop.f32.mrf.mxu1 }
  0xfa   : > { %v788_v51 = vadd.f32 %v787_v48, %v514_v44  ;;  %v857_v53 = vadd.f32 %v856_v47, %v826_v46  ;;  %v1171_v54 = vpack.c.bf16 %v1295_v49, %v1294_v39  ;;  %v1211_v56 = vpack.c.bf16 %v1531_v50, %v1525_v40 }
  0xfb   : > { %v517_v55 = vpop.f32.mrf.mxu0  ;;  %v1535_v57 = vpop.f32.mrf.mxu1  ;;  %v830_v6 = vmul.f32 %v1295_v49, %v1295_v49 }
  0xfc   : > { %v858_v58 = vadd.f32 %v857_v53, %v827_v52  ;;  %1235 = vst [vmem:[%s1513_s20 + $0x18] sm:$0xff] %v1171_v54   ;;  %v1166_v59 = vpack.c.bf16 %v517_v55, %v514_v44  ;;  %v789_v60 = vadd.f32 %v788_v51, %v517_v55  ;;  %v828_v61 = vmul.f32 %v517_v55, %v517_v55 }
  0xfd   : > { %v1298_v62 = vpop.f32.mrf.mxu0  ;;  %1243 = vst [vmem:[%s1513_s20 + $0x58] sm:$0xff] %v1211_v56   ;;  %v1206_v63 = vpack.c.bf16 %v1535_v57, %v1529_v45  ;;  %v1541_v0 = vpop.f32.mrf.mxu1 }
  0xfe   : > { %1234 = vst [vmem:[%s1513_s20 + $0x10] sm:$0xff] %v1166_v59   ;;  %v790_v2 = vadd.f32 %v1294_v39, %v789_v60  ;;  %v859_v3 = vadd.f32 %v858_v58, %v828_v61  ;;  %v833_v26 = vmul.f32 %v1298_v62, %v1298_v62  ;;  %v839_v61 = vmul.f32 %v1506_v27, %v1506_v27 }
  0xff   : > { %v530_v4 = vpop.f32.mrf.mxu0  ;;  %1242 = vst [vmem:[%s1513_s20 + $0x50] sm:$0xff] %v1206_v63   ;;  %v1545_v5 = vpop.f32.mrf.mxu1 }
 0x100   : > { %v860_v7 = vadd.f32 %v859_v3, %v829_v1  ;;  %v791_v8 = vadd.f32 %v1295_v49, %v790_v2  ;;  %v831_v12 = vmul.f32 %v530_v4, %v530_v4  ;;  %v840_v2 = vmul.f32 %v1519_v34, %v1519_v34 }
 0x101   : > { %v1299_v9 = vpop.f32.mrf.mxu0  ;;  %v1547_v10 = vpop.f32.mrf.mxu1 }
 0x102   : > { %v792_v11 = vadd.f32 %v791_v8, %v530_v4  ;;  %v861_v13 = vadd.f32 %v860_v7, %v830_v6  ;;  %v1181_v14 = vpack.c.bf16 %v1299_v9, %v1298_v62  ;;  %v1221_v16 = vpack.c.bf16 %v1547_v10, %v1541_v0 }
 0x103   : > { %v533_v15 = vpop.f32.mrf.mxu0  ;;  %v1551_v17 = vpop.f32.mrf.mxu1  ;;  %v834_v33 = vmul.f32 %v1299_v9, %v1299_v9  ;;  %v842_v8 = vmul.f32 %v1515_v29, %v1515_v29 }
 0x104   : > { %v862_v18 = vadd.f32 %v861_v13, %v831_v12  ;;  %1237 = vst [vmem:[%s1513_s20 + $0x28] sm:$0xff] %v1181_v14   ;;  %v1176_v19 = vpack.c.bf16 %v533_v15, %v530_v4  ;;  %v793_v20 = vadd.f32 %v792_v11, %v533_v15  ;;  %v832_v21 = vmul.f32 %v533_v15, %v533_v15 }
 0x105   : > { %v1302_v22 = vpop.f32.mrf.mxu0  ;;  %1245 = vst [vmem:[%s1513_s20 + $0x68] sm:$0xff] %v1221_v16   ;;  %v1216_v23 = vpack.c.bf16 %v1551_v17, %v1545_v5  ;;  %v1557_v24 = vpop.f32.mrf.mxu1  ;;  %v841_v4 = vmul.f32 %v1504_v25, %v1504_v25  ;;  %v843_v12 = vmul.f32 %v1529_v45, %v1529_v45  ;;  %v844_v15 = vmul.f32 %v1535_v57, %v1535_v57 }
 0x106   : > { %1236 = vst [vmem:[%s1513_s20 + $0x20] sm:$0xff] %v1176_v19   ;;  %v794_v28 = vadd.f32 %v1298_v62, %v793_v20  ;;  %v863_v30 = vadd.f32 %v862_v18, %v832_v21  ;;  %v837_v54 = vmul.f32 %v1302_v22, %v1302_v22  ;;  %v847_v21 = vmul.f32 %v1545_v5, %v1545_v5 }
 0x107   : > { %v546_v31 = vpop.f32.mrf.mxu0  ;;  %1244 = vst [vmem:[%s1513_s20 + $0x60] sm:$0xff] %v1216_v23   ;;  %v1561_v32 = vpop.f32.mrf.mxu1 }
 0x108   : > { %v864_v35 = vadd.f32 %v863_v30, %v833_v26  ;;  %v795_v36 = vadd.f32 %v1299_v9, %v794_v28  ;;  %v835_v41 = vmul.f32 %v546_v31, %v546_v31  ;;  %v848_v26 = vmul.f32 %v1551_v17, %v1551_v17 }
 0x109   : > { %v1303_v37 = vpop.f32.mrf.mxu0  ;;  %v1563_v38 = vpop.f32.mrf.mxu1 }
 0x10a   : > { %v796_v39 = vadd.f32 %v795_v36, %v546_v31  ;;  %v865_v42 = vadd.f32 %v864_v35, %v834_v33  ;;  %v1191_v43 = vpack.c.bf16 %v1303_v37, %v1302_v22  ;;  %v1231_v46 = vpack.c.bf16 %v1563_v38, %v1557_v24 }
 0x10b   : > { %v549_v44 = vpop.f32.mrf.mxu0  ;;  %v613_v47 = vpop.f32.mrf.mxu1  ;;  %v838_v58 = vmul.f32 %v1303_v37, %v1303_v37  ;;  %v851_v35 = vmul.f32 %v1561_v32, %v1561_v32 }
 0x10c   : > { %v866_v48 = vadd.f32 %v865_v42, %v835_v41  ;;  %1239 = vst [vmem:[%s1513_s20 + $0x38] sm:$0xff] %v1191_v43   ;;  %v1186_v49 = vpack.c.bf16 %v549_v44, %v546_v31  ;;  %v797_v51 = vadd.f32 %v796_v39, %v549_v44  ;;  %v836_v52 = vmul.f32 %v549_v44, %v549_v44 }
 0x10d   : > { %1247 = vst [vmem:[%s1513_s20 + $0x78] sm:$0xff] %v1231_v46   ;;  %v1226_v53 = vpack.c.bf16 %v613_v47, %v1561_v32  ;;  %v852_v39 = vmul.f32 %v613_v47, %v613_v47  ;;  %v854_v43 = vmul.f32 %v1563_v38, %v1563_v38 }
 0x10e   : > { %1238 = vst [vmem:[%s1513_s20 + $0x30] sm:$0xff] %v1186_v49   ;;  %v798_v55 = vadd.f32 %v1302_v22, %v797_v51  ;;  %v867_v56 = vadd.f32 %v866_v48, %v836_v52 }
 0x10f   : > { %1246 = vst [vmem:[%s1513_s20 + $0x70] sm:$0xff] %v1226_v53  }
 0x110   : > { %v799_v59 = vadd.f32 %v1303_v37, %v798_v55  ;;  %v868_v60 = vadd.f32 %v867_v56, %v837_v54 }
 0x112   : > { %v869_v62 = vadd.f32 %v868_v60, %v838_v58  ;;  %v800_v63 = vadd.f32 %v799_v59, %v1506_v27 }
 0x114   : > { %v801_v1 = vadd.f32 %v800_v63, %v1519_v34  ;;  %v870_v3 = vadd.f32 %v869_v62, %v839_v61 }
 0x116   : > { %v802_v6 = vadd.f32 %v1504_v25, %v801_v1  ;;  %v871_v7 = vadd.f32 %v870_v3, %v840_v2  ;;  %v845_v25 = vmul.f32 %v1525_v40, %v1525_v40 }
 0x118   : > { %v872_v9 = vadd.f32 %v871_v7, %v841_v4  ;;  %v803_v11 = vadd.f32 %v1515_v29, %v802_v6  ;;  %v846_v29 = vmul.f32 %v1531_v50, %v1531_v50 }
 0x11a   : > { %v804_v27 = vadd.f32 %v803_v11, %v1529_v45  ;;  %v873_v13 = vadd.f32 %v872_v9, %v842_v8 }
 0x11c   : > { %v874_v34 = vadd.f32 %v873_v13, %v843_v12  ;;  %v805_v14 = vadd.f32 %v804_v27, %v1535_v57 }
 0x11e   : > { %v806_v16 = vadd.f32 %v1525_v40, %v805_v14  ;;  %v875_v18 = vadd.f32 %v874_v34, %v844_v15  ;;  %v849_v40 = vmul.f32 %v1541_v0, %v1541_v0 }
 0x120   : > { %v876_v19 = vadd.f32 %v875_v18, %v845_v25  ;;  %v807_v20 = vadd.f32 %v1531_v50, %v806_v16  ;;  %v850_v50 = vmul.f32 %v1547_v10, %v1547_v10 }
 0x122   : > { %v808_v45 = vadd.f32 %v807_v20, %v1545_v5  ;;  %v877_v22 = vadd.f32 %v876_v19, %v846_v29 }
 0x124   : > { %v878_v23 = vadd.f32 %v877_v22, %v847_v21  ;;  %v809_v57 = vadd.f32 %v808_v45, %v1551_v17 }
 0x126   : > { %v810_v28 = vadd.f32 %v1541_v0, %v809_v57  ;;  %v879_v30 = vadd.f32 %v878_v23, %v848_v26  ;;  %v853_v0 = vmul.f32 %v1557_v24, %v1557_v24 }
 0x128   : > { %v880_v31 = vadd.f32 %v879_v30, %v849_v40  ;;  %v811_v5 = vadd.f32 %v1547_v10, %v810_v28 }
 0x12a   : > { %v812_v33 = vadd.f32 %v811_v5, %v1561_v32  ;;  %v881_v36 = vadd.f32 %v880_v31, %v850_v50 }
 0x12c   : > { %v882_v17 = vadd.f32 %v881_v36, %v851_v35  ;;  %v813_v37 = vadd.f32 %v812_v33, %v613_v47 }
 0x12e   : > { %v814_v41 = vadd.f32 %v1557_v24, %v813_v37  ;;  %v883_v42 = vadd.f32 %v882_v17, %v852_v39 }
 0x130   : > { %v815_v10 = vadd.f32 %v1563_v38, %v814_v41  ;;  %v884_v44 = vadd.f32 %v883_v42, %v853_v0 }
 0x132   : > { %v816_v46 = vrot.slane %v815_v10, 4  ;;  %v885_v48 = vadd.f32 %v884_v44, %v854_v43 }
 0x134   : > { %v817_v32 = vadd.f32 %v816_v46, %v815_v10  ;;  %v886_v49 = vrot.slane %v885_v48, 4 }
 0x136   : > { %v818_v51 = vrot.slane %v817_v32, 2  ;;  %v887_v52 = vadd.f32 %v886_v49, %v885_v48 }
 0x138   : > { %v819_v47 = vadd.f32 %v818_v51, %v817_v32  ;;  %v888_v53 = vrot.slane %v887_v52, 2 }
 0x13a   : > { %v820_v54 = vrot.slane %v819_v47, 1  ;;  %v889_v55 = vadd.f32 %v888_v53, %v887_v52 }
 0x13c   : > { %v821_v24 = vadd.f32 %v820_v54, %v819_v47  ;;  %v890_v56 = vrot.slane %v889_v55, 1 }
 0x13e   : > { %822 = vst [vmem:[%s264_s23] sm:$0x1] %v821_v24  ;;  %v891_v38 = vadd.f32 %v890_v56, %v889_v55 }
 0x140   : > { %892 = vst [vmem:[%s270_s26] sm:$0x1] %v891_v38 }
 0x141 PF: > { %s15_s17 = sadd.s32 1, %s1406_s17   ;;  %s1639_s15 = smov %s1402_s16 }
 0x142   : > { %p12_p6 = scmp.ge.s32.totalorder %s15_s17, 4   ;;  %s1640_s16 = smov %s1642_s18 }
 0x144   :  { %14 = sbr.rel (!%p12_p6) target bundleno = 2 (0x2), region = 85 }

// kernel: resnet_forward.20
= control target key start
LH: loop header
LB: loop body
LE: loop exit
PB: predicated region body
PF: predicated region fallthrough
CT: control target
= control target key end

     0   :  { %s3754_s0 = inlined_call_operand.vmem [shape: bf16[128,128], index: 0, kind: input, shape index: {}]   ;;  %s3755_s9 = inlined_call_operand.vmem [shape: f32[1,128], index: 9, kind: input, shape index: {}]   ;;  %s3756_s10 = inlined_call_operand.vmem [shape: f32[1,128], index: 10, kind: input, shape index: {}]   ;;  %s3757_s1 = inlined_call_operand.vmem [shape: bf16[128,128], index: 1, kind: input, shape index: {}]   ;;  %s3758_s2 = inlined_call_operand.vmem [shape: bf16[128,128], index: 2, kind: input, shape index: {}]   ;;  %s3759_s3 = inlined_call_operand.vmem [shape: bf16[128,128], index: 3, kind: input, shape index: {}]   ;;  %s3760_s4 = inlined_call_operand.vmem [shape: bf16[128,128], index: 4, kind: input, shape index: {}]   ;;  %s3761_s5 = inlined_call_operand.vmem [shape: bf16[128,128], index: 5, kind: input, shape index: {}]   ;;  %s3762_s6 = inlined_call_operand.vmem [shape: bf16[128,128], index: 6, kind: input, shape index: {}]   ;;  %s3763_s7 = inlined_call_operand.vmem [shape: bf16[128,128], index: 7, kind: input, shape index: {}]   ;;  %s3764_s8 = inlined_call_operand.vmem [shape: bf16[128,128], index: 8, kind: input, shape index: {}]   ;;  %s3765_s11 = inlined_call_operand.vmem [shape: bf16[128,128], index: 11, kind: output, shape index: {}]  }
   0x1   :  { %v1307_v0 = vld [vmem:[%s3754_s0] sm:$0xff]   ;;  %v1634_v1 = vld [vmem:[%s3754_s0 + $0x8] sm:$0xff]   ;;  %v1635_v2 = vld [vmem:[%s3754_s0 + $0x10] sm:$0xff]  }
   0x2   :  { %v1636_v3 = vld [vmem:[%s3754_s0 + $0x18] sm:$0xff]   ;;  %v1637_v4 = vld [vmem:[%s3754_s0 + $0x20] sm:$0xff]   ;;  %v1308_v5 = vunpack.c.l.bf16 %v1307_v0  ;;  %v1309_v6 = vunpack.c.h.bf16 %v1307_v0  ;;  %v1638_v7 = vld [vmem:[%s3754_s0 + $0x28] sm:$0xff]   ;;  %v1312_v10 = vunpack.c.l.bf16 %v1634_v1  ;;  %v1313_v11 = vunpack.c.h.bf16 %v1634_v1 }
   0x3   :  { %v1639_v8 = vld [vmem:[%s3754_s0 + $0x30] sm:$0xff]   ;;  %v1790_v9 = vld [vmem:[%s3755_s9] ss:$0 sm:$0xff]  ;;  %v1316_v12 = vunpack.c.l.bf16 %v1635_v2  ;;  %v1317_v13 = vunpack.c.h.bf16 %v1635_v2  ;;  %v1640_v14 = vld [vmem:[%s3754_s0 + $0x38] sm:$0xff]   ;;  %v1320_v15 = vunpack.c.l.bf16 %v1636_v3  ;;  %v1321_v16 = vunpack.c.h.bf16 %v1636_v3 }
   0x4   :  { %3840 = vst [vmem:[#allocation2_spill] sm:$0xff] %v1790_v9  ;;  %v1324_v17 = vunpack.c.l.bf16 %v1637_v4  ;;  %v1325_v18 = vunpack.c.h.bf16 %v1637_v4  ;;  %v1328_v19 = vunpack.c.l.bf16 %v1638_v7  ;;  %v1329_v20 = vunpack.c.h.bf16 %v1638_v7  ;;  %v1800_v27 = vld [vmem:[%s3756_s10] ss:$0 sm:$0xff]  ;;  %v1643_v45 = vld [vmem:[%s3757_s1 + $0x18] sm:$0xff]   ;;  %v1645_v51 = vld [vmem:[%s3757_s1 + $0x28] sm:$0xff]  }
   0x5   :  { %v1332_v21 = vunpack.c.l.bf16 %v1639_v8  ;;  %v1333_v22 = vunpack.c.h.bf16 %v1639_v8  ;;  %v1336_v23 = vunpack.c.l.bf16 %v1640_v14  ;;  %v1337_v24 = vunpack.c.h.bf16 %v1640_v14  ;;  %v1646_v56 = vld [vmem:[%s3757_s1 + $0x30] sm:$0xff]  }
   0x6   :  { %v94_v25 = vmul.f32 %v1308_v5, %v1790_v9  ;;  %v95_v26 = vmul.f32 %v1309_v6, %v1790_v9  ;;  %vm1802_vm0 = vcmp.gt.f32.partialorder %v1308_v5, -5e+29  ;;  %vm1806_vm1 = vcmp.gt.f32.partialorder %v1309_v6, -5e+29 }
   0x7   :  { %v96_v30 = vmul.f32 %v1312_v10, %v1790_v9  ;;  %v97_v31 = vmul.f32 %v1313_v11, %v1790_v9  ;;  %v98_v32 = vmul.f32 %v1316_v12, %v1790_v9  ;;  %v99_v33 = vmul.f32 %v1317_v13, %v1790_v9 }
   0x8   :  { %vm1814_vm2 = vcmp.gt.f32.partialorder %v1312_v10, -5e+29  ;;  %vm1818_vm3 = vcmp.gt.f32.partialorder %v1313_v11, -5e+29  ;;  %vm1822_vm4 = vcmp.gt.f32.partialorder %v1316_v12, -5e+29  ;;  %v100_v38 = vmul.f32 %v1320_v15, %v1790_v9 }
   0x9   :  { %vm1826_vm5 = vcmp.gt.f32.partialorder %v1317_v13, -5e+29  ;;  %v101_v39 = vmul.f32 %v1321_v16, %v1790_v9  ;;  %v102_v40 = vmul.f32 %v1324_v17, %v1790_v9  ;;  %v103_v41 = vmul.f32 %v1325_v18, %v1790_v9 }
   0xa   :  { %vm1834_vm6 = vcmp.gt.f32.partialorder %v1320_v15, -5e+29  ;;  %vm1838_vm7 = vcmp.gt.f32.partialorder %v1321_v16, -5e+29  ;;  %vm1842_vm8 = vcmp.gt.f32.partialorder %v1324_v17, -5e+29  ;;  %v104_v46 = vmul.f32 %v1328_v19, %v1790_v9 }
   0xb   :  { %vm1846_vm9 = vcmp.gt.f32.partialorder %v1325_v18, -5e+29  ;;  %v105_v47 = vmul.f32 %v1329_v20, %v1790_v9  ;;  %v106_v48 = vmul.f32 %v1332_v21, %v1790_v9  ;;  %v107_v49 = vmul.f32 %v1333_v22, %v1790_v9 }
   0xc   :  { %vm1854_vm10 = vcmp.gt.f32.partialorder %v1328_v19, -5e+29  ;;  %vm1858_vm11 = vcmp.gt.f32.partialorder %v1329_v20, -5e+29  ;;  %v108_v52 = vmul.f32 %v1336_v23, %v1790_v9  ;;  %v109_v53 = vmul.f32 %v1337_v24, %v1790_v9 }
   0xd   :  { %v116_v54 = vadd.f32 %v1800_v27, %v94_v25  ;;  %v117_v55 = vadd.f32 %v1800_v27, %v95_v26  ;;  %vm1866_vm12 = vcmp.gt.f32.partialorder %v1332_v21, -5e+29  ;;  %vm1870_vm13 = vcmp.gt.f32.partialorder %v1333_v22, -5e+29 }
   0xe   :  { %v118_v58 = vadd.f32 %v1800_v27, %v96_v30  ;;  %v119_v59 = vadd.f32 %v1800_v27, %v97_v31  ;;  %v120_v60 = vadd.f32 %v1800_v27, %v98_v32  ;;  %v121_v61 = vadd.f32 %v1800_v27, %v99_v33  ;;  %v1339_v32 = vld [vmem:[%s3757_s1] sm:$0xff]  }
   0xf   :  { %vm1878_vm14 = vcmp.gt.f32.partialorder %v1336_v23, -5e+29  ;;  %vm1882_vm15 = vcmp.gt.f32.partialorder %v1337_v24, -5e+29  ;;  %v122_v0 = vadd.f32 %v1800_v27, %v100_v38  ;;  %v123_v1 = vadd.f32 %v1800_v27, %v101_v39  ;;  %v1641_v39 = vld [vmem:[%s3757_s1 + $0x8] sm:$0xff]  }
  0x10   :  { %v124_v2 = vadd.f32 %v1800_v27, %v102_v40  ;;  %v125_v3 = vadd.f32 %v1800_v27, %v103_v41  ;;  %v126_v4 = vadd.f32 %v1800_v27, %v104_v46  ;;  %v127_v5 = vadd.f32 %v1800_v27, %v105_v47  ;;  %v1642_v40 = vld [vmem:[%s3757_s1 + $0x10] sm:$0xff]   ;;  %v1644_v46 = vld [vmem:[%s3757_s1 + $0x20] sm:$0xff]  }
  0x11   :  { %v128_v6 = vadd.f32 %v1800_v27, %v106_v48  ;;  %v129_v7 = vadd.f32 %v1800_v27, %v107_v49  ;;  %v130_v8 = vadd.f32 %v1800_v27, %v108_v52  ;;  %v131_v10 = vadd.f32 %v1800_v27, %v109_v53 }
  0x12   :  { %v132_v11 = vmax.f32 %v116_v54, 0.0  ;;  %v133_v12 = vmax.f32 %v117_v55, 0.0  ;;  %v134_v13 = vmax.f32 %v118_v58, 0.0  ;;  %v135_v14 = vmax.f32 %v119_v59, 0.0 }
  0x13   :  { %v136_v15 = vmax.f32 %v120_v60, 0.0  ;;  %v137_v16 = vmax.f32 %v121_v61, 0.0  ;;  %v138_v17 = vmax.f32 %v122_v0, 0.0  ;;  %v139_v18 = vmax.f32 %v123_v1, 0.0  ;;  %v1647_v61 = vld [vmem:[%s3757_s1 + $0x38] sm:$0xff]  }
  0x14   :  { %v140_v19 = vmax.f32 %v124_v2, 0.0  ;;  %v141_v20 = vmax.f32 %v125_v3, 0.0  ;;  %v142_v21 = vmax.f32 %v126_v4, 0.0  ;;  %v143_v22 = vmax.f32 %v127_v5, 0.0 }
  0x15   :  { %v144_v23 = vmax.f32 %v128_v6, 0.0  ;;  %v145_v24 = vmax.f32 %v129_v7, 0.0  ;;  %v146_v25 = vmax.f32 %v130_v8, 0.0  ;;  %v147_v26 = vmax.f32 %v131_v10, 0.0 }
  0x16   :  { %v1898_v30 = vsel %vm1802_vm0, %v132_v11, 0.0  ;;  %v1902_v31 = vsel %vm1806_vm1, %v133_v12, 0.0  ;;  %v1909_v33 = vsel %vm1814_vm2, %v134_v13, 0.0  ;;  %v1913_v38 = vsel %vm1818_vm3, %v135_v14, 0.0 }
  0x17   :  { %v1917_v28 = vsel %vm1822_vm4, %v136_v15, 0.0  ;;  %v1921_v29 = vsel %vm1826_vm5, %v137_v16, 0.0  ;;  %v1928_v34 = vsel %vm1834_vm6, %v138_v17, 0.0  ;;  %v1932_v35 = vsel %vm1838_vm7, %v139_v18, 0.0 }
  0x18   :  { %v1936_v36 = vsel %vm1842_vm8, %v140_v19, 0.0  ;;  %v1940_v37 = vsel %vm1846_vm9, %v141_v20, 0.0  ;;  %v1947_v41 = vsel %vm1854_vm10, %v142_v21, 0.0  ;;  %v1951_v42 = vsel %vm1858_vm11, %v143_v22, 0.0 }
  0x19   :  { %3873 = vst [vmem:[#allocation3_spill] sm:$0xff] %v1940_v37  ;;  %3874 = vst [vmem:[#allocation4_spill] sm:$0xff] %v1947_v41  ;;  %v1340_v43 = vunpack.c.l.bf16 %v1339_v32  ;;  %v1341_v44 = vunpack.c.h.bf16 %v1339_v32  ;;  %v1961_v47 = vsel %vm1866_vm12, %v144_v23, 0.0  ;;  %v1965_v48 = vsel %vm1870_vm13, %v145_v24, 0.0 }
  0x1a   :  { %3875 = vst [vmem:[#allocation5_spill] sm:$0xff] %v1951_v42  ;;  %3876 = vst [vmem:[#allocation6_spill] sm:$0xff] %v1961_v47  ;;  %v1344_v49 = vunpack.c.l.bf16 %v1641_v39  ;;  %v1345_v50 = vunpack.c.h.bf16 %v1641_v39  ;;  %v1972_v52 = vsel %vm1878_vm14, %v146_v25, 0.0  ;;  %v1976_v53 = vsel %vm1882_vm15, %v147_v26, 0.0 }
  0x1b   :  { %3877 = vst [vmem:[#allocation7_spill] sm:$0xff] %v1965_v48  ;;  %3878 = vst [vmem:[#allocation8_spill] sm:$0xff] %v1972_v52  ;;  %v1348_v54 = vunpack.c.l.bf16 %v1642_v40  ;;  %v1349_v55 = vunpack.c.h.bf16 %v1642_v40  ;;  %v1352_v57 = vunpack.c.l.bf16 %v1643_v45  ;;  %v1353_v58 = vunpack.c.h.bf16 %v1643_v45 }
  0x1c   :  { %3879 = vst [vmem:[#allocation9_spill] sm:$0xff] %v1976_v53  ;;  %v1356_v59 = vunpack.c.l.bf16 %v1644_v46  ;;  %v1357_v60 = vunpack.c.h.bf16 %v1644_v46  ;;  %v1360_v62 = vunpack.c.l.bf16 %v1645_v51  ;;  %v1361_v0 = vunpack.c.h.bf16 %v1645_v51 }
  0x1d   :  { %v212_v63 = vmul.f32 %v1340_v43, %v1790_v9  ;;  %v213_v1 = vmul.f32 %v1341_v44, %v1790_v9  ;;  %v1364_v2 = vunpack.c.l.bf16 %v1646_v56  ;;  %v1365_v3 = vunpack.c.h.bf16 %v1646_v56 }
  0x1e   :  { %v214_v4 = vmul.f32 %v1344_v49, %v1790_v9  ;;  %v215_v5 = vmul.f32 %v1345_v50, %v1790_v9  ;;  %v1368_v6 = vunpack.c.l.bf16 %v1647_v61  ;;  %v1369_v7 = vunpack.c.h.bf16 %v1647_v61 }
  0x1f   :  { %vm1988_vm0 = vcmp.gt.f32.partialorder %v1340_v43, -5e+29  ;;  %vm1992_vm1 = vcmp.gt.f32.partialorder %v1341_v44, -5e+29  ;;  %vm1996_vm2 = vcmp.gt.f32.partialorder %v1344_v49, -5e+29  ;;  %v216_v13 = vmul.f32 %v1348_v54, %v1790_v9 }
  0x20   :  { %vm2000_vm3 = vcmp.gt.f32.partialorder %v1345_v50, -5e+29  ;;  %v217_v14 = vmul.f32 %v1349_v55, %v1790_v9  ;;  %v218_v15 = vmul.f32 %v1352_v57, %v1790_v9  ;;  %v219_v16 = vmul.f32 %v1353_v58, %v1790_v9  ;;  %v1371_v50 = vld [vmem:[%s3758_s2] sm:$0xff]  }
  0x21   :  { %v228_v17 = vadd.f32 %v1800_v27, %v212_v63  ;;  %v229_v18 = vadd.f32 %v1800_v27, %v213_v1  ;;  %vm2010_vm4 = vcmp.gt.f32.partialorder %v1348_v54, -5e+29  ;;  %vm2014_vm5 = vcmp.gt.f32.partialorder %v1349_v55, -5e+29 }
  0x22   :  { %v220_v21 = vmul.f32 %v1356_v59, %v1790_v9  ;;  %v221_v22 = vmul.f32 %v1357_v60, %v1790_v9  ;;  %v230_v23 = vadd.f32 %v1800_v27, %v214_v4  ;;  %v231_v24 = vadd.f32 %v1800_v27, %v215_v5 }
  0x23   :  { %vm2022_vm6 = vcmp.gt.f32.partialorder %v1352_v57, -5e+29  ;;  %vm2026_vm7 = vcmp.gt.f32.partialorder %v1353_v58, -5e+29  ;;  %vm2030_vm8 = vcmp.gt.f32.partialorder %v1356_v59, -5e+29  ;;  %v222_v40 = vmul.f32 %v1360_v62, %v1790_v9 }
  0x24   :  { %vm2034_vm9 = vcmp.gt.f32.partialorder %v1357_v60, -5e+29  ;;  %v223_v43 = vmul.f32 %v1361_v0, %v1790_v9  ;;  %v224_v44 = vmul.f32 %v1364_v2, %v1790_v9  ;;  %v225_v45 = vmul.f32 %v1365_v3, %v1790_v9  ;;  %v1648_v59 = vld [vmem:[%s3758_s2 + $0x8] sm:$0xff]  }
  0x25   :  { %vm2042_vm10 = vcmp.gt.f32.partialorder %v1360_v62, -5e+29  ;;  %vm2046_vm11 = vcmp.gt.f32.partialorder %v1361_v0, -5e+29  ;;  %vm2050_vm12 = vcmp.gt.f32.partialorder %v1364_v2, -5e+29  ;;  %v226_v54 = vmul.f32 %v1368_v6, %v1790_v9 }
  0x26   :  { %vm2054_vm13 = vcmp.gt.f32.partialorder %v1365_v3, -5e+29  ;;  %v227_v55 = vmul.f32 %v1369_v7, %v1790_v9  ;;  %v232_v56 = vadd.f32 %v1800_v27, %v216_v13  ;;  %v233_v57 = vadd.f32 %v1800_v27, %v217_v14 }
  0x27   :  { %vm2062_vm14 = vcmp.gt.f32.partialorder %v1368_v6, -5e+29  ;;  %vm2066_vm15 = vcmp.gt.f32.partialorder %v1369_v7, -5e+29  ;;  %v234_v60 = vadd.f32 %v1800_v27, %v218_v15  ;;  %v235_v61 = vadd.f32 %v1800_v27, %v219_v16 }
  0x28   :  { %v244_v62 = vmax.f32 %v228_v17, 0.0  ;;  %v245_v0 = vmax.f32 %v229_v18, 0.0  ;;  %v236_v63 = vadd.f32 %v1800_v27, %v220_v21  ;;  %v237_v1 = vadd.f32 %v1800_v27, %v221_v22 }
  0x29   :  { %v246_v2 = vmax.f32 %v230_v23, 0.0  ;;  %v247_v3 = vmax.f32 %v231_v24, 0.0  ;;  %v238_v4 = vadd.f32 %v1800_v27, %v222_v40  ;;  %v239_v5 = vadd.f32 %v1800_v27, %v223_v43 }
  0x2a   :  { %v240_v6 = vadd.f32 %v1800_v27, %v224_v44  ;;  %v241_v7 = vadd.f32 %v1800_v27, %v225_v45  ;;  %v242_v13 = vadd.f32 %v1800_v27, %v226_v54  ;;  %v243_v14 = vadd.f32 %v1800_v27, %v227_v55 }
  0x2b   :  { %v248_v15 = vmax.f32 %v232_v56, 0.0  ;;  %v249_v16 = vmax.f32 %v233_v57, 0.0  ;;  %v250_v17 = vmax.f32 %v234_v60, 0.0  ;;  %v251_v18 = vmax.f32 %v235_v61, 0.0 }
  0x2c   :  { %v2082_v21 = vsel %vm1988_vm0, %v244_v62, 0.0  ;;  %v2086_v22 = vsel %vm1992_vm1, %v245_v0, 0.0  ;;  %v252_v23 = vmax.f32 %v236_v63, 0.0  ;;  %v253_v24 = vmax.f32 %v237_v1, 0.0 }
  0x2d   :  { %v2090_v40 = vsel %vm1996_vm2, %v246_v2, 0.0  ;;  %v2094_v43 = vsel %vm2000_vm3, %v247_v3, 0.0  ;;  %v254_v44 = vmax.f32 %v238_v4, 0.0  ;;  %v255_v45 = vmax.f32 %v239_v5, 0.0  ;;  %v1649_v4 = vld [vmem:[%s3758_s2 + $0x10] sm:$0xff]  }
  0x2e   :  { %v256_v54 = vmax.f32 %v240_v6, 0.0  ;;  %v257_v8 = vmax.f32 %v241_v7, 0.0  ;;  %v258_v55 = vmax.f32 %v242_v13, 0.0  ;;  %v259_v56 = vmax.f32 %v243_v14, 0.0  ;;  %v1650_v14 = vld [vmem:[%s3758_s2 + $0x18] sm:$0xff]  }
  0x2f   :  { %v2106_v60 = vsel %vm2010_vm4, %v248_v15, 0.0  ;;  %v2110_v61 = vsel %vm2014_vm5, %v249_v16, 0.0  ;;  %v2114_v62 = vsel %vm2022_vm6, %v250_v17, 0.0  ;;  %v2118_v0 = vsel %vm2026_vm7, %v251_v18, 0.0  ;;  %v1651_v15 = vld [vmem:[%s3758_s2 + $0x20] sm:$0xff]  }
  0x30   :  { %v2122_v63 = vsel %vm2030_vm8, %v252_v23, 0.0  ;;  %v2126_v19 = vsel %vm2034_vm9, %v253_v24, 0.0  ;;  %v2130_v20 = vsel %vm2042_vm10, %v254_v44, 0.0  ;;  %v2134_v25 = vsel %vm2046_vm11, %v255_v45, 0.0  ;;  %v1652_v24 = vld [vmem:[%s3758_s2 + $0x28] sm:$0xff]   ;;  %v1653_v44 = vld [vmem:[%s3758_s2 + $0x30] sm:$0xff]  }
  0x31   :  { %3912 = vst [vmem:[#allocation10_spill] sm:$0xff] %v2122_v63  ;;  %3913 = vst [vmem:[#allocation11_spill] sm:$0xff] %v2126_v19  ;;  %v2138_v26 = vsel %vm2050_vm12, %v256_v54, 0.0  ;;  %v2142_v32 = vsel %vm2054_vm13, %v257_v8, 0.0  ;;  %v2150_v1 = vsel %vm2062_vm14, %v258_v55, 0.0  ;;  %v2154_v49 = vsel %vm2066_vm15, %v259_v56, 0.0 }
  0x32   :  { %3914 = vst [vmem:[#allocation12_spill] sm:$0xff] %v2130_v20  ;;  %3915 = vst [vmem:[#allocation13_spill] sm:$0xff] %v2134_v25  ;;  %v1372_v18 = vunpack.c.l.bf16 %v1371_v50  ;;  %v1373_v23 = vunpack.c.h.bf16 %v1371_v50  ;;  %v1376_v45 = vunpack.c.l.bf16 %v1648_v59  ;;  %v1377_v54 = vunpack.c.h.bf16 %v1648_v59  ;;  %v1654_v56 = vld [vmem:[%s3758_s2 + $0x38] sm:$0xff]  }
  0x33   :  { %3916 = vst [vmem:[#allocation14_spill] sm:$0xff] %v2138_v26  ;;  %3917 = vst [vmem:[#allocation15_spill] sm:$0xff] %v2142_v32  ;;  %v1380_v8 = vunpack.c.l.bf16 %v1649_v4  ;;  %v1381_v55 = vunpack.c.h.bf16 %v1649_v4  ;;  %v1384_v16 = vunpack.c.l.bf16 %v1650_v14  ;;  %v1385_v17 = vunpack.c.h.bf16 %v1650_v14 }
  0x34   :  { %3918 = vst [vmem:[#allocation16_spill] sm:$0xff] %v2150_v1  ;;  %3919 = vst [vmem:[#allocation17_spill] sm:$0xff] %v2154_v49  ;;  %v1388_v13 = vunpack.c.l.bf16 %v1651_v15  ;;  %v1389_v50 = vunpack.c.h.bf16 %v1651_v15  ;;  %v1392_v7 = vunpack.c.l.bf16 %v1652_v24  ;;  %v1393_v6 = vunpack.c.h.bf16 %v1652_v24 }
  0x35   :  { %v1396_v5 = vunpack.c.l.bf16 %v1653_v44  ;;  %v1397_v58 = vunpack.c.h.bf16 %v1653_v44  ;;  %v1400_v3 = vunpack.c.l.bf16 %v1654_v56  ;;  %v1401_v2 = vunpack.c.h.bf16 %v1654_v56 }
  0x36   :  { %v340_v51 = vmul.f32 %v1372_v18, %v1790_v9  ;;  %v341_v59 = vmul.f32 %v1373_v23, %v1790_v9  ;;  %vm2202_vm0 = vcmp.gt.f32.partialorder %v1372_v18, -5e+29  ;;  %vm2206_vm1 = vcmp.gt.f32.partialorder %v1373_v23, -5e+29  ;;  %v1655_v23 = vld [vmem:[%s3759_s3 + $0x8] sm:$0xff]  }
  0x37   :  { %v342_v14 = vmul.f32 %v1376_v45, %v1790_v9  ;;  %v343_v15 = vmul.f32 %v1377_v54, %v1790_v9  ;;  %vm2212_vm2 = vcmp.gt.f32.partialorder %v1376_v45, -5e+29  ;;  %vm2216_vm3 = vcmp.gt.f32.partialorder %v1377_v54, -5e+29 }
  0x38   :  { %v344_v18 = vmul.f32 %v1380_v8, %v1790_v9  ;;  %v345_v56 = vmul.f32 %v1381_v55, %v1790_v9  ;;  %vm2222_vm4 = vcmp.gt.f32.partialorder %v1380_v8, -5e+29  ;;  %vm2226_vm5 = vcmp.gt.f32.partialorder %v1381_v55, -5e+29  ;;  %v3962_v8 = vld [vmem:[#allocation10_spill] sm:$0xff] }
  0x39   :  { %v346_v45 = vmul.f32 %v1384_v16, %v1790_v9  ;;  %v347_v12 = vmul.f32 %v1385_v17, %v1790_v9  ;;  %v348_v54 = vmul.f32 %v1388_v13, %v1790_v9  ;;  %v349_v11 = vmul.f32 %v1389_v50, %v1790_v9 }
  0x3a   :  { %vm2234_vm6 = vcmp.gt.f32.partialorder %v1384_v16, -5e+29  ;;  %vm2238_vm7 = vcmp.gt.f32.partialorder %v1385_v17, -5e+29  ;;  %v350_v55 = vmul.f32 %v1392_v7, %v1790_v9  ;;  %v351_v10 = vmul.f32 %v1393_v6, %v1790_v9  ;;  %v3964_v16 = vld [vmem:[#allocation3_spill] sm:$0xff] }
  0x3b   :  { %v356_v49 = vadd.f32 %v1800_v27, %v340_v51  ;;  %v357_v53 = vadd.f32 %v1800_v27, %v341_v59  ;;  %vm2246_vm8 = vcmp.gt.f32.partialorder %v1388_v13, -5e+29  ;;  %vm2250_vm9 = vcmp.gt.f32.partialorder %v1389_v50, -5e+29  ;;  %v3965_v51 = vld [vmem:[#allocation11_spill] sm:$0xff] }
  0x3c   :  { %v352_v17 = vmul.f32 %v1396_v5, %v1790_v9  ;;  %v353_v52 = vmul.f32 %v1397_v58, %v1790_v9  ;;  %v358_v32 = vadd.f32 %v1800_v27, %v342_v14  ;;  %v359_v48 = vadd.f32 %v1800_v27, %v343_v15 }
  0x3d   :  { %vm2258_vm10 = vcmp.gt.f32.partialorder %v1392_v7, -5e+29  ;;  %vm2262_vm11 = vcmp.gt.f32.partialorder %v1393_v6, -5e+29  ;;  %v354_v50 = vmul.f32 %v1400_v3, %v1790_v9  ;;  %v355_v59 = vmul.f32 %v1401_v2, %v1790_v9  ;;  %v1656_v7 = vld [vmem:[%s3759_s3 + $0x10] sm:$0xff]  }
  0x3e   :  { %v360_v26 = vadd.f32 %v1800_v27, %v344_v18  ;;  %v361_v47 = vadd.f32 %v1800_v27, %v345_v56  ;;  %vm2270_vm12 = vcmp.gt.f32.partialorder %v1396_v5, -5e+29  ;;  %vm2274_vm13 = vcmp.gt.f32.partialorder %v1397_v58, -5e+29 }
  0x3f   :  { %v362_v6 = vadd.f32 %v1800_v27, %v346_v45  ;;  %v363_v15 = vadd.f32 %v1800_v27, %v347_v12  ;;  %v364_v25 = vadd.f32 %v1800_v27, %v348_v54  ;;  %v365_v9 = vadd.f32 %v1800_v27, %v349_v11 }
  0x40   :  { %vm2282_vm14 = vcmp.gt.f32.partialorder %v1400_v3, -5e+29  ;;  %v3948_v18 = vmov 0  ;;  %vm2286_vm15 = vcmp.gt.f32.partialorder %v1401_v2, -5e+29  ;;  %v3951_v5 = vmov 0 }
  0x41   :  { %v3949_v18 = vsel %vm2282_vm14, 4294967295, %v3948_v18  ;;  %v3952_v5 = vsel %vm2286_vm15, 4294967295, %v3951_v5  ;;  %v366_v58 = vadd.f32 %v1800_v27, %v350_v55  ;;  %v367_v56 = vadd.f32 %v1800_v27, %v351_v10 }
  0x42   :  { %3950 = vst [vmem:[#allocation18_spill] sm:$0xff] %v3949_v18  ;;  %3953 = vst [vmem:[#allocation19_spill] sm:$0xff] %v3952_v5  ;;  %v372_v42 = vmax.f32 %v356_v49, 0.0  ;;  %v373_v45 = vmax.f32 %v357_v53, 0.0  ;;  %v368_v12 = vadd.f32 %v1800_v27, %v352_v17  ;;  %v369_v54 = vadd.f32 %v1800_v27, %v353_v52 }
  0x43   :  { %v374_v20 = vmax.f32 %v358_v32, 0.0  ;;  %v375_v11 = vmax.f32 %v359_v48, 0.0  ;;  %v370_v3 = vadd.f32 %v1800_v27, %v354_v50  ;;  %v371_v41 = vadd.f32 %v1800_v27, %v355_v59 }
  0x44   :  { %v376_v2 = vmax.f32 %v360_v26, 0.0  ;;  %v377_v18 = vmax.f32 %v361_v47, 0.0  ;;  %v378_v19 = vmax.f32 %v362_v6, 0.0  ;;  %v379_v5 = vmax.f32 %v363_v15, 0.0  ;;  %v3970_v6 = vld [vmem:[#allocation4_spill] sm:$0xff] }
  0x45   :  { %v380_v37 = vmax.f32 %v364_v25, 0.0  ;;  %v381_v55 = vmax.f32 %v365_v9, 0.0  ;;  %v382_v63 = vmax.f32 %v366_v58, 0.0  ;;  %v383_v10 = vmax.f32 %v367_v56, 0.0  ;;  %v3971_v15 = vld [vmem:[#allocation12_spill] sm:$0xff]  ;;  %v3975_v58 = vld [vmem:[#allocation13_spill] sm:$0xff] }
  0x46   :  { %v388_v53 = vsel %vm2202_vm0, %v372_v42, 0.0  ;;  %v389_v52 = vsel %vm2206_vm1, %v373_v45, 0.0  ;;  %v384_v32 = vmax.f32 %v368_v12, 0.0  ;;  %v385_v48 = vmax.f32 %v369_v54, 0.0 }
  0x47   :  { %v390_v49 = vsel %vm2212_vm2, %v374_v20, 0.0  ;;  %v391_v47 = vsel %vm2216_vm3, %v375_v11, 0.0  ;;  %v386_v26 = vmax.f32 %v370_v3, 0.0  ;;  %v387_v17 = vmax.f32 %v371_v41, 0.0  ;;  %v1657_v11 = vld [vmem:[%s3759_s3 + $0x18] sm:$0xff]   ;;  %v1658_v3 = vld [vmem:[%s3759_s3 + $0x20] sm:$0xff]  }
  0x48   :  { %v392_v9 = vsel %vm2222_vm4, %v376_v2, 0.0  ;;  %v393_v25 = vsel %vm2226_vm5, %v377_v18, 0.0  ;;  %v3954_v42 = vmax.f32 %v1898_v30, %v2082_v21  ;;  %v3955_v4 = vmax.f32 %v1902_v31, %v2086_v22  ;;  %v3978_v2 = vld [vmem:[#allocation6_spill] sm:$0xff] }
  0x49   :  { %v394_v24 = vsel %vm2234_vm6, %v378_v19, 0.0  ;;  %v395_v41 = vsel %vm2238_vm7, %v379_v5, 0.0  ;;  %v3956_v39 = vmax.f32 %v1909_v33, %v2090_v40  ;;  %v3957_v30 = vmax.f32 %v1913_v38, %v2094_v43  ;;  %v3974_v5 = vld [vmem:[#allocation5_spill] sm:$0xff] }
  0x4a   :  { %v2311_v46 = vmax.f32 %v3954_v42, %v388_v53  ;;  %v2316_v20 = vmax.f32 %v3955_v4, %v389_v52  ;;  %v396_v31 = vsel %vm2246_vm8, %v380_v37, 0.0  ;;  %v397_v22 = vsel %vm2250_vm9, %v381_v55, 0.0  ;;  %v1403_v37 = vld [vmem:[%s3759_s3] sm:$0xff]   ;;  %v3982_v52 = vld [vmem:[#allocation7_spill] sm:$0xff] }
  0x4b   :  { %v2325_v44 = vmax.f32 %v3956_v39, %v390_v49  ;;  %v2330_v21 = vmax.f32 %v3957_v30, %v391_v47  ;;  %v3958_v57 = vmax.f32 %v1917_v28, %v2106_v60  ;;  %v3959_v33 = vmax.f32 %v1921_v29, %v2110_v61  ;;  %v3979_v55 = vld [vmem:[#allocation14_spill] sm:$0xff] }
  0x4c   :  { %v398_v38 = vsel %vm2258_vm10, %v382_v63, 0.0  ;;  %v399_v43 = vsel %vm2262_vm11, %v383_v10, 0.0  ;;  %v3960_v28 = vmax.f32 %v1928_v34, %v2114_v62  ;;  %v3961_v29 = vmax.f32 %v1932_v35, %v2118_v0 }
  0x4d   :  { %v2339_v19 = vmax.f32 %v3958_v57, %v392_v9  ;;  %v2344_v40 = vmax.f32 %v3959_v33, %v393_v25  ;;  %v400_v63 = vsel %vm2270_vm12, %v384_v32, 0.0  ;;  %v401_v1 = vsel %vm2274_vm13, %v385_v48, 0.0  ;;  %v3983_v32 = vld [vmem:[#allocation15_spill] sm:$0xff]  ;;  %v3986_v9 = vld [vmem:[#allocation8_spill] sm:$0xff] }
  0x4e   :  { %v2356_v60 = vmax.f32 %v3960_v28, %v394_v24  ;;  %v2361_v61 = vmax.f32 %v3961_v29, %v395_v41  ;;  %v3963_v34 = vmax.f32 %v1936_v36, %v3962_v8  ;;  %v3966_v35 = vmax.f32 %v3964_v16, %v3965_v51  ;;  %v3987_v25 = vld [vmem:[#allocation16_spill] sm:$0xff]  ;;  %v3990_v24 = vld [vmem:[#allocation9_spill] sm:$0xff] }
  0x4f   :  { %v402_v50 = vsel %vm2282_vm14, %v386_v26, 0.0  ;;  %v403_v14 = vsel %vm2286_vm15, %v387_v17, 0.0  ;;  %v3972_v36 = vmax.f32 %v3970_v6, %v3971_v15  ;;  %v3976_v56 = vmax.f32 %v3974_v5, %v3975_v58  ;;  %v1659_v17 = vld [vmem:[%s3759_s3 + $0x28] sm:$0xff]   ;;  %v3991_v41 = vld [vmem:[#allocation17_spill] sm:$0xff]  ;;  %v1660_v57 = vld [vmem:[%s3759_s3 + $0x30] sm:$0xff]  }
  0x50   :  { %v2373_v62 = vmax.f32 %v3963_v34, %v396_v31  ;;  %v2378_v0 = vmax.f32 %v3966_v35, %v397_v22  ;;  %v1404_v12 = vunpack.c.l.bf16 %v1403_v37  ;;  %v1405_v54 = vunpack.c.h.bf16 %v1403_v37  ;;  %v1661_v28 = vld [vmem:[%s3759_s3 + $0x38] sm:$0xff]  }
  0x51   :  { %v2390_v18 = vmax.f32 %v3972_v36, %v398_v38  ;;  %v2395_v45 = vmax.f32 %v3976_v56, %v399_v43  ;;  %v3980_v10 = vmax.f32 %v3978_v2, %v3979_v55  ;;  %v3984_v48 = vmax.f32 %v3982_v52, %v3983_v32 }
  0x52   :  { %3967 = vst [vmem:[#allocation10_spill] sm:$0xff] %v2378_v0  ;;  %v1408_v47 = vunpack.c.l.bf16 %v1655_v23  ;;  %v1409_v26 = vunpack.c.h.bf16 %v1655_v23  ;;  %v3988_v42 = vmax.f32 %v3986_v9, %v3987_v25  ;;  %v3992_v39 = vmax.f32 %v3990_v24, %v3991_v41  ;;  %v1435_v41 = vld [vmem:[%s3760_s4] sm:$0xff]  }
  0x53   :  { %3973 = vst [vmem:[#allocation3_spill] sm:$0xff] %v2390_v18  ;;  %3977 = vst [vmem:[#allocation11_spill] sm:$0xff] %v2395_v45  ;;  %v2406_v53 = vmax.f32 %v3980_v10, %v400_v63  ;;  %v2411_v49 = vmax.f32 %v3984_v48, %v401_v1  ;;  %v1412_v31 = vunpack.c.l.bf16 %v1656_v7  ;;  %v1413_v22 = vunpack.c.h.bf16 %v1656_v7  ;;  %v3994_v1 = vld [vmem:[#allocation2_spill] sm:$0xff] }
  0x54   :  { %v2419_v4 = vmax.f32 %v3988_v42, %v402_v50  ;;  %v2424_v30 = vmax.f32 %v3992_v39, %v403_v14  ;;  %v1416_v33 = vunpack.c.l.bf16 %v1657_v11  ;;  %v1417_v38 = vunpack.c.h.bf16 %v1657_v11 }
  0x55   :  { %3981 = vst [vmem:[#allocation18_spill] sm:$0xff] %v2406_v53  ;;  %3985 = vst [vmem:[#allocation19_spill] sm:$0xff] %v2411_v49  ;;  %v1420_v43 = vunpack.c.l.bf16 %v1658_v3  ;;  %v1421_v37 = vunpack.c.h.bf16 %v1658_v3  ;;  %v1424_v29 = vunpack.c.l.bf16 %v1659_v17  ;;  %v1425_v63 = vunpack.c.h.bf16 %v1659_v17 }
  0x56   :  { %3989 = vst [vmem:[#allocation4_spill] sm:$0xff] %v2419_v4  ;;  %3993 = vst [vmem:[#allocation12_spill] sm:$0xff] %v2424_v30  ;;  %v468_v23 = vmul.f32 %v1404_v12, %v3994_v1  ;;  %v469_v8 = vmul.f32 %v1405_v54, %v3994_v1  ;;  %v1428_v34 = vunpack.c.l.bf16 %v1660_v57  ;;  %v1429_v16 = vunpack.c.h.bf16 %v1660_v57 }
  0x57   :  { %v470_v51 = vmul.f32 %v1408_v47, %v3994_v1  ;;  %v471_v35 = vmul.f32 %v1409_v26, %v3994_v1  ;;  %v1432_v13 = vunpack.c.l.bf16 %v1661_v28  ;;  %v1433_v50 = vunpack.c.h.bf16 %v1661_v28 }
  0x58   :  { %vm2436_vm0 = vcmp.gt.f32.partialorder %v1404_v12, -5e+29  ;;  %vm2440_vm1 = vcmp.gt.f32.partialorder %v1405_v54, -5e+29  ;;  %vm2444_vm2 = vcmp.gt.f32.partialorder %v1408_v47, -5e+29  ;;  %v472_v15 = vmul.f32 %v1412_v31, %v3994_v1 }
  0x59   :  { %vm2448_vm3 = vcmp.gt.f32.partialorder %v1409_v26, -5e+29  ;;  %v473_v36 = vmul.f32 %v1413_v22, %v3994_v1  ;;  %v474_v5 = vmul.f32 %v1416_v33, %v3994_v1  ;;  %v475_v58 = vmul.f32 %v1417_v38, %v3994_v1 }
  0x5a   :  { %v484_v56 = vadd.f32 %v1800_v27, %v468_v23  ;;  %v485_v12 = vadd.f32 %v1800_v27, %v469_v8  ;;  %vm2458_vm4 = vcmp.gt.f32.partialorder %v1412_v31, -5e+29  ;;  %vm2462_vm5 = vcmp.gt.f32.partialorder %v1413_v22, -5e+29 }
  0x5b   :  { %v476_v3 = vmul.f32 %v1420_v43, %v3994_v1  ;;  %v477_v2 = vmul.f32 %v1421_v37, %v3994_v1  ;;  %v486_v55 = vadd.f32 %v1800_v27, %v470_v51  ;;  %v487_v10 = vadd.f32 %v1800_v27, %v471_v35 }
  0x5c   :  { %vm2470_vm6 = vcmp.gt.f32.partialorder %v1416_v33, -5e+29  ;;  %vm2474_vm7 = vcmp.gt.f32.partialorder %v1417_v38, -5e+29  ;;  %vm2478_vm8 = vcmp.gt.f32.partialorder %v1420_v43, -5e+29  ;;  %v478_v26 = vmul.f32 %v1424_v29, %v3994_v1 }
  0x5d   :  { %vm2482_vm9 = vcmp.gt.f32.partialorder %v1421_v37, -5e+29  ;;  %v479_v17 = vmul.f32 %v1425_v63, %v3994_v1  ;;  %v480_v9 = vmul.f32 %v1428_v34, %v3994_v1  ;;  %v481_v25 = vmul.f32 %v1429_v16, %v3994_v1  ;;  %v1662_v43 = vld [vmem:[%s3760_s4 + $0x8] sm:$0xff]  }
  0x5e   :  { %vm2490_vm10 = vcmp.gt.f32.partialorder %v1424_v29, -5e+29  ;;  %vm2494_vm11 = vcmp.gt.f32.partialorder %v1425_v63, -5e+29  ;;  %vm2498_vm12 = vcmp.gt.f32.partialorder %v1428_v34, -5e+29  ;;  %v482_v31 = vmul.f32 %v1432_v13, %v3994_v1 }
  0x5f   :  { %vm2502_vm13 = vcmp.gt.f32.partialorder %v1429_v16, -5e+29  ;;  %v483_v22 = vmul.f32 %v1433_v50, %v3994_v1  ;;  %v488_v57 = vadd.f32 %v1800_v27, %v472_v15  ;;  %v489_v33 = vadd.f32 %v1800_v27, %v473_v36 }
  0x60   :  { %vm2510_vm14 = vcmp.gt.f32.partialorder %v1432_v13, -5e+29  ;;  %vm2514_vm15 = vcmp.gt.f32.partialorder %v1433_v50, -5e+29  ;;  %v490_v37 = vadd.f32 %v1800_v27, %v474_v5  ;;  %v491_v28 = vadd.f32 %v1800_v27, %v475_v58 }
  0x61   :  { %v500_v29 = vmax.f32 %v484_v56, 0.0  ;;  %v501_v63 = vmax.f32 %v485_v12, 0.0  ;;  %v492_v23 = vadd.f32 %v1800_v27, %v476_v3  ;;  %v493_v8 = vadd.f32 %v1800_v27, %v477_v2 }
  0x62   :  { %v502_v34 = vmax.f32 %v486_v55, 0.0  ;;  %v503_v16 = vmax.f32 %v487_v10, 0.0  ;;  %v494_v51 = vadd.f32 %v1800_v27, %v478_v26  ;;  %v495_v35 = vadd.f32 %v1800_v27, %v479_v17 }
  0x63   :  { %v496_v13 = vadd.f32 %v1800_v27, %v480_v9  ;;  %v497_v50 = vadd.f32 %v1800_v27, %v481_v25  ;;  %v498_v15 = vadd.f32 %v1800_v27, %v482_v31  ;;  %v499_v36 = vadd.f32 %v1800_v27, %v483_v22 }
  0x64   :  { %v504_v5 = vmax.f32 %v488_v57, 0.0  ;;  %v505_v58 = vmax.f32 %v489_v33, 0.0  ;;  %v506_v56 = vmax.f32 %v490_v37, 0.0  ;;  %v507_v12 = vmax.f32 %v491_v28, 0.0 }
  0x65   :  { %v2530_v3 = vsel %vm2436_vm0, %v500_v29, 0.0  ;;  %v2534_v2 = vsel %vm2440_vm1, %v501_v63, 0.0  ;;  %v508_v55 = vmax.f32 %v492_v23, 0.0  ;;  %v509_v10 = vmax.f32 %v493_v8, 0.0 }
  0x66   :  { %v2538_v26 = vsel %vm2444_vm2, %v502_v34, 0.0  ;;  %v2542_v17 = vsel %vm2448_vm3, %v503_v16, 0.0  ;;  %v510_v9 = vmax.f32 %v494_v51, 0.0  ;;  %v511_v25 = vmax.f32 %v495_v35, 0.0  ;;  %v1663_v51 = vld [vmem:[%s3760_s4 + $0x10] sm:$0xff]  }
  0x67   :  { %v512_v31 = vmax.f32 %v496_v13, 0.0  ;;  %v513_v59 = vmax.f32 %v497_v50, 0.0  ;;  %v514_v22 = vmax.f32 %v498_v15, 0.0  ;;  %v515_v57 = vmax.f32 %v499_v36, 0.0  ;;  %v1664_v36 = vld [vmem:[%s3760_s4 + $0x18] sm:$0xff]  }
  0x68   :  { %v2554_v37 = vsel %vm2458_vm4, %v504_v5, 0.0  ;;  %v2558_v28 = vsel %vm2462_vm5, %v505_v58, 0.0  ;;  %v2562_v29 = vsel %vm2470_vm6, %v506_v56, 0.0  ;;  %v2566_v63 = vsel %vm2474_vm7, %v507_v12, 0.0  ;;  %v1665_v5 = vld [vmem:[%s3760_s4 + $0x20] sm:$0xff]  }
  0x69   :  { %v2570_v23 = vsel %vm2478_vm8, %v508_v55, 0.0  ;;  %v2574_v54 = vsel %vm2482_vm9, %v509_v10, 0.0  ;;  %v2578_v11 = vsel %vm2490_vm10, %v510_v9, 0.0  ;;  %v2582_v52 = vsel %vm2494_vm11, %v511_v25, 0.0  ;;  %v1666_v10 = vld [vmem:[%s3760_s4 + $0x28] sm:$0xff]   ;;  %v1667_v9 = vld [vmem:[%s3760_s4 + $0x30] sm:$0xff]  }
  0x6a   :  { %4027 = vst [vmem:[#allocation5_spill] sm:$0xff] %v2574_v54  ;;  %4028 = vst [vmem:[#allocation13_spill] sm:$0xff] %v2578_v11  ;;  %v2586_v32 = vsel %vm2498_vm12, %v512_v31, 0.0  ;;  %v2590_v48 = vsel %vm2502_vm13, %v513_v59, 0.0  ;;  %v2598_v8 = vsel %vm2510_vm14, %v514_v22, 0.0  ;;  %v2602_v24 = vsel %vm2514_vm15, %v515_v57, 0.0 }
  0x6b   :  { %4029 = vst [vmem:[#allocation6_spill] sm:$0xff] %v2582_v52  ;;  %4030 = vst [vmem:[#allocation14_spill] sm:$0xff] %v2586_v32  ;;  %v1436_v12 = vunpack.c.l.bf16 %v1435_v41  ;;  %v1437_v55 = vunpack.c.h.bf16 %v1435_v41  ;;  %v1440_v25 = vunpack.c.l.bf16 %v1662_v43  ;;  %v1441_v31 = vunpack.c.h.bf16 %v1662_v43  ;;  %v1668_v57 = vld [vmem:[%s3760_s4 + $0x38] sm:$0xff]  }
  0x6c   :  { %4031 = vst [vmem:[#allocation7_spill] sm:$0xff] %v2590_v48  ;;  %4032 = vst [vmem:[#allocation15_spill] sm:$0xff] %v2598_v8  ;;  %v1444_v59 = vunpack.c.l.bf16 %v1663_v51  ;;  %v1445_v22 = vunpack.c.h.bf16 %v1663_v51  ;;  %v1448_v58 = vunpack.c.l.bf16 %v1664_v36  ;;  %v1449_v56 = vunpack.c.h.bf16 %v1664_v36  ;;  %v1467_v8 = vld [vmem:[%s3761_s5] sm:$0xff]  }
  0x6d   :  { %4033 = vst [vmem:[#allocation8_spill] sm:$0xff] %v2602_v24  ;;  %v1452_v15 = vunpack.c.l.bf16 %v1665_v5  ;;  %v1453_v41 = vunpack.c.h.bf16 %v1665_v5  ;;  %v1456_v50 = vunpack.c.l.bf16 %v1666_v10  ;;  %v1457_v13 = vunpack.c.h.bf16 %v1666_v10 }
  0x6e   :  { %v1460_v35 = vunpack.c.l.bf16 %v1667_v9  ;;  %v1461_v38 = vunpack.c.h.bf16 %v1667_v9  ;;  %v1464_v16 = vunpack.c.l.bf16 %v1668_v57  ;;  %v1465_v34 = vunpack.c.h.bf16 %v1668_v57 }
  0x6f   :  { %v596_v39 = vmul.f32 %v1436_v12, %v3994_v1  ;;  %v597_v43 = vmul.f32 %v1437_v55, %v3994_v1  ;;  %vm2650_vm0 = vcmp.gt.f32.partialorder %v1436_v12, -5e+29  ;;  %vm2654_vm1 = vcmp.gt.f32.partialorder %v1437_v55, -5e+29 }
  0x70   :  { %v598_v36 = vmul.f32 %v1440_v25, %v3994_v1  ;;  %v599_v5 = vmul.f32 %v1441_v31, %v3994_v1  ;;  %vm2660_vm2 = vcmp.gt.f32.partialorder %v1440_v25, -5e+29  ;;  %vm2664_vm3 = vcmp.gt.f32.partialorder %v1441_v31, -5e+29 }
  0x71   :  { %v600_v12 = vmul.f32 %v1444_v59, %v3994_v1  ;;  %v601_v57 = vmul.f32 %v1445_v22, %v3994_v1  ;;  %vm2670_vm4 = vcmp.gt.f32.partialorder %v1444_v59, -5e+29  ;;  %vm2674_vm5 = vcmp.gt.f32.partialorder %v1445_v22, -5e+29  ;;  %v1669_v59 = vld [vmem:[%s3761_s5 + $0x8] sm:$0xff]  }
  0x72   :  { %v602_v25 = vmul.f32 %v1448_v58, %v3994_v1  ;;  %v603_v6 = vmul.f32 %v1449_v56, %v3994_v1  ;;  %v604_v31 = vmul.f32 %v1452_v15, %v3994_v1  ;;  %v605_v7 = vmul.f32 %v1453_v41, %v3994_v1 }
  0x73   :  { %vm2682_vm6 = vcmp.gt.f32.partialorder %v1448_v58, -5e+29  ;;  %vm2686_vm7 = vcmp.gt.f32.partialorder %v1449_v56, -5e+29  ;;  %v606_v22 = vmul.f32 %v1456_v50, %v3994_v1  ;;  %v607_v14 = vmul.f32 %v1457_v13, %v3994_v1  ;;  %v4078_v58 = vld [vmem:[#allocation10_spill] sm:$0xff] }
  0x74   :  { %v612_v24 = vadd.f32 %v1800_v27, %v596_v39  ;;  %v613_v30 = vadd.f32 %v1800_v27, %v597_v43  ;;  %vm2694_vm8 = vcmp.gt.f32.partialorder %v1452_v15, -5e+29  ;;  %vm2698_vm9 = vcmp.gt.f32.partialorder %v1453_v41, -5e+29  ;;  %v2717_v41 = vld [vmem:[%s3755_s9] ss:$0 sm:$0xff] }
  0x75   :  { %v608_v56 = vmul.f32 %v1460_v35, %v3994_v1  ;;  %v609_v4 = vmul.f32 %v1461_v38, %v3994_v1  ;;  %v614_v48 = vadd.f32 %v1800_v27, %v598_v36  ;;  %v615_v49 = vadd.f32 %v1800_v27, %v599_v5  ;;  %4058 = vst [vmem:[#allocation16_spill] sm:$0xff] %v2717_v41  ;;  %v4079_v39 = vld [vmem:[#allocation5_spill] sm:$0xff]  ;;  %v1670_v5 = vld [vmem:[%s3761_s5 + $0x10] sm:$0xff]  }
  0x76   :  { %vm2706_vm10 = vcmp.gt.f32.partialorder %v1456_v50, -5e+29  ;;  %vm2710_vm11 = vcmp.gt.f32.partialorder %v1457_v13, -5e+29  ;;  %v610_v43 = vmul.f32 %v2717_v41, %v1464_v16  ;;  %v611_v1 = vmul.f32 %v2717_v41, %v1465_v34  ;;  %v4084_v13 = vld [vmem:[#allocation3_spill] sm:$0xff] }
  0x77   :  { %v616_v36 = vadd.f32 %v1800_v27, %v600_v12  ;;  %v617_v50 = vadd.f32 %v1800_v27, %v601_v57  ;;  %vm2723_vm12 = vcmp.gt.f32.partialorder %v1460_v35, -5e+29  ;;  %vm2727_vm13 = vcmp.gt.f32.partialorder %v1461_v38, -5e+29 }
  0x78   :  { %v618_v32 = vadd.f32 %v1800_v27, %v602_v25  ;;  %v619_v53 = vadd.f32 %v1800_v27, %v603_v6  ;;  %v620_v52 = vadd.f32 %v1800_v27, %v604_v31  ;;  %v621_v41 = vadd.f32 %v1800_v27, %v605_v7  ;;  %v2748_v6 = vld [vmem:[%s3756_s10] ss:$0 sm:$0xff] }
  0x79   :  { %vm2735_vm14 = vcmp.gt.f32.partialorder %v1464_v16, -5e+29  ;;  %v4063_v12 = vmov 0  ;;  %vm2739_vm15 = vcmp.gt.f32.partialorder %v1465_v34, -5e+29  ;;  %v4066_v35 = vmov 0 }
  0x7a   :  { %v4064_v12 = vsel %vm2735_vm14, 4294967295, %v4063_v12  ;;  %v4067_v35 = vsel %vm2739_vm15, 4294967295, %v4066_v35  ;;  %v622_v38 = vadd.f32 %v1800_v27, %v606_v22  ;;  %v623_v57 = vadd.f32 %v1800_v27, %v607_v14 }
  0x7b   :  { %4065 = vst [vmem:[#allocation9_spill] sm:$0xff] %v4064_v12  ;;  %4068 = vst [vmem:[#allocation17_spill] sm:$0xff] %v4067_v35  ;;  %v628_v45 = vmax.f32 %v612_v24, 0.0  ;;  %v629_v25 = vmax.f32 %v613_v30, 0.0  ;;  %v624_v7 = vadd.f32 %v2748_v6, %v608_v56  ;;  %v625_v16 = vadd.f32 %v2748_v6, %v609_v4 }
  0x7c   :  { %v630_v31 = vmax.f32 %v614_v48, 0.0  ;;  %v631_v34 = vmax.f32 %v615_v49, 0.0  ;;  %v626_v11 = vadd.f32 %v2748_v6, %v610_v43  ;;  %v627_v18 = vadd.f32 %v2748_v6, %v611_v1 }
  0x7d   :  { %v632_v22 = vmax.f32 %v616_v36, 0.0  ;;  %v633_v35 = vmax.f32 %v617_v50, 0.0  ;;  %v634_v27 = vmax.f32 %v618_v32, 0.0  ;;  %v635_v14 = vmax.f32 %v619_v53, 0.0 }
  0x7e   :  { %v636_v30 = vmax.f32 %v620_v52, 0.0  ;;  %v637_v24 = vmax.f32 %v621_v41, 0.0  ;;  %v638_v12 = vmax.f32 %v622_v38, 0.0  ;;  %v639_v54 = vmax.f32 %v623_v57, 0.0  ;;  %v4089_v38 = vld [vmem:[#allocation6_spill] sm:$0xff] }
  0x7f   :  { %v644_v0 = vsel %vm2650_vm0, %v628_v45, 0.0  ;;  %v645_v4 = vsel %vm2654_vm1, %v629_v25, 0.0  ;;  %v640_v48 = vmax.f32 %v624_v7, 0.0  ;;  %v641_v49 = vmax.f32 %v625_v16, 0.0 }
  0x80   :  { %v646_v56 = vsel %vm2660_vm2, %v630_v31, 0.0  ;;  %v647_v43 = vsel %vm2664_vm3, %v631_v34, 0.0  ;;  %v642_v32 = vmax.f32 %v626_v11, 0.0  ;;  %v643_v53 = vmax.f32 %v627_v18, 0.0  ;;  %v1671_v31 = vld [vmem:[%s3761_s5 + $0x18] sm:$0xff]   ;;  %v1672_v34 = vld [vmem:[%s3761_s5 + $0x20] sm:$0xff]  }
  0x81   :  { %v648_v52 = vsel %vm2670_vm4, %v632_v22, 0.0  ;;  %v649_v51 = vsel %vm2674_vm5, %v633_v35, 0.0  ;;  %v4069_v45 = vmax.f32 %v2311_v46, %v2530_v3  ;;  %v4070_v10 = vmax.f32 %v2316_v20, %v2534_v2  ;;  %v4088_v35 = vld [vmem:[#allocation11_spill] sm:$0xff]  ;;  %v4092_v22 = vld [vmem:[#allocation18_spill] sm:$0xff] }
  0x82   :  { %v650_v11 = vsel %vm2682_vm6, %v634_v27, 0.0  ;;  %v651_v18 = vsel %vm2686_vm7, %v635_v14, 0.0  ;;  %v4071_v47 = vmax.f32 %v2325_v44, %v2538_v26  ;;  %v4072_v46 = vmax.f32 %v2330_v21, %v2542_v17  ;;  %v4093_v27 = vld [vmem:[#allocation14_spill] sm:$0xff] }
  0x83   :  { %v2769_v42 = vmax.f32 %v4069_v45, %v644_v0  ;;  %v2774_v41 = vmax.f32 %v4070_v10, %v645_v4  ;;  %v652_v20 = vsel %vm2694_vm8, %v636_v30, 0.0  ;;  %v653_v3 = vsel %vm2698_vm9, %v637_v24, 0.0  ;;  %v4096_v24 = vld [vmem:[#allocation19_spill] sm:$0xff]  ;;  %v4104_v10 = vld [vmem:[#allocation12_spill] sm:$0xff] }
  0x84   :  { %v2783_v9 = vmax.f32 %v4071_v47, %v646_v56  ;;  %v2788_v0 = vmax.f32 %v4072_v46, %v647_v43  ;;  %v4073_v2 = vmax.f32 %v2339_v19, %v2554_v37  ;;  %v4074_v44 = vmax.f32 %v2344_v40, %v2558_v28  ;;  %v4097_v4 = vld [vmem:[#allocation7_spill] sm:$0xff] }
  0x85   :  { %v654_v21 = vsel %vm2706_vm10, %v638_v12, 0.0  ;;  %v655_v17 = vsel %vm2710_vm11, %v639_v54, 0.0  ;;  %v4075_v19 = vmax.f32 %v2356_v60, %v2562_v29  ;;  %v4076_v40 = vmax.f32 %v2361_v61, %v2566_v63  ;;  %v4085_v12 = vld [vmem:[#allocation13_spill] sm:$0xff] }
  0x86   :  { %v2797_v33 = vmax.f32 %v4073_v2, %v648_v52  ;;  %v2802_v26 = vmax.f32 %v4074_v44, %v649_v51  ;;  %v656_v55 = vsel %vm2723_vm12, %v640_v48, 0.0  ;;  %v657_v54 = vsel %vm2727_vm13, %v641_v49, 0.0  ;;  %v4101_v52 = vld [vmem:[#allocation15_spill] sm:$0xff] }
  0x87   :  { %v2814_v37 = vmax.f32 %v4075_v19, %v650_v11  ;;  %v2819_v28 = vmax.f32 %v4076_v40, %v651_v18  ;;  %v4077_v60 = vmax.f32 %v2373_v62, %v2570_v23  ;;  %v4080_v61 = vmax.f32 %v4078_v58, %v4079_v39  ;;  %v4105_v11 = vld [vmem:[#allocation8_spill] sm:$0xff] }
  0x88   :  { %v658_v1 = vsel %vm2735_vm14, %v642_v32, 0.0  ;;  %v659_v50 = vsel %vm2739_vm15, %v643_v53, 0.0  ;;  %v4086_v62 = vmax.f32 %v4084_v13, %v4085_v12  ;;  %v4090_v57 = vmax.f32 %v4088_v35, %v4089_v38  ;;  %v1673_v32 = vld [vmem:[%s3761_s5 + $0x28] sm:$0xff]   ;;  %v4100_v53 = vld [vmem:[#allocation4_spill] sm:$0xff] }
  0x89   :  { %v2831_v29 = vmax.f32 %v4077_v60, %v652_v20  ;;  %v2836_v63 = vmax.f32 %v4080_v61, %v653_v3  ;;  %v1468_v7 = vunpack.c.l.bf16 %v1467_v8  ;;  %v1469_v16 = vunpack.c.h.bf16 %v1467_v8  ;;  %v1674_v3 = vld [vmem:[%s3761_s5 + $0x30] sm:$0xff]   ;;  %v1675_v8 = vld [vmem:[%s3761_s5 + $0x38] sm:$0xff]  }
  0x8a   :  { %v2848_v23 = vmax.f32 %v4086_v62, %v654_v21  ;;  %v2853_v25 = vmax.f32 %v4090_v57, %v655_v17  ;;  %v4094_v14 = vmax.f32 %v4092_v22, %v4093_v27  ;;  %v4098_v48 = vmax.f32 %v4096_v24, %v4097_v4 }
  0x8b   :  { %4081 = vst [vmem:[#allocation2_spill] sm:$0xff] %v2836_v63  ;;  %v1472_v56 = vunpack.c.l.bf16 %v1669_v59  ;;  %v1473_v43 = vunpack.c.h.bf16 %v1669_v59  ;;  %v4102_v51 = vmax.f32 %v4100_v53, %v4101_v52  ;;  %v4106_v18 = vmax.f32 %v4104_v10, %v4105_v11  ;;  %v1499_v11 = vld [vmem:[%s3762_s6] sm:$0xff]  }
  0x8c   :  { %4087 = vst [vmem:[#allocation10_spill] sm:$0xff] %v2848_v23  ;;  %4091 = vst [vmem:[#allocation5_spill] sm:$0xff] %v2853_v25  ;;  %v2864_v30 = vmax.f32 %v4094_v14, %v656_v55  ;;  %v2869_v49 = vmax.f32 %v4098_v48, %v657_v54  ;;  %v1476_v46 = vunpack.c.l.bf16 %v1670_v5  ;;  %v1477_v20 = vunpack.c.h.bf16 %v1670_v5  ;;  %v4108_v55 = vld [vmem:[#allocation16_spill] sm:$0xff] }
  0x8d   :  { %v2877_v45 = vmax.f32 %v4102_v51, %v658_v1  ;;  %v2882_v47 = vmax.f32 %v4106_v18, %v659_v50  ;;  %v1480_v2 = vunpack.c.l.bf16 %v1671_v31  ;;  %v1481_v44 = vunpack.c.h.bf16 %v1671_v31 }
  0x8e   :  { %4095 = vst [vmem:[#allocation9_spill] sm:$0xff] %v2864_v30  ;;  %4099 = vst [vmem:[#allocation17_spill] sm:$0xff] %v2869_v49  ;;  %v1484_v21 = vunpack.c.l.bf16 %v1672_v34  ;;  %v1485_v17 = vunpack.c.h.bf16 %v1672_v34  ;;  %v1488_v19 = vunpack.c.l.bf16 %v1673_v32  ;;  %v1489_v40 = vunpack.c.h.bf16 %v1673_v32 }
  0x8f   :  { %4103 = vst [vmem:[#allocation3_spill] sm:$0xff] %v2877_v45  ;;  %4107 = vst [vmem:[#allocation13_spill] sm:$0xff] %v2882_v47  ;;  %v724_v54 = vmul.f32 %v4108_v55, %v1468_v7  ;;  %v725_v59 = vmul.f32 %v4108_v55, %v1469_v16  ;;  %v1492_v60 = vunpack.c.l.bf16 %v1674_v3  ;;  %v1493_v58 = vunpack.c.h.bf16 %v1674_v3 }
  0x90   :  { %v726_v39 = vmul.f32 %v4108_v55, %v1472_v56  ;;  %v727_v61 = vmul.f32 %v4108_v55, %v1473_v43  ;;  %v1496_v15 = vunpack.c.l.bf16 %v1675_v8  ;;  %v1497_v1 = vunpack.c.h.bf16 %v1675_v8 }
  0x91   :  { %vm2894_vm0 = vcmp.gt.f32.partialorder %v1468_v7, -5e+29  ;;  %vm2898_vm1 = vcmp.gt.f32.partialorder %v1469_v16, -5e+29  ;;  %vm2902_vm2 = vcmp.gt.f32.partialorder %v1472_v56, -5e+29  ;;  %v728_v12 = vmul.f32 %v4108_v55, %v1476_v46 }
  0x92   :  { %vm2906_vm3 = vcmp.gt.f32.partialorder %v1473_v43, -5e+29  ;;  %v729_v62 = vmul.f32 %v4108_v55, %v1477_v20  ;;  %v730_v35 = vmul.f32 %v4108_v55, %v1480_v2  ;;  %v731_v38 = vmul.f32 %v4108_v55, %v1481_v44 }
  0x93   :  { %v740_v57 = vadd.f32 %v2748_v6, %v724_v54  ;;  %v741_v7 = vadd.f32 %v2748_v6, %v725_v59  ;;  %vm2916_vm4 = vcmp.gt.f32.partialorder %v1476_v46, -5e+29  ;;  %vm2920_vm5 = vcmp.gt.f32.partialorder %v1477_v20, -5e+29 }
  0x94   :  { %v732_v34 = vmul.f32 %v4108_v55, %v1484_v21  ;;  %v733_v22 = vmul.f32 %v4108_v55, %v1485_v17  ;;  %v742_v27 = vadd.f32 %v2748_v6, %v726_v39  ;;  %v743_v14 = vadd.f32 %v2748_v6, %v727_v61 }
  0x95   :  { %vm2928_vm6 = vcmp.gt.f32.partialorder %v1480_v2, -5e+29  ;;  %vm2932_vm7 = vcmp.gt.f32.partialorder %v1481_v44, -5e+29  ;;  %vm2936_vm8 = vcmp.gt.f32.partialorder %v1484_v21, -5e+29  ;;  %v734_v43 = vmul.f32 %v4108_v55, %v1488_v19 }
  0x96   :  { %vm2940_vm9 = vcmp.gt.f32.partialorder %v1485_v17, -5e+29  ;;  %v735_v32 = vmul.f32 %v4108_v55, %v1489_v40  ;;  %v736_v53 = vmul.f32 %v4108_v55, %v1492_v60  ;;  %v737_v52 = vmul.f32 %v4108_v55, %v1493_v58  ;;  %v1676_v21 = vld [vmem:[%s3762_s6 + $0x8] sm:$0xff]  }
  0x97   :  { %vm2948_vm10 = vcmp.gt.f32.partialorder %v1488_v19, -5e+29  ;;  %vm2952_vm11 = vcmp.gt.f32.partialorder %v1489_v40, -5e+29  ;;  %vm2956_vm12 = vcmp.gt.f32.partialorder %v1492_v60, -5e+29  ;;  %v738_v46 = vmul.f32 %v4108_v55, %v1496_v15 }
  0x98   :  { %vm2960_vm13 = vcmp.gt.f32.partialorder %v1493_v58, -5e+29  ;;  %v739_v20 = vmul.f32 %v4108_v55, %v1497_v1  ;;  %v744_v3 = vadd.f32 %v2748_v6, %v728_v12  ;;  %v745_v2 = vadd.f32 %v2748_v6, %v729_v62 }
  0x99   :  { %vm2968_vm14 = vcmp.gt.f32.partialorder %v1496_v15, -5e+29  ;;  %vm2972_vm15 = vcmp.gt.f32.partialorder %v1497_v1, -5e+29  ;;  %v746_v17 = vadd.f32 %v2748_v6, %v730_v35  ;;  %v747_v8 = vadd.f32 %v2748_v6, %v731_v38 }
  0x9a   :  { %v756_v19 = vmax.f32 %v740_v57, 0.0  ;;  %v757_v40 = vmax.f32 %v741_v7, 0.0  ;;  %v748_v54 = vadd.f32 %v2748_v6, %v732_v34  ;;  %v749_v59 = vadd.f32 %v2748_v6, %v733_v22 }
  0x9b   :  { %v758_v60 = vmax.f32 %v742_v27, 0.0  ;;  %v759_v58 = vmax.f32 %v743_v14, 0.0  ;;  %v750_v39 = vadd.f32 %v2748_v6, %v734_v43  ;;  %v751_v61 = vadd.f32 %v2748_v6, %v735_v32 }
  0x9c   :  { %v752_v15 = vadd.f32 %v2748_v6, %v736_v53  ;;  %v753_v1 = vadd.f32 %v2748_v6, %v737_v52  ;;  %v754_v12 = vadd.f32 %v2748_v6, %v738_v46  ;;  %v755_v62 = vadd.f32 %v2748_v6, %v739_v20 }
  0x9d   :  { %v760_v35 = vmax.f32 %v744_v3, 0.0  ;;  %v761_v38 = vmax.f32 %v745_v2, 0.0  ;;  %v762_v57 = vmax.f32 %v746_v17, 0.0  ;;  %v763_v7 = vmax.f32 %v747_v8, 0.0 }
  0x9e   :  { %v2988_v34 = vsel %vm2894_vm0, %v756_v19, 0.0  ;;  %v2992_v22 = vsel %vm2898_vm1, %v757_v40, 0.0  ;;  %v764_v27 = vmax.f32 %v748_v54, 0.0  ;;  %v765_v14 = vmax.f32 %v749_v59, 0.0 }
  0x9f   :  { %v2996_v43 = vsel %vm2902_vm2, %v758_v60, 0.0  ;;  %v3000_v32 = vsel %vm2906_vm3, %v759_v58, 0.0  ;;  %v766_v53 = vmax.f32 %v750_v39, 0.0  ;;  %v767_v52 = vmax.f32 %v751_v61, 0.0  ;;  %v1677_v39 = vld [vmem:[%s3762_s6 + $0x10] sm:$0xff]  }
  0xa0   :  { %v768_v46 = vmax.f32 %v752_v15, 0.0  ;;  %v769_v36 = vmax.f32 %v753_v1, 0.0  ;;  %v770_v20 = vmax.f32 %v754_v12, 0.0  ;;  %v771_v3 = vmax.f32 %v755_v62, 0.0  ;;  %v1678_v62 = vld [vmem:[%s3762_s6 + $0x18] sm:$0xff]  }
  0xa1   :  { %v3012_v17 = vsel %vm2916_vm4, %v760_v35, 0.0  ;;  %v3016_v8 = vsel %vm2920_vm5, %v761_v38, 0.0  ;;  %v3020_v19 = vsel %vm2928_vm6, %v762_v57, 0.0  ;;  %v3024_v40 = vsel %vm2932_vm7, %v763_v7, 0.0  ;;  %v1679_v35 = vld [vmem:[%s3762_s6 + $0x20] sm:$0xff]  }
  0xa2   :  { %v3028_v54 = vsel %vm2936_vm8, %v764_v27, 0.0  ;;  %v3032_v16 = vsel %vm2940_vm9, %v765_v14, 0.0  ;;  %v3036_v31 = vsel %vm2948_vm10, %v766_v53, 0.0  ;;  %v3040_v24 = vsel %vm2952_vm11, %v767_v52, 0.0  ;;  %v1680_v14 = vld [vmem:[%s3762_s6 + $0x28] sm:$0xff]   ;;  %v1681_v53 = vld [vmem:[%s3762_s6 + $0x30] sm:$0xff]  }
  0xa3   :  { %4141 = vst [vmem:[#allocation11_spill] sm:$0xff] %v3028_v54  ;;  %4142 = vst [vmem:[#allocation6_spill] sm:$0xff] %v3032_v16  ;;  %v3044_v4 = vsel %vm2956_vm12, %v768_v46, 0.0  ;;  %v3048_v48 = vsel %vm2960_vm13, %v769_v36, 0.0  ;;  %v3056_v59 = vsel %vm2968_vm14, %v770_v20, 0.0  ;;  %v3060_v10 = vsel %vm2972_vm15, %v771_v3, 0.0 }
  0xa4   :  { %4143 = vst [vmem:[#allocation18_spill] sm:$0xff] %v3036_v31  ;;  %4144 = vst [vmem:[#allocation14_spill] sm:$0xff] %v3040_v24  ;;  %v1500_v7 = vunpack.c.l.bf16 %v1499_v11  ;;  %v1501_v27 = vunpack.c.h.bf16 %v1499_v11  ;;  %v1504_v52 = vunpack.c.l.bf16 %v1676_v21  ;;  %v1505_v46 = vunpack.c.h.bf16 %v1676_v21  ;;  %v1682_v3 = vld [vmem:[%s3762_s6 + $0x38] sm:$0xff]  }
  0xa5   :  { %4145 = vst [vmem:[#allocation19_spill] sm:$0xff] %v3044_v4  ;;  %4146 = vst [vmem:[#allocation7_spill] sm:$0xff] %v3048_v48  ;;  %v1508_v36 = vunpack.c.l.bf16 %v1677_v39  ;;  %v1509_v20 = vunpack.c.h.bf16 %v1677_v39  ;;  %v1512_v38 = vunpack.c.l.bf16 %v1678_v62  ;;  %v1513_v57 = vunpack.c.h.bf16 %v1678_v62 }
  0xa6   :  { %4147 = vst [vmem:[#allocation4_spill] sm:$0xff] %v3056_v59  ;;  %4148 = vst [vmem:[#allocation15_spill] sm:$0xff] %v3060_v10  ;;  %v1516_v12 = vunpack.c.l.bf16 %v1679_v35  ;;  %v1517_v11 = vunpack.c.h.bf16 %v1679_v35  ;;  %v1520_v1 = vunpack.c.l.bf16 %v1680_v14  ;;  %v1521_v15 = vunpack.c.h.bf16 %v1680_v14 }
  0xa7   :  { %v1524_v61 = vunpack.c.l.bf16 %v1681_v53  ;;  %v1525_v44 = vunpack.c.h.bf16 %v1681_v53  ;;  %v1528_v58 = vunpack.c.l.bf16 %v1682_v3  ;;  %v1529_v60 = vunpack.c.h.bf16 %v1682_v3 }
  0xa8   :  { %v852_v18 = vmul.f32 %v4108_v55, %v1500_v7  ;;  %v853_v21 = vmul.f32 %v4108_v55, %v1501_v27  ;;  %vm3108_vm0 = vcmp.gt.f32.partialorder %v1500_v7, -5e+29  ;;  %vm3112_vm1 = vcmp.gt.f32.partialorder %v1501_v27, -5e+29  ;;  %v1683_v27 = vld [vmem:[%s3763_s7 + $0x8] sm:$0xff]  }
  0xa9   :  { %v854_v62 = vmul.f32 %v4108_v55, %v1504_v52  ;;  %v855_v35 = vmul.f32 %v4108_v55, %v1505_v46  ;;  %vm3118_vm2 = vcmp.gt.f32.partialorder %v1504_v52, -5e+29  ;;  %vm3122_vm3 = vcmp.gt.f32.partialorder %v1505_v46, -5e+29 }
  0xaa   :  { %v856_v7 = vmul.f32 %v4108_v55, %v1508_v36  ;;  %v857_v3 = vmul.f32 %v4108_v55, %v1509_v20  ;;  %vm3128_vm4 = vcmp.gt.f32.partialorder %v1508_v36, -5e+29  ;;  %vm3132_vm5 = vcmp.gt.f32.partialorder %v1509_v20, -5e+29  ;;  %v4191_v36 = vld [vmem:[#allocation11_spill] sm:$0xff] }
  0xab   :  { %v858_v52 = vmul.f32 %v4108_v55, %v1512_v38  ;;  %v859_v13 = vmul.f32 %v4108_v55, %v1513_v57  ;;  %v860_v46 = vmul.f32 %v4108_v55, %v1516_v12  ;;  %v861_v5 = vmul.f32 %v4108_v55, %v1517_v11 }
  0xac   :  { %vm3140_vm6 = vcmp.gt.f32.partialorder %v1512_v38, -5e+29  ;;  %vm3144_vm7 = vcmp.gt.f32.partialorder %v1513_v57, -5e+29  ;;  %v862_v20 = vmul.f32 %v4108_v55, %v1520_v1  ;;  %v863_v50 = vmul.f32 %v4108_v55, %v1521_v15  ;;  %v4193_v38 = vld [vmem:[#allocation2_spill] sm:$0xff] }
  0xad   :  { %v868_v10 = vadd.f32 %v2748_v6, %v852_v18  ;;  %v869_v47 = vadd.f32 %v2748_v6, %v853_v21  ;;  %vm3152_vm8 = vcmp.gt.f32.partialorder %v1516_v12, -5e+29  ;;  %vm3156_vm9 = vcmp.gt.f32.partialorder %v1517_v11, -5e+29  ;;  %v4194_v18 = vld [vmem:[#allocation6_spill] sm:$0xff] }
  0xae   :  { %v864_v57 = vmul.f32 %v4108_v55, %v1524_v61  ;;  %v865_v45 = vmul.f32 %v4108_v55, %v1525_v44  ;;  %v870_v48 = vadd.f32 %v2748_v6, %v854_v62  ;;  %v871_v49 = vadd.f32 %v2748_v6, %v855_v35 }
  0xaf   :  { %vm3164_vm10 = vcmp.gt.f32.partialorder %v1520_v1, -5e+29  ;;  %vm3168_vm11 = vcmp.gt.f32.partialorder %v1521_v15, -5e+29  ;;  %v866_v11 = vmul.f32 %v4108_v55, %v1528_v58  ;;  %v867_v21 = vmul.f32 %v4108_v55, %v1529_v60  ;;  %v1684_v1 = vld [vmem:[%s3763_s7 + $0x10] sm:$0xff]  }
  0xb0   :  { %v872_v4 = vadd.f32 %v2748_v6, %v856_v7  ;;  %v873_v30 = vadd.f32 %v2748_v6, %v857_v3  ;;  %vm3176_vm12 = vcmp.gt.f32.partialorder %v1524_v61, -5e+29  ;;  %vm3180_vm13 = vcmp.gt.f32.partialorder %v1525_v44, -5e+29 }
  0xb1   :  { %v874_v15 = vadd.f32 %v2748_v6, %v858_v52  ;;  %v875_v35 = vadd.f32 %v2748_v6, %v859_v13  ;;  %v876_v24 = vadd.f32 %v2748_v6, %v860_v46  ;;  %v877_v55 = vadd.f32 %v2748_v6, %v861_v5 }
  0xb2   :  { %vm3188_vm14 = vcmp.gt.f32.partialorder %v1528_v58, -5e+29  ;;  %v4177_v7 = vmov 0  ;;  %vm3192_vm15 = vcmp.gt.f32.partialorder %v1529_v60, -5e+29  ;;  %v4180_v61 = vmov 0 }
  0xb3   :  { %v4178_v7 = vsel %vm3188_vm14, 4294967295, %v4177_v7  ;;  %v4181_v61 = vsel %vm3192_vm15, 4294967295, %v4180_v61  ;;  %v878_v44 = vadd.f32 %v2748_v6, %v862_v20  ;;  %v879_v3 = vadd.f32 %v2748_v6, %v863_v50 }
  0xb4   :  { %4179 = vst [vmem:[#allocation12_spill] sm:$0xff] %v4178_v7  ;;  %4182 = vst [vmem:[#allocation8_spill] sm:$0xff] %v4181_v61  ;;  %v884_v25 = vmax.f32 %v868_v10, 0.0  ;;  %v885_v52 = vmax.f32 %v869_v47, 0.0  ;;  %v880_v13 = vadd.f32 %v2748_v6, %v864_v57  ;;  %v881_v46 = vadd.f32 %v2748_v6, %v865_v45 }
  0xb5   :  { %v886_v31 = vmax.f32 %v870_v48, 0.0  ;;  %v887_v5 = vmax.f32 %v871_v49, 0.0  ;;  %v882_v58 = vadd.f32 %v2748_v6, %v866_v11  ;;  %v883_v23 = vadd.f32 %v2748_v6, %v867_v21 }
  0xb6   :  { %v888_v60 = vmax.f32 %v872_v4, 0.0  ;;  %v889_v7 = vmax.f32 %v873_v30, 0.0  ;;  %v890_v16 = vmax.f32 %v874_v15, 0.0  ;;  %v891_v61 = vmax.f32 %v875_v35, 0.0  ;;  %v4198_v15 = vld [vmem:[#allocation10_spill] sm:$0xff] }
  0xb7   :  { %v892_v63 = vmax.f32 %v876_v24, 0.0  ;;  %v893_v20 = vmax.f32 %v877_v55, 0.0  ;;  %v894_v54 = vmax.f32 %v878_v44, 0.0  ;;  %v895_v50 = vmax.f32 %v879_v3, 0.0  ;;  %v4199_v35 = vld [vmem:[#allocation18_spill] sm:$0xff] }
  0xb8   :  { %v900_v47 = vsel %vm3108_vm0, %v884_v25, 0.0  ;;  %v901_v45 = vsel %vm3112_vm1, %v885_v52, 0.0  ;;  %v896_v48 = vmax.f32 %v880_v13, 0.0  ;;  %v897_v49 = vmax.f32 %v881_v46, 0.0  ;;  %v4203_v44 = vld [vmem:[#allocation14_spill] sm:$0xff] }
  0xb9   :  { %v902_v10 = vsel %vm3118_vm2, %v886_v31, 0.0  ;;  %v903_v30 = vsel %vm3122_vm3, %v887_v5, 0.0  ;;  %v898_v4 = vmax.f32 %v882_v58, 0.0  ;;  %v899_v57 = vmax.f32 %v883_v23, 0.0  ;;  %v1685_v5 = vld [vmem:[%s3763_s7 + $0x18] sm:$0xff]   ;;  %v1686_v58 = vld [vmem:[%s3763_s7 + $0x20] sm:$0xff]  }
  0xba   :  { %v904_v55 = vsel %vm3128_vm4, %v888_v60, 0.0  ;;  %v905_v24 = vsel %vm3132_vm5, %v889_v7, 0.0  ;;  %v4183_v25 = vmax.f32 %v2769_v42, %v2988_v34  ;;  %v4184_v39 = vmax.f32 %v2774_v41, %v2992_v22  ;;  %v4206_v60 = vld [vmem:[#allocation9_spill] sm:$0xff] }
  0xbb   :  { %v906_v14 = vsel %vm3140_vm6, %v890_v16, 0.0  ;;  %v907_v23 = vsel %vm3144_vm7, %v891_v61, 0.0  ;;  %v4185_v56 = vmax.f32 %v2783_v9, %v2996_v43  ;;  %v4186_v42 = vmax.f32 %v2788_v0, %v3000_v32  ;;  %v4202_v61 = vld [vmem:[#allocation5_spill] sm:$0xff] }
  0xbc   :  { %v3217_v51 = vmax.f32 %v4183_v25, %v900_v47  ;;  %v3222_v31 = vmax.f32 %v4184_v39, %v901_v45  ;;  %v908_v41 = vsel %vm3152_vm8, %v892_v63, 0.0  ;;  %v909_v22 = vsel %vm3156_vm9, %v893_v20, 0.0  ;;  %v1531_v63 = vld [vmem:[%s3763_s7] sm:$0xff]   ;;  %v4207_v20 = vld [vmem:[#allocation19_spill] sm:$0xff]  ;;  %v4210_v45 = vld [vmem:[#allocation17_spill] sm:$0xff] }
  0xbd   :  { %v3231_v53 = vmax.f32 %v4185_v56, %v902_v10  ;;  %v3236_v34 = vmax.f32 %v4186_v42, %v903_v30  ;;  %v4187_v2 = vmax.f32 %v2797_v33, %v3012_v17  ;;  %v4188_v9 = vmax.f32 %v2802_v26, %v3016_v8 }
  0xbe   :  { %v910_v0 = vsel %vm3164_vm10, %v894_v54, 0.0  ;;  %v911_v32 = vsel %vm3168_vm11, %v895_v50, 0.0  ;;  %v4189_v33 = vmax.f32 %v2814_v37, %v3020_v19  ;;  %v4190_v26 = vmax.f32 %v2819_v28, %v3024_v40 }
  0xbf   :  { %v3245_v16 = vmax.f32 %v4187_v2, %v904_v55  ;;  %v3250_v43 = vmax.f32 %v4188_v9, %v905_v24  ;;  %v912_v54 = vsel %vm3176_vm12, %v896_v48, 0.0  ;;  %v913_v59 = vsel %vm3180_vm13, %v897_v49, 0.0  ;;  %v4211_v48 = vld [vmem:[#allocation7_spill] sm:$0xff]  ;;  %v4215_v24 = vld [vmem:[#allocation4_spill] sm:$0xff] }
  0xc0   :  { %v3262_v17 = vmax.f32 %v4189_v33, %v906_v14  ;;  %v3267_v8 = vmax.f32 %v4190_v26, %v907_v23  ;;  %v4192_v37 = vmax.f32 %v2831_v29, %v4191_v36  ;;  %v4195_v28 = vmax.f32 %v4193_v38, %v4194_v18  ;;  %v4214_v55 = vld [vmem:[#allocation3_spill] sm:$0xff]  ;;  %v4218_v14 = vld [vmem:[#allocation13_spill] sm:$0xff]  ;;  %v1688_v2 = vld [vmem:[%s3763_s7 + $0x30] sm:$0xff]  }
  0xc1   :  { %v914_v11 = vsel %vm3188_vm14, %v898_v4, 0.0  ;;  %v915_v62 = vsel %vm3192_vm15, %v899_v57, 0.0  ;;  %v4200_v29 = vmax.f32 %v4198_v15, %v4199_v35  ;;  %v4204_v3 = vmax.f32 %v4202_v61, %v4203_v44  ;;  %v1687_v57 = vld [vmem:[%s3763_s7 + $0x28] sm:$0xff]   ;;  %v1689_v33 = vld [vmem:[%s3763_s7 + $0x38] sm:$0xff]  }
  0xc2   :  { %v3279_v19 = vmax.f32 %v4192_v37, %v908_v41  ;;  %v3284_v40 = vmax.f32 %v4195_v28, %v909_v22  ;;  %v1532_v13 = vunpack.c.l.bf16 %v1531_v63  ;;  %v1533_v46 = vunpack.c.h.bf16 %v1531_v63  ;;  %v4219_v23 = vld [vmem:[#allocation15_spill] sm:$0xff] }
  0xc3   :  { %v3296_v7 = vmax.f32 %v4200_v29, %v910_v0  ;;  %v3301_v52 = vmax.f32 %v4204_v3, %v911_v32  ;;  %v4208_v50 = vmax.f32 %v4206_v60, %v4207_v20  ;;  %v4212_v49 = vmax.f32 %v4210_v45, %v4211_v48 }
  0xc4   :  { %v1536_v30 = vunpack.c.l.bf16 %v1683_v27  ;;  %v1537_v4 = vunpack.c.h.bf16 %v1683_v27  ;;  %v4216_v25 = vmax.f32 %v4214_v55, %v4215_v24  ;;  %v4220_v56 = vmax.f32 %v4218_v14, %v4219_v23  ;;  %v1563_v23 = vld [vmem:[%s3764_s8] sm:$0xff]  }
  0xc5   :  { %4201 = vst [vmem:[#allocation11_spill] sm:$0xff] %v3296_v7  ;;  %4205 = vst [vmem:[#allocation2_spill] sm:$0xff] %v3301_v52  ;;  %v3312_v47 = vmax.f32 %v4208_v50, %v912_v54  ;;  %v3317_v10 = vmax.f32 %v4212_v49, %v913_v59  ;;  %v1540_v41 = vunpack.c.l.bf16 %v1684_v1  ;;  %v1541_v22 = vunpack.c.h.bf16 %v1684_v1  ;;  %v4222_v59 = vld [vmem:[#allocation16_spill] sm:$0xff] }
  0xc6   :  { %v3325_v39 = vmax.f32 %v4216_v25, %v914_v11  ;;  %v3330_v42 = vmax.f32 %v4220_v56, %v915_v62  ;;  %v1544_v9 = vunpack.c.l.bf16 %v1685_v5  ;;  %v1545_v0 = vunpack.c.h.bf16 %v1685_v5 }
  0xc7   :  { %4209 = vst [vmem:[#allocation6_spill] sm:$0xff] %v3312_v47  ;;  %4213 = vst [vmem:[#allocation12_spill] sm:$0xff] %v3317_v10  ;;  %v1548_v32 = vunpack.c.l.bf16 %v1686_v58  ;;  %v1549_v63 = vunpack.c.h.bf16 %v1686_v58  ;;  %v1552_v26 = vunpack.c.l.bf16 %v1687_v57  ;;  %v1553_v54 = vunpack.c.h.bf16 %v1687_v57 }
  0xc8   :  { %4217 = vst [vmem:[#allocation8_spill] sm:$0xff] %v3325_v39  ;;  %4221 = vst [vmem:[#allocation10_spill] sm:$0xff] %v3330_v42  ;;  %v980_v27 = vmul.f32 %v4222_v59, %v1532_v13  ;;  %v981_v36 = vmul.f32 %v4222_v59, %v1533_v46  ;;  %v1556_v37 = vunpack.c.l.bf16 %v1688_v2  ;;  %v1557_v38 = vunpack.c.h.bf16 %v1688_v2 }
  0xc9   :  { %v982_v18 = vmul.f32 %v4222_v59, %v1536_v30  ;;  %v983_v28 = vmul.f32 %v4222_v59, %v1537_v4  ;;  %v1560_v12 = vunpack.c.l.bf16 %v1689_v33  ;;  %v1561_v11 = vunpack.c.h.bf16 %v1689_v33 }
  0xca   :  { %vm3342_vm0 = vcmp.gt.f32.partialorder %v1532_v13, -5e+29  ;;  %vm3346_vm1 = vcmp.gt.f32.partialorder %v1533_v46, -5e+29  ;;  %vm3350_vm2 = vcmp.gt.f32.partialorder %v1536_v30, -5e+29  ;;  %v984_v35 = vmul.f32 %v4222_v59, %v1540_v41 }
  0xcb   :  { %vm3354_vm3 = vcmp.gt.f32.partialorder %v1537_v4, -5e+29  ;;  %v985_v29 = vmul.f32 %v4222_v59, %v1541_v22  ;;  %v986_v61 = vmul.f32 %v4222_v59, %v1544_v9  ;;  %v987_v44 = vmul.f32 %v4222_v59, %v1545_v0 }
  0xcc   :  { %v996_v3 = vadd.f32 %v2748_v6, %v980_v27  ;;  %v997_v13 = vadd.f32 %v2748_v6, %v981_v36  ;;  %vm3364_vm4 = vcmp.gt.f32.partialorder %v1540_v41, -5e+29  ;;  %vm3368_vm5 = vcmp.gt.f32.partialorder %v1541_v22, -5e+29 }
  0xcd   :  { %v988_v58 = vmul.f32 %v4222_v59, %v1548_v32  ;;  %v989_v60 = vmul.f32 %v4222_v59, %v1549_v63  ;;  %v998_v20 = vadd.f32 %v2748_v6, %v982_v18  ;;  %v999_v50 = vadd.f32 %v2748_v6, %v983_v28 }
  0xce   :  { %vm3376_vm6 = vcmp.gt.f32.partialorder %v1544_v9, -5e+29  ;;  %vm3380_vm7 = vcmp.gt.f32.partialorder %v1545_v0, -5e+29  ;;  %vm3384_vm8 = vcmp.gt.f32.partialorder %v1548_v32, -5e+29  ;;  %v990_v4 = vmul.f32 %v4222_v59, %v1552_v26 }
  0xcf   :  { %vm3388_vm9 = vcmp.gt.f32.partialorder %v1549_v63, -5e+29  ;;  %v991_v57 = vmul.f32 %v4222_v59, %v1553_v54  ;;  %v992_v55 = vmul.f32 %v4222_v59, %v1556_v37  ;;  %v993_v24 = vmul.f32 %v4222_v59, %v1557_v38  ;;  %v1690_v32 = vld [vmem:[%s3764_s8 + $0x8] sm:$0xff]  }
  0xd0   :  { %vm3396_vm10 = vcmp.gt.f32.partialorder %v1552_v26, -5e+29  ;;  %vm3400_vm11 = vcmp.gt.f32.partialorder %v1553_v54, -5e+29  ;;  %vm3404_vm12 = vcmp.gt.f32.partialorder %v1556_v37, -5e+29  ;;  %v994_v41 = vmul.f32 %v4222_v59, %v1560_v12 }
  0xd1   :  { %vm3408_vm13 = vcmp.gt.f32.partialorder %v1557_v38, -5e+29  ;;  %v995_v22 = vmul.f32 %v4222_v59, %v1561_v11  ;;  %v1000_v2 = vadd.f32 %v2748_v6, %v984_v35  ;;  %v1001_v9 = vadd.f32 %v2748_v6, %v985_v29 }
  0xd2   :  { %vm3416_vm14 = vcmp.gt.f32.partialorder %v1560_v12, -5e+29  ;;  %vm3420_vm15 = vcmp.gt.f32.partialorder %v1561_v11, -5e+29  ;;  %v1002_v63 = vadd.f32 %v2748_v6, %v986_v61  ;;  %v1003_v33 = vadd.f32 %v2748_v6, %v987_v44 }
  0xd3   :  { %v1012_v26 = vmax.f32 %v996_v3, 0.0  ;;  %v1013_v54 = vmax.f32 %v997_v13, 0.0  ;;  %v1004_v27 = vadd.f32 %v2748_v6, %v988_v58  ;;  %v1005_v36 = vadd.f32 %v2748_v6, %v989_v60 }
  0xd4   :  { %v1014_v37 = vmax.f32 %v998_v20, 0.0  ;;  %v1015_v38 = vmax.f32 %v999_v50, 0.0  ;;  %v1006_v18 = vadd.f32 %v2748_v6, %v990_v4  ;;  %v1007_v28 = vadd.f32 %v2748_v6, %v991_v57 }
  0xd5   :  { %v1008_v12 = vadd.f32 %v2748_v6, %v992_v55  ;;  %v1009_v11 = vadd.f32 %v2748_v6, %v993_v24  ;;  %v1010_v35 = vadd.f32 %v2748_v6, %v994_v41  ;;  %v1011_v29 = vadd.f32 %v2748_v6, %v995_v22 }
  0xd6   :  { %v1016_v61 = vmax.f32 %v1000_v2, 0.0  ;;  %v1017_v44 = vmax.f32 %v1001_v9, 0.0  ;;  %v1018_v3 = vmax.f32 %v1002_v63, 0.0  ;;  %v1019_v13 = vmax.f32 %v1003_v33, 0.0 }
  0xd7   :  { %v3436_v58 = vsel %vm3342_vm0, %v1012_v26, 0.0  ;;  %v3440_v60 = vsel %vm3346_vm1, %v1013_v54, 0.0  ;;  %v1020_v20 = vmax.f32 %v1004_v27, 0.0  ;;  %v1021_v50 = vmax.f32 %v1005_v36, 0.0 }
  0xd8   :  { %v3444_v4 = vsel %vm3350_vm2, %v1014_v37, 0.0  ;;  %v3448_v57 = vsel %vm3354_vm3, %v1015_v38, 0.0  ;;  %v1022_v55 = vmax.f32 %v1006_v18, 0.0  ;;  %v1023_v24 = vmax.f32 %v1007_v28, 0.0  ;;  %v1691_v18 = vld [vmem:[%s3764_s8 + $0x10] sm:$0xff]  }
  0xd9   :  { %v1024_v41 = vmax.f32 %v1008_v12, 0.0  ;;  %v1025_v21 = vmax.f32 %v1009_v11, 0.0  ;;  %v1026_v22 = vmax.f32 %v1010_v35, 0.0  ;;  %v1027_v2 = vmax.f32 %v1011_v29, 0.0  ;;  %v1692_v29 = vld [vmem:[%s3764_s8 + $0x18] sm:$0xff]  }
  0xda   :  { %v3460_v63 = vsel %vm3364_vm4, %v1016_v61, 0.0  ;;  %v3464_v33 = vsel %vm3368_vm5, %v1017_v44, 0.0  ;;  %v3468_v26 = vsel %vm3376_vm6, %v1018_v3, 0.0  ;;  %v3472_v54 = vsel %vm3380_vm7, %v1019_v13, 0.0  ;;  %v1693_v61 = vld [vmem:[%s3764_s8 + $0x20] sm:$0xff]  }
  0xdb   :  { %v3476_v27 = vsel %vm3384_vm8, %v1020_v20, 0.0  ;;  %v3480_v46 = vsel %vm3388_vm9, %v1021_v50, 0.0  ;;  %v3484_v5 = vsel %vm3396_vm10, %v1022_v55, 0.0  ;;  %v3488_v45 = vsel %vm3400_vm11, %v1023_v24, 0.0  ;;  %v1694_v50 = vld [vmem:[%s3764_s8 + $0x28] sm:$0xff]   ;;  %v1695_v55 = vld [vmem:[%s3764_s8 + $0x30] sm:$0xff]  }
  0xdc   :  { %4255 = vst [vmem:[#allocation18_spill] sm:$0xff] %v3480_v46  ;;  %4256 = vst [vmem:[#allocation5_spill] sm:$0xff] %v3484_v5  ;;  %v3492_v48 = vsel %vm3404_vm12, %v1024_v41, 0.0  ;;  %v3496_v49 = vsel %vm3408_vm13, %v1025_v21, 0.0  ;;  %v3504_v36 = vsel %vm3416_vm14, %v1026_v22, 0.0  ;;  %v3508_v14 = vsel %vm3420_vm15, %v1027_v2, 0.0 }
  0xdd   :  { %4257 = vst [vmem:[#allocation14_spill] sm:$0xff] %v3488_v45  ;;  %4258 = vst [vmem:[#allocation9_spill] sm:$0xff] %v3492_v48  ;;  %v1564_v13 = vunpack.c.l.bf16 %v1563_v23  ;;  %v1565_v20 = vunpack.c.h.bf16 %v1563_v23  ;;  %v1568_v24 = vunpack.c.l.bf16 %v1690_v32  ;;  %v1569_v41 = vunpack.c.h.bf16 %v1690_v32  ;;  %v1696_v2 = vld [vmem:[%s3764_s8 + $0x38] sm:$0xff]  }
  0xde   :  { %4259 = vst [vmem:[#allocation19_spill] sm:$0xff] %v3496_v49  ;;  %4260 = vst [vmem:[#allocation17_spill] sm:$0xff] %v3504_v36  ;;  %v1572_v21 = vunpack.c.l.bf16 %v1691_v18  ;;  %v1573_v22 = vunpack.c.h.bf16 %v1691_v18  ;;  %v1576_v44 = vunpack.c.l.bf16 %v1692_v29  ;;  %v1577_v3 = vunpack.c.h.bf16 %v1692_v29 }
  0xdf   :  { %4261 = vst [vmem:[#allocation7_spill] sm:$0xff] %v3508_v14  ;;  %v1580_v35 = vunpack.c.l.bf16 %v1693_v61  ;;  %v1581_v23 = vunpack.c.h.bf16 %v1693_v61  ;;  %v1584_v11 = vunpack.c.l.bf16 %v1694_v50  ;;  %v1585_v12 = vunpack.c.h.bf16 %v1694_v50 }
  0xe0   :  { %v1588_v28 = vunpack.c.l.bf16 %v1695_v55  ;;  %v1589_v0 = vunpack.c.h.bf16 %v1695_v55  ;;  %v1592_v38 = vunpack.c.l.bf16 %v1696_v2  ;;  %v1593_v37 = vunpack.c.h.bf16 %v1696_v2 }
  0xe1   :  { %v1108_v56 = vmul.f32 %v4222_v59, %v1564_v13  ;;  %v1109_v32 = vmul.f32 %v4222_v59, %v1565_v20  ;;  %vm3556_vm0 = vcmp.gt.f32.partialorder %v1564_v13, -5e+29  ;;  %vm3560_vm1 = vcmp.gt.f32.partialorder %v1565_v20, -5e+29 }
  0xe2   :  { %v1110_v29 = vmul.f32 %v4222_v59, %v1568_v24  ;;  %v1111_v61 = vmul.f32 %v4222_v59, %v1569_v41  ;;  %v1112_v50 = vmul.f32 %v4222_v59, %v1572_v21  ;;  %v1113_v55 = vmul.f32 %v4222_v59, %v1573_v22 }
  0xe3   :  { %vm3568_vm2 = vcmp.gt.f32.partialorder %v1568_v24, -5e+29  ;;  %vm3572_vm3 = vcmp.gt.f32.partialorder %v1569_v41, -5e+29  ;;  %v1114_v20 = vmul.f32 %v4222_v59, %v1576_v44  ;;  %v1115_v30 = vmul.f32 %v4222_v59, %v1577_v3  ;;  %v4314_v48 = vld [vmem:[#allocation5_spill] sm:$0xff] }
  0xe4   :  { %v1116_v15 = vmul.f32 %v4222_v59, %v1580_v35  ;;  %v1117_v1 = vmul.f32 %v4222_v59, %v1581_v23  ;;  %vm3580_vm4 = vcmp.gt.f32.partialorder %v1572_v21, -5e+29  ;;  %vm3584_vm5 = vcmp.gt.f32.partialorder %v1573_v22, -5e+29 }
  0xe5   :  { %v1118_v41 = vmul.f32 %v4222_v59, %v1584_v11  ;;  %v1119_v62 = vmul.f32 %v4222_v59, %v1585_v12  ;;  %v1120_v14 = vmul.f32 %v4222_v59, %v1588_v28  ;;  %v1121_v42 = vmul.f32 %v4222_v59, %v1589_v0 }
  0xe6   :  { %vm3592_vm6 = vcmp.gt.f32.partialorder %v1576_v44, -5e+29  ;;  %vm3596_vm7 = vcmp.gt.f32.partialorder %v1577_v3, -5e+29  ;;  %v1122_v22 = vmul.f32 %v4222_v59, %v1592_v38  ;;  %v1123_v39 = vmul.f32 %v4222_v59, %v1593_v37  ;;  %v4316_v44 = vld [vmem:[#allocation2_spill] sm:$0xff] }
  0xe7   :  { %v1124_v49 = vadd.f32 %v2748_v6, %v1108_v56  ;;  %v1125_v10 = vadd.f32 %v2748_v6, %v1109_v32  ;;  %vm3604_vm8 = vcmp.gt.f32.partialorder %v1580_v35, -5e+29  ;;  %vm3608_vm9 = vcmp.gt.f32.partialorder %v1581_v23, -5e+29 }
  0xe8   :  { %v1126_v3 = vadd.f32 %v2748_v6, %v1110_v29  ;;  %v1127_v47 = vadd.f32 %v2748_v6, %v1111_v61  ;;  %v1128_v45 = vadd.f32 %v2748_v6, %v1112_v50  ;;  %v1129_v59 = vadd.f32 %v2748_v6, %v1113_v55 }
  0xe9   :  { %vm3616_vm10 = vcmp.gt.f32.partialorder %v1584_v11, -5e+29  ;;  %v4282_v56 = vmov 0  ;;  %vm3620_vm11 = vcmp.gt.f32.partialorder %v1585_v12, -5e+29  ;;  %v4285_v35 = vmov 0 }
  0xea   :  { %v4283_v56 = vsel %vm3616_vm10, 4294967295, %v4282_v56  ;;  %v4286_v35 = vsel %vm3620_vm11, 4294967295, %v4285_v35  ;;  %v1130_v23 = vadd.f32 %v2748_v6, %v1114_v20  ;;  %v1131_v32 = vadd.f32 %v2748_v6, %v1115_v30 }
  0xeb   :  { %4284 = vst [vmem:[#allocation3_spill] sm:$0xff] %v4283_v56  ;;  %4287 = vst [vmem:[#allocation4_spill] sm:$0xff] %v4286_v35  ;;  %v1132_v29 = vadd.f32 %v2748_v6, %v1116_v15  ;;  %v1133_v61 = vadd.f32 %v2748_v6, %v1117_v1  ;;  %vm3628_vm12 = vcmp.gt.f32.partialorder %v1588_v28, -5e+29  ;;  %v4288_v50 = vmov 0 }
  0xec   :  { %v4289_v50 = vsel %vm3628_vm12, 4294967295, %v4288_v50  ;;  %vm3632_vm13 = vcmp.gt.f32.partialorder %v1589_v0, -5e+29  ;;  %v4291_v11 = vmov 0  ;;  %v1134_v12 = vadd.f32 %v2748_v6, %v1118_v41 }
  0xed   :  { %4290 = vst [vmem:[#allocation13_spill] sm:$0xff] %v4289_v50  ;;  %v4292_v11 = vsel %vm3632_vm13, 4294967295, %v4291_v11  ;;  %v1135_v55 = vadd.f32 %v2748_v6, %v1119_v62  ;;  %v1136_v20 = vadd.f32 %v2748_v6, %v1120_v14  ;;  %v1137_v30 = vadd.f32 %v2748_v6, %v1121_v42 }
  0xee   :  { %4293 = vst [vmem:[#allocation15_spill] sm:$0xff] %v4292_v11  ;;  %vm3640_vm14 = vcmp.gt.f32.partialorder %v1592_v38, -5e+29  ;;  %v4294_v15 = vmov 0  ;;  %vm3644_vm15 = vcmp.gt.f32.partialorder %v1593_v37, -5e+29  ;;  %v1138_v0 = vadd.f32 %v2748_v6, %v1122_v22 }
  0xef   :  { %v4295_v15 = vsel %vm3640_vm14, 4294967295, %v4294_v15  ;;  %v4297_v1 = vmov 0  ;;  %v1139_v28 = vadd.f32 %v2748_v6, %v1123_v39  ;;  %v1140_v11 = vmax.f32 %v1124_v49, 0.0 }
  0xf0   :  { %4296 = vst [vmem:[#allocation16_spill] sm:$0xff] %v4295_v15  ;;  %v4298_v1 = vsel %vm3644_vm15, 4294967295, %v4297_v1  ;;  %v1141_v41 = vmax.f32 %v1125_v10, 0.0  ;;  %v1142_v50 = vmax.f32 %v1126_v3, 0.0  ;;  %v1143_v62 = vmax.f32 %v1127_v47, 0.0 }
  0xf1   :  { %4299 = vst [vmem:[#allocation20_spill] sm:$0xff] %v4298_v1  ;;  %v1144_v52 = vmax.f32 %v1128_v45, 0.0  ;;  %v1145_v14 = vmax.f32 %v1129_v59, 0.0  ;;  %v1146_v5 = vmax.f32 %v1130_v23, 0.0  ;;  %v1147_v42 = vmax.f32 %v1131_v32, 0.0 }
  0xf2   :  { %v1148_v38 = vmax.f32 %v1132_v29, 0.0  ;;  %v1149_v7 = vmax.f32 %v1133_v61, 0.0  ;;  %v1150_v35 = vmax.f32 %v1134_v12, 0.0  ;;  %v1151_v15 = vmax.f32 %v1135_v55, 0.0  ;;  %v4321_v12 = vld [vmem:[#allocation6_spill] sm:$0xff]  ;;  %v4322_v55 = vld [vmem:[#allocation9_spill] sm:$0xff] }
  0xf3   :  { %v1152_v37 = vmax.f32 %v1136_v20, 0.0  ;;  %v1153_v56 = vmax.f32 %v1137_v30, 0.0  ;;  %v1154_v46 = vmax.f32 %v1138_v0, 0.0  ;;  %v1155_v1 = vmax.f32 %v1139_v28, 0.0  ;;  %v4324_v30 = vld [vmem:[#allocation12_spill] sm:$0xff] }
  0xf4   :  { %v1156_v22 = vsel %vm3556_vm0, %v1140_v11, 0.0  ;;  %v1157_v6 = vsel %vm3560_vm1, %v1141_v41, 0.0  ;;  %v4300_v47 = vmax.f32 %v3217_v51, %v3436_v58  ;;  %v4301_v39 = vmax.f32 %v3222_v31, %v3440_v60 }
  0xf5   :  { %v1158_v49 = vsel %vm3568_vm2, %v1142_v50, 0.0  ;;  %v1159_v3 = vsel %vm3572_vm3, %v1143_v62, 0.0  ;;  %v4302_v18 = vmax.f32 %v3231_v53, %v3444_v4  ;;  %v4303_v25 = vmax.f32 %v3236_v34, %v3448_v57 }
  0xf6   :  { %v1172_v10 = vmax.f32 %v4300_v47, %v1156_v22  ;;  %v1173_v45 = vmax.f32 %v4301_v39, %v1157_v6  ;;  %v1160_v51 = vsel %vm3580_vm4, %v1144_v52, 0.0  ;;  %v1161_v31 = vsel %vm3584_vm5, %v1145_v14, 0.0  ;;  %v4330_v22 = vld [vmem:[#allocation17_spill] sm:$0xff]  ;;  %v4332_v47 = vld [vmem:[#allocation10_spill] sm:$0xff] }
  0xf7   :  { %v1174_v59 = vmax.f32 %v4302_v18, %v1158_v49  ;;  %v1175_v23 = vmax.f32 %v4303_v25, %v1159_v3  ;;  %v4304_v58 = vmax.f32 %v3245_v16, %v3460_v63  ;;  %v4305_v2 = vmax.f32 %v3250_v43, %v3464_v33 }
  0xf8   :  { %v1162_v53 = vsel %vm3592_vm6, %v1146_v5, 0.0  ;;  %v1163_v34 = vsel %vm3596_vm7, %v1147_v42, 0.0  ;;  %v4306_v52 = vmax.f32 %v3262_v17, %v3468_v26  ;;  %v4307_v57 = vmax.f32 %v3267_v8, %v3472_v54  ;;  %v4309_v5 = vld [vmem:[#allocation18_spill] sm:$0xff]  ;;  %v4313_v54 = vld [vmem:[#allocation11_spill] sm:$0xff] }
  0xf9   :  { %v1176_v60 = vmax.f32 %v4304_v58, %v1160_v51  ;;  %v1177_v13 = vmax.f32 %v4305_v2, %v1161_v31  ;;  %v1164_v16 = vsel %vm3604_vm8, %v1148_v38, 0.0  ;;  %v1165_v43 = vsel %vm3608_vm9, %v1149_v7, 0.0  ;;  %v4317_v7 = vld [vmem:[#allocation14_spill] sm:$0xff]  ;;  %v4329_v38 = vld [vmem:[#allocation8_spill] sm:$0xff] }
  0xfa   :  { %v1178_v4 = vmax.f32 %v4306_v52, %v1162_v53  ;;  %v1179_v9 = vmax.f32 %v4307_v57, %v1163_v34  ;;  %v4308_v63 = vmax.f32 %v3279_v19, %v3476_v27  ;;  %v4310_v36 = vmax.f32 %v3284_v40, %v4309_v5 }
  0xfb   :  { %v1166_v26 = vsel %vm3616_vm10, %v1150_v35, 0.0  ;;  %v1167_v8 = vsel %vm3620_vm11, %v1151_v15, 0.0  ;;  %v4315_v32 = vmax.f32 %v4313_v54, %v4314_v48  ;;  %v4318_v61 = vmax.f32 %v4316_v44, %v4317_v7  ;;  %v4325_v15 = vld [vmem:[#allocation19_spill] sm:$0xff] }
  0xfc   :  { %v1180_v33 = vmax.f32 %v4308_v63, %v1164_v16  ;;  %v1181_v24 = vmax.f32 %v4310_v36, %v1165_v43  ;;  %v1168_v27 = vsel %vm3628_vm12, %v1152_v37, 0.0  ;;  %v1169_v40 = vsel %vm3632_vm13, %v1153_v56, 0.0  ;;  %v4333_v56 = vld [vmem:[#allocation7_spill] sm:$0xff] }
  0xfd   :  { %v1182_v29 = vmax.f32 %v4315_v32, %v1166_v26  ;;  %v1183_v50 = vmax.f32 %v4318_v61, %v1167_v8  ;;  %v4323_v35 = vmax.f32 %v4321_v12, %v4322_v55  ;;  %v4326_v0 = vmax.f32 %v4324_v30, %v4325_v15 }
  0xfe   :  { %v1170_v62 = vsel %vm3640_vm14, %v1154_v46, 0.0  ;;  %v1171_v42 = vsel %vm3644_vm15, %v1155_v1, 0.0  ;;  %v4331_v37 = vmax.f32 %v4329_v38, %v4330_v22  ;;  %v4334_v39 = vmax.f32 %v4332_v47, %v4333_v56 }
  0xff   :  { %v1184_v20 = vmax.f32 %v4323_v35, %v1168_v27  ;;  %v1185_v28 = vmax.f32 %v4326_v0, %v1169_v40  ;;  %v1597_v3 = vpack.c.bf16 %v1173_v45, %v1172_v10  ;;  %v1602_v18 = vpack.c.bf16 %v1175_v23, %v1174_v59 }
 0x100   :  { %v1186_v6 = vmax.f32 %v4331_v37, %v1170_v62  ;;  %v1187_v49 = vmax.f32 %v4334_v39, %v1171_v42  ;;  %v1607_v25 = vpack.c.bf16 %v1177_v13, %v1176_v60  ;;  %v1612_v51 = vpack.c.bf16 %v1179_v9, %v1178_v4 }
 0x101   :  { %v1617_v31 = vpack.c.bf16 %v1181_v24, %v1180_v33  ;;  %v1622_v58 = vpack.c.bf16 %v1183_v50, %v1182_v29  ;;  %1598 = vst [vmem:[%s3765_s11] sm:$0xff] %v1597_v3   ;;  %1697 = vst [vmem:[%s3765_s11 + $0x8] sm:$0xff] %v1602_v18   ;;  %v1627_v46 = vpack.c.bf16 %v1185_v28, %v1184_v20 }
 0x102   :  { %v1632_v1 = vpack.c.bf16 %v1187_v49, %v1186_v6  ;;  %1698 = vst [vmem:[%s3765_s11 + $0x10] sm:$0xff] %v1607_v25   ;;  %1699 = vst [vmem:[%s3765_s11 + $0x18] sm:$0xff] %v1612_v51  }
 0x103   :  { %1700 = vst [vmem:[%s3765_s11 + $0x20] sm:$0xff] %v1617_v31   ;;  %1701 = vst [vmem:[%s3765_s11 + $0x28] sm:$0xff] %v1622_v58  }
 0x104   :  { %1702 = vst [vmem:[%s3765_s11 + $0x30] sm:$0xff] %v1627_v46   ;;  %1703 = vst [vmem:[%s3765_s11 + $0x38] sm:$0xff] %v1632_v1  }

// kernel: resnet_forward.22
= control target key start
LH: loop header
LB: loop body
LE: loop exit
PB: predicated region body
PF: predicated region fallthrough
CT: control target
= control target key end

     0   :  { %s422_s0 = inlined_call_operand.vmem [shape: bf16[128,128], index: 0, kind: input, shape index: {}]   ;;  %s423_s1 = inlined_call_operand.vmem [shape: f32[1,128], index: 1, kind: input, shape index: {}]   ;;  %s424_s2 = inlined_call_operand.vmem [shape: f32[1,128], index: 2, kind: input, shape index: {}]   ;;  %s425_s3 = inlined_call_operand.vmem [shape: bf16[128,128], index: 3, kind: output, shape index: {}]  }
   0x1   :  { %v227_v0 = vld [vmem:[%s422_s0] sm:$0xff]   ;;  %v298_v4 = vld [vmem:[%s422_s0 + $0x8] sm:$0xff]   ;;  %v299_v5 = vld [vmem:[%s422_s0 + $0x10] sm:$0xff]  }
   0x2   :  { %v338_v1 = vld [vmem:[%s423_s1] ss:$0 sm:$0xff]  ;;  %v228_v2 = vunpack.c.l.bf16 %v227_v0  ;;  %v229_v3 = vunpack.c.h.bf16 %v227_v0  ;;  %v300_v6 = vld [vmem:[%s422_s0 + $0x18] sm:$0xff]   ;;  %v232_v8 = vunpack.c.l.bf16 %v298_v4  ;;  %v233_v9 = vunpack.c.h.bf16 %v298_v4  ;;  %v302_v33 = vld [vmem:[%s422_s0 + $0x28] sm:$0xff]  }
   0x3   :  { %v352_v7 = vld [vmem:[%s424_s2] ss:$0 sm:$0xff]  ;;  %v236_v10 = vunpack.c.l.bf16 %v299_v5  ;;  %v237_v11 = vunpack.c.h.bf16 %v299_v5  ;;  %v240_v14 = vunpack.c.l.bf16 %v300_v6  ;;  %v241_v15 = vunpack.c.h.bf16 %v300_v6  ;;  %v303_v38 = vld [vmem:[%s422_s0 + $0x30] sm:$0xff]   ;;  %v304_v43 = vld [vmem:[%s422_s0 + $0x38] sm:$0xff]  }
   0x4   :  { %v53_v12 = vmul.f32 %v228_v2, %v338_v1  ;;  %v54_v13 = vmul.f32 %v229_v3, %v338_v1  ;;  %v55_v16 = vmul.f32 %v232_v8, %v338_v1  ;;  %v56_v17 = vmul.f32 %v233_v9, %v338_v1  ;;  %v301_v28 = vld [vmem:[%s422_s0 + $0x20] sm:$0xff]  }
   0x5   :  { %v57_v18 = vmul.f32 %v236_v10, %v338_v1  ;;  %v58_v19 = vmul.f32 %v237_v11, %v338_v1  ;;  %v59_v22 = vmul.f32 %v240_v14, %v338_v1  ;;  %v60_v23 = vmul.f32 %v241_v15, %v338_v1 }
   0x6   :  { %v76_v20 = vadd.f32 %v352_v7, %v53_v12  ;;  %v77_v21 = vadd.f32 %v352_v7, %v54_v13  ;;  %v78_v24 = vadd.f32 %v352_v7, %v55_v16  ;;  %v79_v25 = vadd.f32 %v352_v7, %v56_v17 }
   0x7   :  { %v80_v26 = vadd.f32 %v352_v7, %v57_v18  ;;  %v81_v27 = vadd.f32 %v352_v7, %v58_v19  ;;  %v82_v31 = vadd.f32 %v352_v7, %v59_v22  ;;  %v83_v32 = vadd.f32 %v352_v7, %v60_v23 }
   0x8   :  { %v92_v29 = vmax.f32 %v76_v20, 0.0  ;;  %v93_v30 = vmax.f32 %v77_v21, 0.0  ;;  %v94_v34 = vmax.f32 %v78_v24, 0.0  ;;  %v95_v35 = vmax.f32 %v79_v25, 0.0 }
   0x9   :  { %v96_v36 = vmax.f32 %v80_v26, 0.0  ;;  %v97_v37 = vmax.f32 %v81_v27, 0.0  ;;  %v98_v40 = vmax.f32 %v82_v31, 0.0  ;;  %v99_v41 = vmax.f32 %v83_v32, 0.0 }
   0xa   :  { %v261_v39 = vpack.c.bf16 %v93_v30, %v92_v29  ;;  %v244_v42 = vunpack.c.l.bf16 %v301_v28  ;;  %v266_v44 = vpack.c.bf16 %v95_v35, %v94_v34  ;;  %v245_v46 = vunpack.c.h.bf16 %v301_v28 }
   0xb   :  { %v271_v45 = vpack.c.bf16 %v97_v37, %v96_v36  ;;  %v248_v47 = vunpack.c.l.bf16 %v302_v33  ;;  %v276_v48 = vpack.c.bf16 %v99_v41, %v98_v40  ;;  %v249_v50 = vunpack.c.h.bf16 %v302_v33 }
   0xc   :  { %262 = vst [vmem:[%s425_s3] sm:$0xff] %v261_v39   ;;  %v61_v49 = vmul.f32 %v244_v42, %v338_v1  ;;  %v252_v51 = vunpack.c.l.bf16 %v303_v38  ;;  %305 = vst [vmem:[%s425_s3 + $0x8] sm:$0xff] %v266_v44   ;;  %v62_v52 = vmul.f32 %v245_v46, %v338_v1  ;;  %v253_v54 = vunpack.c.h.bf16 %v303_v38 }
   0xd   :  { %306 = vst [vmem:[%s425_s3 + $0x10] sm:$0xff] %v271_v45   ;;  %v63_v53 = vmul.f32 %v248_v47, %v338_v1  ;;  %v256_v55 = vunpack.c.l.bf16 %v304_v43  ;;  %307 = vst [vmem:[%s425_s3 + $0x18] sm:$0xff] %v276_v48   ;;  %v64_v57 = vmul.f32 %v249_v50, %v338_v1  ;;  %v257_v59 = vunpack.c.h.bf16 %v304_v43 }
   0xe   :  { %v84_v56 = vadd.f32 %v352_v7, %v61_v49  ;;  %v65_v58 = vmul.f32 %v252_v51, %v338_v1  ;;  %v85_v60 = vadd.f32 %v352_v7, %v62_v52  ;;  %v66_v62 = vmul.f32 %v253_v54, %v338_v1 }
   0xf   :  { %v86_v61 = vadd.f32 %v352_v7, %v63_v53  ;;  %v67_v63 = vmul.f32 %v256_v55, %v338_v1  ;;  %v87_v2 = vadd.f32 %v352_v7, %v64_v57  ;;  %v68_v4 = vmul.f32 %v257_v59, %v338_v1 }
  0x10   :  { %v100_v0 = vmax.f32 %v84_v56, 0.0  ;;  %v88_v3 = vadd.f32 %v352_v7, %v65_v58  ;;  %v101_v5 = vmax.f32 %v85_v60, 0.0  ;;  %v89_v8 = vadd.f32 %v352_v7, %v66_v62 }
  0x11   :  { %v102_v6 = vmax.f32 %v86_v61, 0.0  ;;  %v90_v9 = vadd.f32 %v352_v7, %v67_v63  ;;  %v103_v10 = vmax.f32 %v87_v2, 0.0  ;;  %v91_v12 = vadd.f32 %v352_v7, %v68_v4 }
  0x12   :  { %v104_v11 = vmax.f32 %v88_v3, 0.0  ;;  %v281_v13 = vpack.c.bf16 %v101_v5, %v100_v0  ;;  %v105_v14 = vmax.f32 %v89_v8, 0.0 }
  0x13   :  { %v106_v15 = vmax.f32 %v90_v9, 0.0  ;;  %v286_v16 = vpack.c.bf16 %v103_v10, %v102_v6  ;;  %v107_v17 = vmax.f32 %v91_v12, 0.0 }
  0x14   :  { %308 = vst [vmem:[%s425_s3 + $0x20] sm:$0xff] %v281_v13   ;;  %v291_v1 = vpack.c.bf16 %v105_v14, %v104_v11 }
  0x15   :  { %309 = vst [vmem:[%s425_s3 + $0x28] sm:$0xff] %v286_v16   ;;  %v296_v18 = vpack.c.bf16 %v107_v17, %v106_v15 }
  0x16   :  { %310 = vst [vmem:[%s425_s3 + $0x30] sm:$0xff] %v291_v1  }
  0x17   :  { %311 = vst [vmem:[%s425_s3 + $0x38] sm:$0xff] %v296_v18  }

// kernel: resnet_forward.24
= control target key start
LH: loop header
LB: loop body
LE: loop exit
PB: predicated region body
PF: predicated region fallthrough
CT: control target
= control target key end

     0   :  { %s541_s0 = inlined_call_operand.vmem [shape: bf16[128,128], index: 0, kind: input, shape index: {}]   ;;  %s542_s1 = inlined_call_operand.vmem [shape: bf16[128,128], index: 1, kind: input, shape index: {}]   ;;  %s543_s2 = inlined_call_operand.vmem [shape: f32[1,128], index: 2, kind: input, shape index: {}]   ;;  %s544_s3 = inlined_call_operand.vmem [shape: f32[1,128], index: 3, kind: input, shape index: {}]   ;;  %s545_s4 = inlined_call_operand.vmem [shape: bf16[128,128], index: 4, kind: output, shape index: {}]  }
   0x1   :  { %v278_v0 = vld [vmem:[%s541_s0] sm:$0xff]   ;;  %v381_v5 = vld [vmem:[%s541_s0 + $0x8] sm:$0xff]   ;;  %v382_v12 = vld [vmem:[%s541_s0 + $0x10] sm:$0xff]  }
   0x2   :  { %v433_v1 = vld [vmem:[%s543_s2] ss:$0 sm:$0xff]  ;;  %v279_v2 = vunpack.c.l.bf16 %v278_v0  ;;  %v280_v3 = vunpack.c.h.bf16 %v278_v0  ;;  %v388_v6 = vld [vmem:[%s542_s1 + $0x8] sm:$0xff]   ;;  %v283_v10 = vunpack.c.l.bf16 %v381_v5  ;;  %v284_v11 = vunpack.c.h.bf16 %v381_v5  ;;  %v389_v13 = vld [vmem:[%s542_s1 + $0x10] sm:$0xff]  }
   0x3   :  { %v310_v4 = vld [vmem:[%s542_s1] sm:$0xff]   ;;  %v315_v16 = vunpack.c.l.bf16 %v388_v6  ;;  %v316_v17 = vunpack.c.h.bf16 %v388_v6  ;;  %v287_v20 = vunpack.c.l.bf16 %v382_v12  ;;  %v288_v21 = vunpack.c.h.bf16 %v382_v12  ;;  %v383_v22 = vld [vmem:[%s541_s0 + $0x18] sm:$0xff]   ;;  %v385_v54 = vld [vmem:[%s541_s0 + $0x28] sm:$0xff]  }
   0x4   :  { %v447_v7 = vld [vmem:[%s544_s3] ss:$0 sm:$0xff]  ;;  %v311_v8 = vunpack.c.l.bf16 %v310_v4  ;;  %v312_v9 = vunpack.c.h.bf16 %v310_v4  ;;  %v56_v14 = vmul.f32 %v279_v2, %v433_v1  ;;  %v57_v15 = vmul.f32 %v280_v3, %v433_v1  ;;  %v390_v39 = vld [vmem:[%s542_s1 + $0x18] sm:$0xff]   ;;  %v392_v63 = vld [vmem:[%s542_s1 + $0x28] sm:$0xff]  }
   0x5   :  { %v58_v18 = vmul.f32 %v283_v10, %v433_v1  ;;  %v59_v19 = vmul.f32 %v284_v11, %v433_v1  ;;  %v319_v25 = vunpack.c.l.bf16 %v389_v13  ;;  %v320_v26 = vunpack.c.h.bf16 %v389_v13  ;;  %v384_v48 = vld [vmem:[%s541_s0 + $0x20] sm:$0xff]   ;;  %v386_v5 = vld [vmem:[%s541_s0 + $0x30] sm:$0xff]  }
   0x6   :  { %v79_v23 = vadd.f32 %v447_v7, %v56_v14  ;;  %v80_v24 = vadd.f32 %v447_v7, %v57_v15  ;;  %v60_v29 = vmul.f32 %v287_v20, %v433_v1  ;;  %v61_v30 = vmul.f32 %v288_v21, %v433_v1  ;;  %v391_v49 = vld [vmem:[%s542_s1 + $0x20] sm:$0xff]   ;;  %v393_v11 = vld [vmem:[%s542_s1 + $0x30] sm:$0xff]   ;;  %v387_v20 = vld [vmem:[%s541_s0 + $0x38] sm:$0xff]  }
   0x7   :  { %v81_v27 = vadd.f32 %v447_v7, %v58_v18  ;;  %v82_v28 = vadd.f32 %v447_v7, %v59_v19  ;;  %v291_v33 = vunpack.c.l.bf16 %v383_v22  ;;  %v292_v34 = vunpack.c.h.bf16 %v383_v22 }
   0x8   :  { %v127_v31 = vadd.f32 %v311_v8, %v79_v23  ;;  %v128_v32 = vadd.f32 %v312_v9, %v80_v24  ;;  %v83_v37 = vadd.f32 %v447_v7, %v60_v29  ;;  %v84_v38 = vadd.f32 %v447_v7, %v61_v30 }
   0x9   :  { %v129_v35 = vadd.f32 %v315_v16, %v81_v27  ;;  %v130_v36 = vadd.f32 %v316_v17, %v82_v28  ;;  %v62_v42 = vmul.f32 %v291_v33, %v433_v1  ;;  %v63_v43 = vmul.f32 %v292_v34, %v433_v1  ;;  %v394_v33 = vld [vmem:[%s542_s1 + $0x38] sm:$0xff]  }
   0xa   :  { %v143_v40 = vmax.f32 %v127_v31, 0.0  ;;  %v144_v41 = vmax.f32 %v128_v32, 0.0  ;;  %v131_v46 = vadd.f32 %v319_v25, %v83_v37  ;;  %v132_v47 = vadd.f32 %v320_v26, %v84_v38 }
   0xb   :  { %v145_v44 = vmax.f32 %v129_v35, 0.0  ;;  %v146_v45 = vmax.f32 %v130_v36, 0.0  ;;  %v85_v51 = vadd.f32 %v447_v7, %v62_v42  ;;  %v86_v52 = vadd.f32 %v447_v7, %v63_v43 }
   0xc   :  { %v344_v50 = vpack.c.bf16 %v144_v41, %v143_v40  ;;  %v323_v53 = vunpack.c.l.bf16 %v390_v39  ;;  %v147_v56 = vmax.f32 %v131_v46, 0.0  ;;  %v148_v57 = vmax.f32 %v132_v47, 0.0 }
   0xd   :  { %v349_v55 = vpack.c.bf16 %v146_v45, %v145_v44  ;;  %v324_v58 = vunpack.c.h.bf16 %v390_v39  ;;  %v295_v60 = vunpack.c.l.bf16 %v384_v48  ;;  %v296_v61 = vunpack.c.h.bf16 %v384_v48 }
   0xe   :  { %345 = vst [vmem:[%s545_s4] sm:$0xff] %v344_v50   ;;  %v133_v59 = vadd.f32 %v323_v53, %v85_v51  ;;  %v327_v62 = vunpack.c.l.bf16 %v391_v49  ;;  %v354_v0 = vpack.c.bf16 %v148_v57, %v147_v56  ;;  %v328_v3 = vunpack.c.h.bf16 %v391_v49 }
   0xf   :  { %395 = vst [vmem:[%s545_s4 + $0x8] sm:$0xff] %v349_v55   ;;  %v134_v2 = vadd.f32 %v324_v58, %v86_v52  ;;  %v299_v4 = vunpack.c.l.bf16 %v385_v54  ;;  %v64_v8 = vmul.f32 %v295_v60, %v433_v1  ;;  %v65_v9 = vmul.f32 %v296_v61, %v433_v1 }
  0x10   :  { %v149_v6 = vmax.f32 %v133_v59, 0.0  ;;  %v300_v10 = vunpack.c.h.bf16 %v385_v54  ;;  %396 = vst [vmem:[%s545_s4 + $0x10] sm:$0xff] %v354_v0   ;;  %v331_v14 = vunpack.c.l.bf16 %v392_v63  ;;  %v332_v15 = vunpack.c.h.bf16 %v392_v63 }
  0x11   :  { %v150_v12 = vmax.f32 %v134_v2, 0.0  ;;  %v66_v13 = vmul.f32 %v299_v4, %v433_v1  ;;  %v87_v16 = vadd.f32 %v447_v7, %v64_v8  ;;  %v88_v17 = vadd.f32 %v447_v7, %v65_v9 }
  0x12   :  { %v67_v18 = vmul.f32 %v300_v10, %v433_v1  ;;  %v303_v19 = vunpack.c.l.bf16 %v386_v5  ;;  %v304_v23 = vunpack.c.h.bf16 %v386_v5  ;;  %v335_v24 = vunpack.c.l.bf16 %v393_v11 }
  0x13   :  { %v359_v21 = vpack.c.bf16 %v150_v12, %v149_v6  ;;  %v89_v22 = vadd.f32 %v447_v7, %v66_v13  ;;  %v135_v25 = vadd.f32 %v327_v62, %v87_v16  ;;  %v136_v26 = vadd.f32 %v328_v3, %v88_v17 }
  0x14   :  { %v90_v27 = vadd.f32 %v447_v7, %v67_v18  ;;  %v68_v28 = vmul.f32 %v303_v19, %v433_v1  ;;  %v69_v30 = vmul.f32 %v304_v23, %v433_v1  ;;  %v336_v31 = vunpack.c.h.bf16 %v393_v11 }
  0x15   :  { %397 = vst [vmem:[%s545_s4 + $0x18] sm:$0xff] %v359_v21   ;;  %v137_v29 = vadd.f32 %v331_v14, %v89_v22  ;;  %v307_v32 = vunpack.c.l.bf16 %v387_v20  ;;  %v151_v34 = vmax.f32 %v135_v25, 0.0  ;;  %v152_v35 = vmax.f32 %v136_v26, 0.0 }
  0x16   :  { %v138_v36 = vadd.f32 %v332_v15, %v90_v27  ;;  %v91_v37 = vadd.f32 %v447_v7, %v68_v28  ;;  %v92_v39 = vadd.f32 %v447_v7, %v69_v30  ;;  %v308_v40 = vunpack.c.h.bf16 %v387_v20 }
  0x17   :  { %v153_v38 = vmax.f32 %v137_v29, 0.0  ;;  %v70_v41 = vmul.f32 %v307_v32, %v433_v1  ;;  %v364_v42 = vpack.c.bf16 %v152_v35, %v151_v34  ;;  %v339_v45 = vunpack.c.l.bf16 %v394_v33 }
  0x18   :  { %v154_v43 = vmax.f32 %v138_v36, 0.0  ;;  %v139_v44 = vadd.f32 %v335_v24, %v91_v37  ;;  %v140_v46 = vadd.f32 %v336_v31, %v92_v39  ;;  %v71_v47 = vmul.f32 %v308_v40, %v433_v1 }
  0x19   :  { %v93_v48 = vadd.f32 %v447_v7, %v70_v41  ;;  %v340_v49 = vunpack.c.h.bf16 %v394_v33  ;;  %398 = vst [vmem:[%s545_s4 + $0x20] sm:$0xff] %v364_v42  }
  0x1a   :  { %v369_v50 = vpack.c.bf16 %v154_v43, %v153_v38  ;;  %v155_v51 = vmax.f32 %v139_v44, 0.0  ;;  %v156_v52 = vmax.f32 %v140_v46, 0.0  ;;  %v94_v53 = vadd.f32 %v447_v7, %v71_v47 }
  0x1b   :  { %v141_v54 = vadd.f32 %v339_v45, %v93_v48 }
  0x1c   :  { %399 = vst [vmem:[%s545_s4 + $0x28] sm:$0xff] %v369_v50   ;;  %v374_v55 = vpack.c.bf16 %v156_v52, %v155_v51  ;;  %v142_v56 = vadd.f32 %v340_v49, %v94_v53 }
  0x1d   :  { %v157_v1 = vmax.f32 %v141_v54, 0.0 }
  0x1e   :  { %400 = vst [vmem:[%s545_s4 + $0x30] sm:$0xff] %v374_v55   ;;  %v158_v57 = vmax.f32 %v142_v56, 0.0 }
  0x20   :  { %v379_v58 = vpack.c.bf16 %v158_v57, %v157_v1 }
  0x22   :  { %401 = vst [vmem:[%s545_s4 + $0x38] sm:$0xff] %v379_v58  }

// kernel: resnet_forward.21
= control target key start
LH: loop header
LB: loop body
LE: loop exit
PB: predicated region body
PF: predicated region fallthrough
CT: control target
= control target key end

     0   :  { %s1833_s1 = inlined_call_operand.vmem [shape: bf16[640,128], index: 1, kind: input, shape index: {}]   ;;  %s1834_s0 = inlined_call_operand.vmem [shape: bf16[128,640], index: 0, kind: input, shape index: {}]   ;;  %s1835_s2 = inlined_call_operand.vmem [shape: bf16[128,128], index: 2, kind: output, shape index: {0}]   ;;  %s1836_s3 = inlined_call_operand.vmem [shape: f32[1,1,128], index: 3, kind: output, shape index: {1}]   ;;  %s1837_s4 = inlined_call_operand.vmem [shape: f32[1,1,128], index: 4, kind: output, shape index: {2}]  }
   0x1   :  { %v1385_v0 = vld [vmem:[%s1833_s1 + $0x78] sm:$0xff]   ;;  %v1389_v4 = vld [vmem:[%s1833_s1 + $0x70] sm:$0xff]   ;;  %v1393_v8 = vld [vmem:[%s1833_s1 + $0x68] sm:$0xff]  }
   0x2   :  { %v1386_v1 = vld [vmem:[%s1833_s1 + $0xf8] sm:$0xff]   ;;  %1193 = vmatprep.subr.bf16.mxu0 %v1385_v0  ;;  %v1390_v5 = vld [vmem:[%s1833_s1 + $0xf0] sm:$0xff]   ;;  %v1394_v9 = vld [vmem:[%s1833_s1 + $0xe8] sm:$0xff]  }
   0x3   :  { %v1387_v2 = vld [vmem:[%s1833_s1 + $0x38] sm:$0xff]   ;;  %1257 = vmatprep.subr.bf16.mxu1 %v1386_v1  ;;  %v1391_v6 = vld [vmem:[%s1833_s1 + $0x30] sm:$0xff]   ;;  %v1395_v10 = vld [vmem:[%s1833_s1 + $0x28] sm:$0xff]  }
   0x4   :  { %v1388_v3 = vld [vmem:[%s1833_s1 + $0xb8] sm:$0xff]   ;;  %1194 = vmatpush3.bf16.msra.mxu0 %v1387_v2  ;;  %v1392_v7 = vld [vmem:[%s1833_s1 + $0xb0] sm:$0xff]   ;;  %v1396_v11 = vld [vmem:[%s1833_s1 + $0xa8] sm:$0xff]  }
   0x5   :  { %1258 = vmatpush3.bf16.msra.mxu1 %v1388_v3  ;;  %1195 = vmatprep.subr.bf16.mxu0 %v1389_v4  ;;  %v1397_v12 = vld [vmem:[%s1833_s1 + $0x60] sm:$0xff]   ;;  %v1401_v16 = vld [vmem:[%s1833_s1 + $0x58] sm:$0xff]   ;;  %v1405_v20 = vld [vmem:[%s1833_s1 + $0x50] sm:$0xff]  }
   0x6   :  { %1259 = vmatprep.subr.bf16.mxu1 %v1390_v5  ;;  %v1398_v13 = vld [vmem:[%s1833_s1 + $0xe0] sm:$0xff]   ;;  %v1402_v17 = vld [vmem:[%s1833_s1 + $0xd8] sm:$0xff]   ;;  %v1406_v21 = vld [vmem:[%s1833_s1 + $0xd0] sm:$0xff]  }
   0x7   :  { %v1399_v14 = vld [vmem:[%s1833_s1 + $0x20] sm:$0xff]   ;;  %v1403_v18 = vld [vmem:[%s1833_s1 + $0x18] sm:$0xff]   ;;  %v1407_v22 = vld [vmem:[%s1833_s1 + $0x10] sm:$0xff]  }
   0x8   :  { %1196 = vmatpush3.bf16.msra.mxu0 %v1391_v6  ;;  %v1400_v15 = vld [vmem:[%s1833_s1 + $0xa0] sm:$0xff]   ;;  %v1404_v19 = vld [vmem:[%s1833_s1 + $0x98] sm:$0xff]   ;;  %v1408_v23 = vld [vmem:[%s1833_s1 + $0x90] sm:$0xff]  }
   0x9   :  { %1260 = vmatpush3.bf16.msra.mxu1 %v1392_v7  ;;  %1197 = vmatprep.subr.bf16.mxu0 %v1393_v8  ;;  %v1409_v24 = vld [vmem:[%s1833_s1 + $0x48] sm:$0xff]   ;;  %v1413_v28 = vld [vmem:[%s1833_s1 + $0x40] sm:$0xff]   ;;  %v1423_v36 = vld [vmem:[%s1833_s1 + $0x138] sm:$0xff]  }
   0xa   :  { %1261 = vmatprep.subr.bf16.mxu1 %v1394_v9  ;;  %v1410_v25 = vld [vmem:[%s1833_s1 + $0xc8] sm:$0xff]   ;;  %v1414_v29 = vld [vmem:[%s1833_s1 + $0xc0] sm:$0xff]   ;;  %v1430_v39 = vld [vmem:[%s1833_s1 + $0x130] sm:$0xff]  }
   0xb   :  { %v1411_v26 = vld [vmem:[%s1833_s1 + $0x8] sm:$0xff]   ;;  %v1415_v30 = vld [vmem:[%s1833_s1] sm:$0xff]   ;;  %v1433_v43 = vld [vmem:[%s1834_s0 + $0x5c] ss:$20 sps:$4 sm:$0xff]  }
   0xc   :  { %1198 = vmatpush3.bf16.msra.mxu0 %v1395_v10  ;;  %v1412_v27 = vld [vmem:[%s1833_s1 + $0x88] sm:$0xff]   ;;  %v1416_v31 = vld [vmem:[%s1833_s1 + $0x80] sm:$0xff]   ;;  %v1438_v48 = vld [vmem:[%s1834_s0 + $0x7c] ss:$20 sps:$4 sm:$0xff]  }
   0xd   :  { %1262 = vmatpush3.bf16.msra.mxu1 %v1396_v11  ;;  %1199 = vmatprep.subr.bf16.mxu0 %v1397_v12  ;;  %v1417_v32 = vld [vmem:[%s1834_s0] ss:$20 sps:$4 sm:$0xff]   ;;  %v1419_v33 = vld [vmem:[%s1834_s0 + $0x4] ss:$20 sps:$4 sm:$0xff]   ;;  %v1420_v34 = vld [vmem:[%s1834_s0 + $0x8] ss:$20 sps:$4 sm:$0xff]  }
   0xe   :  { %1263 = vmatprep.subr.bf16.mxu1 %v1398_v13  ;;  %v1422_v35 = vld [vmem:[%s1834_s0 + $0xc] ss:$20 sps:$4 sm:$0xff]   ;;  %623 = vmatprep.mubr.bf16.mxu0 %v1419_v33  ;;  %v1426_v38 = vld [vmem:[%s1834_s0 + $0x34] ss:$20 sps:$4 sm:$0xff]   ;;  %v1429_v41 = vld [vmem:[%s1834_s0 + $0x30] ss:$20 sps:$4 sm:$0xff]  }
   0xf   :  { %720 = vmatprep.mubr.bf16.mxu1 %v1422_v35  ;;  %v1424_v37 = vld [vmem:[%s1834_s0 + $0x2c] ss:$20 sps:$4 sm:$0xff]   ;;  %v1428_v40 = vld [vmem:[%s1834_s0 + $0x28] ss:$20 sps:$4 sm:$0xff]   ;;  %v1435_v46 = vld [vmem:[%s1834_s0 + $0x50] ss:$20 sps:$4 sm:$0xff]  }
  0x10   :  { %1200 = vmatpush3.bf16.msra.mxu0 %v1399_v14  ;;  %v1431_v42 = vld [vmem:[%s1834_s0 + $0x54] ss:$20 sps:$4 sm:$0xff]   ;;  %v1444_v45 = vld [vmem:[%s1833_s1 + $0x120] sm:$0xff]   ;;  %v1436_v47 = vld [vmem:[%s1834_s0 + $0x58] ss:$20 sps:$4 sm:$0xff]  }
  0x11   :  { %1264 = vmatpush3.bf16.msra.mxu1 %v1400_v15  ;;  %1201 = vmatprep.subr.bf16.mxu0 %v1401_v16  ;;  %v1437_v44 = vld [vmem:[%s1833_s1 + $0x128] sm:$0xff]   ;;  %v1440_v49 = vld [vmem:[%s1834_s0 + $0x84] ss:$20 sps:$4 sm:$0xff]   ;;  %v1458_v51 = vld [vmem:[%s1833_s1 + $0x110] sm:$0xff]  }
  0x12   :  { %1265 = vmatprep.subr.bf16.mxu1 %v1402_v17  ;;  %v1451_v50 = vld [vmem:[%s1833_s1 + $0x118] sm:$0xff]   ;;  %v1443_v53 = vld [vmem:[%s1834_s0 + $0x80] ss:$20 sps:$4 sm:$0xff]   ;;  %v1465_v55 = vld [vmem:[%s1833_s1 + $0x108] sm:$0xff]  }
  0x13   :  { %v1442_v52 = vld [vmem:[%s1834_s0 + $0x78] ss:$20 sps:$4 sm:$0xff]   ;;  %v1472_v57 = vld [vmem:[%s1833_s1 + $0x100] sm:$0xff]   ;;  %v1450_v59 = vld [vmem:[%s1834_s0 + $0xa8] ss:$20 sps:$4 sm:$0xff]  }
  0x14   :  { %1202 = vmatpush3.bf16.msra.mxu0 %v1403_v18  ;;  %v1445_v54 = vld [vmem:[%s1834_s0 + $0xa4] ss:$20 sps:$4 sm:$0xff]   ;;  %v1447_v56 = vld [vmem:[%s1834_s0 + $0xac] ss:$20 sps:$4 sm:$0xff]   ;;  %v1454_v61 = vld [vmem:[%s1834_s0 + $0xd4] ss:$20 sps:$4 sm:$0xff]  }
  0x15   :  { %1266 = vmatpush3.bf16.msra.mxu1 %v1404_v19  ;;  %1203 = vmatprep.subr.bf16.mxu0 %v1405_v20  ;;  %v1449_v58 = vld [vmem:[%s1834_s0 + $0xa0] ss:$20 sps:$4 sm:$0xff]   ;;  %v1456_v62 = vld [vmem:[%s1834_s0 + $0xc8] ss:$20 sps:$4 sm:$0xff]   ;;  %v1457_v63 = vld [vmem:[%s1834_s0 + $0xd0] ss:$20 sps:$4 sm:$0xff]  }
  0x16   :  { %1267 = vmatprep.subr.bf16.mxu1 %v1406_v21  ;;  %v1452_v60 = vld [vmem:[%s1834_s0 + $0xcc] ss:$20 sps:$4 sm:$0xff]   ;;  %v1459_v0 = vld [vmem:[%s1834_s0 + $0xf4] ss:$20 sps:$4 sm:$0xff]   ;;  %v1461_v1 = vld [vmem:[%s1834_s0 + $0xfc] ss:$20 sps:$4 sm:$0xff]  }
  0x17   :  { %v1463_v2 = vld [vmem:[%s1834_s0 + $0xf0] ss:$20 sps:$4 sm:$0xff]   ;;  %v1464_v3 = vld [vmem:[%s1834_s0 + $0xf8] ss:$20 sps:$4 sm:$0xff]   ;;  %v1471_v7 = vld [vmem:[%s1834_s0 + $0x120] ss:$20 sps:$4 sm:$0xff]  }
  0x18   :  { %1204 = vmatpush3.bf16.msra.mxu0 %v1407_v22  ;;  %v1466_v4 = vld [vmem:[%s1834_s0 + $0x11c] ss:$20 sps:$4 sm:$0xff]   ;;  %v1468_v5 = vld [vmem:[%s1834_s0 + $0x124] ss:$20 sps:$4 sm:$0xff]   ;;  %v1477_v12 = vld [vmem:[%s1834_s0 + $0x60] ss:$20 sps:$4 sm:$0xff]  }
  0x19   :  { %1268 = vmatpush3.bf16.msra.mxu1 %v1408_v23  ;;  %1205 = vmatprep.subr.bf16.mxu0 %v1409_v24  ;;  %v1470_v6 = vld [vmem:[%s1834_s0 + $0x118] ss:$20 sps:$4 sm:$0xff]   ;;  %v1473_v8 = vld [vmem:[%s1834_s0 + $0x10] ss:$20 sps:$4 sm:$0xff]   ;;  %v1478_v13 = vld [vmem:[%s1834_s0 + $0x100] ss:$20 sps:$4 sm:$0xff]  }
  0x1a   :  { %1269 = vmatprep.subr.bf16.mxu1 %v1410_v25  ;;  %v1474_v9 = vld [vmem:[%s1834_s0 + $0xb0] ss:$20 sps:$4 sm:$0xff]   ;;  %v1475_v10 = vld [vmem:[%s1834_s0 + $0x38] ss:$20 sps:$4 sm:$0xff]   ;;  %v1479_v14 = vld [vmem:[%s1834_s0 + $0x88] ss:$20 sps:$4 sm:$0xff]  }
  0x1b   :  { %v1476_v11 = vld [vmem:[%s1834_s0 + $0xd8] ss:$20 sps:$4 sm:$0xff]   ;;  %v1480_v15 = vld [vmem:[%s1834_s0 + $0x128] ss:$20 sps:$4 sm:$0xff]  }
  0x1c   :  { %1206 = vmatpush3.bf16.msra.mxu0 %v1411_v26 }
  0x1d   :  { %1270 = vmatpush3.bf16.msra.mxu1 %v1412_v27  ;;  %1207 = vmatprep.subr.bf16.mxu0 %v1413_v28 }
  0x1e   :  { %1271 = vmatprep.subr.bf16.mxu1 %v1414_v29 }
  0x20   :  { %1208 = vmatpush3.bf16.msra.mxu0 %v1415_v30 }
  0x21   :  { %1272 = vmatpush3.bf16.msra.mxu1 %v1416_v31  ;;  %1337 = vmatprep.subr.bf16.mxu0 %v1423_v36 }
  0x22   :  { %1369 = vmatprep.subr.bf16.mxu1 %v1423_v36 }
  0x23   :  { %624 = vmatmul.mubr.bf16.vlgmr.msra.gmra.mxu0 %v1417_v32 }
  0x24   :  { %721 = vmatmul.mubr.bf16.vlgmr.msra.gmra.mxu1 %v1420_v34  ;;  %1338 = vmatpush3.bf16.msra.mxu0 %v1423_v36 }
  0x25   :  { %631 = vmatprep.mubr.bf16.mxu0 %v1424_v37  ;;  %728 = vmatprep.mubr.bf16.mxu1 %v1426_v38 }
  0x26   :  { %1377 = vmatpush3.bf16.msra.mxu1 %v1423_v36  ;;  %1339 = vmatprep.subr.bf16.mxu0 %v1430_v39 }
  0x27   :  { %1370 = vmatprep.subr.bf16.mxu1 %v1430_v39 }
  0x28   :  { %1340 = vmatpush3.bf16.msra.mxu0 %v1430_v39 }
  0x29   :  { %1341 = vmatprep.subr.bf16.mxu0 %v1437_v44 }
  0x2a   :  { %1378 = vmatpush3.bf16.msra.mxu1 %v1430_v39 }
  0x2b   :  { %632 = vmatmul.mubr.bf16.gmra.mxu0 %v1428_v40  ;;  %1371 = vmatprep.subr.bf16.mxu1 %v1437_v44 }
  0x2c   :  { %729 = vmatmul.mubr.bf16.gmra.mxu1 %v1429_v41  ;;  %639 = vmatprep.mubr.bf16.mxu0 %v1431_v42 }
  0x2d   :  { %736 = vmatprep.mubr.bf16.mxu1 %v1433_v43  ;;  %1342 = vmatpush3.bf16.msra.mxu0 %v1437_v44 }
  0x2e   :  { %1343 = vmatprep.subr.bf16.mxu0 %v1444_v45  ;;  %1379 = vmatpush3.bf16.msra.mxu1 %v1437_v44 }
  0x2f   :  { %1372 = vmatprep.subr.bf16.mxu1 %v1444_v45 }
  0x31   :  { %1344 = vmatpush3.bf16.msra.mxu0 %v1444_v45 }
  0x32   :  { %1345 = vmatprep.subr.bf16.mxu0 %v1451_v50  ;;  %1380 = vmatpush3.bf16.msra.mxu1 %v1444_v45 }
  0x33   :  { %640 = vmatmul.mubr.bf16.gmra.mxu0 %v1435_v46  ;;  %1373 = vmatprep.subr.bf16.mxu1 %v1451_v50 }
  0x34   :  { %737 = vmatmul.mubr.bf16.gmra.mxu1 %v1436_v47  ;;  %647 = vmatprep.mubr.bf16.mxu0 %v1438_v48 }
  0x35   :  { %744 = vmatprep.mubr.bf16.mxu1 %v1440_v49  ;;  %1346 = vmatpush3.bf16.msra.mxu0 %v1451_v50 }
  0x36   :  { %1347 = vmatprep.subr.bf16.mxu0 %v1458_v51  ;;  %1381 = vmatpush3.bf16.msra.mxu1 %v1451_v50 }
  0x37   :  { %1374 = vmatprep.subr.bf16.mxu1 %v1458_v51 }
  0x39   :  { %1348 = vmatpush3.bf16.msra.mxu0 %v1458_v51 }
  0x3a   :  { %1349 = vmatprep.subr.bf16.mxu0 %v1465_v55  ;;  %1382 = vmatpush3.bf16.msra.mxu1 %v1458_v51 }
  0x3b   :  { %648 = vmatmul.mubr.bf16.gmra.mxu0 %v1442_v52  ;;  %1375 = vmatprep.subr.bf16.mxu1 %v1465_v55 }
  0x3c   :  { %745 = vmatmul.mubr.bf16.gmra.mxu1 %v1443_v53  ;;  %655 = vmatprep.mubr.bf16.mxu0 %v1445_v54 }
  0x3d   :  { %752 = vmatprep.mubr.bf16.mxu1 %v1447_v56  ;;  %1350 = vmatpush3.bf16.msra.mxu0 %v1465_v55 }
  0x3e   :  { %1351 = vmatprep.subr.bf16.mxu0 %v1472_v57  ;;  %1383 = vmatpush3.bf16.msra.mxu1 %v1465_v55 }
  0x3f   :  { %1376 = vmatprep.subr.bf16.mxu1 %v1472_v57 }
  0x41   :  { %1352 = vmatpush3.bf16.msra.mxu0 %v1472_v57 }
  0x42   :  { %1384 = vmatpush3.bf16.msra.mxu1 %v1472_v57 }
  0x43   :  { %656 = vmatmul.mubr.bf16.gmra.mxu0 %v1449_v58 }
  0x44   :  { %753 = vmatmul.mubr.bf16.gmra.mxu1 %v1450_v59  ;;  %663 = vmatprep.mubr.bf16.mxu0 %v1452_v60 }
  0x45   :  { %760 = vmatprep.mubr.bf16.mxu1 %v1454_v61 }
  0x4b   :  { %664 = vmatmul.mubr.bf16.gmra.mxu0 %v1456_v62 }
  0x4c   :  { %761 = vmatmul.mubr.bf16.gmra.mxu1 %v1457_v63  ;;  %671 = vmatprep.mubr.bf16.mxu0 %v1459_v0 }
  0x4d   :  { %768 = vmatprep.mubr.bf16.mxu1 %v1461_v1 }
  0x53   :  { %672 = vmatmul.mubr.bf16.gmra.mxu0 %v1463_v2 }
  0x54   :  { %769 = vmatmul.mubr.bf16.gmra.mxu1 %v1464_v3  ;;  %679 = vmatprep.mubr.bf16.mxu0 %v1466_v4 }
  0x55   :  { %776 = vmatprep.mubr.bf16.mxu1 %v1468_v5 }
  0x5b   :  { %680 = vmatmul.mubr.bf16.gmra.mxu0 %v1470_v6 }
  0x5c   :  { %777 = vmatmul.mubr.bf16.gmra.mxu1 %v1471_v7  ;;  %1353 = vmatprep.mubr.bf16.mxu0 %v1473_v8 }
  0x5d   :  { %1361 = vmatprep.mubr.bf16.mxu1 %v1474_v9 }
  0x63   :  { %1354 = vmatmul.mubr.bf16.vlgmr.msra.gmra.mxu0 %v1475_v10 }
  0x64   :  { %1362 = vmatmul.mubr.bf16.vlgmr.msra.gmra.mxu1 %v1476_v11  ;;  %1357 = vmatprep.mubr.bf16.mxu0 %v1477_v12 }
  0x65   :  { %1365 = vmatprep.mubr.bf16.mxu1 %v1478_v13 }
  0x6b   :  { %1358 = vmatmul.mubr.bf16.gmra.mxu0 %v1479_v14 }
  0x6c   :  { %1366 = vmatmul.mubr.bf16.gmra.mxu1 %v1480_v15 }
  0xe3   :  { %v1209_v16 = vpop.f32.mrf.mxu0 }
  0xe4   :  { %v1273_v17 = vpop.f32.mrf.mxu1 }
  0xe5   :  { %v1210_v18 = vpop.f32.mrf.mxu0 }
  0xe6   :  { %v1211_v19 = vadd.f32 %v1210_v18, %v1209_v16  ;;  %v1274_v20 = vpop.f32.mrf.mxu1 }
  0xe7   :  { %v1275_v21 = vadd.f32 %v1274_v20, %v1273_v17  ;;  %v1212_v22 = vpop.f32.mrf.mxu0 }
  0xe8   :  { %v1276_v23 = vpop.f32.mrf.mxu1 }
  0xe9   :  { %v1213_v24 = vpop.f32.mrf.mxu0  ;;  %v1746_v25 = vadd.f32 %v1275_v21, %v1211_v19 }
  0xea   :  { %v1277_v26 = vpop.f32.mrf.mxu1  ;;  %v1214_v15 = vadd.f32 %v1213_v24, %v1212_v22 }
  0xeb   :  { %1838 = vst [vmem:[#allocation2_spill] sm:$0xff] %v1746_v25  ;;  %v1215_v27 = vpop.f32.mrf.mxu0  ;;  %v1278_v16 = vadd.f32 %v1277_v26, %v1276_v23 }
  0xec   :  { %v1279_v28 = vpop.f32.mrf.mxu1 }
  0xed   :  { %v1216_v29 = vpop.f32.mrf.mxu0 }
  0xee   :  { %v1280_v30 = vpop.f32.mrf.mxu1  ;;  %v1217_v18 = vadd.f32 %v1216_v29, %v1215_v27 }
  0xef   :  { %v1218_v31 = vpop.f32.mrf.mxu0  ;;  %v1281_v19 = vadd.f32 %v1280_v30, %v1279_v28 }
  0xf0   :  { %v1282_v32 = vpop.f32.mrf.mxu1 }
  0xf1   :  { %v1219_v33 = vpop.f32.mrf.mxu0 }
  0xf2   :  { %v1283_v34 = vpop.f32.mrf.mxu1  ;;  %v1220_v20 = vadd.f32 %v1219_v33, %v1218_v31  ;;  %v731_v31 = vadd.f32 %v1281_v19, %v1217_v18 }
  0xf3   :  { %v1221_v35 = vpop.f32.mrf.mxu0  ;;  %v1284_v21 = vadd.f32 %v1283_v34, %v1282_v32  ;;  %v726_v34 = vadd.f32 %v1278_v16, %v1214_v15 }
  0xf4   :  { %v1285_v36 = vpop.f32.mrf.mxu1 }
  0xf5   :  { %v1222_v37 = vpop.f32.mrf.mxu0  ;;  %v734_v33 = vadd.f32 %v1284_v21, %v1220_v20 }
  0xf6   :  { %v1286_v38 = vpop.f32.mrf.mxu1 }
  0xf7   :  { %v1748_v39 = vpop.f32.mrf.mxu0 }
  0xf8   :  { %1839 = vst [vmem:[#allocation3_spill] sm:$0xff] %v1748_v39  ;;  %v1750_v40 = vpop.f32.mrf.mxu1 }
  0xf9   :  { %1840 = vst [vmem:[#allocation4_spill] sm:$0xff] %v1750_v40  ;;  %v1752_v41 = vpop.f32.mrf.mxu0 }
  0xfa   :  { %1841 = vst [vmem:[#allocation5_spill] sm:$0xff] %v1752_v41  ;;  %v1754_v42 = vpop.f32.mrf.mxu1 }
  0xfb   :  { %1842 = vst [vmem:[#allocation6_spill] sm:$0xff] %v1754_v42  ;;  %v1227_v43 = vpop.f32.mrf.mxu0 }
  0xfc   :  { %v1291_v44 = vpop.f32.mrf.mxu1 }
  0xfd   :  { %v1228_v45 = vpop.f32.mrf.mxu0 }
  0xfe   :  { %v1292_v46 = vpop.f32.mrf.mxu1  ;;  %v1229_v25 = vadd.f32 %v1228_v45, %v1227_v43 }
  0xff   :  { %v1230_v47 = vpop.f32.mrf.mxu0 }
 0x100   :  { %v1294_v48 = vpop.f32.mrf.mxu1 }
 0x101   :  { %v1231_v49 = vpop.f32.mrf.mxu0 }
 0x102   :  { %v1295_v50 = vpop.f32.mrf.mxu1  ;;  %v1852_v43 = vld [vmem:[#allocation6_spill] sm:$0xff] }
 0x103   :  { %v1233_v51 = vpop.f32.mrf.mxu0  ;;  %v1296_v40 = vadd.f32 %v1295_v50, %v1294_v48 }
 0x104   :  { %v1297_v52 = vpop.f32.mrf.mxu1 }
 0x105   :  { %v1234_v53 = vpop.f32.mrf.mxu0 }
 0x106   :  { %v1298_v54 = vpop.f32.mrf.mxu1 }
 0x107   :  { %v1236_v55 = vpop.f32.mrf.mxu0  ;;  %v1299_v41 = vadd.f32 %v1298_v54, %v1297_v52  ;;  %v1853_v54 = vld [vmem:[#allocation2_spill] sm:$0xff] }
 0x108   :  { %v1300_v56 = vpop.f32.mrf.mxu1 }
 0x109   :  { %v1237_v57 = vpop.f32.mrf.mxu0 }
 0x10a   :  { %v1301_v58 = vpop.f32.mrf.mxu1  ;;  %v1238_v29 = vadd.f32 %v1237_v57, %v1236_v55 }
 0x10b   :  { %v1239_v59 = vpop.f32.mrf.mxu0  ;;  %v1302_v28 = vadd.f32 %v1301_v58, %v1300_v56 }
 0x10c   :  { %v1303_v60 = vpop.f32.mrf.mxu1 }
 0x10d   :  { %v1240_v61 = vpop.f32.mrf.mxu0  ;;  %v758_v58 = vadd.f32 %v1302_v28, %v1238_v29 }
 0x10e   :  { %v1304_v62 = vpop.f32.mrf.mxu1  ;;  %v1241_v22 = vadd.f32 %v1240_v61, %v1239_v59 }
 0x10f   :  { %v1242_v63 = vpop.f32.mrf.mxu0  ;;  %v1305_v24 = vadd.f32 %v1304_v62, %v1303_v60 }
 0x110   :  { %v1306_v0 = vpop.f32.mrf.mxu1 }
 0x111   :  { %v1243_v1 = vpop.f32.mrf.mxu0  ;;  %v763_v48 = vadd.f32 %v1305_v24, %v1241_v22 }
 0x112   :  { %v1307_v2 = vpop.f32.mrf.mxu1  ;;  %v1244_v23 = vadd.f32 %v1243_v1, %v1242_v63 }
 0x113   :  { %v1245_v3 = vpop.f32.mrf.mxu0  ;;  %v1308_v26 = vadd.f32 %v1307_v2, %v1306_v0 }
 0x114   :  { %v1756_v4 = vpop.f32.mrf.mxu1 }
 0x115   :  { %1843 = vst [vmem:[#allocation7_spill] sm:$0xff] %v1756_v4  ;;  %v1246_v5 = vpop.f32.mrf.mxu0  ;;  %v1223_v4 = vadd.f32 %v1222_v37, %v1221_v35  ;;  %v1849_v35 = vld [vmem:[#allocation3_spill] sm:$0xff] }
 0x116   :  { %v1758_v6 = vpop.f32.mrf.mxu1  ;;  %v1247_v59 = vadd.f32 %v1246_v5, %v1245_v3 }
 0x117   :  { %1844 = vst [vmem:[#allocation8_spill] sm:$0xff] %v1758_v6  ;;  %v1760_v7 = vpop.f32.mrf.mxu0 }
 0x118   :  { %1845 = vst [vmem:[#allocation9_spill] sm:$0xff] %v1760_v7  ;;  %v1762_v8 = vpop.f32.mrf.mxu1  ;;  %v1287_v7 = vadd.f32 %v1286_v38, %v1285_v36  ;;  %v1850_v36 = vld [vmem:[#allocation5_spill] sm:$0xff]  ;;  %v1851_v38 = vld [vmem:[#allocation4_spill] sm:$0xff] }
 0x119   :  { %1846 = vst [vmem:[#allocation10_spill] sm:$0xff] %v1762_v8  ;;  %v1764_v9 = vpop.f32.mrf.mxu0  ;;  %v1293_v8 = vadd.f32 %v1292_v46, %v1291_v44  ;;  %v1226_v37 = vadd.f32 %v1850_v36, %v1849_v35  ;;  %v1290_v44 = vadd.f32 %v1852_v43, %v1851_v38 }
 0x11a   :  { %1847 = vst [vmem:[#allocation11_spill] sm:$0xff] %v1764_v9  ;;  %v1766_v10 = vpop.f32.mrf.mxu1  ;;  %v1232_v9 = vadd.f32 %v1231_v49, %v1230_v47  ;;  %v739_v47 = vadd.f32 %v1287_v7, %v1223_v4 }
 0x11b   :  { %1848 = vst [vmem:[#allocation12_spill] sm:$0xff] %v1766_v10  ;;  %v1251_v11 = vpop.f32.mrf.mxu0  ;;  %v1235_v10 = vadd.f32 %v1234_v53, %v1233_v51  ;;  %v747_v46 = vadd.f32 %v1293_v8, %v1229_v25  ;;  %v766_v51 = vadd.f32 %v1308_v26, %v1244_v23 }
 0x11c   :  { %v1315_v12 = vpop.f32.mrf.mxu1  ;;  %v750_v52 = vadd.f32 %v1296_v40, %v1232_v9 }
 0x11d   :  { %v1252_v13 = vpop.f32.mrf.mxu0  ;;  %v755_v49 = vadd.f32 %v1299_v41, %v1235_v10 }
 0x11e   :  { %v1316_v14 = vpop.f32.mrf.mxu1  ;;  %v1253_v60 = vadd.f32 %v1252_v13, %v1251_v11  ;;  %v1855_v13 = vld [vmem:[#allocation8_spill] sm:$0xff] }
 0x11f   :  { %v1254_v17 = vpop.f32.mrf.mxu0  ;;  %v1317_v25 = vadd.f32 %v1316_v14, %v1315_v12  ;;  %v1854_v12 = vld [vmem:[#allocation7_spill] sm:$0xff] }
 0x120   :  { %v1318_v6 = vpop.f32.mrf.mxu1  ;;  %v1858_v16 = vld [vmem:[#allocation10_spill] sm:$0xff] }
 0x121   :  { %v1255_v42 = vpop.f32.mrf.mxu0  ;;  %v1857_v14 = vld [vmem:[#allocation11_spill] sm:$0xff]  ;;  %v779_v29 = vadd.f32 %v1317_v25, %v1253_v60 }
 0x122   :  { %v1319_v39 = vpop.f32.mrf.mxu1  ;;  %v1256_v0 = vadd.f32 %v1255_v42, %v1254_v17  ;;  %v1859_v17 = vld [vmem:[#allocation12_spill] sm:$0xff] }
 0x123   :  { %v1355_v27 = vpop.f32.mrf.mxu0  ;;  %v1320_v4 = vadd.f32 %v1319_v39, %v1318_v6  ;;  %v1311_v39 = vadd.f32 %v1855_v13, %v1854_v12  ;;  %v1856_v6 = vld [vmem:[#allocation9_spill] sm:$0xff]  ;;  %v1314_v18 = vadd.f32 %v1859_v17, %v1858_v16 }
 0x124   :  { %v1363_v30 = vpop.f32.mrf.mxu1  ;;  %v828_v53 = vadd.f32 %v1355_v27, %v731_v31  ;;  %v1250_v15 = vadd.f32 %v1857_v14, %v1856_v6  ;;  %v742_v31 = vadd.f32 %v1290_v44, %v1226_v37 }
 0x125   :  { %v819_v32 = vpop.f32.mrf.mxu0  ;;  %v1773_v61 = vadd.f32 %v1363_v30, %v763_v48  ;;  %v782_v30 = vadd.f32 %v1320_v4, %v1256_v0  ;;  %v771_v43 = vadd.f32 %v1311_v39, %v1247_v59 }
 0x126   :  { %v851_v45 = vpop.f32.mrf.mxu1  ;;  %v820_v55 = vadd.f32 %v819_v32, %v1853_v54  ;;  %v986_v21 = vmul.f32 %v828_v53, %v828_v53 }
 0x127   :  { %v1356_v50 = vpop.f32.mrf.mxu0  ;;  %v1777_v40 = vadd.f32 %v851_v45, %v755_v49 }
 0x128   :  { %v831_v56 = vadd.f32 %v1356_v50, %v734_v33  ;;  %v1364_v57 = vpop.f32.mrf.mxu1  ;;  %v984_v5 = vmul.f32 %v820_v55, %v820_v55 }
 0x129   :  { %v1775_v62 = vadd.f32 %v1364_v57, %v766_v51  ;;  %v822_v63 = vpop.f32.mrf.mxu0 }
 0x12a   :  { %v1154_v1 = vpack.c.bf16 %v831_v56, %v828_v53  ;;  %v823_v41 = vadd.f32 %v822_v63, %v726_v34  ;;  %v854_v2 = vpop.f32.mrf.mxu1  ;;  %v987_v27 = vmul.f32 %v831_v56, %v831_v56 }
 0x12b   :  { %v1174_v7 = vpack.c.bf16 %v1775_v62, %v1773_v61  ;;  %v1781_v8 = vadd.f32 %v854_v2, %v758_v58  ;;  %v1359_v3 = vpop.f32.mrf.mxu0  ;;  %v992_v2 = vmul.f32 %v1777_v40, %v1777_v40  ;;  %v995_v12 = vmul.f32 %v1775_v62, %v1775_v62 }
 0x12c   :  { %1186 = vst [vmem:[%s1835_s2 + $0x8] sm:$0xff] %v1154_v1   ;;  %v1149_v9 = vpack.c.bf16 %v823_v41, %v820_v55  ;;  %v962_v10 = vadd.f32 %v823_v41, %v820_v55  ;;  %v985_v42 = vmul.f32 %v823_v41, %v823_v41  ;;  %v1367_v11 = vpop.f32.mrf.mxu1  ;;  %v844_v33 = vadd.f32 %v1359_v3, %v747_v46 }
 0x12d   :  { %1190 = vst [vmem:[%s1835_s2 + $0x28] sm:$0xff] %v1174_v7   ;;  %v1169_v19 = vpack.c.bf16 %v1781_v8, %v1777_v40  ;;  %v835_v20 = vpop.f32.mrf.mxu0  ;;  %v876_v38 = vadd.f32 %v1367_v11, %v779_v29  ;;  %v993_v3 = vmul.f32 %v1781_v8, %v1781_v8 }
 0x12e   :  { %1150 = vst [vmem:[%s1835_s2] sm:$0xff] %v1149_v9   ;;  %v963_v22 = vadd.f32 %v962_v10, %v828_v53  ;;  %v1000_v24 = vadd.f32 %v985_v42, %v984_v5  ;;  %v836_v23 = vadd.f32 %v835_v20, %v739_v47  ;;  %v867_v26 = vpop.f32.mrf.mxu1  ;;  %v774_v47 = vadd.f32 %v1314_v18, %v1250_v15 }
 0x12f   :  { %1189 = vst [vmem:[%s1835_s2 + $0x20] sm:$0xff] %v1169_v19   ;;  %v1360_v28 = vpop.f32.mrf.mxu0  ;;  %v868_v55 = vadd.f32 %v867_v26, %v771_v43  ;;  %v990_v59 = vmul.f32 %v844_v33, %v844_v33  ;;  %v994_v10 = vmul.f32 %v1773_v61, %v1773_v61  ;;  %v998_v18 = vmul.f32 %v876_v38, %v876_v38 }
 0x130   :  { %v1001_v32 = vadd.f32 %v1000_v24, %v986_v21  ;;  %v964_v34 = vadd.f32 %v963_v22, %v831_v56  ;;  %v847_v35 = vadd.f32 %v1360_v28, %v750_v52  ;;  %v1368_v36 = vpop.f32.mrf.mxu1  ;;  %v988_v50 = vmul.f32 %v836_v23, %v836_v23 }
 0x131   :  { %v879_v45 = vadd.f32 %v1368_v36, %v782_v30  ;;  %v838_v48 = vpop.f32.mrf.mxu0 }
 0x132   :  { %v965_v49 = vadd.f32 %v964_v34, %v836_v23  ;;  %v1002_v51 = vadd.f32 %v1001_v32, %v987_v27  ;;  %v1164_v53 = vpack.c.bf16 %v847_v35, %v844_v33  ;;  %v870_v54 = vpop.f32.mrf.mxu1  ;;  %v839_v58 = vadd.f32 %v838_v48, %v742_v31 }
 0x133   :  { %v1184_v57 = vpack.c.bf16 %v879_v45, %v876_v38  ;;  %v871_v60 = vadd.f32 %v870_v54, %v774_v47  ;;  %v991_v0 = vmul.f32 %v847_v35, %v847_v35  ;;  %v999_v20 = vmul.f32 %v879_v45, %v879_v45 }
 0x134   :  { %v1003_v37 = vadd.f32 %v1002_v51, %v988_v50  ;;  %1188 = vst [vmem:[%s1835_s2 + $0x18] sm:$0xff] %v1164_v53   ;;  %v1159_v44 = vpack.c.bf16 %v839_v58, %v836_v23  ;;  %v966_v46 = vadd.f32 %v965_v49, %v839_v58  ;;  %v989_v52 = vmul.f32 %v839_v58, %v839_v58 }
 0x135   :  { %1192 = vst [vmem:[%s1835_s2 + $0x38] sm:$0xff] %v1184_v57   ;;  %v1179_v56 = vpack.c.bf16 %v871_v60, %v868_v55  ;;  %v997_v16 = vmul.f32 %v871_v60, %v871_v60 }
 0x136   :  { %1187 = vst [vmem:[%s1835_s2 + $0x10] sm:$0xff] %v1159_v44   ;;  %v967_v63 = vadd.f32 %v966_v46, %v844_v33  ;;  %v1004_v25 = vadd.f32 %v1003_v37, %v989_v52 }
 0x137   :  { %1191 = vst [vmem:[%s1835_s2 + $0x30] sm:$0xff] %v1179_v56  }
 0x138   :  { %v968_v1 = vadd.f32 %v967_v63, %v847_v35  ;;  %v1005_v41 = vadd.f32 %v1004_v25, %v990_v59 }
 0x13a   :  { %v969_v4 = vadd.f32 %v968_v1, %v1777_v40  ;;  %v1006_v7 = vadd.f32 %v1005_v41, %v991_v0  ;;  %v996_v40 = vmul.f32 %v868_v55, %v868_v55 }
 0x13c   :  { %v1007_v5 = vadd.f32 %v1006_v7, %v992_v2  ;;  %v970_v9 = vadd.f32 %v969_v4, %v1781_v8 }
 0x13e   :  { %v971_v42 = vadd.f32 %v970_v9, %v1773_v61  ;;  %v1008_v11 = vadd.f32 %v1007_v5, %v993_v3 }
 0x140   :  { %v972_v13 = vadd.f32 %v971_v42, %v1775_v62  ;;  %v1009_v39 = vadd.f32 %v1008_v11, %v994_v10 }
 0x142   :  { %v973_v6 = vadd.f32 %v972_v13, %v868_v55  ;;  %v1010_v14 = vadd.f32 %v1009_v39, %v995_v12 }
 0x144   :  { %v974_v15 = vadd.f32 %v973_v6, %v871_v60  ;;  %v1011_v17 = vadd.f32 %v1010_v14, %v996_v40 }
 0x146   :  { %v975_v8 = vadd.f32 %v974_v15, %v876_v38  ;;  %v1012_v19 = vadd.f32 %v1011_v17, %v997_v16 }
 0x148   :  { %v976_v21 = vadd.f32 %v975_v8, %v879_v45  ;;  %v1013_v22 = vadd.f32 %v1012_v19, %v998_v18 }
 0x14a   :  { %v977_v61 = vrot.slane %v976_v21, 4  ;;  %v1014_v24 = vadd.f32 %v1013_v22, %v999_v20 }
 0x14c   :  { %v978_v23 = vadd.f32 %v977_v61, %v976_v21  ;;  %v1015_v26 = vrot.slane %v1014_v24, 4 }
 0x14e   :  { %v979_v27 = vrot.slane %v978_v23, 2  ;;  %v1016_v29 = vadd.f32 %v1015_v26, %v1014_v24 }
 0x150   :  { %v980_v62 = vadd.f32 %v979_v27, %v978_v23  ;;  %v1017_v28 = vrot.slane %v1016_v29, 2 }
 0x152   :  { %v981_v30 = vrot.slane %v980_v62, 1  ;;  %v1018_v31 = vadd.f32 %v1017_v28, %v1016_v29 }
 0x154   :  { %v982_v32 = vadd.f32 %v981_v30, %v980_v62  ;;  %v1019_v33 = vrot.slane %v1018_v31, 1 }
 0x156   :  { %983 = vst [vmem:[%s1836_s3] sm:$0x1] %v982_v32  ;;  %v1020_v34 = vadd.f32 %v1019_v33, %v1018_v31 }
 0x158   :  { %1021 = vst [vmem:[%s1837_s4] sm:$0x1] %v1020_v34 }

// kernel: resnet_forward.26
= control target key start
LH: loop header
LB: loop body
LE: loop exit
PB: predicated region body
PF: predicated region fallthrough
CT: control target
= control target key end

     0   :  { %s140_s0 = inlined_call_operand.vmem [shape: bf16[32,128], index: 0, kind: input, shape index: {}]   ;;  %s141_s1 = inlined_call_operand.vmem [shape: f32[1,128], index: 1, kind: input, shape index: {}]   ;;  %s142_s2 = inlined_call_operand.vmem [shape: f32[1,128], index: 2, kind: input, shape index: {}]   ;;  %s143_s3 = inlined_call_operand.vmem [shape: bf16[32,128], index: 3, kind: output, shape index: {}]  }
   0x1   :  { %v83_v0 = vld [vmem:[%s140_s0] sm:$0xff]   ;;  %v100_v4 = vld [vmem:[%s140_s0 + $0x8] sm:$0xff]  }
   0x2   :  { %v72_v1 = vld [vmem:[%s141_s1] ss:$0 sm:$0xff]  ;;  %v84_v2 = vunpack.c.l.bf16 %v83_v0  ;;  %v85_v3 = vunpack.c.h.bf16 %v83_v0  ;;  %v88_v6 = vunpack.c.l.bf16 %v100_v4  ;;  %v89_v7 = vunpack.c.h.bf16 %v100_v4 }
   0x3   :  { %v73_v5 = vld [vmem:[%s142_s2] ss:$0 sm:$0xff] }
   0x4   :  { %v29_v8 = vmul.f32 %v84_v2, %v72_v1  ;;  %v30_v9 = vmul.f32 %v85_v3, %v72_v1  ;;  %v31_v10 = vmul.f32 %v88_v6, %v72_v1  ;;  %v32_v11 = vmul.f32 %v89_v7, %v72_v1 }
   0x6   :  { %v40_v12 = vadd.f32 %v73_v5, %v29_v8  ;;  %v41_v13 = vadd.f32 %v73_v5, %v30_v9  ;;  %v42_v14 = vadd.f32 %v73_v5, %v31_v10  ;;  %v43_v15 = vadd.f32 %v73_v5, %v32_v11 }
   0x8   :  { %v44_v16 = vmax.f32 %v40_v12, 0.0  ;;  %v45_v17 = vmax.f32 %v41_v13, 0.0  ;;  %v46_v18 = vmax.f32 %v42_v14, 0.0  ;;  %v47_v19 = vmax.f32 %v43_v15, 0.0 }
   0xa   :  { %v93_v20 = vpack.c.bf16 %v45_v17, %v44_v16  ;;  %v98_v21 = vpack.c.bf16 %v47_v19, %v46_v18 }
   0xc   :  { %94 = vst [vmem:[%s143_s3] sm:$0xff] %v93_v20   ;;  %101 = vst [vmem:[%s143_s3 + $0x8] sm:$0xff] %v98_v21  }

// kernel: resnet_forward.25
= control target key start
LH: loop header
LB: loop body
LE: loop exit
PB: predicated region body
PF: predicated region fallthrough
CT: control target
= control target key end

     0   :  { %s1409_s1 = inlined_call_operand.vmem [shape: bf16[640,256], index: 1, kind: input, shape index: {}]   ;;  %s1410_s0 = inlined_call_operand.vmem [shape: bf16[32,640], index: 0, kind: input, shape index: {}]   ;;  %s1411_s2 = inlined_call_operand.vmem [shape: bf16[32,256], index: 2, kind: output, shape index: {0}]   ;;  %s1412_s3 = inlined_call_operand.vmem [shape: f32[1,1,256], index: 3, kind: output, shape index: {1}]   ;;  %s1413_s4 = inlined_call_operand.vmem [shape: f32[1,1,256], index: 4, kind: output, shape index: {2}]  }
   0x1   :  { %v960_v0 = vld [vmem:[%s1409_s1 + $0x74] ss:$8 sps:$4 sm:$0xff]   ;;  %v964_v2 = vld [vmem:[%s1409_s1 + $0x70] ss:$8 sps:$4 sm:$0xff]   ;;  %v966_v4 = vld [vmem:[%s1409_s1 + $0x64] ss:$8 sps:$4 sm:$0xff]  }
   0x2   :  { %v962_v1 = vld [vmem:[%s1409_s1 + $0x174] ss:$8 sps:$4 sm:$0xff]   ;;  %559 = vmatprep.subr.bf16.mxu0 %v960_v0  ;;  %v965_v3 = vld [vmem:[%s1409_s1 + $0x170] ss:$8 sps:$4 sm:$0xff]   ;;  %v968_v5 = vld [vmem:[%s1409_s1 + $0x164] ss:$8 sps:$4 sm:$0xff]  }
   0x3   :  { %612 = vmatprep.subr.bf16.mxu1 %v962_v1  ;;  %560 = vmatpush1.bf16.msra.mxu0 %v964_v2  ;;  %v970_v6 = vld [vmem:[%s1409_s1 + $0x60] ss:$8 sps:$4 sm:$0xff]   ;;  %v972_v8 = vld [vmem:[%s1409_s1 + $0x54] ss:$8 sps:$4 sm:$0xff]   ;;  %v976_v10 = vld [vmem:[%s1409_s1 + $0x50] ss:$8 sps:$4 sm:$0xff]  }
   0x4   :  { %613 = vmatpush1.bf16.msra.mxu1 %v965_v3  ;;  %561 = vmatprep.subr.bf16.mxu0 %v966_v4  ;;  %v971_v7 = vld [vmem:[%s1409_s1 + $0x160] ss:$8 sps:$4 sm:$0xff]   ;;  %v974_v9 = vld [vmem:[%s1409_s1 + $0x154] ss:$8 sps:$4 sm:$0xff]   ;;  %v977_v11 = vld [vmem:[%s1409_s1 + $0x150] ss:$8 sps:$4 sm:$0xff]  }
   0x5   :  { %614 = vmatprep.subr.bf16.mxu1 %v968_v5  ;;  %v978_v12 = vld [vmem:[%s1409_s1 + $0x44] ss:$8 sps:$4 sm:$0xff]   ;;  %v982_v14 = vld [vmem:[%s1409_s1 + $0x40] ss:$8 sps:$4 sm:$0xff]   ;;  %v984_v16 = vld [vmem:[%s1409_s1 + $0x34] ss:$8 sps:$4 sm:$0xff]  }
   0x6   :  { %v980_v13 = vld [vmem:[%s1409_s1 + $0x144] ss:$8 sps:$4 sm:$0xff]   ;;  %v983_v15 = vld [vmem:[%s1409_s1 + $0x140] ss:$8 sps:$4 sm:$0xff]   ;;  %v986_v17 = vld [vmem:[%s1409_s1 + $0x134] ss:$8 sps:$4 sm:$0xff]  }
   0x7   :  { %562 = vmatpush1.bf16.msra.mxu0 %v970_v6  ;;  %v988_v18 = vld [vmem:[%s1409_s1 + $0x30] ss:$8 sps:$4 sm:$0xff]   ;;  %v990_v20 = vld [vmem:[%s1409_s1 + $0x24] ss:$8 sps:$4 sm:$0xff]   ;;  %v994_v22 = vld [vmem:[%s1409_s1 + $0x20] ss:$8 sps:$4 sm:$0xff]  }
   0x8   :  { %615 = vmatpush1.bf16.msra.mxu1 %v971_v7  ;;  %563 = vmatprep.subr.bf16.mxu0 %v972_v8  ;;  %v989_v19 = vld [vmem:[%s1409_s1 + $0x130] ss:$8 sps:$4 sm:$0xff]   ;;  %v992_v21 = vld [vmem:[%s1409_s1 + $0x124] ss:$8 sps:$4 sm:$0xff]   ;;  %v995_v23 = vld [vmem:[%s1409_s1 + $0x120] ss:$8 sps:$4 sm:$0xff]  }
   0x9   :  { %616 = vmatprep.subr.bf16.mxu1 %v974_v9  ;;  %v996_v24 = vld [vmem:[%s1409_s1 + $0x14] ss:$8 sps:$4 sm:$0xff]   ;;  %v1000_v26 = vld [vmem:[%s1409_s1 + $0x10] ss:$8 sps:$4 sm:$0xff]   ;;  %v1002_v28 = vld [vmem:[%s1409_s1 + $0x4] ss:$8 sps:$4 sm:$0xff]  }
   0xa   :  { %v998_v25 = vld [vmem:[%s1409_s1 + $0x114] ss:$8 sps:$4 sm:$0xff]   ;;  %v1001_v27 = vld [vmem:[%s1409_s1 + $0x110] ss:$8 sps:$4 sm:$0xff]   ;;  %v1004_v29 = vld [vmem:[%s1409_s1 + $0x104] ss:$8 sps:$4 sm:$0xff]  }
   0xb   :  { %564 = vmatpush1.bf16.msra.mxu0 %v976_v10  ;;  %v1006_v30 = vld [vmem:[%s1409_s1] ss:$8 sps:$4 sm:$0xff]   ;;  %v1008_v32 = vld [vmem:[%s1409_s1 + $0xf4] ss:$8 sps:$4 sm:$0xff]   ;;  %v1012_v34 = vld [vmem:[%s1409_s1 + $0xf0] ss:$8 sps:$4 sm:$0xff]  }
   0xc   :  { %617 = vmatpush1.bf16.msra.mxu1 %v977_v11  ;;  %565 = vmatprep.subr.bf16.mxu0 %v978_v12  ;;  %v1007_v31 = vld [vmem:[%s1409_s1 + $0x100] ss:$8 sps:$4 sm:$0xff]   ;;  %v1010_v33 = vld [vmem:[%s1409_s1 + $0x1f4] ss:$8 sps:$4 sm:$0xff]   ;;  %v1013_v35 = vld [vmem:[%s1409_s1 + $0x1f0] ss:$8 sps:$4 sm:$0xff]  }
   0xd   :  { %618 = vmatprep.subr.bf16.mxu1 %v980_v13  ;;  %v1014_v36 = vld [vmem:[%s1409_s1 + $0xe4] ss:$8 sps:$4 sm:$0xff]   ;;  %v1018_v38 = vld [vmem:[%s1409_s1 + $0xe0] ss:$8 sps:$4 sm:$0xff]   ;;  %v1020_v40 = vld [vmem:[%s1409_s1 + $0xd4] ss:$8 sps:$4 sm:$0xff]  }
   0xe   :  { %v1016_v37 = vld [vmem:[%s1409_s1 + $0x1e4] ss:$8 sps:$4 sm:$0xff]   ;;  %v1019_v39 = vld [vmem:[%s1409_s1 + $0x1e0] ss:$8 sps:$4 sm:$0xff]   ;;  %v1022_v41 = vld [vmem:[%s1409_s1 + $0x1d4] ss:$8 sps:$4 sm:$0xff]  }
   0xf   :  { %566 = vmatpush1.bf16.msra.mxu0 %v982_v14  ;;  %v1024_v42 = vld [vmem:[%s1409_s1 + $0xd0] ss:$8 sps:$4 sm:$0xff]   ;;  %v1026_v44 = vld [vmem:[%s1409_s1 + $0xc4] ss:$8 sps:$4 sm:$0xff]   ;;  %v1030_v46 = vld [vmem:[%s1409_s1 + $0xc0] ss:$8 sps:$4 sm:$0xff]  }
  0x10   :  { %619 = vmatpush1.bf16.msra.mxu1 %v983_v15  ;;  %567 = vmatprep.subr.bf16.mxu0 %v984_v16  ;;  %v1025_v43 = vld [vmem:[%s1409_s1 + $0x1d0] ss:$8 sps:$4 sm:$0xff]   ;;  %v1028_v45 = vld [vmem:[%s1409_s1 + $0x1c4] ss:$8 sps:$4 sm:$0xff]   ;;  %v1031_v47 = vld [vmem:[%s1409_s1 + $0x1c0] ss:$8 sps:$4 sm:$0xff]  }
  0x11   :  { %620 = vmatprep.subr.bf16.mxu1 %v986_v17  ;;  %v1032_v48 = vld [vmem:[%s1409_s1 + $0xb4] ss:$8 sps:$4 sm:$0xff]   ;;  %v1058_v49 = vld [vmem:[%s1410_s0 + $0x4] ss:$20 sps:$4 sm:$0xff]   ;;  %v1061_v51 = vld [vmem:[%s1410_s0 + $0xc] ss:$20 sps:$4 sm:$0xff]  }
  0x12   :  { %v1034_v50 = vld [vmem:[%s1409_s1 + $0x1b4] ss:$8 sps:$4 sm:$0xff]   ;;  %591 = vmatprep.mubr.bf16.mxu0 %v1058_v49  ;;  %v1036_v52 = vld [vmem:[%s1409_s1 + $0xb0] ss:$8 sps:$4 sm:$0xff]   ;;  %644 = vmatprep.mubr.bf16.mxu1 %v1061_v51  ;;  %v1038_v54 = vld [vmem:[%s1409_s1 + $0xa4] ss:$8 sps:$4 sm:$0xff]  }
  0x13   :  { %568 = vmatpush1.bf16.msra.mxu0 %v988_v18  ;;  %v1037_v53 = vld [vmem:[%s1409_s1 + $0x1b0] ss:$8 sps:$4 sm:$0xff]   ;;  %v1040_v55 = vld [vmem:[%s1409_s1 + $0x1a4] ss:$8 sps:$4 sm:$0xff]   ;;  %v1042_v56 = vld [vmem:[%s1409_s1 + $0xa0] ss:$8 sps:$4 sm:$0xff]  }
  0x14   :  { %621 = vmatpush1.bf16.msra.mxu1 %v989_v19  ;;  %569 = vmatprep.subr.bf16.mxu0 %v990_v20  ;;  %v1043_v57 = vld [vmem:[%s1409_s1 + $0x1a0] ss:$8 sps:$4 sm:$0xff]   ;;  %v1044_v58 = vld [vmem:[%s1409_s1 + $0x94] ss:$8 sps:$4 sm:$0xff]   ;;  %v1048_v60 = vld [vmem:[%s1409_s1 + $0x90] ss:$8 sps:$4 sm:$0xff]  }
  0x15   :  { %622 = vmatprep.subr.bf16.mxu1 %v992_v21  ;;  %v1046_v59 = vld [vmem:[%s1409_s1 + $0x194] ss:$8 sps:$4 sm:$0xff]   ;;  %v1049_v61 = vld [vmem:[%s1409_s1 + $0x190] ss:$8 sps:$4 sm:$0xff]   ;;  %v1050_v62 = vld [vmem:[%s1409_s1 + $0x84] ss:$8 sps:$4 sm:$0xff]  }
  0x16   :  { %v1052_v63 = vld [vmem:[%s1409_s1 + $0x184] ss:$8 sps:$4 sm:$0xff]   ;;  %v1054_v0 = vld [vmem:[%s1409_s1 + $0x80] ss:$8 sps:$4 sm:$0xff]   ;;  %v1064_v2 = vld [vmem:[%s1409_s1 + $0x274] ss:$8 sps:$4 sm:$0xff]  }
  0x17   :  { %570 = vmatpush1.bf16.msra.mxu0 %v994_v22  ;;  %v1055_v1 = vld [vmem:[%s1409_s1 + $0x180] ss:$8 sps:$4 sm:$0xff]   ;;  %v1062_v5 = vld [vmem:[%s1409_s1 + $0x270] ss:$8 sps:$4 sm:$0xff]   ;;  %v1067_v6 = vld [vmem:[%s1409_s1 + $0x264] ss:$8 sps:$4 sm:$0xff]  }
  0x18   :  { %623 = vmatpush1.bf16.msra.mxu1 %v995_v23  ;;  %571 = vmatprep.subr.bf16.mxu0 %v996_v24  ;;  %v1056_v3 = vld [vmem:[%s1410_s0] ss:$20 sps:$4 sm:$0xff]   ;;  %v1059_v4 = vld [vmem:[%s1410_s0 + $0x8] ss:$20 sps:$4 sm:$0xff]   ;;  %v1082_v12 = vld [vmem:[%s1410_s0 + $0x30] ss:$20 sps:$4 sm:$0xff]  }
  0x19   :  { %624 = vmatprep.subr.bf16.mxu1 %v998_v25  ;;  %v1077_v7 = vld [vmem:[%s1410_s0 + $0x2c] ss:$20 sps:$4 sm:$0xff]   ;;  %v1079_v8 = vld [vmem:[%s1410_s0 + $0x34] ss:$20 sps:$4 sm:$0xff]   ;;  %v1068_v13 = vld [vmem:[%s1409_s1 + $0x250] ss:$8 sps:$4 sm:$0xff]  }
  0x1a   :  { %v1065_v9 = vld [vmem:[%s1409_s1 + $0x260] ss:$8 sps:$4 sm:$0xff]   ;;  %v1070_v10 = vld [vmem:[%s1409_s1 + $0x254] ss:$8 sps:$4 sm:$0xff]   ;;  %v1073_v14 = vld [vmem:[%s1409_s1 + $0x244] ss:$8 sps:$4 sm:$0xff]  }
  0x1b   :  { %572 = vmatpush1.bf16.msra.mxu0 %v1000_v26  ;;  %v1081_v11 = vld [vmem:[%s1410_s0 + $0x28] ss:$20 sps:$4 sm:$0xff]   ;;  %v1094_v17 = vmov 0   ;;  %v1074_v18 = vld [vmem:[%s1409_s1 + $0x230] ss:$8 sps:$4 sm:$0xff]  }
  0x1c   :  { %625 = vmatpush1.bf16.msra.mxu1 %v1001_v27  ;;  %573 = vmatprep.subr.bf16.mxu0 %v1002_v28  ;;  %v1071_v15 = vld [vmem:[%s1409_s1 + $0x240] ss:$8 sps:$4 sm:$0xff]   ;;  %v1076_v16 = vld [vmem:[%s1409_s1 + $0x234] ss:$8 sps:$4 sm:$0xff]   ;;  %v1085_v19 = vld [vmem:[%s1409_s1 + $0x224] ss:$8 sps:$4 sm:$0xff]  }
  0x1d   :  { %626 = vmatprep.subr.bf16.mxu1 %v1004_v29  ;;  %v1083_v20 = vld [vmem:[%s1409_s1 + $0x220] ss:$8 sps:$4 sm:$0xff]   ;;  %v1088_v21 = vld [vmem:[%s1409_s1 + $0x214] ss:$8 sps:$4 sm:$0xff]   ;;  %v1086_v22 = vld [vmem:[%s1409_s1 + $0x210] ss:$8 sps:$4 sm:$0xff]  }
  0x1e   :  { %v1091_v23 = vld [vmem:[%s1409_s1 + $0x204] ss:$8 sps:$4 sm:$0xff]   ;;  %v1089_v24 = vld [vmem:[%s1409_s1 + $0x200] ss:$8 sps:$4 sm:$0xff]  }
  0x1f   :  { %574 = vmatpush1.bf16.msra.mxu0 %v1006_v30  ;;  %v1092_v25 = vld [vmem:[%s1410_s0 + $0x10] ss:$20 sps:$4 sm:$0xff]   ;;  %v1093_v26 = vld [vmem:[%s1410_s0 + $0x38] ss:$20 sps:$4 sm:$0xff]  }
  0x20   :  { %627 = vmatpush1.bf16.msra.mxu1 %v1007_v31  ;;  %575 = vmatprep.subr.bf16.mxu0 %v1008_v32 }
  0x21   :  { %628 = vmatprep.subr.bf16.mxu1 %v1010_v33 }
  0x23   :  { %576 = vmatpush2.bf16.msra.mxu0 %v1012_v34 }
  0x24   :  { %629 = vmatpush2.bf16.msra.mxu1 %v1013_v35  ;;  %577 = vmatprep.subr.bf16.mxu0 %v1014_v36 }
  0x25   :  { %630 = vmatprep.subr.bf16.mxu1 %v1016_v37 }
  0x27   :  { %578 = vmatpush2.bf16.msra.mxu0 %v1018_v38 }
  0x28   :  { %631 = vmatpush2.bf16.msra.mxu1 %v1019_v39  ;;  %579 = vmatprep.subr.bf16.mxu0 %v1020_v40 }
  0x29   :  { %632 = vmatprep.subr.bf16.mxu1 %v1022_v41 }
  0x2b   :  { %580 = vmatpush2.bf16.msra.mxu0 %v1024_v42 }
  0x2c   :  { %633 = vmatpush2.bf16.msra.mxu1 %v1025_v43  ;;  %581 = vmatprep.subr.bf16.mxu0 %v1026_v44 }
  0x2d   :  { %634 = vmatprep.subr.bf16.mxu1 %v1028_v45 }
  0x2f   :  { %582 = vmatpush2.bf16.msra.mxu0 %v1030_v46 }
  0x30   :  { %635 = vmatpush2.bf16.msra.mxu1 %v1031_v47  ;;  %583 = vmatprep.subr.bf16.mxu0 %v1032_v48 }
  0x31   :  { %636 = vmatprep.subr.bf16.mxu1 %v1034_v50 }
  0x33   :  { %584 = vmatpush2.bf16.msra.mxu0 %v1036_v52 }
  0x34   :  { %637 = vmatpush2.bf16.msra.mxu1 %v1037_v53  ;;  %585 = vmatprep.subr.bf16.mxu0 %v1038_v54 }
  0x35   :  { %638 = vmatprep.subr.bf16.mxu1 %v1040_v55 }
  0x37   :  { %586 = vmatpush2.bf16.msra.mxu0 %v1042_v56 }
  0x38   :  { %639 = vmatpush2.bf16.msra.mxu1 %v1043_v57  ;;  %587 = vmatprep.subr.bf16.mxu0 %v1044_v58 }
  0x39   :  { %640 = vmatprep.subr.bf16.mxu1 %v1046_v59 }
  0x3b   :  { %588 = vmatpush2.bf16.msra.mxu0 %v1048_v60 }
  0x3c   :  { %641 = vmatpush2.bf16.msra.mxu1 %v1049_v61  ;;  %589 = vmatprep.subr.bf16.mxu0 %v1050_v62 }
  0x3d   :  { %642 = vmatprep.subr.bf16.mxu1 %v1052_v63 }
  0x3f   :  { %590 = vmatpush2.bf16.msra.mxu0 %v1054_v0 }
  0x40   :  { %643 = vmatpush2.bf16.msra.mxu1 %v1055_v1  ;;  %665 = vmatprep.subr.bf16.mxu0 %v1064_v2 }
  0x41   :  { %942 = vmatprep.subr.bf16.mxu1 %v1064_v2 }
  0x42   :  { %592 = vmatmul.mubr.bf16.vlgmr.msra.gmra.mxu0 %v1056_v3 }
  0x43   :  { %645 = vmatmul.mubr.bf16.vlgmr.msra.gmra.mxu1 %v1059_v4  ;;  %666 = vmatpush1.bf16.msra.mxu0 %v1062_v5 }
  0x44   :  { %950 = vmatpush1.bf16.msra.mxu1 %v1062_v5  ;;  %667 = vmatprep.subr.bf16.mxu0 %v1067_v6 }
  0x45   :  { %943 = vmatprep.subr.bf16.mxu1 %v1067_v6  ;;  %601 = vmatprep.mubr.bf16.mxu0 %v1077_v7 }
  0x46   :  { %654 = vmatprep.mubr.bf16.mxu1 %v1079_v8 }
  0x47   :  { %668 = vmatpush1.bf16.msra.mxu0 %v1065_v9 }
  0x48   :  { %951 = vmatpush1.bf16.msra.mxu1 %v1065_v9  ;;  %669 = vmatprep.subr.bf16.mxu0 %v1070_v10 }
  0x49   :  { %944 = vmatprep.subr.bf16.mxu1 %v1070_v10 }
  0x4a   :  { %602 = vmatmul.mubr.bf16.gmra.mxu0 %v1081_v11 }
  0x4b   :  { %655 = vmatmul.mubr.bf16.gmra.mxu1 %v1082_v12  ;;  %670 = vmatpush1.bf16.msra.mxu0 %v1068_v13 }
  0x4c   :  { %952 = vmatpush1.bf16.msra.mxu1 %v1068_v13  ;;  %671 = vmatprep.subr.bf16.mxu0 %v1073_v14 }
  0x4d   :  { %945 = vmatprep.subr.bf16.mxu1 %v1073_v14  ;;  %697 = vmatprep.mubr.bf16.mxu0 %v1094_v17 }
  0x4e   :  { %707 = vmatprep.mubr.bf16.mxu1 %v1094_v17 }
  0x4f   :  { %672 = vmatpush1.bf16.msra.mxu0 %v1071_v15 }
  0x50   :  { %953 = vmatpush1.bf16.msra.mxu1 %v1071_v15  ;;  %673 = vmatprep.subr.bf16.mxu0 %v1076_v16 }
  0x51   :  { %946 = vmatprep.subr.bf16.mxu1 %v1076_v16 }
  0x53   :  { %674 = vmatpush1.bf16.msra.mxu0 %v1074_v18 }
  0x54   :  { %954 = vmatpush1.bf16.msra.mxu1 %v1074_v18  ;;  %675 = vmatprep.subr.bf16.mxu0 %v1085_v19 }
  0x55   :  { %947 = vmatprep.subr.bf16.mxu1 %v1085_v19 }
  0x57   :  { %676 = vmatpush1.bf16.msra.mxu0 %v1083_v20 }
  0x58   :  { %955 = vmatpush1.bf16.msra.mxu1 %v1083_v20  ;;  %677 = vmatprep.subr.bf16.mxu0 %v1088_v21 }
  0x59   :  { %948 = vmatprep.subr.bf16.mxu1 %v1088_v21 }
  0x5b   :  { %678 = vmatpush1.bf16.msra.mxu0 %v1086_v22 }
  0x5c   :  { %956 = vmatpush1.bf16.msra.mxu1 %v1086_v22  ;;  %679 = vmatprep.subr.bf16.mxu0 %v1091_v23 }
  0x5d   :  { %949 = vmatprep.subr.bf16.mxu1 %v1091_v23 }
  0x5f   :  { %680 = vmatpush1.bf16.msra.mxu0 %v1089_v24 }
  0x60   :  { %957 = vmatpush1.bf16.msra.mxu1 %v1089_v24 }
  0x62   :  { %698 = vmatmul.mubr.bf16.vlgmr.msra.gmra.mxu0 %v1092_v25 }
  0x63   :  { %708 = vmatmul.mubr.bf16.vlgmr.msra.gmra.mxu1 %v1093_v26 }
 0x102   :  { %v593_v27 = vpop.f32.mrf.mxu0 }
 0x103   :  { %v646_v28 = vpop.f32.mrf.mxu1 }
 0x104   :  { %v595_v29 = vpop.f32.mrf.mxu0  ;;  %v647_v45 = vadd.f32 %v646_v28, %v593_v27 }
 0x105   :  { %v648_v30 = vpop.f32.mrf.mxu1 }
 0x106   :  { %v597_v31 = vpop.f32.mrf.mxu0  ;;  %v649_v46 = vadd.f32 %v648_v30, %v595_v29 }
 0x107   :  { %v650_v32 = vpop.f32.mrf.mxu1 }
 0x108   :  { %v599_v33 = vpop.f32.mrf.mxu0  ;;  %v651_v55 = vadd.f32 %v650_v32, %v597_v31  ;;  %v1095_v32 = vmov 1966171168  }
 0x109   :  { %v652_v34 = vpop.f32.mrf.mxu1 }
 0x10a   :  { %v603_v35 = vpop.f32.mrf.mxu0  ;;  %v653_v56 = vadd.f32 %v652_v34, %v599_v33  ;;  %v768_v33 = vunpack.c.l.s4 %v1095_v32  ;;  %v770_v34 = vlaneseq }
 0x10b   :  { %v656_v36 = vpop.f32.mrf.mxu1 }
 0x10c   :  { %v605_v37 = vpop.f32.mrf.mxu0  ;;  %v657_v47 = vadd.f32 %v656_v36, %v603_v35  ;;  %vm784_vm0 = vcmp.lt.s32.totalorder %v770_v34, 256 }
 0x10d   :  { %v658_v38 = vpop.f32.mrf.mxu1 }
 0x10e   :  { %v607_v39 = vpop.f32.mrf.mxu0  ;;  %v659_v48 = vadd.f32 %v658_v38, %v605_v37 }
 0x10f   :  { %v660_v40 = vpop.f32.mrf.mxu1 }
 0x110   :  { %v609_v41 = vpop.f32.mrf.mxu0  ;;  %v661_v59 = vadd.f32 %v660_v40, %v607_v39 }
 0x111   :  { %v662_v42 = vpop.f32.mrf.mxu1 }
 0x112   :  { %v663_v60 = vadd.f32 %v662_v42, %v609_v41 }
 0x122   :  { %v699_v43 = vpop.f32.mrf.mxu0 }
 0x123   :  { %v709_v44 = vpop.f32.mrf.mxu1  ;;  %v700_v51 = vadd.f32 %v699_v43, %v647_v45  ;;  %v769_v43 = vunpack.c.0.s8 %v768_v33 }
 0x124   :  { %v701_v49 = vpop.f32.mrf.mxu0  ;;  %v710_v52 = vadd.f32 %v709_v44, %v657_v47  ;;  %v771_v44 = vshrl.u32 %v770_v34, 7 }
 0x125   :  { %v711_v50 = vpop.f32.mrf.mxu1  ;;  %v702_v53 = vadd.f32 %v701_v49, %v649_v46  ;;  %v787_v5 = vmul.f32 %v700_v51, %v700_v51 }
 0x126   :  { %v712_v54 = vadd.f32 %v711_v50, %v659_v48  ;;  %v703_v57 = vpop.f32.mrf.mxu0  ;;  %v791_v13 = vmul.f32 %v710_v52, %v710_v52 }
 0x127   :  { %v713_v58 = vpop.f32.mrf.mxu1  ;;  %v938_v61 = vpack.c.bf16 %v702_v53, %v700_v51  ;;  %v704_v63 = vadd.f32 %v703_v57, %v651_v55  ;;  %v788_v6 = vmul.f32 %v702_v53, %v702_v53 }
 0x128   :  { %v940_v62 = vpack.c.bf16 %v712_v54, %v710_v52  ;;  %v705_v0 = vpop.f32.mrf.mxu0  ;;  %v714_v2 = vadd.f32 %v713_v58, %v661_v59  ;;  %v792_v16 = vmul.f32 %v712_v54, %v712_v54 }
 0x129   :  { %v715_v1 = vpop.f32.mrf.mxu1  ;;  %742 = vst [vmem:[%s1411_s2] sm:$0xff] %v938_v61  ;;  %v706_v3 = vadd.f32 %v705_v0, %v653_v56  ;;  %v746_v7 = vadd.f32 %v704_v63, %v700_v51  ;;  %v789_v8 = vmul.f32 %v704_v63, %v704_v63 }
 0x12a   :  { %744 = vst [vmem:[%s1411_s2 + $0x10] sm:$0xff] %v940_v62  ;;  %v716_v4 = vadd.f32 %v715_v1, %v663_v60  ;;  %v793_v20 = vmul.f32 %v714_v2, %v714_v2 }
 0x12b   :  { %v939_v9 = vpack.c.bf16 %v706_v3, %v704_v63  ;;  %v755_v10 = vadd.f32 %v706_v3, %v702_v53  ;;  %v790_v11 = vmul.f32 %v706_v3, %v706_v3  ;;  %v795_v14 = vadd.f32 %v789_v8, %v787_v5 }
 0x12c   :  { %v941_v12 = vpack.c.bf16 %v716_v4, %v714_v2  ;;  %v747_v15 = vadd.f32 %v746_v7, %v710_v52  ;;  %v794_v23 = vmul.f32 %v716_v4, %v716_v4  ;;  %v772_v53 = vsub.s32 %v769_v43, %v771_v44 }
 0x12d   :  { %743 = vst [vmem:[%s1411_s2 + $0x8] sm:$0xff] %v939_v9  ;;  %v804_v17 = vadd.f32 %v790_v11, %v788_v6  ;;  %v756_v18 = vadd.f32 %v755_v10, %v712_v54  ;;  %v796_v21 = vadd.f32 %v795_v14, %v791_v13 }
 0x12e   :  { %745 = vst [vmem:[%s1411_s2 + $0x18] sm:$0xff] %v941_v12  ;;  %v748_v19 = vadd.f32 %v747_v15, %v714_v2 }
 0x12f   :  { %v757_v22 = vadd.f32 %v756_v18, %v716_v4  ;;  %v805_v24 = vadd.f32 %v804_v17, %v792_v16  ;;  %v797_v26 = vadd.f32 %v796_v21, %v793_v20 }
 0x130   :  { %v749_v25 = vrot.slane %v748_v19, 4 }
 0x131   :  { %v758_v27 = vrot.slane %v757_v22, 4  ;;  %v806_v28 = vadd.f32 %v805_v24, %v794_v23  ;;  %v798_v30 = vrot.slane %v797_v26, 4 }
 0x132   :  { %v750_v29 = vadd.f32 %v749_v25, %v748_v19 }
 0x133   :  { %v759_v31 = vadd.f32 %v758_v27, %v757_v22  ;;  %v807_v35 = vrot.slane %v806_v28, 4  ;;  %v799_v37 = vadd.f32 %v798_v30, %v797_v26 }
 0x134   :  { %v751_v36 = vrot.slane %v750_v29, 2 }
 0x135   :  { %v760_v38 = vrot.slane %v759_v31, 2  ;;  %v808_v39 = vadd.f32 %v807_v35, %v806_v28  ;;  %v800_v41 = vrot.slane %v799_v37, 2 }
 0x136   :  { %v752_v40 = vadd.f32 %v751_v36, %v750_v29 }
 0x137   :  { %v761_v42 = vadd.f32 %v760_v38, %v759_v31  ;;  %v809_v45 = vrot.slane %v808_v39, 2  ;;  %v801_v47 = vadd.f32 %v800_v41, %v799_v37 }
 0x138   :  { %v753_v46 = vrot.slane %v752_v40, 1 }
 0x139   :  { %v762_v48 = vrot.slane %v761_v42, 1  ;;  %v810_v49 = vadd.f32 %v809_v45, %v808_v39  ;;  %v802_v50 = vrot.slane %v801_v47, 1 }
 0x13a   :  { %v754_v51 = vadd.f32 %v753_v46, %v752_v40 }
 0x13b   :  { %v763_v52 = vadd.f32 %v762_v48, %v761_v42  ;;  %v811_v54 = vrot.slane %v810_v49, 1  ;;  %v803_v55 = vadd.f32 %v802_v50, %v801_v47 }
 0x13d   :  { %v766_v56 = vcombine.low %v754_v51, %v763_v52  ;;  %v812_v57 = vadd.f32 %v811_v54, %v810_v49 }
 0x13f   :  { %v773_v58 = vrot.slane %v766_v56, %v772_v53  ;;  %v815_v59 = vcombine.low %v803_v55, %v812_v57 }
 0x141   :  { %v780_v60 = vrot.slane %v773_v58, %v772_v53  ;;  %v822_v61 = vrot.slane %v815_v59, %v772_v53 }
 0x143   :  { %786 = vst.msk [vmem:[%s1412_s3] sm:$0x3] %vm784_vm0, %v780_v60  ;;  %v829_v62 = vrot.slane %v822_v61, %v772_v53 }
 0x145   :  { %831 = vst.msk [vmem:[%s1413_s4] sm:$0x3] %vm784_vm0, %v829_v62 }

// kernel: resnet_forward.28
= control target key start
LH: loop header
LB: loop body
LE: loop exit
PB: predicated region body
PF: predicated region fallthrough
CT: control target
= control target key end

     0   :  { %s221_s0 = inlined_call_operand.vmem [shape: bf16[32,128], index: 0, kind: input, shape index: {}]   ;;  %s222_s1 = inlined_call_operand.vmem [shape: bf16[32,128], index: 1, kind: input, shape index: {}]   ;;  %s223_s2 = inlined_call_operand.vmem [shape: f32[1,128], index: 2, kind: input, shape index: {}]   ;;  %s224_s3 = inlined_call_operand.vmem [shape: f32[1,128], index: 3, kind: input, shape index: {}]   ;;  %s225_s4 = inlined_call_operand.vmem [shape: f32[1,128], index: 4, kind: input, shape index: {}]   ;;  %s226_s5 = inlined_call_operand.vmem [shape: f32[1,128], index: 5, kind: input, shape index: {}]   ;;  %s227_s6 = inlined_call_operand.vmem [shape: bf16[32,128], index: 6, kind: output, shape index: {}]  }
   0x1   :  { %v128_v0 = vld [vmem:[%s221_s0] sm:$0xff]   ;;  %v153_v9 = vld [vmem:[%s221_s0 + $0x8] sm:$0xff]  }
   0x2   :  { %v115_v1 = vld [vmem:[%s223_s2] ss:$0 sm:$0xff]  ;;  %v129_v2 = vunpack.c.l.bf16 %v128_v0  ;;  %v130_v3 = vunpack.c.h.bf16 %v128_v0  ;;  %v154_v10 = vld [vmem:[%s222_s1 + $0x8] sm:$0xff]   ;;  %v133_v13 = vunpack.c.l.bf16 %v153_v9  ;;  %v134_v14 = vunpack.c.h.bf16 %v153_v9 }
   0x3   :  { %v136_v4 = vld [vmem:[%s222_s1] sm:$0xff]   ;;  %v141_v17 = vunpack.c.l.bf16 %v154_v10  ;;  %v142_v18 = vunpack.c.h.bf16 %v154_v10 }
   0x4   :  { %v117_v5 = vld [vmem:[%s225_s4] ss:$0 sm:$0xff]  ;;  %v137_v7 = vunpack.c.l.bf16 %v136_v4  ;;  %v138_v8 = vunpack.c.h.bf16 %v136_v4  ;;  %v38_v11 = vmul.f32 %v129_v2, %v115_v1  ;;  %v39_v12 = vmul.f32 %v130_v3, %v115_v1 }
   0x5   :  { %v116_v6 = vld [vmem:[%s224_s3] ss:$0 sm:$0xff]  ;;  %v40_v21 = vmul.f32 %v133_v13, %v115_v1  ;;  %v41_v22 = vmul.f32 %v134_v14, %v115_v1  ;;  %v70_v24 = vmul.f32 %v141_v17, %v117_v5  ;;  %v71_v25 = vmul.f32 %v142_v18, %v117_v5 }
   0x6   :  { %v68_v15 = vmul.f32 %v137_v7, %v117_v5  ;;  %v69_v16 = vmul.f32 %v138_v8, %v117_v5  ;;  %v49_v19 = vadd.f32 %v116_v6, %v38_v11  ;;  %v50_v20 = vadd.f32 %v116_v6, %v39_v12  ;;  %v118_v23 = vld [vmem:[%s226_s5] ss:$0 sm:$0xff] }
   0x7   :  { %v51_v28 = vadd.f32 %v116_v6, %v40_v21  ;;  %v52_v29 = vadd.f32 %v116_v6, %v41_v22 }
   0x8   :  { %v72_v26 = vadd.f32 %v68_v15, %v49_v19  ;;  %v73_v27 = vadd.f32 %v69_v16, %v50_v20 }
   0x9   :  { %v74_v32 = vadd.f32 %v70_v24, %v51_v28  ;;  %v75_v33 = vadd.f32 %v71_v25, %v52_v29 }
   0xa   :  { %v83_v30 = vadd.f32 %v118_v23, %v72_v26  ;;  %v84_v31 = vadd.f32 %v118_v23, %v73_v27 }
   0xb   :  { %v85_v36 = vadd.f32 %v118_v23, %v74_v32  ;;  %v86_v37 = vadd.f32 %v118_v23, %v75_v33 }
   0xc   :  { %v87_v34 = vmax.f32 %v83_v30, 0.0  ;;  %v88_v35 = vmax.f32 %v84_v31, 0.0 }
   0xd   :  { %v89_v39 = vmax.f32 %v85_v36, 0.0  ;;  %v90_v40 = vmax.f32 %v86_v37, 0.0 }
   0xe   :  { %v146_v38 = vpack.c.bf16 %v88_v35, %v87_v34 }
   0xf   :  { %v151_v41 = vpack.c.bf16 %v90_v40, %v89_v39 }
  0x10   :  { %147 = vst [vmem:[%s227_s6] sm:$0xff] %v146_v38  }
  0x11   :  { %155 = vst [vmem:[%s227_s6 + $0x8] sm:$0xff] %v151_v41  }

// kernel: resnet_forward.27
= control target key start
LH: loop header
LB: loop body
LE: loop exit
PB: predicated region body
PF: predicated region fallthrough
CT: control target
= control target key end

     0   :  { %s1660_s1 = inlined_call_operand.vmem [shape: bf16[1152,128], index: 1, kind: input, shape index: {}]   ;;  %s1661_s0 = inlined_call_operand.vmem [shape: bf16[32,1152], index: 0, kind: input, shape index: {}]   ;;  %s1662_s2 = inlined_call_operand.vmem [shape: bf16[32,128], index: 2, kind: output, shape index: {0}]   ;;  %s1663_s3 = inlined_call_operand.vmem [shape: f32[1,1,128], index: 3, kind: output, shape index: {1}]   ;;  %s1664_s4 = inlined_call_operand.vmem [shape: f32[1,1,128], index: 4, kind: output, shape index: {2}]  }
   0x1   :  { %v1255_v0 = vld [vmem:[%s1660_s1 + $0x78] sm:$0xff]   ;;  %v1259_v4 = vld [vmem:[%s1660_s1 + $0x70] sm:$0xff]   ;;  %v1263_v8 = vld [vmem:[%s1660_s1 + $0x68] sm:$0xff]  }
   0x2   :  { %v1256_v1 = vld [vmem:[%s1660_s1 + $0xf8] sm:$0xff]   ;;  %1113 = vmatprep.subr.bf16.mxu0 %v1255_v0  ;;  %v1260_v5 = vld [vmem:[%s1660_s1 + $0xf0] sm:$0xff]   ;;  %v1264_v9 = vld [vmem:[%s1660_s1 + $0xe8] sm:$0xff]  }
   0x3   :  { %v1257_v2 = vld [vmem:[%s1660_s1 + $0x38] sm:$0xff]   ;;  %1141 = vmatprep.subr.bf16.mxu1 %v1256_v1  ;;  %v1261_v6 = vld [vmem:[%s1660_s1 + $0x30] sm:$0xff]   ;;  %v1265_v10 = vld [vmem:[%s1660_s1 + $0x28] sm:$0xff]  }
   0x4   :  { %v1258_v3 = vld [vmem:[%s1660_s1 + $0xb8] sm:$0xff]   ;;  %1114 = vmatpush3.bf16.msra.mxu0 %v1257_v2  ;;  %v1262_v7 = vld [vmem:[%s1660_s1 + $0xb0] sm:$0xff]   ;;  %v1266_v11 = vld [vmem:[%s1660_s1 + $0xa8] sm:$0xff]  }
   0x5   :  { %1142 = vmatpush3.bf16.msra.mxu1 %v1258_v3  ;;  %1115 = vmatprep.subr.bf16.mxu0 %v1259_v4  ;;  %v1267_v12 = vld [vmem:[%s1660_s1 + $0x60] sm:$0xff]   ;;  %v1271_v16 = vld [vmem:[%s1660_s1 + $0x58] sm:$0xff]   ;;  %v1275_v20 = vld [vmem:[%s1660_s1 + $0x50] sm:$0xff]  }
   0x6   :  { %1143 = vmatprep.subr.bf16.mxu1 %v1260_v5  ;;  %v1268_v13 = vld [vmem:[%s1660_s1 + $0xe0] sm:$0xff]   ;;  %v1272_v17 = vld [vmem:[%s1660_s1 + $0xd8] sm:$0xff]   ;;  %v1276_v21 = vld [vmem:[%s1660_s1 + $0xd0] sm:$0xff]  }
   0x7   :  { %v1269_v14 = vld [vmem:[%s1660_s1 + $0x20] sm:$0xff]   ;;  %v1273_v18 = vld [vmem:[%s1660_s1 + $0x18] sm:$0xff]   ;;  %v1277_v22 = vld [vmem:[%s1660_s1 + $0x10] sm:$0xff]  }
   0x8   :  { %1116 = vmatpush3.bf16.msra.mxu0 %v1261_v6  ;;  %v1270_v15 = vld [vmem:[%s1660_s1 + $0xa0] sm:$0xff]   ;;  %v1274_v19 = vld [vmem:[%s1660_s1 + $0x98] sm:$0xff]   ;;  %v1278_v23 = vld [vmem:[%s1660_s1 + $0x90] sm:$0xff]  }
   0x9   :  { %1144 = vmatpush3.bf16.msra.mxu1 %v1262_v7  ;;  %1117 = vmatprep.subr.bf16.mxu0 %v1263_v8  ;;  %v1279_v24 = vld [vmem:[%s1660_s1 + $0x48] sm:$0xff]   ;;  %v1283_v28 = vld [vmem:[%s1660_s1 + $0x40] sm:$0xff]   ;;  %v1293_v36 = vld [vmem:[%s1660_s1 + $0x178] sm:$0xff]  }
   0xa   :  { %1145 = vmatprep.subr.bf16.mxu1 %v1264_v9  ;;  %v1280_v25 = vld [vmem:[%s1660_s1 + $0xc8] sm:$0xff]   ;;  %v1284_v29 = vld [vmem:[%s1660_s1 + $0xc0] sm:$0xff]   ;;  %v1294_v37 = vld [vmem:[%s1660_s1 + $0x138] sm:$0xff]  }
   0xb   :  { %v1281_v26 = vld [vmem:[%s1660_s1 + $0x8] sm:$0xff]   ;;  %v1285_v30 = vld [vmem:[%s1660_s1] sm:$0xff]   ;;  %v1295_v38 = vld [vmem:[%s1660_s1 + $0x1f8] sm:$0xff]  }
   0xc   :  { %1118 = vmatpush3.bf16.msra.mxu0 %v1265_v10  ;;  %v1282_v27 = vld [vmem:[%s1660_s1 + $0x88] sm:$0xff]   ;;  %v1286_v31 = vld [vmem:[%s1660_s1 + $0x80] sm:$0xff]   ;;  %v1296_v39 = vld [vmem:[%s1660_s1 + $0x1b8] sm:$0xff]  }
   0xd   :  { %1146 = vmatpush3.bf16.msra.mxu1 %v1266_v11  ;;  %1119 = vmatprep.subr.bf16.mxu0 %v1267_v12  ;;  %v1287_v32 = vld [vmem:[%s1661_s0] ss:$36 sps:$4 sm:$0xff]   ;;  %v1290_v34 = vld [vmem:[%s1661_s0 + $0x8] ss:$36 sps:$4 sm:$0xff]   ;;  %v1297_v40 = vld [vmem:[%s1660_s1 + $0x170] sm:$0xff]  }
   0xe   :  { %1147 = vmatprep.subr.bf16.mxu1 %v1268_v13  ;;  %v1289_v33 = vld [vmem:[%s1661_s0 + $0x4] ss:$36 sps:$4 sm:$0xff]   ;;  %v1292_v35 = vld [vmem:[%s1661_s0 + $0xc] ss:$36 sps:$4 sm:$0xff]   ;;  %v1309_v52 = vld [vmem:[%s1660_s1 + $0x158] sm:$0xff]  }
   0xf   :  { %735 = vmatprep.mubr.bf16.mxu0 %v1289_v33  ;;  %784 = vmatprep.mubr.bf16.mxu1 %v1292_v35  ;;  %v1298_v41 = vld [vmem:[%s1660_s1 + $0x130] sm:$0xff]   ;;  %v1301_v44 = vld [vmem:[%s1660_s1 + $0x168] sm:$0xff]   ;;  %v1305_v48 = vld [vmem:[%s1660_s1 + $0x160] sm:$0xff]  }
  0x10   :  { %1120 = vmatpush3.bf16.msra.mxu0 %v1269_v14  ;;  %v1299_v42 = vld [vmem:[%s1660_s1 + $0x1f0] sm:$0xff]   ;;  %v1302_v45 = vld [vmem:[%s1660_s1 + $0x128] sm:$0xff]   ;;  %v1306_v49 = vld [vmem:[%s1660_s1 + $0x120] sm:$0xff]  }
  0x11   :  { %1148 = vmatpush3.bf16.msra.mxu1 %v1270_v15  ;;  %1121 = vmatprep.subr.bf16.mxu0 %v1271_v16  ;;  %v1300_v43 = vld [vmem:[%s1660_s1 + $0x1b0] sm:$0xff]   ;;  %v1303_v46 = vld [vmem:[%s1660_s1 + $0x1e8] sm:$0xff]   ;;  %v1307_v50 = vld [vmem:[%s1660_s1 + $0x1e0] sm:$0xff]  }
  0x12   :  { %1149 = vmatprep.subr.bf16.mxu1 %v1272_v17  ;;  %v1304_v47 = vld [vmem:[%s1660_s1 + $0x1a8] sm:$0xff]   ;;  %v1308_v51 = vld [vmem:[%s1660_s1 + $0x1a0] sm:$0xff]   ;;  %v1310_v53 = vld [vmem:[%s1660_s1 + $0x118] sm:$0xff]  }
  0x13   :  { %v1311_v54 = vld [vmem:[%s1661_s0 + $0x4c] ss:$36 sps:$4 sm:$0xff]   ;;  %v1313_v55 = vld [vmem:[%s1661_s0 + $0x54] ss:$36 sps:$4 sm:$0xff]   ;;  %v1327_v4 = vld [vmem:[%s1660_s1 + $0x140] sm:$0xff]  }
  0x14   :  { %1122 = vmatpush3.bf16.msra.mxu0 %v1273_v18  ;;  %v1315_v56 = vld [vmem:[%s1660_s1 + $0x1d8] sm:$0xff]   ;;  %v1316_v57 = vld [vmem:[%s1661_s0 + $0x48] ss:$36 sps:$4 sm:$0xff]   ;;  %v1317_v58 = vld [vmem:[%s1661_s0 + $0x50] ss:$36 sps:$4 sm:$0xff]  }
  0x15   :  { %1150 = vmatpush3.bf16.msra.mxu1 %v1274_v19  ;;  %1123 = vmatprep.subr.bf16.mxu0 %v1275_v20  ;;  %v1318_v59 = vld [vmem:[%s1660_s1 + $0x198] sm:$0xff]   ;;  %v1319_v60 = vld [vmem:[%s1660_s1 + $0x150] sm:$0xff]   ;;  %v1323_v0 = vld [vmem:[%s1660_s1 + $0x148] sm:$0xff]  }
  0x16   :  { %1151 = vmatprep.subr.bf16.mxu1 %v1276_v21  ;;  %v1320_v61 = vld [vmem:[%s1660_s1 + $0x110] sm:$0xff]   ;;  %v1324_v1 = vld [vmem:[%s1660_s1 + $0x108] sm:$0xff]   ;;  %v1328_v5 = vld [vmem:[%s1660_s1 + $0x100] sm:$0xff]  }
  0x17   :  { %v1321_v62 = vld [vmem:[%s1660_s1 + $0x1d0] sm:$0xff]   ;;  %v1325_v2 = vld [vmem:[%s1660_s1 + $0x1c8] sm:$0xff]   ;;  %v1329_v6 = vld [vmem:[%s1660_s1 + $0x1c0] sm:$0xff]  }
  0x18   :  { %1124 = vmatpush3.bf16.msra.mxu0 %v1277_v22  ;;  %v1322_v63 = vld [vmem:[%s1660_s1 + $0x190] sm:$0xff]   ;;  %v1326_v3 = vld [vmem:[%s1660_s1 + $0x188] sm:$0xff]   ;;  %v1333_v9 = vld [vmem:[%s1660_s1 + $0x180] sm:$0xff]  }
  0x19   :  { %1152 = vmatpush3.bf16.msra.mxu1 %v1278_v23  ;;  %1125 = vmatprep.subr.bf16.mxu0 %v1279_v24  ;;  %v1330_v7 = vld [vmem:[%s1661_s0 + $0x10] ss:$36 sps:$4 sm:$0xff]   ;;  %v1334_v10 = vld [vmem:[%s1660_s1 + $0x238] sm:$0xff]   ;;  %v1342_v16 = vld [vmem:[%s1660_s1 + $0x228] sm:$0xff]  }
  0x1a   :  { %1153 = vmatprep.subr.bf16.mxu1 %v1280_v25  ;;  %v1332_v8 = vld [vmem:[%s1661_s0 + $0x14] ss:$36 sps:$4 sm:$0xff]   ;;  %v1337_v12 = vld [vmem:[%s1661_s0 + $0x1c] ss:$36 sps:$4 sm:$0xff]   ;;  %v1343_v17 = vld [vmem:[%s1661_s0 + $0x64] ss:$36 sps:$4 sm:$0xff]  }
  0x1b   :  { %v1335_v11 = vld [vmem:[%s1661_s0 + $0x18] ss:$36 sps:$4 sm:$0xff]   ;;  %v1338_v13 = vld [vmem:[%s1660_s1 + $0x230] sm:$0xff]   ;;  %v1345_v18 = vld [vmem:[%s1661_s0 + $0x60] ss:$36 sps:$4 sm:$0xff]  }
  0x1c   :  { %1126 = vmatpush3.bf16.msra.mxu0 %v1281_v26  ;;  %v1339_v14 = vld [vmem:[%s1661_s0 + $0x5c] ss:$36 sps:$4 sm:$0xff]   ;;  %v1348_v22 = vld [vmem:[%s1660_s1 + $0x210] sm:$0xff]   ;;  %v1349_v23 = vld [vmem:[%s1660_s1 + $0x208] sm:$0xff]  }
  0x1d   :  { %1154 = vmatpush3.bf16.msra.mxu1 %v1282_v27  ;;  %1127 = vmatprep.subr.bf16.mxu0 %v1283_v28  ;;  %v1341_v15 = vld [vmem:[%s1661_s0 + $0x58] ss:$36 sps:$4 sm:$0xff]   ;;  %v1346_v19 = vld [vmem:[%s1660_s1 + $0x220] sm:$0xff]   ;;  %v1352_v25 = vld [vmem:[%s1661_s0 + $0x68] ss:$36 sps:$4 sm:$0xff]  }
  0x1e   :  { %1155 = vmatprep.subr.bf16.mxu1 %v1284_v29  ;;  %v1347_v20 = vld [vmem:[%s1660_s1 + $0x218] sm:$0xff]   ;;  %v1351_v21 = vld [vmem:[%s1661_s0 + $0x20] ss:$36 sps:$4 sm:$0xff]  }
  0x1f   :  { %v1350_v24 = vld [vmem:[%s1660_s1 + $0x200] sm:$0xff]  }
  0x20   :  { %1128 = vmatpush3.bf16.msra.mxu0 %v1285_v30 }
  0x21   :  { %1156 = vmatpush3.bf16.msra.mxu1 %v1286_v31  ;;  %1169 = vmatprep.subr.bf16.mxu0 %v1293_v36 }
  0x22   :  { %1197 = vmatprep.subr.bf16.mxu1 %v1295_v38 }
  0x23   :  { %736 = vmatmul.mubr.bf16.vlgmr.msra.gmra.mxu0 %v1287_v32 }
  0x24   :  { %785 = vmatmul.mubr.bf16.vlgmr.msra.gmra.mxu1 %v1290_v34  ;;  %1170 = vmatpush3.bf16.msra.mxu0 %v1294_v37 }
  0x25   :  { %1198 = vmatpush3.bf16.msra.mxu1 %v1296_v39  ;;  %1171 = vmatprep.subr.bf16.mxu0 %v1297_v40 }
  0x26   :  { %1199 = vmatprep.subr.bf16.mxu1 %v1299_v42  ;;  %743 = vmatprep.mubr.bf16.mxu0 %v1311_v54 }
  0x27   :  { %792 = vmatprep.mubr.bf16.mxu1 %v1313_v55 }
  0x28   :  { %1172 = vmatpush3.bf16.msra.mxu0 %v1298_v41 }
  0x29   :  { %1200 = vmatpush3.bf16.msra.mxu1 %v1300_v43  ;;  %1173 = vmatprep.subr.bf16.mxu0 %v1301_v44 }
  0x2a   :  { %1201 = vmatprep.subr.bf16.mxu1 %v1303_v46 }
  0x2b   :  { %744 = vmatmul.mubr.bf16.gmra.mxu0 %v1316_v57 }
  0x2c   :  { %1174 = vmatpush3.bf16.msra.mxu0 %v1302_v45  ;;  %793 = vmatmul.mubr.bf16.gmra.mxu1 %v1317_v58 }
  0x2d   :  { %1202 = vmatpush3.bf16.msra.mxu1 %v1304_v47  ;;  %1175 = vmatprep.subr.bf16.mxu0 %v1305_v48 }
  0x2e   :  { %1203 = vmatprep.subr.bf16.mxu1 %v1307_v50  ;;  %833 = vmatprep.mubr.bf16.mxu0 %v1332_v8 }
  0x2f   :  { %882 = vmatprep.mubr.bf16.mxu1 %v1337_v12 }
  0x30   :  { %1176 = vmatpush3.bf16.msra.mxu0 %v1306_v49 }
  0x31   :  { %1204 = vmatpush3.bf16.msra.mxu1 %v1308_v51  ;;  %1177 = vmatprep.subr.bf16.mxu0 %v1309_v52 }
  0x32   :  { %1205 = vmatprep.subr.bf16.mxu1 %v1315_v56 }
  0x34   :  { %1178 = vmatpush3.bf16.msra.mxu0 %v1310_v53 }
  0x35   :  { %1206 = vmatpush3.bf16.msra.mxu1 %v1318_v59  ;;  %1179 = vmatprep.subr.bf16.mxu0 %v1319_v60 }
  0x36   :  { %1207 = vmatprep.subr.bf16.mxu1 %v1321_v62 }
  0x38   :  { %1180 = vmatpush3.bf16.msra.mxu0 %v1320_v61 }
  0x39   :  { %1208 = vmatpush3.bf16.msra.mxu1 %v1322_v63  ;;  %1181 = vmatprep.subr.bf16.mxu0 %v1323_v0 }
  0x3a   :  { %1209 = vmatprep.subr.bf16.mxu1 %v1325_v2 }
  0x3c   :  { %1182 = vmatpush3.bf16.msra.mxu0 %v1324_v1 }
  0x3d   :  { %1210 = vmatpush3.bf16.msra.mxu1 %v1326_v3  ;;  %1183 = vmatprep.subr.bf16.mxu0 %v1327_v4 }
  0x3e   :  { %1211 = vmatprep.subr.bf16.mxu1 %v1329_v6 }
  0x40   :  { %1184 = vmatpush3.bf16.msra.mxu0 %v1328_v5 }
  0x41   :  { %1212 = vmatpush3.bf16.msra.mxu1 %v1333_v9  ;;  %1235 = vmatprep.subr.bf16.mxu0 %v1334_v10 }
  0x43   :  { %834 = vmatmul.mubr.bf16.vlgmr.msra.gmra.mxu0 %v1330_v7 }
  0x44   :  { %1236 = vmatpush3.bf16.msra.mxu0 %v1334_v10  ;;  %883 = vmatmul.mubr.bf16.vlgmr.msra.gmra.mxu1 %v1335_v11 }
  0x45   :  { %1237 = vmatprep.subr.bf16.mxu0 %v1338_v13  ;;  %841 = vmatprep.mubr.bf16.mxu0 %v1339_v14 }
  0x46   :  { %890 = vmatprep.mubr.bf16.mxu1 %v1343_v17 }
  0x48   :  { %1238 = vmatpush3.bf16.msra.mxu0 %v1338_v13 }
  0x49   :  { %1239 = vmatprep.subr.bf16.mxu0 %v1342_v16 }
  0x4b   :  { %842 = vmatmul.mubr.bf16.gmra.mxu0 %v1341_v15 }
  0x4c   :  { %1240 = vmatpush3.bf16.msra.mxu0 %v1342_v16  ;;  %891 = vmatmul.mubr.bf16.gmra.mxu1 %v1345_v18 }
  0x4d   :  { %1241 = vmatprep.subr.bf16.mxu0 %v1346_v19  ;;  %1251 = vmatprep.mubr.bf16.mxu0 %v1351_v21 }
  0x50   :  { %1242 = vmatpush3.bf16.msra.mxu0 %v1346_v19 }
  0x51   :  { %1243 = vmatprep.subr.bf16.mxu0 %v1347_v20 }
  0x54   :  { %1244 = vmatpush3.bf16.msra.mxu0 %v1347_v20 }
  0x55   :  { %1245 = vmatprep.subr.bf16.mxu0 %v1348_v22 }
  0x58   :  { %1246 = vmatpush3.bf16.msra.mxu0 %v1348_v22 }
  0x59   :  { %1247 = vmatprep.subr.bf16.mxu0 %v1349_v23 }
  0x5c   :  { %1248 = vmatpush3.bf16.msra.mxu0 %v1349_v23 }
  0x5d   :  { %1249 = vmatprep.subr.bf16.mxu0 %v1350_v24 }
  0x60   :  { %1250 = vmatpush3.bf16.msra.mxu0 %v1350_v24 }
  0x63   :  { %1252 = vmatmul.mubr.bf16.vlgmr.msra.gmra.mxu0 %v1352_v25 }
  0xe3   :  { %v1129_v26 = vpop.f32.mrf.mxu0 }
  0xe4   :  { %v1157_v27 = vpop.f32.mrf.mxu1 }
  0xe5   :  { %v1130_v28 = vpop.f32.mrf.mxu0 }
  0xe6   :  { %v1158_v29 = vpop.f32.mrf.mxu1  ;;  %v1131_v55 = vadd.f32 %v1130_v28, %v1129_v26 }
  0xe7   :  { %v1132_v30 = vpop.f32.mrf.mxu0  ;;  %v1159_v56 = vadd.f32 %v1158_v29, %v1157_v27 }
  0xe8   :  { %v1160_v31 = vpop.f32.mrf.mxu1 }
  0xe9   :  { %v1133_v32 = vpop.f32.mrf.mxu0  ;;  %v787_v4 = vadd.f32 %v1159_v56, %v1131_v55 }
  0xea   :  { %v1161_v34 = vpop.f32.mrf.mxu1  ;;  %v1134_v63 = vadd.f32 %v1133_v32, %v1132_v30 }
  0xeb   :  { %v1135_v33 = vpop.f32.mrf.mxu0  ;;  %v1162_v0 = vadd.f32 %v1161_v34, %v1160_v31 }
  0xec   :  { %v1163_v35 = vpop.f32.mrf.mxu1 }
  0xed   :  { %v1136_v36 = vpop.f32.mrf.mxu0  ;;  %v790_v9 = vadd.f32 %v1162_v0, %v1134_v63 }
  0xee   :  { %v1164_v37 = vpop.f32.mrf.mxu1  ;;  %v1137_v59 = vadd.f32 %v1136_v36, %v1135_v33 }
  0xef   :  { %v1138_v38 = vpop.f32.mrf.mxu0  ;;  %v1165_v60 = vadd.f32 %v1164_v37, %v1163_v35 }
  0xf0   :  { %v1166_v39 = vpop.f32.mrf.mxu1 }
  0xf1   :  { %v1139_v40 = vpop.f32.mrf.mxu0  ;;  %v795_v6 = vadd.f32 %v1165_v60, %v1137_v59 }
  0xf2   :  { %v1167_v42 = vpop.f32.mrf.mxu1  ;;  %v1140_v61 = vadd.f32 %v1139_v40, %v1138_v38 }
  0xf3   :  { %v1168_v62 = vadd.f32 %v1167_v42, %v1166_v39 }
  0xf5   :  { %v798_v7 = vadd.f32 %v1168_v62, %v1140_v61 }
 0x103   :  { %v1185_v41 = vpop.f32.mrf.mxu0 }
 0x104   :  { %v1213_v44 = vpop.f32.mrf.mxu1 }
 0x105   :  { %v1186_v43 = vpop.f32.mrf.mxu0 }
 0x106   :  { %v1214_v46 = vpop.f32.mrf.mxu1  ;;  %v1187_v1 = vadd.f32 %v1186_v43, %v1185_v41 }
 0x107   :  { %v1188_v45 = vpop.f32.mrf.mxu0  ;;  %v1215_v11 = vadd.f32 %v1214_v46, %v1213_v44 }
 0x108   :  { %v1216_v48 = vpop.f32.mrf.mxu1  ;;  %v836_v10 = vadd.f32 %v1187_v1, %v787_v4 }
 0x109   :  { %v1189_v47 = vpop.f32.mrf.mxu0 }
 0x10a   :  { %v1217_v50 = vpop.f32.mrf.mxu1  ;;  %v1190_v8 = vadd.f32 %v1189_v47, %v1188_v45  ;;  %v885_v21 = vadd.f32 %v1215_v11, %v836_v10 }
 0x10b   :  { %v1191_v49 = vpop.f32.mrf.mxu0  ;;  %v1218_v18 = vadd.f32 %v1217_v50, %v1216_v48 }
 0x10c   :  { %v1219_v52 = vpop.f32.mrf.mxu1  ;;  %v839_v17 = vadd.f32 %v1190_v8, %v790_v9 }
 0x10d   :  { %v1192_v51 = vpop.f32.mrf.mxu0 }
 0x10e   :  { %v1220_v54 = vpop.f32.mrf.mxu1  ;;  %v1193_v2 = vadd.f32 %v1192_v51, %v1191_v49  ;;  %v888_v27 = vadd.f32 %v1218_v18, %v839_v17 }
 0x10f   :  { %v1194_v53 = vpop.f32.mrf.mxu0  ;;  %v1221_v13 = vadd.f32 %v1220_v54, %v1219_v52 }
 0x110   :  { %v1222_v58 = vpop.f32.mrf.mxu1  ;;  %v844_v12 = vadd.f32 %v1193_v2, %v795_v6 }
 0x111   :  { %v1195_v57 = vpop.f32.mrf.mxu0 }
 0x112   :  { %v1196_v3 = vadd.f32 %v1195_v57, %v1194_v53  ;;  %v1223_v5 = vpop.f32.mrf.mxu1  ;;  %v893_v20 = vadd.f32 %v1221_v13, %v844_v12 }
 0x113   :  { %v1224_v15 = vadd.f32 %v1223_v5, %v1222_v58 }
 0x114   :  { %v847_v14 = vadd.f32 %v1196_v3, %v798_v7 }
 0x116   :  { %v896_v22 = vadd.f32 %v1224_v15, %v847_v14 }
 0x123   :  { %v1253_v16 = vpop.f32.mrf.mxu0 }
 0x124   :  { %v942_v24 = vadd.f32 %v1253_v16, %v893_v20 }
 0x125   :  { %v933_v19 = vpop.f32.mrf.mxu0 }
 0x126   :  { %v934_v25 = vadd.f32 %v933_v19, %v885_v21  ;;  %v980_v35 = vmul.f32 %v942_v24, %v942_v24 }
 0x127   :  { %v1254_v23 = vpop.f32.mrf.mxu0 }
 0x128   :  { %v945_v26 = vadd.f32 %v1254_v23, %v896_v22  ;;  %v978_v31 = vmul.f32 %v934_v25, %v934_v25 }
 0x129   :  { %v936_v28 = vpop.f32.mrf.mxu0 }
 0x12a   :  { %v1110_v29 = vpack.c.bf16 %v945_v26, %v942_v24  ;;  %v937_v30 = vadd.f32 %v936_v28, %v888_v27  ;;  %v981_v38 = vmul.f32 %v945_v26, %v945_v26 }
 0x12c   :  { %1112 = vst [vmem:[%s1662_s2 + $0x8] sm:$0xff] %v1110_v29   ;;  %v1105_v32 = vpack.c.bf16 %v937_v30, %v934_v25  ;;  %v968_v33 = vadd.f32 %v937_v30, %v934_v25  ;;  %v979_v34 = vmul.f32 %v937_v30, %v937_v30 }
 0x12e   :  { %1106 = vst [vmem:[%s1662_s2] sm:$0xff] %v1105_v32   ;;  %v969_v36 = vadd.f32 %v968_v33, %v942_v24  ;;  %v982_v37 = vadd.f32 %v979_v34, %v978_v31 }
 0x130   :  { %v970_v39 = vadd.f32 %v969_v36, %v945_v26  ;;  %v983_v40 = vadd.f32 %v982_v37, %v980_v35 }
 0x132   :  { %v971_v41 = vrot.slane %v970_v39, 4  ;;  %v984_v42 = vadd.f32 %v983_v40, %v981_v38 }
 0x134   :  { %v972_v43 = vadd.f32 %v971_v41, %v970_v39  ;;  %v985_v44 = vrot.slane %v984_v42, 4 }
 0x136   :  { %v973_v45 = vrot.slane %v972_v43, 2  ;;  %v986_v46 = vadd.f32 %v985_v44, %v984_v42 }
 0x138   :  { %v974_v47 = vadd.f32 %v973_v45, %v972_v43  ;;  %v987_v48 = vrot.slane %v986_v46, 2 }
 0x13a   :  { %v975_v49 = vrot.slane %v974_v47, 1  ;;  %v988_v50 = vadd.f32 %v987_v48, %v986_v46 }
 0x13c   :  { %v976_v51 = vadd.f32 %v975_v49, %v974_v47  ;;  %v989_v52 = vrot.slane %v988_v50, 1 }
 0x13e   :  { %977 = vst [vmem:[%s1663_s3] sm:$0x1] %v976_v51  ;;  %v990_v53 = vadd.f32 %v989_v52, %v988_v50 }
 0x140   :  { %991 = vst [vmem:[%s1664_s4] sm:$0x1] %v990_v53 }

// kernel: resnet_forward.29
= control target key start
LH: loop header
LB: loop body
LE: loop exit
PB: predicated region body
PF: predicated region fallthrough
CT: control target
= control target key end

     0   :  { %s2845_s15 = smov 0   ;;  %s2847_s16 = smov 0   ;;  %s3399_s0 = inlined_call_operand.vmem [shape: bf16[16,1152], index: 0, kind: input, shape index: {}]   ;;  %s3400_s1 = inlined_call_operand.vmem [shape: bf16[1152,512], index: 1, kind: input, shape index: {}]   ;;  %s3401_s2 = inlined_call_operand.vmem [shape: bf16[16,512], index: 2, kind: output, shape index: {0}]   ;;  %s3402_s3 = inlined_call_operand.vmem [shape: f32[1,1,512], index: 3, kind: output, shape index: {1}]   ;;  %s3403_s4 = inlined_call_operand.vmem [shape: f32[1,1,512], index: 4, kind: output, shape index: {2}]  }
   0x1   :  { %s2849_s17 = smov 0   ;;  %s2851_s18 = smov 0  }
   0x2   :  { %s2853_s19 = smov 0  }
   0x3 LB: > { %s24_s20 = sadd.s32 1, %s2812_s18  ;;  %s2330_s21 = sadd.s32 4294967295, %s2816_s19   ;;  %s2816_s19 = sphi %s2853_s19, %s15_s19   ;;  %s2812_s18 = sphi %s2851_s18, %s3408_s18   ;;  %s2808_s17 = sphi %s2849_s17, %s3407_s17   ;;  %s2804_s16 = sphi %s2847_s16, %s3406_s16   ;;  %s2800_s15 = sphi %s2845_s15, %s3405_s15  }
   0x4   : > { %p25_p0 = scmp.ge.s32.totalorder %s24_s20, 2  ;;  %p67_p1 = scmp.ne.s32.totalorder %s2804_s16, %s2800_s15 }
   0x5   : > { %p68_p2 = scmp.eq.s32.totalorder %s2816_s19, 0  ;;  %p99_p4 = scmp.eq.s32.totalorder %s2330_s21, 1 }
   0x6   : > { %s3410_s20 = smov (%p25_p0, %s24_s20), 0  ;;  %s60_s23 = sadd.s32 1, %s2804_s16 }
   0x7   : > { %p69_p3 = por %p68_p2, %p67_p1  ;;  %s57_s22 = ssub.s32 %s2812_s18, %s3410_s20 }
   0x8   : > { %p58_p5 = scmp.eq.s32.totalorder %s57_s22, 0  ;;  %p2880_p6 = por %p99_p4, %p67_p1 }
   0x9   : > { %p2334_p7 = scmp.ge.s32.totalorder %s2816_s19, 2 }
   0xa   : > { %s2885_s25 = scalar_select %p58_p5, %s2804_s16, %s60_s23  }
   0xb   : > { %187 = sbr.rel (%p2334_p7) target bundleno = 92 (0x5c), region = 20 }
  0x10   : > { %190 = sbr.rel (!%p69_p3) target bundleno = 92 (0x5c), region = 24  ;;  %s192_s26 = sand.u32 (%p69_p3), 1, %s2804_s16  }
  0x11   : > { %s2501_s27 = sshll.u32 (%p69_p3), %s2812_s18, 3  ;;  %s2505_s28 = smul.u32 (%p69_p3), 1152, %s192_s26 }
  0x12   : > { %s2893_s5 = scalar_lea.vmem (%p69_p3), %s3400_s1, %s2501_s27 }
  0x13   : > { %v512_v0 = vld [vmem:[%s2893_s5] sm:$0xff] (%p69_p3)  ;;  %v514_v1 = vld [vmem:[%s2893_s5 + $0x10] sm:$0xff] (%p69_p3)  ;;  %s2901_s6 = scalar_lea.vmem (%p69_p3), [#allocation2], %s2505_s28 }
  0x14   : > { %v516_v2 = vld [vmem:[%s2893_s5 + $0x20] sm:$0xff] (%p69_p3)  ;;  %v518_v3 = vld [vmem:[%s2893_s5 + $0x30] sm:$0xff] (%p69_p3)  ;;  %513 = vst [vmem:[%s2901_s6] sm:$0xff] (%p69_p3), %v512_v0  ;;  %515 = vst [vmem:[%s2901_s6 + $0x8] sm:$0xff] (%p69_p3), %v514_v1 }
  0x15   : > { %v520_v4 = vld [vmem:[%s2893_s5 + $0x40] sm:$0xff]  ;;  %v522_v5 = vld [vmem:[%s2893_s5 + $0x50] sm:$0xff]  ;;  %517 = vst [vmem:[%s2901_s6 + $0x10] sm:$0xff] %v516_v2  ;;  %519 = vst [vmem:[%s2901_s6 + $0x18] sm:$0xff] %v518_v3 }
  0x16   : > { %521 = vst [vmem:[%s2901_s6 + $0x20] sm:$0xff] %v520_v4  ;;  %523 = vst [vmem:[%s2901_s6 + $0x28] sm:$0xff] %v522_v5  ;;  %v524_v6 = vld [vmem:[%s2893_s5 + $0x60] sm:$0xff]  ;;  %v526_v7 = vld [vmem:[%s2893_s5 + $0x70] sm:$0xff] }
  0x17   : > { %v528_v8 = vld [vmem:[%s2893_s5 + $0x80] sm:$0xff]  ;;  %525 = vst [vmem:[%s2901_s6 + $0x30] sm:$0xff] %v524_v6  ;;  %527 = vst [vmem:[%s2901_s6 + $0x38] sm:$0xff] %v526_v7  ;;  %v530_v9 = vld [vmem:[%s2893_s5 + $0x90] sm:$0xff] }
  0x18   : > { %529 = vst [vmem:[%s2901_s6 + $0x40] sm:$0xff] %v528_v8  ;;  %v532_v10 = vld [vmem:[%s2893_s5 + $0xa0] sm:$0xff]  ;;  %v534_v11 = vld [vmem:[%s2893_s5 + $0xb0] sm:$0xff]  ;;  %531 = vst [vmem:[%s2901_s6 + $0x48] sm:$0xff] %v530_v9 }
  0x19   : > { %533 = vst [vmem:[%s2901_s6 + $0x50] sm:$0xff] %v532_v10  ;;  %535 = vst [vmem:[%s2901_s6 + $0x58] sm:$0xff] %v534_v11  ;;  %v536_v12 = vld [vmem:[%s2893_s5 + $0xc0] sm:$0xff]  ;;  %v538_v13 = vld [vmem:[%s2893_s5 + $0xd0] sm:$0xff] }
  0x1a   : > { %v540_v14 = vld [vmem:[%s2893_s5 + $0xe0] sm:$0xff]  ;;  %537 = vst [vmem:[%s2901_s6 + $0x60] sm:$0xff] %v536_v12  ;;  %539 = vst [vmem:[%s2901_s6 + $0x68] sm:$0xff] %v538_v13  ;;  %v542_v15 = vld [vmem:[%s2893_s5 + $0xf0] sm:$0xff] }
  0x1b   : > { %541 = vst [vmem:[%s2901_s6 + $0x70] sm:$0xff] %v540_v14  ;;  %v544_v16 = vld [vmem:[%s2893_s5 + $0x100] sm:$0xff]  ;;  %v546_v17 = vld [vmem:[%s2893_s5 + $0x110] sm:$0xff]  ;;  %543 = vst [vmem:[%s2901_s6 + $0x78] sm:$0xff] %v542_v15 }
  0x1c   : > { %545 = vst [vmem:[%s2901_s6 + $0x80] sm:$0xff] %v544_v16  ;;  %547 = vst [vmem:[%s2901_s6 + $0x88] sm:$0xff] %v546_v17  ;;  %v548_v18 = vld [vmem:[%s2893_s5 + $0x120] sm:$0xff]  ;;  %v550_v19 = vld [vmem:[%s2893_s5 + $0x130] sm:$0xff] }
  0x1d   : > { %v552_v20 = vld [vmem:[%s2893_s5 + $0x140] sm:$0xff]  ;;  %549 = vst [vmem:[%s2901_s6 + $0x90] sm:$0xff] %v548_v18  ;;  %551 = vst [vmem:[%s2901_s6 + $0x98] sm:$0xff] %v550_v19  ;;  %v554_v21 = vld [vmem:[%s2893_s5 + $0x150] sm:$0xff] }
  0x1e   : > { %553 = vst [vmem:[%s2901_s6 + $0xa0] sm:$0xff] %v552_v20  ;;  %v556_v22 = vld [vmem:[%s2893_s5 + $0x160] sm:$0xff]  ;;  %v558_v23 = vld [vmem:[%s2893_s5 + $0x170] sm:$0xff]  ;;  %555 = vst [vmem:[%s2901_s6 + $0xa8] sm:$0xff] %v554_v21 }
  0x1f   : > { %557 = vst [vmem:[%s2901_s6 + $0xb0] sm:$0xff] %v556_v22  ;;  %559 = vst [vmem:[%s2901_s6 + $0xb8] sm:$0xff] %v558_v23  ;;  %v560_v24 = vld [vmem:[%s2893_s5 + $0x180] sm:$0xff]  ;;  %v562_v25 = vld [vmem:[%s2893_s5 + $0x190] sm:$0xff] }
  0x20   : > { %v564_v26 = vld [vmem:[%s2893_s5 + $0x1a0] sm:$0xff]  ;;  %561 = vst [vmem:[%s2901_s6 + $0xc0] sm:$0xff] %v560_v24  ;;  %563 = vst [vmem:[%s2901_s6 + $0xc8] sm:$0xff] %v562_v25  ;;  %v566_v27 = vld [vmem:[%s2893_s5 + $0x1b0] sm:$0xff] }
  0x21   : > { %565 = vst [vmem:[%s2901_s6 + $0xd0] sm:$0xff] %v564_v26  ;;  %v568_v28 = vld [vmem:[%s2893_s5 + $0x1c0] sm:$0xff]  ;;  %v570_v29 = vld [vmem:[%s2893_s5 + $0x1d0] sm:$0xff]  ;;  %567 = vst [vmem:[%s2901_s6 + $0xd8] sm:$0xff] %v566_v27 }
  0x22   : > { %569 = vst [vmem:[%s2901_s6 + $0xe0] sm:$0xff] %v568_v28  ;;  %571 = vst [vmem:[%s2901_s6 + $0xe8] sm:$0xff] %v570_v29  ;;  %v572_v30 = vld [vmem:[%s2893_s5 + $0x1e0] sm:$0xff]  ;;  %v574_v31 = vld [vmem:[%s2893_s5 + $0x1f0] sm:$0xff] }
  0x23   : > { %v576_v32 = vld [vmem:[%s2893_s5 + $0x200] sm:$0xff]  ;;  %573 = vst [vmem:[%s2901_s6 + $0xf0] sm:$0xff] %v572_v30  ;;  %575 = vst [vmem:[%s2901_s6 + $0xf8] sm:$0xff] %v574_v31  ;;  %v578_v33 = vld [vmem:[%s2893_s5 + $0x210] sm:$0xff] }
  0x24   : > { %577 = vst [vmem:[%s2901_s6 + $0x100] sm:$0xff] %v576_v32  ;;  %v580_v34 = vld [vmem:[%s2893_s5 + $0x220] sm:$0xff]  ;;  %v582_v35 = vld [vmem:[%s2893_s5 + $0x230] sm:$0xff]  ;;  %579 = vst [vmem:[%s2901_s6 + $0x108] sm:$0xff] %v578_v33 }
  0x25   : > { %581 = vst [vmem:[%s2901_s6 + $0x110] sm:$0xff] %v580_v34  ;;  %583 = vst [vmem:[%s2901_s6 + $0x118] sm:$0xff] %v582_v35  ;;  %v584_v36 = vld [vmem:[%s2893_s5 + $0x240] sm:$0xff]  ;;  %v586_v37 = vld [vmem:[%s2893_s5 + $0x250] sm:$0xff] }
  0x26   : > { %v588_v38 = vld [vmem:[%s2893_s5 + $0x260] sm:$0xff]  ;;  %585 = vst [vmem:[%s2901_s6 + $0x120] sm:$0xff] %v584_v36  ;;  %587 = vst [vmem:[%s2901_s6 + $0x128] sm:$0xff] %v586_v37  ;;  %v590_v39 = vld [vmem:[%s2893_s5 + $0x270] sm:$0xff] }
  0x27   : > { %589 = vst [vmem:[%s2901_s6 + $0x130] sm:$0xff] %v588_v38  ;;  %v592_v40 = vld [vmem:[%s2893_s5 + $0x280] sm:$0xff]  ;;  %v594_v41 = vld [vmem:[%s2893_s5 + $0x290] sm:$0xff]  ;;  %591 = vst [vmem:[%s2901_s6 + $0x138] sm:$0xff] %v590_v39 }
  0x28   : > { %593 = vst [vmem:[%s2901_s6 + $0x140] sm:$0xff] %v592_v40  ;;  %595 = vst [vmem:[%s2901_s6 + $0x148] sm:$0xff] %v594_v41  ;;  %v596_v42 = vld [vmem:[%s2893_s5 + $0x2a0] sm:$0xff]  ;;  %v598_v43 = vld [vmem:[%s2893_s5 + $0x2b0] sm:$0xff] }
  0x29   : > { %v600_v44 = vld [vmem:[%s2893_s5 + $0x2c0] sm:$0xff]  ;;  %597 = vst [vmem:[%s2901_s6 + $0x150] sm:$0xff] %v596_v42  ;;  %599 = vst [vmem:[%s2901_s6 + $0x158] sm:$0xff] %v598_v43  ;;  %v602_v45 = vld [vmem:[%s2893_s5 + $0x2d0] sm:$0xff] }
  0x2a   : > { %601 = vst [vmem:[%s2901_s6 + $0x160] sm:$0xff] %v600_v44  ;;  %v604_v46 = vld [vmem:[%s2893_s5 + $0x2e0] sm:$0xff]  ;;  %v606_v47 = vld [vmem:[%s2893_s5 + $0x2f0] sm:$0xff]  ;;  %603 = vst [vmem:[%s2901_s6 + $0x168] sm:$0xff] %v602_v45 }
  0x2b   : > { %605 = vst [vmem:[%s2901_s6 + $0x170] sm:$0xff] %v604_v46  ;;  %607 = vst [vmem:[%s2901_s6 + $0x178] sm:$0xff] %v606_v47  ;;  %v608_v48 = vld [vmem:[%s2893_s5 + $0x300] sm:$0xff]  ;;  %v610_v49 = vld [vmem:[%s2893_s5 + $0x310] sm:$0xff] }
  0x2c   : > { %v612_v50 = vld [vmem:[%s2893_s5 + $0x320] sm:$0xff]  ;;  %609 = vst [vmem:[%s2901_s6 + $0x180] sm:$0xff] %v608_v48  ;;  %611 = vst [vmem:[%s2901_s6 + $0x188] sm:$0xff] %v610_v49  ;;  %v614_v51 = vld [vmem:[%s2893_s5 + $0x330] sm:$0xff] }
  0x2d   : > { %613 = vst [vmem:[%s2901_s6 + $0x190] sm:$0xff] %v612_v50  ;;  %v616_v52 = vld [vmem:[%s2893_s5 + $0x340] sm:$0xff]  ;;  %v618_v53 = vld [vmem:[%s2893_s5 + $0x350] sm:$0xff]  ;;  %615 = vst [vmem:[%s2901_s6 + $0x198] sm:$0xff] %v614_v51 }
  0x2e   : > { %617 = vst [vmem:[%s2901_s6 + $0x1a0] sm:$0xff] %v616_v52  ;;  %619 = vst [vmem:[%s2901_s6 + $0x1a8] sm:$0xff] %v618_v53  ;;  %v620_v54 = vld [vmem:[%s2893_s5 + $0x360] sm:$0xff]  ;;  %v622_v55 = vld [vmem:[%s2893_s5 + $0x370] sm:$0xff] }
  0x2f   : > { %v624_v56 = vld [vmem:[%s2893_s5 + $0x380] sm:$0xff]  ;;  %621 = vst [vmem:[%s2901_s6 + $0x1b0] sm:$0xff] %v620_v54  ;;  %623 = vst [vmem:[%s2901_s6 + $0x1b8] sm:$0xff] %v622_v55  ;;  %v626_v57 = vld [vmem:[%s2893_s5 + $0x390] sm:$0xff] }
  0x30   : > { %625 = vst [vmem:[%s2901_s6 + $0x1c0] sm:$0xff] %v624_v56  ;;  %v628_v58 = vld [vmem:[%s2893_s5 + $0x3a0] sm:$0xff]  ;;  %v630_v59 = vld [vmem:[%s2893_s5 + $0x3b0] sm:$0xff]  ;;  %627 = vst [vmem:[%s2901_s6 + $0x1c8] sm:$0xff] %v626_v57 }
  0x31   : > { %629 = vst [vmem:[%s2901_s6 + $0x1d0] sm:$0xff] %v628_v58  ;;  %631 = vst [vmem:[%s2901_s6 + $0x1d8] sm:$0xff] %v630_v59  ;;  %v632_v60 = vld [vmem:[%s2893_s5 + $0x3c0] sm:$0xff]  ;;  %v634_v61 = vld [vmem:[%s2893_s5 + $0x3d0] sm:$0xff] }
  0x32   : > { %v636_v62 = vld [vmem:[%s2893_s5 + $0x3e0] sm:$0xff]  ;;  %633 = vst [vmem:[%s2901_s6 + $0x1e0] sm:$0xff] %v632_v60  ;;  %635 = vst [vmem:[%s2901_s6 + $0x1e8] sm:$0xff] %v634_v61  ;;  %v638_v63 = vld [vmem:[%s2893_s5 + $0x3f0] sm:$0xff] }
  0x33   : > { %637 = vst [vmem:[%s2901_s6 + $0x1f0] sm:$0xff] %v636_v62  ;;  %v640_v0 = vld [vmem:[%s2893_s5 + $0x400] sm:$0xff]  ;;  %v642_v1 = vld [vmem:[%s2893_s5 + $0x410] sm:$0xff]  ;;  %639 = vst [vmem:[%s2901_s6 + $0x1f8] sm:$0xff] %v638_v63 }
  0x34   : > { %641 = vst [vmem:[%s2901_s6 + $0x200] sm:$0xff] %v640_v0  ;;  %643 = vst [vmem:[%s2901_s6 + $0x208] sm:$0xff] %v642_v1  ;;  %v644_v2 = vld [vmem:[%s2893_s5 + $0x420] sm:$0xff]  ;;  %v646_v3 = vld [vmem:[%s2893_s5 + $0x430] sm:$0xff] }
  0x35   : > { %v648_v4 = vld [vmem:[%s2893_s5 + $0x440] sm:$0xff]  ;;  %645 = vst [vmem:[%s2901_s6 + $0x210] sm:$0xff] %v644_v2  ;;  %647 = vst [vmem:[%s2901_s6 + $0x218] sm:$0xff] %v646_v3  ;;  %v650_v5 = vld [vmem:[%s2893_s5 + $0x450] sm:$0xff] }
  0x36   : > { %649 = vst [vmem:[%s2901_s6 + $0x220] sm:$0xff] %v648_v4  ;;  %v652_v6 = vld [vmem:[%s2893_s5 + $0x460] sm:$0xff]  ;;  %v654_v7 = vld [vmem:[%s2893_s5 + $0x470] sm:$0xff]  ;;  %651 = vst [vmem:[%s2901_s6 + $0x228] sm:$0xff] %v650_v5 }
  0x37   : > { %653 = vst [vmem:[%s2901_s6 + $0x230] sm:$0xff] %v652_v6  ;;  %655 = vst [vmem:[%s2901_s6 + $0x238] sm:$0xff] %v654_v7  ;;  %v656_v8 = vld [vmem:[%s2893_s5 + $0x480] sm:$0xff]  ;;  %v658_v9 = vld [vmem:[%s2893_s5 + $0x490] sm:$0xff] }
  0x38   : > { %v660_v10 = vld [vmem:[%s2893_s5 + $0x4a0] sm:$0xff]  ;;  %657 = vst [vmem:[%s2901_s6 + $0x240] sm:$0xff] %v656_v8  ;;  %659 = vst [vmem:[%s2901_s6 + $0x248] sm:$0xff] %v658_v9  ;;  %v662_v11 = vld [vmem:[%s2893_s5 + $0x4b0] sm:$0xff] }
  0x39   : > { %661 = vst [vmem:[%s2901_s6 + $0x250] sm:$0xff] %v660_v10  ;;  %v664_v12 = vld [vmem:[%s2893_s5 + $0x4c0] sm:$0xff]  ;;  %v666_v13 = vld [vmem:[%s2893_s5 + $0x4d0] sm:$0xff]  ;;  %663 = vst [vmem:[%s2901_s6 + $0x258] sm:$0xff] %v662_v11 }
  0x3a   : > { %665 = vst [vmem:[%s2901_s6 + $0x260] sm:$0xff] %v664_v12  ;;  %667 = vst [vmem:[%s2901_s6 + $0x268] sm:$0xff] %v666_v13  ;;  %v668_v14 = vld [vmem:[%s2893_s5 + $0x4e0] sm:$0xff]  ;;  %v670_v15 = vld [vmem:[%s2893_s5 + $0x4f0] sm:$0xff] }
  0x3b   : > { %v672_v16 = vld [vmem:[%s2893_s5 + $0x500] sm:$0xff]  ;;  %669 = vst [vmem:[%s2901_s6 + $0x270] sm:$0xff] %v668_v14  ;;  %671 = vst [vmem:[%s2901_s6 + $0x278] sm:$0xff] %v670_v15  ;;  %v674_v17 = vld [vmem:[%s2893_s5 + $0x510] sm:$0xff] }
  0x3c   : > { %673 = vst [vmem:[%s2901_s6 + $0x280] sm:$0xff] %v672_v16  ;;  %v676_v18 = vld [vmem:[%s2893_s5 + $0x520] sm:$0xff]  ;;  %v678_v19 = vld [vmem:[%s2893_s5 + $0x530] sm:$0xff]  ;;  %675 = vst [vmem:[%s2901_s6 + $0x288] sm:$0xff] %v674_v17 }
  0x3d   : > { %677 = vst [vmem:[%s2901_s6 + $0x290] sm:$0xff] %v676_v18  ;;  %679 = vst [vmem:[%s2901_s6 + $0x298] sm:$0xff] %v678_v19  ;;  %v680_v20 = vld [vmem:[%s2893_s5 + $0x540] sm:$0xff]  ;;  %v682_v21 = vld [vmem:[%s2893_s5 + $0x550] sm:$0xff] }
  0x3e   : > { %v684_v22 = vld [vmem:[%s2893_s5 + $0x560] sm:$0xff]  ;;  %681 = vst [vmem:[%s2901_s6 + $0x2a0] sm:$0xff] %v680_v20  ;;  %683 = vst [vmem:[%s2901_s6 + $0x2a8] sm:$0xff] %v682_v21  ;;  %v686_v23 = vld [vmem:[%s2893_s5 + $0x570] sm:$0xff] }
  0x3f   : > { %685 = vst [vmem:[%s2901_s6 + $0x2b0] sm:$0xff] %v684_v22  ;;  %v688_v24 = vld [vmem:[%s2893_s5 + $0x580] sm:$0xff]  ;;  %v690_v25 = vld [vmem:[%s2893_s5 + $0x590] sm:$0xff]  ;;  %687 = vst [vmem:[%s2901_s6 + $0x2b8] sm:$0xff] %v686_v23 }
  0x40   : > { %689 = vst [vmem:[%s2901_s6 + $0x2c0] sm:$0xff] %v688_v24  ;;  %691 = vst [vmem:[%s2901_s6 + $0x2c8] sm:$0xff] %v690_v25  ;;  %v692_v26 = vld [vmem:[%s2893_s5 + $0x5a0] sm:$0xff]  ;;  %v694_v27 = vld [vmem:[%s2893_s5 + $0x5b0] sm:$0xff] }
  0x41   : > { %v696_v28 = vld [vmem:[%s2893_s5 + $0x5c0] sm:$0xff]  ;;  %693 = vst [vmem:[%s2901_s6 + $0x2d0] sm:$0xff] %v692_v26  ;;  %695 = vst [vmem:[%s2901_s6 + $0x2d8] sm:$0xff] %v694_v27  ;;  %v698_v29 = vld [vmem:[%s2893_s5 + $0x5d0] sm:$0xff] }
  0x42   : > { %697 = vst [vmem:[%s2901_s6 + $0x2e0] sm:$0xff] %v696_v28  ;;  %v700_v30 = vld [vmem:[%s2893_s5 + $0x5e0] sm:$0xff]  ;;  %v702_v31 = vld [vmem:[%s2893_s5 + $0x5f0] sm:$0xff]  ;;  %699 = vst [vmem:[%s2901_s6 + $0x2e8] sm:$0xff] %v698_v29 }
  0x43   : > { %701 = vst [vmem:[%s2901_s6 + $0x2f0] sm:$0xff] %v700_v30  ;;  %703 = vst [vmem:[%s2901_s6 + $0x2f8] sm:$0xff] %v702_v31  ;;  %v704_v32 = vld [vmem:[%s2893_s5 + $0x600] sm:$0xff]  ;;  %v706_v33 = vld [vmem:[%s2893_s5 + $0x610] sm:$0xff] }
  0x44   : > { %v708_v34 = vld [vmem:[%s2893_s5 + $0x620] sm:$0xff]  ;;  %705 = vst [vmem:[%s2901_s6 + $0x300] sm:$0xff] %v704_v32  ;;  %707 = vst [vmem:[%s2901_s6 + $0x308] sm:$0xff] %v706_v33  ;;  %v710_v35 = vld [vmem:[%s2893_s5 + $0x630] sm:$0xff] }
  0x45   : > { %709 = vst [vmem:[%s2901_s6 + $0x310] sm:$0xff] %v708_v34  ;;  %v712_v36 = vld [vmem:[%s2893_s5 + $0x640] sm:$0xff]  ;;  %v714_v37 = vld [vmem:[%s2893_s5 + $0x650] sm:$0xff]  ;;  %711 = vst [vmem:[%s2901_s6 + $0x318] sm:$0xff] %v710_v35 }
  0x46   : > { %713 = vst [vmem:[%s2901_s6 + $0x320] sm:$0xff] %v712_v36  ;;  %715 = vst [vmem:[%s2901_s6 + $0x328] sm:$0xff] %v714_v37  ;;  %v716_v38 = vld [vmem:[%s2893_s5 + $0x660] sm:$0xff]  ;;  %v718_v39 = vld [vmem:[%s2893_s5 + $0x670] sm:$0xff] }
  0x47   : > { %v720_v40 = vld [vmem:[%s2893_s5 + $0x680] sm:$0xff]  ;;  %717 = vst [vmem:[%s2901_s6 + $0x330] sm:$0xff] %v716_v38  ;;  %719 = vst [vmem:[%s2901_s6 + $0x338] sm:$0xff] %v718_v39  ;;  %v722_v41 = vld [vmem:[%s2893_s5 + $0x690] sm:$0xff] }
  0x48   : > { %721 = vst [vmem:[%s2901_s6 + $0x340] sm:$0xff] %v720_v40  ;;  %v724_v42 = vld [vmem:[%s2893_s5 + $0x6a0] sm:$0xff]  ;;  %v726_v43 = vld [vmem:[%s2893_s5 + $0x6b0] sm:$0xff]  ;;  %723 = vst [vmem:[%s2901_s6 + $0x348] sm:$0xff] %v722_v41 }
  0x49   : > { %725 = vst [vmem:[%s2901_s6 + $0x350] sm:$0xff] %v724_v42  ;;  %727 = vst [vmem:[%s2901_s6 + $0x358] sm:$0xff] %v726_v43  ;;  %v728_v44 = vld [vmem:[%s2893_s5 + $0x6c0] sm:$0xff]  ;;  %v730_v45 = vld [vmem:[%s2893_s5 + $0x6d0] sm:$0xff] }
  0x4a   : > { %v732_v46 = vld [vmem:[%s2893_s5 + $0x6e0] sm:$0xff]  ;;  %729 = vst [vmem:[%s2901_s6 + $0x360] sm:$0xff] %v728_v44  ;;  %731 = vst [vmem:[%s2901_s6 + $0x368] sm:$0xff] %v730_v45  ;;  %v734_v47 = vld [vmem:[%s2893_s5 + $0x6f0] sm:$0xff] }
  0x4b   : > { %733 = vst [vmem:[%s2901_s6 + $0x370] sm:$0xff] %v732_v46  ;;  %v736_v48 = vld [vmem:[%s2893_s5 + $0x700] sm:$0xff]  ;;  %v738_v49 = vld [vmem:[%s2893_s5 + $0x710] sm:$0xff]  ;;  %735 = vst [vmem:[%s2901_s6 + $0x378] sm:$0xff] %v734_v47 }
  0x4c   : > { %737 = vst [vmem:[%s2901_s6 + $0x380] sm:$0xff] %v736_v48  ;;  %739 = vst [vmem:[%s2901_s6 + $0x388] sm:$0xff] %v738_v49  ;;  %v740_v50 = vld [vmem:[%s2893_s5 + $0x720] sm:$0xff]  ;;  %v742_v51 = vld [vmem:[%s2893_s5 + $0x730] sm:$0xff] }
  0x4d   : > { %v744_v52 = vld [vmem:[%s2893_s5 + $0x740] sm:$0xff]  ;;  %741 = vst [vmem:[%s2901_s6 + $0x390] sm:$0xff] %v740_v50  ;;  %743 = vst [vmem:[%s2901_s6 + $0x398] sm:$0xff] %v742_v51  ;;  %v746_v53 = vld [vmem:[%s2893_s5 + $0x750] sm:$0xff] }
  0x4e   : > { %745 = vst [vmem:[%s2901_s6 + $0x3a0] sm:$0xff] %v744_v52  ;;  %v748_v54 = vld [vmem:[%s2893_s5 + $0x760] sm:$0xff]  ;;  %v750_v55 = vld [vmem:[%s2893_s5 + $0x770] sm:$0xff]  ;;  %747 = vst [vmem:[%s2901_s6 + $0x3a8] sm:$0xff] %v746_v53 }
  0x4f   : > { %749 = vst [vmem:[%s2901_s6 + $0x3b0] sm:$0xff] %v748_v54  ;;  %751 = vst [vmem:[%s2901_s6 + $0x3b8] sm:$0xff] %v750_v55  ;;  %v752_v56 = vld [vmem:[%s2893_s5 + $0x780] sm:$0xff]  ;;  %v754_v57 = vld [vmem:[%s2893_s5 + $0x790] sm:$0xff] }
  0x50   : > { %v756_v58 = vld [vmem:[%s2893_s5 + $0x7a0] sm:$0xff]  ;;  %753 = vst [vmem:[%s2901_s6 + $0x3c0] sm:$0xff] %v752_v56  ;;  %755 = vst [vmem:[%s2901_s6 + $0x3c8] sm:$0xff] %v754_v57  ;;  %v758_v59 = vld [vmem:[%s2893_s5 + $0x7b0] sm:$0xff] }
  0x51   : > { %757 = vst [vmem:[%s2901_s6 + $0x3d0] sm:$0xff] %v756_v58  ;;  %v760_v60 = vld [vmem:[%s2893_s5 + $0x7c0] sm:$0xff]  ;;  %v762_v61 = vld [vmem:[%s2893_s5 + $0x7d0] sm:$0xff]  ;;  %759 = vst [vmem:[%s2901_s6 + $0x3d8] sm:$0xff] %v758_v59 }
  0x52   : > { %761 = vst [vmem:[%s2901_s6 + $0x3e0] sm:$0xff] %v760_v60  ;;  %763 = vst [vmem:[%s2901_s6 + $0x3e8] sm:$0xff] %v762_v61  ;;  %v764_v62 = vld [vmem:[%s2893_s5 + $0x7e0] sm:$0xff]  ;;  %v766_v63 = vld [vmem:[%s2893_s5 + $0x7f0] sm:$0xff] }
  0x53   : > { %v768_v0 = vld [vmem:[%s2893_s5 + $0x800] sm:$0xff]  ;;  %765 = vst [vmem:[%s2901_s6 + $0x3f0] sm:$0xff] %v764_v62  ;;  %767 = vst [vmem:[%s2901_s6 + $0x3f8] sm:$0xff] %v766_v63  ;;  %v770_v1 = vld [vmem:[%s2893_s5 + $0x810] sm:$0xff] }
  0x54   : > { %769 = vst [vmem:[%s2901_s6 + $0x400] sm:$0xff] %v768_v0  ;;  %v772_v2 = vld [vmem:[%s2893_s5 + $0x820] sm:$0xff]  ;;  %v774_v3 = vld [vmem:[%s2893_s5 + $0x830] sm:$0xff]  ;;  %771 = vst [vmem:[%s2901_s6 + $0x408] sm:$0xff] %v770_v1 }
  0x55   : > { %773 = vst [vmem:[%s2901_s6 + $0x410] sm:$0xff] %v772_v2  ;;  %775 = vst [vmem:[%s2901_s6 + $0x418] sm:$0xff] %v774_v3  ;;  %v776_v4 = vld [vmem:[%s2893_s5 + $0x840] sm:$0xff]  ;;  %v778_v5 = vld [vmem:[%s2893_s5 + $0x850] sm:$0xff] }
  0x56   : > { %v780_v6 = vld [vmem:[%s2893_s5 + $0x860] sm:$0xff]  ;;  %777 = vst [vmem:[%s2901_s6 + $0x420] sm:$0xff] %v776_v4  ;;  %779 = vst [vmem:[%s2901_s6 + $0x428] sm:$0xff] %v778_v5  ;;  %v782_v7 = vld [vmem:[%s2893_s5 + $0x870] sm:$0xff] }
  0x57   : > { %781 = vst [vmem:[%s2901_s6 + $0x430] sm:$0xff] %v780_v6  ;;  %v784_v8 = vld [vmem:[%s2893_s5 + $0x880] sm:$0xff]  ;;  %v786_v9 = vld [vmem:[%s2893_s5 + $0x890] sm:$0xff]  ;;  %783 = vst [vmem:[%s2901_s6 + $0x438] sm:$0xff] %v782_v7 }
  0x58   : > { %785 = vst [vmem:[%s2901_s6 + $0x440] sm:$0xff] %v784_v8  ;;  %787 = vst [vmem:[%s2901_s6 + $0x448] sm:$0xff] %v786_v9  ;;  %v788_v10 = vld [vmem:[%s2893_s5 + $0x8a0] sm:$0xff]  ;;  %v790_v11 = vld [vmem:[%s2893_s5 + $0x8b0] sm:$0xff] }
  0x59   : > { %v792_v12 = vld [vmem:[%s2893_s5 + $0x8c0] sm:$0xff]  ;;  %789 = vst [vmem:[%s2901_s6 + $0x450] sm:$0xff] %v788_v10  ;;  %791 = vst [vmem:[%s2901_s6 + $0x458] sm:$0xff] %v790_v11  ;;  %v794_v13 = vld [vmem:[%s2893_s5 + $0x8d0] sm:$0xff] }
  0x5a   : > { %793 = vst [vmem:[%s2901_s6 + $0x460] sm:$0xff] %v792_v12  ;;  %v796_v14 = vld [vmem:[%s2893_s5 + $0x8e0] sm:$0xff]  ;;  %v798_v15 = vld [vmem:[%s2893_s5 + $0x8f0] sm:$0xff]  ;;  %795 = vst [vmem:[%s2901_s6 + $0x468] sm:$0xff] %v794_v13 }
  0x5b   : > { %797 = vst [vmem:[%s2901_s6 + $0x470] sm:$0xff] %v796_v14  ;;  %799 = vst [vmem:[%s2901_s6 + $0x478] sm:$0xff] %v798_v15 }
  0x5c PF: > { %p2337_p8 = scmp.ge.s32.totalorder %s2816_s19, 1  ;;  %p804_p9 = scmp.lt.s32.totalorder %s2816_s19, 3 }
  0x5e   : > { %p805_p10 = pnand %p2337_p8, %p804_p9 }
  0x5f   : > { %s811_s7 = sand.u32 (!%p805_p10), 1, %s2800_s15   ;;  %s2339_s15 = sshll.u32 (!%p805_p10), %s2808_s17, 1 }
  0x60   : > { %808 = sbr.rel (%p805_p10) target bundleno = 488 (0x1e8), region = 62  ;;  %s2338_s11 = sshll.u32 (!%p805_p10), %s811_s7, 4 }
  0x61   : > { %s2506_s8 = smul.u32 (!%p805_p10), 1152, %s811_s7  ;;  %s3365_s12 = scalar_lea.vmem (!%p805_p10), [#allocation3], %s2338_s11 }
  0x62   : > { %p870_p11 = scmp.lt.s32.totalorder (!%p805_p10), %s2339_s15, 3 }
  0x63   : > { %s3196_s13 = scalar_lea.vmem (!%p805_p10), [#allocation2], %s2506_s8 }
  0x65   : > { %v2647_v16 = vld [vmem:[%s3399_s0 + $0x4] ss:$36 sps:$4 sm:$0xff]   ;;  %v2650_v17 = vld [vmem:[%s3399_s0 + $0xc] ss:$36 sps:$4 sm:$0xff]   ;;  %v2549_v18 = vld [vmem:[%s3196_s13 + $0x74] ss:$8 sps:$4 sm:$0xff]  }
  0x66   : > { %1838 = vmatprep.mubr.bf16.mxu0 %v2647_v16  ;;  %1881 = vmatprep.mubr.bf16.mxu1 %v2650_v17  ;;  %v2551_v19 = vld [vmem:[%s3196_s13 + $0x174] ss:$8 sps:$4 sm:$0xff]   ;;  %v2553_v20 = vld [vmem:[%s3196_s13 + $0x70] ss:$8 sps:$4 sm:$0xff]   ;;  %v2555_v22 = vld [vmem:[%s3196_s13 + $0x64] ss:$8 sps:$4 sm:$0xff]  }
  0x67   : > { %1806 = vmatprep.subr.bf16.mxu0 %v2549_v18  ;;  %v2554_v21 = vld [vmem:[%s3196_s13 + $0x170] ss:$8 sps:$4 sm:$0xff]   ;;  %1849 = vmatprep.subr.bf16.mxu1 %v2551_v19  ;;  %v2557_v23 = vld [vmem:[%s3196_s13 + $0x164] ss:$8 sps:$4 sm:$0xff]   ;;  %v2559_v24 = vld [vmem:[%s3196_s13 + $0x60] ss:$8 sps:$4 sm:$0xff]  }
  0x68   : > { %1807 = vmatpush1.bf16.msra.mxu0 %v2553_v20  ;;  %1850 = vmatpush1.bf16.msra.mxu1 %v2554_v21  ;;  %v2560_v25 = vld [vmem:[%s3196_s13 + $0x160] ss:$8 sps:$4 sm:$0xff]   ;;  %v2561_v26 = vld [vmem:[%s3196_s13 + $0x54] ss:$8 sps:$4 sm:$0xff]   ;;  %v2565_v28 = vld [vmem:[%s3196_s13 + $0x50] ss:$8 sps:$4 sm:$0xff]  }
  0x69   : > { %1808 = vmatprep.subr.bf16.mxu0 %v2555_v22  ;;  %1851 = vmatprep.subr.bf16.mxu1 %v2557_v23  ;;  %v2563_v27 = vld [vmem:[%s3196_s13 + $0x154] ss:$8 sps:$4 sm:$0xff]   ;;  %v2566_v29 = vld [vmem:[%s3196_s13 + $0x150] ss:$8 sps:$4 sm:$0xff]   ;;  %v2567_v30 = vld [vmem:[%s3196_s13 + $0x44] ss:$8 sps:$4 sm:$0xff]  }
  0x6a   : > { %v2569_v31 = vld [vmem:[%s3196_s13 + $0x144] ss:$8 sps:$4 sm:$0xff]   ;;  %v2571_v32 = vld [vmem:[%s3196_s13 + $0x40] ss:$8 sps:$4 sm:$0xff]   ;;  %v2573_v34 = vld [vmem:[%s3196_s13 + $0x34] ss:$8 sps:$4 sm:$0xff]  }
  0x6b   : > { %v2572_v33 = vld [vmem:[%s3196_s13 + $0x140] ss:$8 sps:$4 sm:$0xff]   ;;  %v2575_v35 = vld [vmem:[%s3196_s13 + $0x134] ss:$8 sps:$4 sm:$0xff]   ;;  %v2577_v36 = vld [vmem:[%s3196_s13 + $0x30] ss:$8 sps:$4 sm:$0xff]  }
  0x6c   : > { %1809 = vmatpush1.bf16.msra.mxu0 %v2559_v24  ;;  %1852 = vmatpush1.bf16.msra.mxu1 %v2560_v25  ;;  %v2578_v37 = vld [vmem:[%s3196_s13 + $0x130] ss:$8 sps:$4 sm:$0xff]   ;;  %v2579_v38 = vld [vmem:[%s3196_s13 + $0x24] ss:$8 sps:$4 sm:$0xff]   ;;  %v2583_v40 = vld [vmem:[%s3196_s13 + $0x20] ss:$8 sps:$4 sm:$0xff]  }
  0x6d   : > { %1810 = vmatprep.subr.bf16.mxu0 %v2561_v26  ;;  %1853 = vmatprep.subr.bf16.mxu1 %v2563_v27  ;;  %v2581_v39 = vld [vmem:[%s3196_s13 + $0x124] ss:$8 sps:$4 sm:$0xff]   ;;  %v2584_v41 = vld [vmem:[%s3196_s13 + $0x120] ss:$8 sps:$4 sm:$0xff]   ;;  %v2585_v42 = vld [vmem:[%s3196_s13 + $0x14] ss:$8 sps:$4 sm:$0xff]  }
  0x6e   : > { %v2587_v43 = vld [vmem:[%s3196_s13 + $0x114] ss:$8 sps:$4 sm:$0xff]   ;;  %v2589_v44 = vld [vmem:[%s3196_s13 + $0x10] ss:$8 sps:$4 sm:$0xff]   ;;  %v2591_v46 = vld [vmem:[%s3196_s13 + $0x4] ss:$8 sps:$4 sm:$0xff]  }
  0x6f   : > { %v2590_v45 = vld [vmem:[%s3196_s13 + $0x110] ss:$8 sps:$4 sm:$0xff]   ;;  %v2593_v47 = vld [vmem:[%s3196_s13 + $0x104] ss:$8 sps:$4 sm:$0xff]   ;;  %v2595_v48 = vld [vmem:[%s3196_s13] ss:$8 sps:$4 sm:$0xff]  }
  0x70   : > { %1811 = vmatpush1.bf16.msra.mxu0 %v2565_v28  ;;  %1854 = vmatpush1.bf16.msra.mxu1 %v2566_v29  ;;  %v2596_v49 = vld [vmem:[%s3196_s13 + $0x100] ss:$8 sps:$4 sm:$0xff]   ;;  %v2597_v50 = vld [vmem:[%s3196_s13 + $0xf4] ss:$8 sps:$4 sm:$0xff]   ;;  %v2601_v52 = vld [vmem:[%s3196_s13 + $0xf0] ss:$8 sps:$4 sm:$0xff]  }
  0x71   : > { %1812 = vmatprep.subr.bf16.mxu0 %v2567_v30  ;;  %1855 = vmatprep.subr.bf16.mxu1 %v2569_v31  ;;  %v2599_v51 = vld [vmem:[%s3196_s13 + $0x1f4] ss:$8 sps:$4 sm:$0xff]   ;;  %v2602_v53 = vld [vmem:[%s3196_s13 + $0x1f0] ss:$8 sps:$4 sm:$0xff]   ;;  %v2603_v54 = vld [vmem:[%s3196_s13 + $0xe4] ss:$8 sps:$4 sm:$0xff]  }
  0x72   : > { %v2605_v55 = vld [vmem:[%s3196_s13 + $0x1e4] ss:$8 sps:$4 sm:$0xff]   ;;  %v2607_v56 = vld [vmem:[%s3196_s13 + $0xe0] ss:$8 sps:$4 sm:$0xff]   ;;  %v2609_v58 = vld [vmem:[%s3196_s13 + $0xd4] ss:$8 sps:$4 sm:$0xff]  }
  0x73   : > { %v2608_v57 = vld [vmem:[%s3196_s13 + $0x1e0] ss:$8 sps:$4 sm:$0xff]   ;;  %v2611_v59 = vld [vmem:[%s3196_s13 + $0x1d4] ss:$8 sps:$4 sm:$0xff]   ;;  %v2613_v60 = vld [vmem:[%s3196_s13 + $0xd0] ss:$8 sps:$4 sm:$0xff]  }
  0x74   : > { %1813 = vmatpush1.bf16.msra.mxu0 %v2571_v32  ;;  %1856 = vmatpush1.bf16.msra.mxu1 %v2572_v33  ;;  %v2614_v61 = vld [vmem:[%s3196_s13 + $0x1d0] ss:$8 sps:$4 sm:$0xff]   ;;  %v2615_v62 = vld [vmem:[%s3196_s13 + $0xc4] ss:$8 sps:$4 sm:$0xff]   ;;  %v2619_v0 = vld [vmem:[%s3196_s13 + $0xc0] ss:$8 sps:$4 sm:$0xff]  }
  0x75   : > { %1814 = vmatprep.subr.bf16.mxu0 %v2573_v34  ;;  %1857 = vmatprep.subr.bf16.mxu1 %v2575_v35  ;;  %v2617_v63 = vld [vmem:[%s3196_s13 + $0x1c4] ss:$8 sps:$4 sm:$0xff]   ;;  %v2620_v1 = vld [vmem:[%s3196_s13 + $0x1c0] ss:$8 sps:$4 sm:$0xff]   ;;  %v2621_v2 = vld [vmem:[%s3196_s13 + $0xb4] ss:$8 sps:$4 sm:$0xff]  }
  0x76   : > { %v2623_v3 = vld [vmem:[%s3196_s13 + $0x1b4] ss:$8 sps:$4 sm:$0xff]   ;;  %v2625_v4 = vld [vmem:[%s3196_s13 + $0xb0] ss:$8 sps:$4 sm:$0xff]   ;;  %v2627_v6 = vld [vmem:[%s3196_s13 + $0xa4] ss:$8 sps:$4 sm:$0xff]  }
  0x77   : > { %v2626_v5 = vld [vmem:[%s3196_s13 + $0x1b0] ss:$8 sps:$4 sm:$0xff]   ;;  %v2629_v7 = vld [vmem:[%s3196_s13 + $0x1a4] ss:$8 sps:$4 sm:$0xff]   ;;  %v2631_v8 = vld [vmem:[%s3196_s13 + $0xa0] ss:$8 sps:$4 sm:$0xff]  }
  0x78   : > { %1815 = vmatpush1.bf16.msra.mxu0 %v2577_v36  ;;  %1858 = vmatpush1.bf16.msra.mxu1 %v2578_v37  ;;  %v2632_v9 = vld [vmem:[%s3196_s13 + $0x1a0] ss:$8 sps:$4 sm:$0xff]   ;;  %v2633_v10 = vld [vmem:[%s3196_s13 + $0x94] ss:$8 sps:$4 sm:$0xff]   ;;  %v2637_v12 = vld [vmem:[%s3196_s13 + $0x90] ss:$8 sps:$4 sm:$0xff]  }
  0x79   : > { %1816 = vmatprep.subr.bf16.mxu0 %v2579_v38  ;;  %1859 = vmatprep.subr.bf16.mxu1 %v2581_v39  ;;  %v2635_v11 = vld [vmem:[%s3196_s13 + $0x194] ss:$8 sps:$4 sm:$0xff]   ;;  %v2638_v13 = vld [vmem:[%s3196_s13 + $0x190] ss:$8 sps:$4 sm:$0xff]   ;;  %v2639_v14 = vld [vmem:[%s3196_s13 + $0x84] ss:$8 sps:$4 sm:$0xff]  }
  0x7a   : > { %v2641_v15 = vld [vmem:[%s3196_s13 + $0x184] ss:$8 sps:$4 sm:$0xff]   ;;  %v2643_v16 = vld [vmem:[%s3196_s13 + $0x80] ss:$8 sps:$4 sm:$0xff]   ;;  %v2653_v18 = vld [vmem:[%s3196_s13 + $0x274] ss:$8 sps:$4 sm:$0xff]  }
  0x7b   : > { %v2644_v17 = vld [vmem:[%s3196_s13 + $0x180] ss:$8 sps:$4 sm:$0xff]   ;;  %v2656_v19 = vld [vmem:[%s3196_s13 + $0x374] ss:$8 sps:$4 sm:$0xff]   ;;  %v2651_v22 = vld [vmem:[%s3196_s13 + $0x270] ss:$8 sps:$4 sm:$0xff]  }
  0x7c   : > { %1817 = vmatpush1.bf16.msra.mxu0 %v2583_v40  ;;  %1860 = vmatpush1.bf16.msra.mxu1 %v2584_v41  ;;  %v2645_v20 = vld [vmem:[%s3399_s0] ss:$36 sps:$4 sm:$0xff]   ;;  %v2648_v21 = vld [vmem:[%s3399_s0 + $0x8] ss:$36 sps:$4 sm:$0xff]   ;;  %v2654_v23 = vld [vmem:[%s3196_s13 + $0x370] ss:$8 sps:$4 sm:$0xff]  }
  0x7d   : > { %1818 = vmatprep.subr.bf16.mxu0 %v2585_v42  ;;  %1861 = vmatprep.subr.bf16.mxu1 %v2587_v43  ;;  %v2659_v24 = vld [vmem:[%s3196_s13 + $0x264] ss:$8 sps:$4 sm:$0xff]   ;;  %v2657_v26 = vld [vmem:[%s3196_s13 + $0x260] ss:$8 sps:$4 sm:$0xff]   ;;  %v2665_v28 = vld [vmem:[%s3196_s13 + $0x254] ss:$8 sps:$4 sm:$0xff]  }
  0x7e   : > { %v2662_v25 = vld [vmem:[%s3196_s13 + $0x364] ss:$8 sps:$4 sm:$0xff]   ;;  %v2660_v27 = vld [vmem:[%s3196_s13 + $0x360] ss:$8 sps:$4 sm:$0xff]   ;;  %v2668_v29 = vld [vmem:[%s3196_s13 + $0x354] ss:$8 sps:$4 sm:$0xff]  }
  0x7f   : > { %v2663_v30 = vld [vmem:[%s3196_s13 + $0x250] ss:$8 sps:$4 sm:$0xff]   ;;  %v2671_v32 = vld [vmem:[%s3196_s13 + $0x244] ss:$8 sps:$4 sm:$0xff]   ;;  %v2669_v34 = vld [vmem:[%s3196_s13 + $0x240] ss:$8 sps:$4 sm:$0xff]  }
  0x80   : > { %1819 = vmatpush1.bf16.msra.mxu0 %v2589_v44  ;;  %1862 = vmatpush1.bf16.msra.mxu1 %v2590_v45  ;;  %v2666_v31 = vld [vmem:[%s3196_s13 + $0x350] ss:$8 sps:$4 sm:$0xff]   ;;  %v2674_v33 = vld [vmem:[%s3196_s13 + $0x344] ss:$8 sps:$4 sm:$0xff]   ;;  %v2672_v35 = vld [vmem:[%s3196_s13 + $0x340] ss:$8 sps:$4 sm:$0xff]  }
  0x81   : > { %1820 = vmatprep.subr.bf16.mxu0 %v2591_v46  ;;  %1863 = vmatprep.subr.bf16.mxu1 %v2593_v47  ;;  %v2677_v36 = vld [vmem:[%s3196_s13 + $0x234] ss:$8 sps:$4 sm:$0xff]   ;;  %v2675_v38 = vld [vmem:[%s3196_s13 + $0x230] ss:$8 sps:$4 sm:$0xff]   ;;  %v2683_v40 = vld [vmem:[%s3196_s13 + $0x224] ss:$8 sps:$4 sm:$0xff]  }
  0x82   : > { %v2680_v37 = vld [vmem:[%s3196_s13 + $0x334] ss:$8 sps:$4 sm:$0xff]   ;;  %v2678_v39 = vld [vmem:[%s3196_s13 + $0x330] ss:$8 sps:$4 sm:$0xff]   ;;  %v2686_v41 = vld [vmem:[%s3196_s13 + $0x324] ss:$8 sps:$4 sm:$0xff]  }
  0x83   : > { %v2681_v42 = vld [vmem:[%s3196_s13 + $0x220] ss:$8 sps:$4 sm:$0xff]   ;;  %v2689_v44 = vld [vmem:[%s3196_s13 + $0x214] ss:$8 sps:$4 sm:$0xff]   ;;  %v2687_v47 = vld [vmem:[%s3196_s13 + $0x210] ss:$8 sps:$4 sm:$0xff]  }
  0x84   : > { %1821 = vmatpush1.bf16.msra.mxu0 %v2595_v48  ;;  %1864 = vmatpush1.bf16.msra.mxu1 %v2596_v49  ;;  %v2684_v43 = vld [vmem:[%s3196_s13 + $0x320] ss:$8 sps:$4 sm:$0xff]   ;;  %v2692_v45 = vld [vmem:[%s3196_s13 + $0x314] ss:$8 sps:$4 sm:$0xff]   ;;  %v2690_v48 = vld [vmem:[%s3196_s13 + $0x310] ss:$8 sps:$4 sm:$0xff]  }
  0x85   : > { %1822 = vmatprep.subr.bf16.mxu0 %v2597_v50  ;;  %1865 = vmatprep.subr.bf16.mxu1 %v2599_v51  ;;  %v2749_v46 = vld [vmem:[%s3399_s0 + $0x14] ss:$36 sps:$4 sm:$0xff]   ;;  %v2755_v49 = vld [vmem:[%s3399_s0 + $0x1c] ss:$36 sps:$4 sm:$0xff]   ;;  %v2695_v50 = vld [vmem:[%s3196_s13 + $0x204] ss:$8 sps:$4 sm:$0xff]  }
  0x86   : > { %v2698_v51 = vld [vmem:[%s3196_s13 + $0x304] ss:$8 sps:$4 sm:$0xff]   ;;  %s3412_s15 = smov (!%p870_p11, %s2339_s15), 3  ;;  %s2504_s26 = sshll.u32 (%p2880_p6), %s2808_s17, 3 }
  0x87   : > { %s874_s14 = scalar_lea.vmem %s3402_s3, %s3412_s15  ;;  %s883_s23 = scalar_lea.vmem %s3403_s4, %s3412_s15 }
  0x88   : > { %1823 = vmatpush2.bf16.msra.mxu0 %v2601_v52  ;;  %1866 = vmatpush2.bf16.msra.mxu1 %v2602_v53  ;;  %v2693_v52 = vld [vmem:[%s3196_s13 + $0x200] ss:$8 sps:$4 sm:$0xff]   ;;  %s2137_s29 = scalar_lea.vmem (%p2880_p6), %s3401_s2, %s2504_s26 }
  0x89   : > { %1824 = vmatprep.subr.bf16.mxu0 %v2603_v54  ;;  %1867 = vmatprep.subr.bf16.mxu1 %v2605_v55  ;;  %v2696_v53 = vld [vmem:[%s3196_s13 + $0x300] ss:$8 sps:$4 sm:$0xff]   ;;  %v2701_v54 = vld [vmem:[%s3196_s13 + $0x2f4] ss:$8 sps:$4 sm:$0xff]  }
  0x8a   : > { %v2704_v55 = vld [vmem:[%s3196_s13 + $0x3f4] ss:$8 sps:$4 sm:$0xff]  }
  0x8c   : > { %1825 = vmatpush2.bf16.msra.mxu0 %v2607_v56  ;;  %1868 = vmatpush2.bf16.msra.mxu1 %v2608_v57  ;;  %v2699_v56 = vld [vmem:[%s3196_s13 + $0x2f0] ss:$8 sps:$4 sm:$0xff]  }
  0x8d   : > { %1826 = vmatprep.subr.bf16.mxu0 %v2609_v58  ;;  %1869 = vmatprep.subr.bf16.mxu1 %v2611_v59  ;;  %v2702_v57 = vld [vmem:[%s3196_s13 + $0x3f0] ss:$8 sps:$4 sm:$0xff]   ;;  %v2707_v58 = vld [vmem:[%s3196_s13 + $0x2e4] ss:$8 sps:$4 sm:$0xff]  }
  0x8e   : > { %v2710_v59 = vld [vmem:[%s3196_s13 + $0x3e4] ss:$8 sps:$4 sm:$0xff]  }
  0x90   : > { %1827 = vmatpush2.bf16.msra.mxu0 %v2613_v60  ;;  %1870 = vmatpush2.bf16.msra.mxu1 %v2614_v61  ;;  %v2705_v60 = vld [vmem:[%s3196_s13 + $0x2e0] ss:$8 sps:$4 sm:$0xff]  }
  0x91   : > { %1828 = vmatprep.subr.bf16.mxu0 %v2615_v62  ;;  %1871 = vmatprep.subr.bf16.mxu1 %v2617_v63  ;;  %v2708_v61 = vld [vmem:[%s3196_s13 + $0x3e0] ss:$8 sps:$4 sm:$0xff]   ;;  %v2713_v62 = vld [vmem:[%s3196_s13 + $0x2d4] ss:$8 sps:$4 sm:$0xff]  }
  0x92   : > { %v2716_v63 = vld [vmem:[%s3196_s13 + $0x3d4] ss:$8 sps:$4 sm:$0xff]  }
  0x94   : > { %1829 = vmatpush2.bf16.msra.mxu0 %v2619_v0  ;;  %1872 = vmatpush2.bf16.msra.mxu1 %v2620_v1  ;;  %v2711_v0 = vld [vmem:[%s3196_s13 + $0x2d0] ss:$8 sps:$4 sm:$0xff]  }
  0x95   : > { %1830 = vmatprep.subr.bf16.mxu0 %v2621_v2  ;;  %1873 = vmatprep.subr.bf16.mxu1 %v2623_v3  ;;  %v2714_v1 = vld [vmem:[%s3196_s13 + $0x3d0] ss:$8 sps:$4 sm:$0xff]   ;;  %v2719_v2 = vld [vmem:[%s3196_s13 + $0x2c4] ss:$8 sps:$4 sm:$0xff]  }
  0x96   : > { %v2722_v3 = vld [vmem:[%s3196_s13 + $0x3c4] ss:$8 sps:$4 sm:$0xff]  }
  0x98   : > { %1831 = vmatpush2.bf16.msra.mxu0 %v2625_v4  ;;  %1874 = vmatpush2.bf16.msra.mxu1 %v2626_v5  ;;  %v2717_v4 = vld [vmem:[%s3196_s13 + $0x2c0] ss:$8 sps:$4 sm:$0xff]  }
  0x99   : > { %1832 = vmatprep.subr.bf16.mxu0 %v2627_v6  ;;  %1875 = vmatprep.subr.bf16.mxu1 %v2629_v7  ;;  %v2720_v5 = vld [vmem:[%s3196_s13 + $0x3c0] ss:$8 sps:$4 sm:$0xff]   ;;  %v2725_v6 = vld [vmem:[%s3196_s13 + $0x2b4] ss:$8 sps:$4 sm:$0xff]  }
  0x9a   : > { %v2728_v7 = vld [vmem:[%s3196_s13 + $0x3b4] ss:$8 sps:$4 sm:$0xff]  }
  0x9c   : > { %1833 = vmatpush2.bf16.msra.mxu0 %v2631_v8  ;;  %1876 = vmatpush2.bf16.msra.mxu1 %v2632_v9  ;;  %v2723_v8 = vld [vmem:[%s3196_s13 + $0x2b0] ss:$8 sps:$4 sm:$0xff]  }
  0x9d   : > { %1834 = vmatprep.subr.bf16.mxu0 %v2633_v10  ;;  %1877 = vmatprep.subr.bf16.mxu1 %v2635_v11  ;;  %v2726_v9 = vld [vmem:[%s3196_s13 + $0x3b0] ss:$8 sps:$4 sm:$0xff]   ;;  %v2731_v10 = vld [vmem:[%s3196_s13 + $0x2a4] ss:$8 sps:$4 sm:$0xff]  }
  0x9e   : > { %v2734_v11 = vld [vmem:[%s3196_s13 + $0x3a4] ss:$8 sps:$4 sm:$0xff]  }
  0xa0   : > { %1835 = vmatpush2.bf16.msra.mxu0 %v2637_v12  ;;  %1878 = vmatpush2.bf16.msra.mxu1 %v2638_v13  ;;  %v2729_v12 = vld [vmem:[%s3196_s13 + $0x2a0] ss:$8 sps:$4 sm:$0xff]  }
  0xa1   : > { %1836 = vmatprep.subr.bf16.mxu0 %v2639_v14  ;;  %1879 = vmatprep.subr.bf16.mxu1 %v2641_v15  ;;  %v2732_v13 = vld [vmem:[%s3196_s13 + $0x3a0] ss:$8 sps:$4 sm:$0xff]   ;;  %v2737_v14 = vld [vmem:[%s3196_s13 + $0x294] ss:$8 sps:$4 sm:$0xff]  }
  0xa2   : > { %v2740_v15 = vld [vmem:[%s3196_s13 + $0x394] ss:$8 sps:$4 sm:$0xff]  }
  0xa4   : > { %1837 = vmatpush2.bf16.msra.mxu0 %v2643_v16  ;;  %1880 = vmatpush2.bf16.msra.mxu1 %v2644_v17  ;;  %v2735_v16 = vld [vmem:[%s3196_s13 + $0x290] ss:$8 sps:$4 sm:$0xff]  }
  0xa5   : > { %1892 = vmatprep.subr.bf16.mxu0 %v2653_v18  ;;  %1935 = vmatprep.subr.bf16.mxu1 %v2656_v19  ;;  %v2738_v17 = vld [vmem:[%s3196_s13 + $0x390] ss:$8 sps:$4 sm:$0xff]   ;;  %v2743_v18 = vld [vmem:[%s3196_s13 + $0x284] ss:$8 sps:$4 sm:$0xff]  }
  0xa6   : > { %v2746_v19 = vld [vmem:[%s3196_s13 + $0x384] ss:$8 sps:$4 sm:$0xff]  }
  0xa7   : > { %1839 = vmatmul.mubr.bf16.vlgmr.msra.gmra.mxu0 %v2645_v20  ;;  %1882 = vmatmul.mubr.bf16.vlgmr.msra.gmra.mxu1 %v2648_v21  ;;  %v2741_v20 = vld [vmem:[%s3196_s13 + $0x280] ss:$8 sps:$4 sm:$0xff]  }
  0xa8   : > { %1893 = vmatpush1.bf16.msra.mxu0 %v2651_v22  ;;  %1936 = vmatpush1.bf16.msra.mxu1 %v2654_v23  ;;  %v2744_v21 = vld [vmem:[%s3196_s13 + $0x380] ss:$8 sps:$4 sm:$0xff]   ;;  %v2752_v22 = vld [vmem:[%s3196_s13 + $0x474] ss:$8 sps:$4 sm:$0xff]  }
  0xa9   : > { %1894 = vmatprep.subr.bf16.mxu0 %v2659_v24  ;;  %1937 = vmatprep.subr.bf16.mxu1 %v2662_v25  ;;  %v2747_v23 = vld [vmem:[%s3399_s0 + $0x10] ss:$36 sps:$4 sm:$0xff]   ;;  %v2753_v24 = vld [vmem:[%s3399_s0 + $0x18] ss:$36 sps:$4 sm:$0xff]  }
  0xaa   : > { %1924 = vmatprep.mubr.bf16.mxu0 %v2749_v46  ;;  %1967 = vmatprep.mubr.bf16.mxu1 %v2755_v49  ;;  %v2750_v25 = vld [vmem:[%s3196_s13 + $0x470] ss:$8 sps:$4 sm:$0xff]  }
  0xac   : > { %1895 = vmatpush1.bf16.msra.mxu0 %v2657_v26  ;;  %1938 = vmatpush1.bf16.msra.mxu1 %v2660_v27  ;;  %v2758_v26 = vld [vmem:[%s3196_s13 + $0x464] ss:$8 sps:$4 sm:$0xff]   ;;  %v2756_v27 = vld [vmem:[%s3196_s13 + $0x460] ss:$8 sps:$4 sm:$0xff]  }
  0xad   : > { %1896 = vmatprep.subr.bf16.mxu0 %v2665_v28  ;;  %1939 = vmatprep.subr.bf16.mxu1 %v2668_v29  ;;  %v2818_v28 = vmov 0   ;;  %v2761_v29 = vld [vmem:[%s3196_s13 + $0x454] ss:$8 sps:$4 sm:$0xff]  }
  0xb0   : > { %1897 = vmatpush1.bf16.msra.mxu0 %v2663_v30  ;;  %1940 = vmatpush1.bf16.msra.mxu1 %v2666_v31  ;;  %v2759_v30 = vld [vmem:[%s3196_s13 + $0x450] ss:$8 sps:$4 sm:$0xff]   ;;  %v2764_v31 = vld [vmem:[%s3196_s13 + $0x444] ss:$8 sps:$4 sm:$0xff]  }
  0xb1   : > { %1898 = vmatprep.subr.bf16.mxu0 %v2671_v32  ;;  %1941 = vmatprep.subr.bf16.mxu1 %v2674_v33  ;;  %v2762_v32 = vld [vmem:[%s3196_s13 + $0x440] ss:$8 sps:$4 sm:$0xff]   ;;  %v2767_v33 = vld [vmem:[%s3196_s13 + $0x434] ss:$8 sps:$4 sm:$0xff]  }
  0xb4   : > { %1899 = vmatpush1.bf16.msra.mxu0 %v2669_v34  ;;  %1942 = vmatpush1.bf16.msra.mxu1 %v2672_v35  ;;  %v2765_v34 = vld [vmem:[%s3196_s13 + $0x430] ss:$8 sps:$4 sm:$0xff]   ;;  %v2770_v35 = vld [vmem:[%s3196_s13 + $0x424] ss:$8 sps:$4 sm:$0xff]  }
  0xb5   : > { %1900 = vmatprep.subr.bf16.mxu0 %v2677_v36  ;;  %1943 = vmatprep.subr.bf16.mxu1 %v2680_v37  ;;  %v2768_v36 = vld [vmem:[%s3196_s13 + $0x420] ss:$8 sps:$4 sm:$0xff]   ;;  %v2773_v37 = vld [vmem:[%s3196_s13 + $0x414] ss:$8 sps:$4 sm:$0xff]  }
  0xb8   : > { %1901 = vmatpush1.bf16.msra.mxu0 %v2675_v38  ;;  %1944 = vmatpush1.bf16.msra.mxu1 %v2678_v39  ;;  %v2771_v38 = vld [vmem:[%s3196_s13 + $0x410] ss:$8 sps:$4 sm:$0xff]   ;;  %v2776_v39 = vld [vmem:[%s3196_s13 + $0x404] ss:$8 sps:$4 sm:$0xff]  }
  0xb9   : > { %1902 = vmatprep.subr.bf16.mxu0 %v2683_v40  ;;  %1945 = vmatprep.subr.bf16.mxu1 %v2686_v41  ;;  %v2774_v40 = vld [vmem:[%s3196_s13 + $0x400] ss:$8 sps:$4 sm:$0xff]  }
  0xba   : > { %v2777_v41 = vld [vmem:[%s3399_s0 + $0x20] ss:$36 sps:$4 sm:$0xff]  }
  0xbc   : > { %1903 = vmatpush1.bf16.msra.mxu0 %v2681_v42  ;;  %1946 = vmatpush1.bf16.msra.mxu1 %v2684_v43 }
  0xbd   : > { %1904 = vmatprep.subr.bf16.mxu0 %v2689_v44  ;;  %1947 = vmatprep.subr.bf16.mxu1 %v2692_v45 }
  0xc0   : > { %1905 = vmatpush1.bf16.msra.mxu0 %v2687_v47  ;;  %1948 = vmatpush1.bf16.msra.mxu1 %v2690_v48 }
  0xc1   : > { %1906 = vmatprep.subr.bf16.mxu0 %v2695_v50  ;;  %1949 = vmatprep.subr.bf16.mxu1 %v2698_v51 }
  0xc4   : > { %1907 = vmatpush1.bf16.msra.mxu0 %v2693_v52  ;;  %1950 = vmatpush1.bf16.msra.mxu1 %v2696_v53 }
  0xc5   : > { %1908 = vmatprep.subr.bf16.mxu0 %v2701_v54  ;;  %1951 = vmatprep.subr.bf16.mxu1 %v2704_v55 }
  0xc8   : > { %1909 = vmatpush2.bf16.msra.mxu0 %v2699_v56  ;;  %1952 = vmatpush2.bf16.msra.mxu1 %v2702_v57 }
  0xc9   : > { %1910 = vmatprep.subr.bf16.mxu0 %v2707_v58  ;;  %1953 = vmatprep.subr.bf16.mxu1 %v2710_v59 }
  0xcc   : > { %1911 = vmatpush2.bf16.msra.mxu0 %v2705_v60  ;;  %1954 = vmatpush2.bf16.msra.mxu1 %v2708_v61 }
  0xcd   : > { %1912 = vmatprep.subr.bf16.mxu0 %v2713_v62  ;;  %1955 = vmatprep.subr.bf16.mxu1 %v2716_v63 }
  0xd0   : > { %1913 = vmatpush2.bf16.msra.mxu0 %v2711_v0  ;;  %1956 = vmatpush2.bf16.msra.mxu1 %v2714_v1 }
  0xd1   : > { %1914 = vmatprep.subr.bf16.mxu0 %v2719_v2  ;;  %1957 = vmatprep.subr.bf16.mxu1 %v2722_v3 }
  0xd4   : > { %1915 = vmatpush2.bf16.msra.mxu0 %v2717_v4  ;;  %1958 = vmatpush2.bf16.msra.mxu1 %v2720_v5 }
  0xd5   : > { %1916 = vmatprep.subr.bf16.mxu0 %v2725_v6  ;;  %1959 = vmatprep.subr.bf16.mxu1 %v2728_v7 }
  0xd8   : > { %1917 = vmatpush2.bf16.msra.mxu0 %v2723_v8  ;;  %1960 = vmatpush2.bf16.msra.mxu1 %v2726_v9 }
  0xd9   : > { %1918 = vmatprep.subr.bf16.mxu0 %v2731_v10  ;;  %1961 = vmatprep.subr.bf16.mxu1 %v2734_v11 }
  0xdc   : > { %1919 = vmatpush2.bf16.msra.mxu0 %v2729_v12  ;;  %1962 = vmatpush2.bf16.msra.mxu1 %v2732_v13 }
  0xdd   : > { %1920 = vmatprep.subr.bf16.mxu0 %v2737_v14  ;;  %1963 = vmatprep.subr.bf16.mxu1 %v2740_v15 }
  0xe0   : > { %1921 = vmatpush2.bf16.msra.mxu0 %v2735_v16  ;;  %1964 = vmatpush2.bf16.msra.mxu1 %v2738_v17 }
  0xe1   : > { %1922 = vmatprep.subr.bf16.mxu0 %v2743_v18  ;;  %1965 = vmatprep.subr.bf16.mxu1 %v2746_v19 }
  0xe4   : > { %1923 = vmatpush2.bf16.msra.mxu0 %v2741_v20  ;;  %1966 = vmatpush2.bf16.msra.mxu1 %v2744_v21 }
  0xe5   : > { %1978 = vmatprep.subr.bf16.mxu0 %v2752_v22 }
  0xe7   : > { %1925 = vmatmul.mubr.bf16.vlgmr.msra.gmra.mxu0 %v2747_v23  ;;  %1968 = vmatmul.mubr.bf16.vlgmr.msra.gmra.mxu1 %v2753_v24 }
  0xe8   : > { %1979 = vmatpush1.bf16.msra.mxu0 %v2750_v25  ;;  %2010 = vmatprep.mubr.bf16.mxu0 %v2818_v28 }
  0xe9   : > { %1980 = vmatprep.subr.bf16.mxu0 %v2758_v26 }
  0xec   : > { %1981 = vmatpush1.bf16.msra.mxu0 %v2756_v27  ;;  %v2819_v27 = vmov 1966171168  }
  0xed   : > { %1982 = vmatprep.subr.bf16.mxu0 %v2761_v29  ;;  %v2053_v28 = vunpack.c.l.s4 %v2819_v27 }
  0xf0   : > { %1983 = vmatpush1.bf16.msra.mxu0 %v2759_v30 }
  0xf1   : > { %1984 = vmatprep.subr.bf16.mxu0 %v2764_v31 }
  0xf4   : > { %1985 = vmatpush1.bf16.msra.mxu0 %v2762_v32 }
  0xf5   : > { %1986 = vmatprep.subr.bf16.mxu0 %v2767_v33  ;;  %v2055_v33 = vlaneseq }
  0xf7   : > { %vm2069_vm0 = vcmp.lt.s32.totalorder %v2055_v33, 256 }
  0xf8   : > { %1987 = vmatpush1.bf16.msra.mxu0 %v2765_v34 }
  0xf9   : > { %1988 = vmatprep.subr.bf16.mxu0 %v2770_v35 }
  0xfc   : > { %1989 = vmatpush1.bf16.msra.mxu0 %v2768_v36 }
  0xfd   : > { %1990 = vmatprep.subr.bf16.mxu0 %v2773_v37 }
 0x100   : > { %1991 = vmatpush1.bf16.msra.mxu0 %v2771_v38  ;;  %v2054_v38 = vunpack.c.0.s8 %v2053_v28 }
 0x101   : > { %1992 = vmatprep.subr.bf16.mxu0 %v2776_v39 }
 0x104   : > { %1993 = vmatpush1.bf16.msra.mxu0 %v2774_v40 }
 0x107   : > { %2011 = vmatmul.mubr.bf16.vlgmr.msra.gmra.mxu0 %v2777_v41 }
 0x167   : > { %v1840_v42 = vpop.f32.mrf.mxu0  ;;  %v1883_v43 = vpop.f32.mrf.mxu1 }
 0x168   : > { %v1884_v55 = vadd.f32 %v1883_v43, %v1840_v42  ;;  %v2056_v43 = vshrl.u32 %v2055_v33, 7 }
 0x169   : > { %v1842_v44 = vpop.f32.mrf.mxu0  ;;  %v1885_v45 = vpop.f32.mrf.mxu1 }
 0x16a   : > { %v1886_v56 = vadd.f32 %v1885_v45, %v1842_v44 }
 0x16b   : > { %v1844_v46 = vpop.f32.mrf.mxu0  ;;  %v1887_v47 = vpop.f32.mrf.mxu1 }
 0x16c   : > { %v1888_v57 = vadd.f32 %v1887_v47, %v1844_v46 }
 0x16d   : > { %v1846_v48 = vpop.f32.mrf.mxu0  ;;  %v1889_v50 = vpop.f32.mrf.mxu1 }
 0x16e   : > { %v1890_v62 = vadd.f32 %v1889_v50, %v1846_v48  ;;  %v2057_v50 = vsub.s32 %v2054_v38, %v2056_v43 }
 0x1a7   : > { %v1926_v49 = vpop.f32.mrf.mxu0  ;;  %v1969_v52 = vpop.f32.mrf.mxu1 }
 0x1a8   : > { %v1927_v58 = vadd.f32 %v1926_v49, %v1884_v55 }
 0x1a9   : > { %v1928_v51 = vpop.f32.mrf.mxu0  ;;  %v1971_v54 = vpop.f32.mrf.mxu1 }
 0x1aa   : > { %v1929_v59 = vadd.f32 %v1928_v51, %v1886_v56  ;;  %v1970_v1 = vadd.f32 %v1969_v52, %v1927_v58 }
 0x1ab   : > { %v1930_v53 = vpop.f32.mrf.mxu0  ;;  %v1973_v61 = vpop.f32.mrf.mxu1 }
 0x1ac   : > { %v1931_v63 = vadd.f32 %v1930_v53, %v1888_v57  ;;  %v1972_v2 = vadd.f32 %v1971_v54, %v1929_v59 }
 0x1ad   : > { %v1932_v60 = vpop.f32.mrf.mxu0  ;;  %v1975_v4 = vpop.f32.mrf.mxu1 }
 0x1ae   : > { %v1933_v3 = vadd.f32 %v1932_v60, %v1890_v62  ;;  %v1974_v6 = vadd.f32 %v1973_v61, %v1931_v63 }
 0x1b0   : > { %v1976_v10 = vadd.f32 %v1975_v4, %v1933_v3 }
 0x1c7   : > { %v2012_v0 = vpop.f32.mrf.mxu0 }
 0x1c8   : > { %v2013_v7 = vadd.f32 %v2012_v0, %v1970_v1 }
 0x1c9   : > { %v2014_v5 = vpop.f32.mrf.mxu0 }
 0x1ca   : > { %v2015_v8 = vadd.f32 %v2014_v5, %v1972_v2  ;;  %v2072_v14 = vmul.f32 %v2013_v7, %v2013_v7 }
 0x1cb   : > { %v2016_v9 = vpop.f32.mrf.mxu0 }
 0x1cc   : > { %v2502_v11 = vpack.c.bf16 %v2015_v8, %v2013_v7  ;;  %v2017_v12 = vadd.f32 %v2016_v9, %v1974_v6  ;;  %v2073_v22 = vmul.f32 %v2015_v8, %v2015_v8 }
 0x1cd   : > { %v2018_v13 = vpop.f32.mrf.mxu0 }
 0x1ce   : > { %2033 = vst [vmem:[%s3365_s12] sm:$0xff] %v2502_v11  ;;  %v2035_v15 = vadd.f32 %v2017_v12, %v2013_v7  ;;  %v2074_v16 = vmul.f32 %v2017_v12, %v2017_v12  ;;  %v2019_v17 = vadd.f32 %v2018_v13, %v1976_v10 }
 0x1d0   : > { %v2036_v18 = vrot.slane %v2035_v15, 4  ;;  %v2076_v19 = vadd.f32 %v2074_v16, %v2072_v14  ;;  %v2503_v20 = vpack.c.bf16 %v2019_v17, %v2017_v12  ;;  %v2042_v21 = vadd.f32 %v2019_v17, %v2015_v8 }
 0x1d1   : > { %v2075_v23 = vmul.f32 %v2019_v17, %v2019_v17 }
 0x1d2   : > { %v2037_v24 = vadd.f32 %v2036_v18, %v2035_v15  ;;  %v2077_v25 = vrot.slane %v2076_v19, 4  ;;  %2034 = vst [vmem:[%s3365_s12 + $0x8] sm:$0xff] %v2503_v20  ;;  %v2043_v26 = vrot.slane %v2042_v21, 4 }
 0x1d3   : > { %v2083_v29 = vadd.f32 %v2075_v23, %v2073_v22 }
 0x1d4   : > { %v2038_v30 = vrot.slane %v2037_v24, 2  ;;  %v2078_v31 = vadd.f32 %v2077_v25, %v2076_v19  ;;  %v2044_v32 = vadd.f32 %v2043_v26, %v2042_v21 }
 0x1d5   : > { %v2084_v34 = vrot.slane %v2083_v29, 4  ;;  %v2168_v60 = vld [vmem:[%s3365_s12] sm:$0xff] (%p2880_p6) }
 0x1d6   : > { %v2039_v35 = vadd.f32 %v2038_v30, %v2037_v24  ;;  %v2079_v36 = vrot.slane %v2078_v31, 2  ;;  %v2045_v37 = vrot.slane %v2044_v32, 2  ;;  %2169 = vst [vmem:[%s2137_s29] sm:$0xff] (%p2880_p6), %v2168_v60 }
 0x1d7   : > { %v2085_v39 = vadd.f32 %v2084_v34, %v2083_v29 }
 0x1d8   : > { %v2040_v40 = vrot.slane %v2039_v35, 1  ;;  %v2080_v41 = vadd.f32 %v2079_v36, %v2078_v31  ;;  %v2046_v42 = vadd.f32 %v2045_v37, %v2044_v32 }
 0x1d9   : > { %v2086_v44 = vrot.slane %v2085_v39, 2  ;;  %v2170_v61 = vld [vmem:[%s3365_s12 + $0x8] sm:$0xff] (%p2880_p6) }
 0x1da   : > { %v2047_v45 = vrot.slane %v2046_v42, 1  ;;  %v2081_v46 = vrot.slane %v2080_v41, 1  ;;  %v2041_v48 = vadd.f32 %v2040_v40, %v2039_v35  ;;  %2171 = vst [vmem:[%s2137_s29 + $0x10] sm:$0xff] (%p2880_p6), %v2170_v61 }
 0x1db   : > { %v2087_v47 = vadd.f32 %v2086_v44, %v2085_v39 }
 0x1dc   : > { %v2048_v49 = vadd.f32 %v2047_v45, %v2046_v42  ;;  %v2082_v53 = vadd.f32 %v2081_v46, %v2080_v41 }
 0x1dd   : > { %v2088_v51 = vrot.slane %v2087_v47, 1 }
 0x1de   : > { %v2051_v52 = vcombine.low %v2041_v48, %v2048_v49 }
 0x1df   : > { %v2089_v54 = vadd.f32 %v2088_v51, %v2087_v47 }
 0x1e0   : > { %v2058_v55 = vrot.slane %v2051_v52, %v2057_v50 }
 0x1e1   : > { %v2092_v56 = vcombine.low %v2082_v53, %v2089_v54 }
 0x1e2   : > { %v2065_v57 = vrot.slane %v2058_v55, %v2057_v50 }
 0x1e3   : > { %v2099_v58 = vrot.slane %v2092_v56, %v2057_v50  ;;  %2131 = sbr.rel (!%p2880_p6) target bundleno = 488 (0x1e8), region = 70 }
 0x1e4   : > { %2071 = vst.msk [vmem:[%s874_s14] sm:$0x3] %vm2069_vm0, %v2065_v57 }
 0x1e5   : > { %v2106_v59 = vrot.slane %v2099_v58, %v2057_v50 }
 0x1e7   : > { %2108 = vst.msk [vmem:[%s883_s23] sm:$0x3] %vm2069_vm0, %v2106_v59 }
 0x1e8 PF: > { %s15_s19 = sadd.s32 1, %s2816_s19   ;;  %s3405_s15 = smov %s2804_s16 }
 0x1e9   : > { %p12_p12 = scmp.ge.s32.totalorder %s15_s19, 4   ;;  %s3406_s16 = smov %s2885_s25 }
 0x1ea   : > { %s3407_s17 = smov %s2812_s18  ;;  %s3408_s18 = smov %s3410_s20 }
 0x1eb   :  { %14 = sbr.rel (!%p12_p12) target bundleno = 3 (0x3), region = 166 }

// kernel: resnet_forward.30
= control target key start
LH: loop header
LB: loop body
LE: loop exit
PB: predicated region body
PF: predicated region fallthrough
CT: control target
= control target key end

     0   :  { %v22_v0 = vlaneseq  ;;  %s116_s0 = inlined_call_operand.vmem [shape: bf16[16,256], index: 0, kind: input, shape index: {}]   ;;  %s117_s1 = inlined_call_operand.vmem [shape: f32[1,256], index: 1, kind: input, shape index: {}]   ;;  %s118_s2 = inlined_call_operand.vmem [shape: f32[1,256], index: 2, kind: input, shape index: {}]   ;;  %s119_s3 = inlined_call_operand.vmem [shape: bf16[16,256], index: 3, kind: output, shape index: {}]  }
   0x1   :  { %v14_v1 = vld [vmem:[%s116_s0] sm:$0xff]  ;;  %v15_v3 = vld [vmem:[%s116_s0 + $0x8] sm:$0xff] }
   0x2   :  { %v23_v2 = vshrl.u32 %v22_v0, 7  ;;  %v16_v4 = vunpack.c.l.bf16 %v14_v1  ;;  %v17_v5 = vunpack.c.h.bf16 %v14_v1  ;;  %v20_v6 = vld [vmem:[%s117_s1] sm:$0x3]  ;;  %v18_v10 = vunpack.c.l.bf16 %v15_v3 }
   0x3   :  { %v36_v7 = vld [vmem:[%s118_s2] sm:$0x3]  ;;  %v19_v11 = vunpack.c.h.bf16 %v15_v3 }
   0x4   :  { %v24_v8 = vsub.s32 0, %v23_v2  ;;  %v28_v9 = vsub.s32 1, %v23_v2 }
   0x6   :  { %v25_v12 = vrot.slane %v20_v6, %v24_v8  ;;  %v29_v13 = vrot.slane %v20_v6, %v28_v9  ;;  %v41_v14 = vrot.slane %v36_v7, %v24_v8  ;;  %v45_v15 = vrot.slane %v36_v7, %v28_v9 }
   0x8   :  { %v32_v16 = vmul.f32 %v25_v12, %v16_v4  ;;  %v33_v17 = vmul.f32 %v29_v13, %v17_v5  ;;  %v34_v18 = vmul.f32 %v25_v12, %v18_v10  ;;  %v35_v19 = vmul.f32 %v29_v13, %v19_v11 }
   0xa   :  { %v48_v20 = vadd.f32 %v41_v14, %v32_v16  ;;  %v49_v21 = vadd.f32 %v45_v15, %v33_v17  ;;  %v50_v22 = vadd.f32 %v41_v14, %v34_v18  ;;  %v51_v23 = vadd.f32 %v45_v15, %v35_v19 }
   0xc   :  { %v52_v24 = vmax.f32 %v48_v20, 0.0  ;;  %v53_v25 = vmax.f32 %v49_v21, 0.0  ;;  %v54_v26 = vmax.f32 %v50_v22, 0.0  ;;  %v55_v27 = vmax.f32 %v51_v23, 0.0 }
   0xe   :  { %v76_v28 = vpack.c.bf16 %v53_v25, %v52_v24  ;;  %v77_v29 = vpack.c.bf16 %v55_v27, %v54_v26 }
  0x10   :  { %68 = vst [vmem:[%s119_s3] sm:$0xff] %v76_v28  ;;  %69 = vst [vmem:[%s119_s3 + $0x8] sm:$0xff] %v77_v29 }

// kernel: resnet_forward.32
= control target key start
LH: loop header
LB: loop body
LE: loop exit
PB: predicated region body
PF: predicated region fallthrough
CT: control target
= control target key end

     0   :  { %v31_v0 = vlaneseq  ;;  %s194_s0 = inlined_call_operand.vmem [shape: bf16[16,256], index: 0, kind: input, shape index: {}]   ;;  %s195_s1 = inlined_call_operand.vmem [shape: bf16[16,256], index: 1, kind: input, shape index: {}]   ;;  %s196_s2 = inlined_call_operand.vmem [shape: f32[1,256], index: 2, kind: input, shape index: {}]   ;;  %s197_s3 = inlined_call_operand.vmem [shape: f32[1,256], index: 3, kind: input, shape index: {}]   ;;  %s198_s4 = inlined_call_operand.vmem [shape: f32[1,256], index: 4, kind: input, shape index: {}]   ;;  %s199_s5 = inlined_call_operand.vmem [shape: f32[1,256], index: 5, kind: input, shape index: {}]   ;;  %s200_s6 = inlined_call_operand.vmem [shape: bf16[16,256], index: 6, kind: output, shape index: {}]  }
   0x1   :  { %v23_v1 = vld [vmem:[%s194_s0] sm:$0xff]  ;;  %v24_v8 = vld [vmem:[%s194_s0 + $0x8] sm:$0xff] }
   0x2   :  { %v29_v2 = vld [vmem:[%s196_s2] sm:$0x3]  ;;  %v32_v3 = vshrl.u32 %v31_v0, 7  ;;  %v25_v5 = vunpack.c.l.bf16 %v23_v1  ;;  %v26_v6 = vunpack.c.h.bf16 %v23_v1  ;;  %v62_v9 = vld [vmem:[%s195_s1 + $0x8] sm:$0xff]  ;;  %v27_v14 = vunpack.c.l.bf16 %v24_v8 }
   0x3   :  { %v61_v4 = vld [vmem:[%s195_s1] sm:$0xff]  ;;  %v28_v15 = vunpack.c.h.bf16 %v24_v8  ;;  %v65_v18 = vunpack.c.l.bf16 %v62_v9  ;;  %v66_v19 = vunpack.c.h.bf16 %v62_v9 }
   0x4   :  { %v45_v7 = vld [vmem:[%s197_s3] sm:$0x3]  ;;  %v33_v10 = vsub.s32 0, %v32_v3  ;;  %v37_v11 = vsub.s32 1, %v32_v3  ;;  %v63_v16 = vunpack.c.l.bf16 %v61_v4  ;;  %v64_v17 = vunpack.c.h.bf16 %v61_v4 }
   0x5   :  { %v67_v12 = vld [vmem:[%s198_s4] sm:$0x3] }
   0x6   :  { %v87_v13 = vld [vmem:[%s199_s5] sm:$0x3]  ;;  %v34_v20 = vrot.slane %v29_v2, %v33_v10  ;;  %v38_v21 = vrot.slane %v29_v2, %v37_v11  ;;  %v50_v22 = vrot.slane %v45_v7, %v33_v10  ;;  %v54_v23 = vrot.slane %v45_v7, %v37_v11 }
   0x7   :  { %v72_v24 = vrot.slane %v67_v12, %v33_v10  ;;  %v76_v25 = vrot.slane %v67_v12, %v37_v11  ;;  %v92_v26 = vrot.slane %v87_v13, %v33_v10  ;;  %v96_v27 = vrot.slane %v87_v13, %v37_v11 }
   0x8   :  { %v41_v28 = vmul.f32 %v34_v20, %v25_v5  ;;  %v42_v29 = vmul.f32 %v38_v21, %v26_v6  ;;  %v43_v30 = vmul.f32 %v34_v20, %v27_v14  ;;  %v44_v31 = vmul.f32 %v38_v21, %v28_v15 }
   0x9   :  { %v79_v32 = vmul.f32 %v72_v24, %v63_v16  ;;  %v80_v33 = vmul.f32 %v76_v25, %v64_v17  ;;  %v81_v34 = vmul.f32 %v72_v24, %v65_v18  ;;  %v82_v35 = vmul.f32 %v76_v25, %v66_v19 }
   0xa   :  { %v57_v36 = vadd.f32 %v50_v22, %v41_v28  ;;  %v58_v37 = vadd.f32 %v54_v23, %v42_v29  ;;  %v59_v38 = vadd.f32 %v50_v22, %v43_v30  ;;  %v60_v39 = vadd.f32 %v54_v23, %v44_v31 }
   0xc   :  { %v83_v40 = vadd.f32 %v79_v32, %v57_v36  ;;  %v84_v41 = vadd.f32 %v80_v33, %v58_v37  ;;  %v85_v42 = vadd.f32 %v81_v34, %v59_v38  ;;  %v86_v43 = vadd.f32 %v82_v35, %v60_v39 }
   0xe   :  { %v99_v44 = vadd.f32 %v92_v26, %v83_v40  ;;  %v100_v45 = vadd.f32 %v96_v27, %v84_v41  ;;  %v101_v46 = vadd.f32 %v92_v26, %v85_v42  ;;  %v102_v47 = vadd.f32 %v96_v27, %v86_v43 }
  0x10   :  { %v103_v48 = vmax.f32 %v99_v44, 0.0  ;;  %v104_v49 = vmax.f32 %v100_v45, 0.0  ;;  %v105_v50 = vmax.f32 %v101_v46, 0.0  ;;  %v106_v51 = vmax.f32 %v102_v47, 0.0 }
  0x12   :  { %v127_v52 = vpack.c.bf16 %v104_v49, %v103_v48  ;;  %v128_v53 = vpack.c.bf16 %v106_v51, %v105_v50 }
  0x14   :  { %119 = vst [vmem:[%s200_s6] sm:$0xff] %v127_v52  ;;  %120 = vst [vmem:[%s200_s6 + $0x8] sm:$0xff] %v128_v53 }

// kernel: resnet_forward.31
= control target key start
LH: loop header
LB: loop body
LE: loop exit
PB: predicated region body
PF: predicated region fallthrough
CT: control target
= control target key end

     0   :  { %s1457_s15 = smov 0   ;;  %s1459_s16 = smov 0   ;;  %s1608_s0 = inlined_call_operand.vmem [shape: bf16[16,2560], index: 0, kind: input, shape index: {}]   ;;  %s1609_s1 = inlined_call_operand.vmem [shape: bf16[2560,256], index: 1, kind: input, shape index: {}]   ;;  %s1610_s2 = inlined_call_operand.vmem [shape: bf16[16,256], index: 2, kind: output, shape index: {0}]   ;;  %s1611_s3 = inlined_call_operand.vmem [shape: f32[1,1,256], index: 3, kind: output, shape index: {1}]   ;;  %s1612_s4 = inlined_call_operand.vmem [shape: f32[1,1,256], index: 4, kind: output, shape index: {2}]  }
   0x1   :  { %s1461_s17 = smov 0   ;;  %s1463_s18 = smov 0  }
   0x2   :  { %s1465_s19 = smov 0  }
   0x3 LB: > { %s27_s20 = sadd.s32 1, %s1424_s18  ;;  %p50_p1 = scmp.ne.s32.totalorder %s1416_s16, %s1412_s15  ;;  %s1428_s19 = sphi %s1465_s19, %s15_s19   ;;  %s1424_s18 = sphi %s1463_s18, %s1616_s18   ;;  %s1420_s17 = sphi %s1461_s17, %s1615_s17   ;;  %s1416_s16 = sphi %s1459_s16, %s1614_s16   ;;  %s1412_s15 = sphi %s1457_s15, %s1613_s15  }
   0x4   : > { %p28_p0 = scmp.ge.s32.totalorder %s27_s20, 5  ;;  %p51_p2 = scmp.eq.s32.totalorder %s1428_s19, 0 }
   0x5   : > { %s43_s22 = sadd.s32 1, %s1416_s16  ;;  %p1153_p5 = scmp.ge.s32.totalorder %s1428_s19, 5 }
   0x6   : > { %s1618_s20 = smov (%p28_p0, %s27_s20), 0  ;;  %p52_p3 = por %p51_p2, %p50_p1 }
   0x7   : > { %s39_s21 = ssub.s32 %s1424_s18, %s1618_s20  ;;  %188 = sbr.rel (%p1153_p5) target bundleno = 18 (0x12), region = 16 }
   0x8   : > { %p41_p4 = scmp.eq.s32.totalorder %s39_s21, 0 }
   0xa   : > { %s1492_s23 = scalar_select %p41_p4, %s1416_s16, %s43_s22  }
   0xc   : > { %191 = sbr.rel (!%p52_p3) target bundleno = 18 (0x12), region = 20  ;;  %s193_s24 = sand.u32 (%p52_p3), 1, %s1416_s16  }
   0xd   : > { %s1242_s25 = sshll.u32 (%p52_p3), %s1424_s18, 4  ;;  %s1154_s26 = sshll.u32 (%p52_p3), %s193_s24, 5 }
   0xe   : > { %s201_s29 = scalar_lea.vmem (%p52_p3), %s1608_s0, %s1242_s25  ;;  %s195_s30 = scalar_lea.vmem (%p52_p3), [#allocation3], %s1154_s26 }
   0xf   : > { %v214_v0 = vld [vmem:[%s201_s29] sm:$0xff] (%p52_p3)  ;;  %v216_v1 = vld [vmem:[%s201_s29 + $0x8] sm:$0xff] (%p52_p3)  ;;  %v218_v2 = vld [vmem:[%s201_s29 + $0x50] sm:$0xff] (%p52_p3) }
  0x10   : > { %215 = vst [vmem:[%s195_s30] sm:$0xff] (%p52_p3), %v214_v0  ;;  %217 = vst [vmem:[%s195_s30 + $0x8] sm:$0xff] (%p52_p3), %v216_v1  ;;  %v220_v3 = vld [vmem:[%s201_s29 + $0x58] sm:$0xff] (%p52_p3) }
  0x11   : > { %219 = vst [vmem:[%s195_s30 + $0x10] sm:$0xff] %v218_v2  ;;  %221 = vst [vmem:[%s195_s30 + $0x18] sm:$0xff] %v220_v3 }
  0x12 PF: > { %p1157_p6 = scmp.ge.s32.totalorder %s1428_s19, 1  ;;  %p241_p7 = scmp.lt.s32.totalorder %s1428_s19, 6 }
  0x14   : > { %p242_p8 = pnand %p1157_p6, %p241_p7 }
  0x15   : > { %s248_s5 = sand.u32 (!%p242_p8), 1, %s1412_s15   ;;  %s1159_s6 = sshll.u32 (!%p242_p8), %s1420_s17, 6 }
  0x16   : > { %245 = sbr.rel (%p242_p8) target bundleno = 335 (0x14f), region = 47  ;;  %s1158_s7 = sshll.u32 (!%p242_p8), %s248_s5, 5 }
  0x17   : > { %p308_p9 = scmp.lt.s32.totalorder (!%p242_p8), %s1159_s6, 319  ;;  %s1509_s12 = scalar_lea.vmem (!%p242_p8), [#allocation3], %s1158_s7 }
  0x18   : > { %p1162_p10 = scmp.ne.s32.totalorder (!%p242_p8), %s1420_s17, 0 }
  0x1b   : > { %s1620_s6 = smov (!%p308_p9, %s1159_s6), 319  ;;  %351 = sbr.rel (%p1162_p10) target bundleno = 35 (0x23), region = 55 }
  0x1c   : > { %s1243_s8 = sshll.u32 %s1620_s6, 3 }
  0x1d   : > { %s1507_s11 = scalar_lea.vmem %s1609_s1, %s1243_s8 }
  0x20   : > { %v1430_v4 = vmov 0.0  }
  0x21   : > { %352 = vst [vmem:[#allocation2 + $0x10] sm:$0xff] %v1430_v4  ;;  %353 = vst [vmem:[#allocation2] sm:$0xff] %v1430_v4 }
  0x22   : > { %354 = vst [vmem:[#allocation2 + $0x18] sm:$0xff] %v1430_v4  ;;  %355 = vst [vmem:[#allocation2 + $0x8] sm:$0xff] %v1430_v4 }
  0x23 PF: > { %v1288_v5 = vld [vmem:[%s1507_s11 + $0x74] ss:$8 sps:$4 sm:$0xff]   ;;  %v1292_v7 = vld [vmem:[%s1507_s11 + $0x70] ss:$8 sps:$4 sm:$0xff]   ;;  %v1294_v9 = vld [vmem:[%s1507_s11 + $0x64] ss:$8 sps:$4 sm:$0xff]  }
  0x24   : > { %v1290_v6 = vld [vmem:[%s1507_s11 + $0x174] ss:$8 sps:$4 sm:$0xff]   ;;  %768 = vmatprep.subr.bf16.mxu0 %v1288_v5  ;;  %v1293_v8 = vld [vmem:[%s1507_s11 + $0x170] ss:$8 sps:$4 sm:$0xff]   ;;  %v1296_v10 = vld [vmem:[%s1507_s11 + $0x164] ss:$8 sps:$4 sm:$0xff]  }
  0x25   : > { %811 = vmatprep.subr.bf16.mxu1 %v1290_v6  ;;  %769 = vmatpush1.bf16.msra.mxu0 %v1292_v7  ;;  %v1298_v11 = vld [vmem:[%s1507_s11 + $0x60] ss:$8 sps:$4 sm:$0xff]   ;;  %v1300_v13 = vld [vmem:[%s1507_s11 + $0x54] ss:$8 sps:$4 sm:$0xff]   ;;  %v1304_v15 = vld [vmem:[%s1507_s11 + $0x50] ss:$8 sps:$4 sm:$0xff]  }
  0x26   : > { %812 = vmatpush1.bf16.msra.mxu1 %v1293_v8  ;;  %770 = vmatprep.subr.bf16.mxu0 %v1294_v9  ;;  %v1299_v12 = vld [vmem:[%s1507_s11 + $0x160] ss:$8 sps:$4 sm:$0xff]   ;;  %v1302_v14 = vld [vmem:[%s1507_s11 + $0x154] ss:$8 sps:$4 sm:$0xff]   ;;  %v1305_v16 = vld [vmem:[%s1507_s11 + $0x150] ss:$8 sps:$4 sm:$0xff]  }
  0x27   : > { %813 = vmatprep.subr.bf16.mxu1 %v1296_v10  ;;  %v1306_v17 = vld [vmem:[%s1507_s11 + $0x44] ss:$8 sps:$4 sm:$0xff]   ;;  %v1310_v19 = vld [vmem:[%s1507_s11 + $0x40] ss:$8 sps:$4 sm:$0xff]   ;;  %v1312_v21 = vld [vmem:[%s1507_s11 + $0x34] ss:$8 sps:$4 sm:$0xff]  }
  0x28   : > { %v1308_v18 = vld [vmem:[%s1507_s11 + $0x144] ss:$8 sps:$4 sm:$0xff]   ;;  %v1311_v20 = vld [vmem:[%s1507_s11 + $0x140] ss:$8 sps:$4 sm:$0xff]   ;;  %v1314_v22 = vld [vmem:[%s1507_s11 + $0x134] ss:$8 sps:$4 sm:$0xff]  }
  0x29   : > { %771 = vmatpush1.bf16.msra.mxu0 %v1298_v11  ;;  %v1316_v23 = vld [vmem:[%s1507_s11 + $0x30] ss:$8 sps:$4 sm:$0xff]   ;;  %v1318_v25 = vld [vmem:[%s1507_s11 + $0x24] ss:$8 sps:$4 sm:$0xff]   ;;  %v1322_v27 = vld [vmem:[%s1507_s11 + $0x20] ss:$8 sps:$4 sm:$0xff]  }
  0x2a   : > { %814 = vmatpush1.bf16.msra.mxu1 %v1299_v12  ;;  %772 = vmatprep.subr.bf16.mxu0 %v1300_v13  ;;  %v1317_v24 = vld [vmem:[%s1507_s11 + $0x130] ss:$8 sps:$4 sm:$0xff]   ;;  %v1320_v26 = vld [vmem:[%s1507_s11 + $0x124] ss:$8 sps:$4 sm:$0xff]   ;;  %v1323_v28 = vld [vmem:[%s1507_s11 + $0x120] ss:$8 sps:$4 sm:$0xff]  }
  0x2b   : > { %815 = vmatprep.subr.bf16.mxu1 %v1302_v14  ;;  %v1324_v29 = vld [vmem:[%s1507_s11 + $0x14] ss:$8 sps:$4 sm:$0xff]   ;;  %v1328_v31 = vld [vmem:[%s1507_s11 + $0x10] ss:$8 sps:$4 sm:$0xff]   ;;  %v1330_v33 = vld [vmem:[%s1507_s11 + $0x4] ss:$8 sps:$4 sm:$0xff]  }
  0x2c   : > { %v1326_v30 = vld [vmem:[%s1507_s11 + $0x114] ss:$8 sps:$4 sm:$0xff]   ;;  %v1329_v32 = vld [vmem:[%s1507_s11 + $0x110] ss:$8 sps:$4 sm:$0xff]   ;;  %v1332_v34 = vld [vmem:[%s1507_s11 + $0x104] ss:$8 sps:$4 sm:$0xff]  }
  0x2d   : > { %773 = vmatpush1.bf16.msra.mxu0 %v1304_v15  ;;  %v1334_v35 = vld [vmem:[%s1507_s11] ss:$8 sps:$4 sm:$0xff]   ;;  %v1336_v37 = vld [vmem:[%s1507_s11 + $0xf4] ss:$8 sps:$4 sm:$0xff]   ;;  %v1340_v39 = vld [vmem:[%s1507_s11 + $0xf0] ss:$8 sps:$4 sm:$0xff]  }
  0x2e   : > { %816 = vmatpush1.bf16.msra.mxu1 %v1305_v16  ;;  %774 = vmatprep.subr.bf16.mxu0 %v1306_v17  ;;  %v1335_v36 = vld [vmem:[%s1507_s11 + $0x100] ss:$8 sps:$4 sm:$0xff]   ;;  %v1338_v38 = vld [vmem:[%s1507_s11 + $0x1f4] ss:$8 sps:$4 sm:$0xff]   ;;  %v1341_v40 = vld [vmem:[%s1507_s11 + $0x1f0] ss:$8 sps:$4 sm:$0xff]  }
  0x2f   : > { %817 = vmatprep.subr.bf16.mxu1 %v1308_v18  ;;  %v1342_v41 = vld [vmem:[%s1507_s11 + $0xe4] ss:$8 sps:$4 sm:$0xff]   ;;  %v1346_v43 = vld [vmem:[%s1507_s11 + $0xe0] ss:$8 sps:$4 sm:$0xff]   ;;  %v1348_v45 = vld [vmem:[%s1507_s11 + $0xd4] ss:$8 sps:$4 sm:$0xff]  }
  0x30   : > { %v1344_v42 = vld [vmem:[%s1507_s11 + $0x1e4] ss:$8 sps:$4 sm:$0xff]   ;;  %v1347_v44 = vld [vmem:[%s1507_s11 + $0x1e0] ss:$8 sps:$4 sm:$0xff]   ;;  %v1350_v46 = vld [vmem:[%s1507_s11 + $0x1d4] ss:$8 sps:$4 sm:$0xff]  }
  0x31   : > { %775 = vmatpush1.bf16.msra.mxu0 %v1310_v19  ;;  %v1352_v47 = vld [vmem:[%s1507_s11 + $0xd0] ss:$8 sps:$4 sm:$0xff]   ;;  %v1354_v49 = vld [vmem:[%s1507_s11 + $0xc4] ss:$8 sps:$4 sm:$0xff]   ;;  %v1358_v51 = vld [vmem:[%s1507_s11 + $0xc0] ss:$8 sps:$4 sm:$0xff]  }
  0x32   : > { %818 = vmatpush1.bf16.msra.mxu1 %v1311_v20  ;;  %776 = vmatprep.subr.bf16.mxu0 %v1312_v21  ;;  %v1353_v48 = vld [vmem:[%s1507_s11 + $0x1d0] ss:$8 sps:$4 sm:$0xff]   ;;  %v1356_v50 = vld [vmem:[%s1507_s11 + $0x1c4] ss:$8 sps:$4 sm:$0xff]   ;;  %v1359_v53 = vld [vmem:[%s1507_s11 + $0x1c0] ss:$8 sps:$4 sm:$0xff]  }
  0x33   : > { %819 = vmatprep.subr.bf16.mxu1 %v1314_v22  ;;  %v1386_v52 = vld [vmem:[%s1509_s12 + $0x4] ss:$16 sps:$4 sm:$0xff]   ;;  %v1389_v56 = vld [vmem:[%s1509_s12 + $0xc] ss:$16 sps:$4 sm:$0xff]   ;;  %v1364_v57 = vld [vmem:[%s1507_s11 + $0xb0] ss:$8 sps:$4 sm:$0xff]  }
  0x34   : > { %v1360_v54 = vld [vmem:[%s1507_s11 + $0xb4] ss:$8 sps:$4 sm:$0xff]   ;;  %800 = vmatprep.mubr.bf16.mxu0 %v1386_v52  ;;  %843 = vmatprep.mubr.bf16.mxu1 %v1389_v56  ;;  %v1365_v58 = vld [vmem:[%s1507_s11 + $0x1b0] ss:$8 sps:$4 sm:$0xff]   ;;  %v1366_v59 = vld [vmem:[%s1507_s11 + $0xa4] ss:$8 sps:$4 sm:$0xff]  }
  0x35   : > { %777 = vmatpush1.bf16.msra.mxu0 %v1316_v23  ;;  %v1362_v55 = vld [vmem:[%s1507_s11 + $0x1b4] ss:$8 sps:$4 sm:$0xff]   ;;  %v1368_v60 = vld [vmem:[%s1507_s11 + $0x1a4] ss:$8 sps:$4 sm:$0xff]   ;;  %v1370_v61 = vld [vmem:[%s1507_s11 + $0xa0] ss:$8 sps:$4 sm:$0xff]  }
  0x36   : > { %820 = vmatpush1.bf16.msra.mxu1 %v1317_v24  ;;  %778 = vmatprep.subr.bf16.mxu0 %v1318_v25  ;;  %v1371_v62 = vld [vmem:[%s1507_s11 + $0x1a0] ss:$8 sps:$4 sm:$0xff]   ;;  %v1372_v63 = vld [vmem:[%s1507_s11 + $0x94] ss:$8 sps:$4 sm:$0xff]   ;;  %v1376_v1 = vld [vmem:[%s1507_s11 + $0x90] ss:$8 sps:$4 sm:$0xff]  }
  0x37   : > { %821 = vmatprep.subr.bf16.mxu1 %v1320_v26  ;;  %v1374_v0 = vld [vmem:[%s1507_s11 + $0x194] ss:$8 sps:$4 sm:$0xff]   ;;  %v1377_v2 = vld [vmem:[%s1507_s11 + $0x190] ss:$8 sps:$4 sm:$0xff]   ;;  %v1378_v3 = vld [vmem:[%s1507_s11 + $0x84] ss:$8 sps:$4 sm:$0xff]  }
  0x38   : > { %v1380_v4 = vld [vmem:[%s1507_s11 + $0x184] ss:$8 sps:$4 sm:$0xff]   ;;  %v1382_v5 = vld [vmem:[%s1507_s11 + $0x80] ss:$8 sps:$4 sm:$0xff]   ;;  %v356_v10 = vld [vmem:[#allocation2 + $0x10] sm:$0xff]  ;;  %p1231_p11 = scmp.ne.s32.totalorder %s1420_s17, 4 }
  0x39   : > { %779 = vmatpush1.bf16.msra.mxu0 %v1322_v27  ;;  %v1383_v6 = vld [vmem:[%s1507_s11 + $0x180] ss:$8 sps:$4 sm:$0xff]   ;;  %v358_v19 = vld [vmem:[#allocation2 + $0x18] sm:$0xff] }
  0x3a   : > { %822 = vmatpush1.bf16.msra.mxu1 %v1323_v28  ;;  %780 = vmatprep.subr.bf16.mxu0 %v1324_v29  ;;  %v1384_v7 = vld [vmem:[%s1509_s12] ss:$16 sps:$4 sm:$0xff]   ;;  %v1387_v8 = vld [vmem:[%s1509_s12 + $0x8] ss:$16 sps:$4 sm:$0xff]  }
  0x3b   : > { %823 = vmatprep.subr.bf16.mxu1 %v1326_v30  ;;  %v357_v14 = vld [vmem:[#allocation2] sm:$0xff]  ;;  %v359_v24 = vld [vmem:[#allocation2 + $0x8] sm:$0xff] }
  0x3d   : > { %781 = vmatpush1.bf16.msra.mxu0 %v1328_v31 }
  0x3e   : > { %824 = vmatpush1.bf16.msra.mxu1 %v1329_v32  ;;  %782 = vmatprep.subr.bf16.mxu0 %v1330_v33 }
  0x3f   : > { %825 = vmatprep.subr.bf16.mxu1 %v1332_v34 }
  0x41   : > { %783 = vmatpush1.bf16.msra.mxu0 %v1334_v35 }
  0x42   : > { %826 = vmatpush1.bf16.msra.mxu1 %v1335_v36  ;;  %784 = vmatprep.subr.bf16.mxu0 %v1336_v37 }
  0x43   : > { %827 = vmatprep.subr.bf16.mxu1 %v1338_v38 }
  0x45   : > { %785 = vmatpush2.bf16.msra.mxu0 %v1340_v39 }
  0x46   : > { %828 = vmatpush2.bf16.msra.mxu1 %v1341_v40  ;;  %786 = vmatprep.subr.bf16.mxu0 %v1342_v41 }
  0x47   : > { %829 = vmatprep.subr.bf16.mxu1 %v1344_v42 }
  0x49   : > { %787 = vmatpush2.bf16.msra.mxu0 %v1346_v43 }
  0x4a   : > { %830 = vmatpush2.bf16.msra.mxu1 %v1347_v44  ;;  %788 = vmatprep.subr.bf16.mxu0 %v1348_v45 }
  0x4b   : > { %831 = vmatprep.subr.bf16.mxu1 %v1350_v46 }
  0x4d   : > { %789 = vmatpush2.bf16.msra.mxu0 %v1352_v47 }
  0x4e   : > { %832 = vmatpush2.bf16.msra.mxu1 %v1353_v48  ;;  %790 = vmatprep.subr.bf16.mxu0 %v1354_v49 }
  0x4f   : > { %833 = vmatprep.subr.bf16.mxu1 %v1356_v50 }
  0x51   : > { %791 = vmatpush2.bf16.msra.mxu0 %v1358_v51 }
  0x52   : > { %834 = vmatpush2.bf16.msra.mxu1 %v1359_v53  ;;  %792 = vmatprep.subr.bf16.mxu0 %v1360_v54 }
  0x53   : > { %835 = vmatprep.subr.bf16.mxu1 %v1362_v55 }
  0x55   : > { %793 = vmatpush2.bf16.msra.mxu0 %v1364_v57 }
  0x56   : > { %836 = vmatpush2.bf16.msra.mxu1 %v1365_v58  ;;  %794 = vmatprep.subr.bf16.mxu0 %v1366_v59 }
  0x57   : > { %837 = vmatprep.subr.bf16.mxu1 %v1368_v60 }
  0x59   : > { %795 = vmatpush2.bf16.msra.mxu0 %v1370_v61 }
  0x5a   : > { %838 = vmatpush2.bf16.msra.mxu1 %v1371_v62  ;;  %796 = vmatprep.subr.bf16.mxu0 %v1372_v63 }
  0x5b   : > { %839 = vmatprep.subr.bf16.mxu1 %v1374_v0 }
  0x5d   : > { %797 = vmatpush2.bf16.msra.mxu0 %v1376_v1 }
  0x5e   : > { %840 = vmatpush2.bf16.msra.mxu1 %v1377_v2  ;;  %798 = vmatprep.subr.bf16.mxu0 %v1378_v3 }
  0x5f   : > { %841 = vmatprep.subr.bf16.mxu1 %v1380_v4 }
  0x61   : > { %799 = vmatpush2.bf16.msra.mxu0 %v1382_v5 }
  0x62   : > { %842 = vmatpush2.bf16.msra.mxu1 %v1383_v6 }
  0x64   : > { %801 = vmatmul.mubr.bf16.vlgmr.msra.gmra.mxu0 %v1384_v7 }
  0x65   : > { %844 = vmatmul.mubr.bf16.vlgmr.msra.gmra.mxu1 %v1387_v8 }
 0x124   : > { %v802_v9 = vpop.f32.mrf.mxu0 }
 0x125   : > { %v845_v11 = vpop.f32.mrf.mxu1 }
 0x126   : > { %v846_v12 = vadd.f32 %v845_v11, %v802_v9  ;;  %v804_v13 = vpop.f32.mrf.mxu0 }
 0x127   : > { %v847_v15 = vpop.f32.mrf.mxu1 }
 0x128   : > { %v854_v16 = vadd.f32 %v846_v12, %v356_v10  ;;  %v848_v17 = vadd.f32 %v847_v15, %v804_v13  ;;  %v806_v18 = vpop.f32.mrf.mxu0 }
 0x129   : > { %v849_v20 = vpop.f32.mrf.mxu1 }
 0x12a   : > { %858 = vst [vmem:[#allocation2 + $0x10] sm:$0xff] %v854_v16  ;;  %v855_v21 = vadd.f32 %v848_v17, %v357_v14  ;;  %v850_v22 = vadd.f32 %v849_v20, %v806_v18  ;;  %v808_v23 = vpop.f32.mrf.mxu0 }
 0x12b   : > { %v851_v25 = vpop.f32.mrf.mxu1 }
 0x12c   : > { %859 = vst [vmem:[#allocation2] sm:$0xff] %v855_v21  ;;  %v856_v26 = vadd.f32 %v850_v22, %v358_v19  ;;  %v852_v27 = vadd.f32 %v851_v25, %v808_v23  ;;  %865 = sbr.rel (%p1231_p11) target bundleno = 335 (0x14f), region = 59 }
 0x12e   : > { %860 = vst [vmem:[#allocation2 + $0x18] sm:$0xff] %v856_v26  ;;  %v857_v28 = vadd.f32 %v852_v27, %v359_v24 }
 0x130   : > { %861 = vst [vmem:[#allocation2 + $0x8] sm:$0xff] %v857_v28 }
 0x131   : > { %v866_v29 = vld [vmem:[#allocation2 + $0x10] sm:$0xff]  ;;  %v904_v46 = vlaneseq  ;;  %v1431_v50 = vmov 1966171168  }
 0x132   : > { %v921_v33 = vmul.f32 %v866_v29, %v866_v29  ;;  %v902_v51 = vunpack.c.l.s4 %v1431_v50 }
 0x133   : > { %v867_v30 = vld [vmem:[#allocation2] sm:$0xff]  ;;  %v905_v57 = vshrl.u32 %v904_v46, 7  ;;  %vm918_vm0 = vcmp.lt.s32.totalorder %v904_v46, 256 }
 0x134   : > { %v1244_v32 = vpack.c.bf16 %v867_v30, %v866_v29  ;;  %v922_v34 = vmul.f32 %v867_v30, %v867_v30  ;;  %v903_v61 = vunpack.c.0.s8 %v902_v51 }
 0x135   : > { %v868_v31 = vld [vmem:[#allocation2 + $0x18] sm:$0xff] }
 0x136   : > { %v884_v36 = vadd.f32 %v868_v31, %v866_v29  ;;  %v923_v39 = vmul.f32 %v868_v31, %v868_v31  ;;  %882 = vst [vmem:[%s1610_s2] sm:$0xff] %v1244_v32  ;;  %v906_v4 = vsub.s32 %v903_v61, %v905_v57 }
 0x137   : > { %v869_v35 = vld [vmem:[#allocation2 + $0x8] sm:$0xff] }
 0x138   : > { %v1245_v37 = vpack.c.bf16 %v869_v35, %v868_v31  ;;  %v891_v38 = vadd.f32 %v869_v35, %v867_v30  ;;  %v924_v40 = vmul.f32 %v869_v35, %v869_v35  ;;  %v885_v41 = vrot.slane %v884_v36, 4 }
 0x139   : > { %v925_v43 = vadd.f32 %v923_v39, %v921_v33 }
 0x13a   : > { %883 = vst [vmem:[%s1610_s2 + $0x8] sm:$0xff] %v1245_v37  ;;  %v892_v42 = vrot.slane %v891_v38, 4  ;;  %v932_v44 = vadd.f32 %v924_v40, %v922_v34  ;;  %v886_v45 = vadd.f32 %v885_v41, %v884_v36 }
 0x13b   : > { %v926_v48 = vrot.slane %v925_v43, 4 }
 0x13c   : > { %v893_v47 = vadd.f32 %v892_v42, %v891_v38  ;;  %v933_v49 = vrot.slane %v932_v44, 4  ;;  %v887_v52 = vrot.slane %v886_v45, 2 }
 0x13d   : > { %v927_v54 = vadd.f32 %v926_v48, %v925_v43 }
 0x13e   : > { %v894_v53 = vrot.slane %v893_v47, 2  ;;  %v934_v55 = vadd.f32 %v933_v49, %v932_v44  ;;  %v888_v56 = vadd.f32 %v887_v52, %v886_v45 }
 0x13f   : > { %v928_v59 = vrot.slane %v927_v54, 2 }
 0x140   : > { %v895_v58 = vadd.f32 %v894_v53, %v893_v47  ;;  %v935_v60 = vrot.slane %v934_v55, 2  ;;  %v889_v62 = vrot.slane %v888_v56, 1 }
 0x141   : > { %v929_v0 = vadd.f32 %v928_v59, %v927_v54 }
 0x142   : > { %v896_v63 = vrot.slane %v895_v58, 1  ;;  %v936_v1 = vadd.f32 %v935_v60, %v934_v55  ;;  %v890_v2 = vadd.f32 %v889_v62, %v888_v56 }
 0x143   : > { %v930_v5 = vrot.slane %v929_v0, 1 }
 0x144   : > { %v897_v3 = vadd.f32 %v896_v63, %v895_v58  ;;  %v937_v6 = vrot.slane %v936_v1, 1 }
 0x145   : > { %v931_v8 = vadd.f32 %v930_v5, %v929_v0 }
 0x146   : > { %v900_v7 = vcombine.low %v890_v2, %v897_v3  ;;  %v938_v9 = vadd.f32 %v937_v6, %v936_v1 }
 0x148   : > { %v907_v10 = vrot.slane %v900_v7, %v906_v4  ;;  %v941_v11 = vcombine.low %v931_v8, %v938_v9 }
 0x14a   : > { %v914_v12 = vrot.slane %v907_v10, %v906_v4  ;;  %v948_v13 = vrot.slane %v941_v11, %v906_v4 }
 0x14c   : > { %920 = vst.msk [vmem:[%s1611_s3] sm:$0x3] %vm918_vm0, %v914_v12  ;;  %v955_v14 = vrot.slane %v948_v13, %v906_v4 }
 0x14e   : > { %957 = vst.msk [vmem:[%s1612_s4] sm:$0x3] %vm918_vm0, %v955_v14 }
 0x14f PF: > { %s15_s19 = sadd.s32 1, %s1428_s19   ;;  %s1613_s15 = smov %s1416_s16 }
 0x150   : > { %p12_p12 = scmp.ge.s32.totalorder %s15_s19, 7   ;;  %s1614_s16 = smov %s1492_s23 }
 0x151   : > { %s1615_s17 = smov %s1424_s18  ;;  %s1616_s18 = smov %s1618_s20 }
 0x152   :  { %14 = sbr.rel (!%p12_p12) target bundleno = 3 (0x3), region = 121 }

// kernel: resnet_forward.33
= control target key start
LH: loop header
LB: loop body
LE: loop exit
PB: predicated region body
PF: predicated region fallthrough
CT: control target
= control target key end

     0   :  { %s2250_s0 = inlined_call_operand.vmem [shape: bf16[16,2560], index: 0, kind: input, shape index: {}]   ;;  %s2251_s1 = inlined_call_operand.vmem [shape: bf16[2560,1024], index: 1, kind: input, shape index: {}]   ;;  %s2252_s2 = inlined_call_operand.vmem [shape: bf16[16,1024], index: 2, kind: output, shape index: {0}]   ;;  %s2253_s3 = inlined_call_operand.vmem [shape: f32[1,1,1024], index: 3, kind: output, shape index: {1}]   ;;  %s2254_s4 = inlined_call_operand.vmem [shape: f32[1,1,1024], index: 4, kind: output, shape index: {2}]  }
   0x1   :  { %2257 = sst [smem:[#allocation8_spill]] %s2250_s0 }
   0x2   :  { %2258 = sst [smem:[#allocation9_spill]] %s2251_s1 }
   0x3   :  { %s1859_s15 = smov 0   ;;  %s1861_s16 = smov 0  }
   0x4   :  { %s1863_s17 = smov 0   ;;  %s1865_s18 = smov 0  }
   0x5   :  { %s1867_s19 = smov 0   ;;  %s1869_s20 = smov 0  }
   0x6   :  { %s1871_s21 = smov 0   ;;  %s1873_s22 = smov 0  }
   0x7   :  { %s1875_s23 = smov 0   ;;  %s1877_s24 = smov 0  }
   0x8   :  { %s1879_s25 = smov 0  }
   0x9 LB: > { %s1452_s26 = sadd.s32 4294967295, %s1830_s25   ;;  %s27_s27 = sadd.s32 1, %s1822_s23  ;;  %s1830_s25 = sphi %s1879_s25, %s15_s25   ;;  %s1826_s24 = sphi %s1877_s24, %s2277_s24   ;;  %s1822_s23 = sphi %s1875_s23, %s2276_s23   ;;  %s1818_s22 = sphi %s1873_s22, %s2275_s22   ;;  %s1814_s21 = sphi %s1871_s21, %s2274_s21   ;;  %s1810_s20 = sphi %s1869_s20, %s2273_s20   ;;  %s1806_s19 = sphi %s1867_s19, %s2272_s19   ;;  %s1802_s18 = sphi %s1865_s18, %s2271_s18   ;;  %s1798_s17 = sphi %s1863_s17, %s2270_s17   ;;  %s1794_s16 = sphi %s1861_s16, %s2269_s16   ;;  %s1790_s15 = sphi %s1859_s15, %s2268_s15  }
   0xa   : > { %p28_p0 = scmp.ge.s32.totalorder %s27_s27, 5  ;;  %s30_s28 = sadd.s32 1, %s1826_s24 }
   0xb   : > { %s43_s29 = sadd.s32 1, %s1810_s20  ;;  %p50_p1 = scmp.ne.s32.totalorder %s1810_s20, %s1806_s19 }
   0xc   : > { %s2279_s27 = smov (%p28_p0, %s27_s27), 0  ;;  %s2281_s28 = smov (!%p28_p0, %s30_s28), %s1826_s24 }
   0xd   : > { %2259 = sst [smem:[#allocation6_spill]] %s2279_s27  ;;  %s39_s30 = ssub.s32 %s1822_s23, %s2279_s27 }
   0xe   : > { %p51_p2 = scmp.eq.s32.totalorder %s1830_s25, 0  ;;  %p32_p3 = scmp.ge.s32.totalorder %s2281_s28, 4 }
   0xf   : > { %p41_p4 = scmp.eq.s32.totalorder %s39_s30, 0  ;;  %s71_s6 = sadd.s32 1, %s1802_s18 }
  0x10   : > { %p1926_p5 = por %p51_p2, %p50_p1  ;;  %s2283_s28 = smov (%p32_p3, %s2281_s28), 0 }
  0x11   : > { %2261 = sst [smem:[#allocation7_spill]] %s2283_s28  ;;  %s67_s8 = ssub.s32 %s1826_s24, %s2283_s28 }
  0x12   : > { %s1934_s7 = scalar_select %p41_p4, %s1810_s20, %s43_s29  }
  0x13   : > { %p78_p6 = scmp.ne.s32.totalorder %s1802_s18, %s1798_s17  ;;  %s68_s9 = sor.u32 %s67_s8, %s39_s30 }
  0x14   : > { %p97_p7 = scmp.eq.s32.totalorder %s67_s8, 0  ;;  %p69_p8 = scmp.eq.s32.totalorder %s68_s9, 0 }
  0x15   : > { %p1940_p9 = por %p78_p6, %p51_p2  ;;  %s99_s11 = sadd.s32 1, %s1794_s16 }
  0x16   : > { %p109_p10 = scmp.ne.s32.totalorder %s1794_s16, %s1790_s15  ;;  %p110_p11 = scmp.eq.s32.totalorder %s1452_s26, 19 }
  0x17   : > { %s1948_s12 = scalar_select %p69_p8, %s1802_s18, %s71_s6  }
  0x18   : > { %s1951_s13 = scalar_select %p97_p7, %s1794_s16, %s99_s11  }
  0x19   : > { %p1953_p12 = por %p110_p11, %p109_p10  ;;  %p1455_p13 = scmp.ge.s32.totalorder %s1830_s25, 20 }
  0x1b   : > { %188 = sbr.rel (%p1455_p13) target bundleno = 118 (0x76), region = 16 }
  0x20   : > { %191 = sbr.rel (!%p1926_p5) target bundleno = 44 (0x2c), region = 20  ;;  %s193_s29 = sand.u32 (%p1926_p5), 1, %s1810_s20  }
  0x21   : > { %s1547_s30 = sshll.u32 (%p1926_p5), %s1822_s23, 4  ;;  %s1456_s8 = sshll.u32 (%p1926_p5), %s193_s29, 5 }
  0x22   : > { %s2264_s0 = sld [smem:[#allocation8_spill]] (%p1926_p5)  ;;  %s195_s26 = scalar_lea.vmem (%p1926_p5), [#allocation3], %s1456_s8 }
  0x28   : > { %s201_s11 = scalar_lea.vmem %s2264_s0, %s1547_s30 }
  0x29   : > { %v214_v0 = vld [vmem:[%s201_s11] sm:$0xff]  ;;  %v216_v1 = vld [vmem:[%s201_s11 + $0x8] sm:$0xff]  ;;  %v218_v2 = vld [vmem:[%s201_s11 + $0x50] sm:$0xff] }
  0x2a   : > { %215 = vst [vmem:[%s195_s26] sm:$0xff] %v214_v0  ;;  %217 = vst [vmem:[%s195_s26 + $0x8] sm:$0xff] %v216_v1  ;;  %v220_v3 = vld [vmem:[%s201_s11 + $0x58] sm:$0xff] }
  0x2b   : > { %219 = vst [vmem:[%s195_s26 + $0x10] sm:$0xff] %v218_v2  ;;  %221 = vst [vmem:[%s195_s26 + $0x18] sm:$0xff] %v220_v3 }
  0x2c PF: > { %227 = sbr.rel (!%p1940_p9) target bundleno = 118 (0x76), region = 43  ;;  %s229_s5 = sand.u32 (%p1940_p9), 1, %s1802_s18  }
  0x2d   : > { %s1461_s29 = sshll.u32 (%p1940_p9), %s1826_s24, 1  ;;  %s1459_s6 = sshll.u32 (%p1940_p9), %s229_s5, 9 }
  0x2e   : > { %s1548_s30 = sshll.u32 (%p1940_p9), %s1822_s23, 9  ;;  %s2265_s1 = sld [smem:[#allocation9_spill]] (%p1940_p9) }
  0x2f   : > { %s235_s9 = sadd.s32 (%p1940_p9), %s1548_s30, %s1461_s29  ;;  %s1978_s10 = scalar_lea.vmem (%p1940_p9), [#allocation4], %s1459_s6 }
  0x30   : > { %s1463_s0 = sshll.u32 (%p1940_p9), %s235_s9, 2 }
  0x34   : > { %s1973_s27 = scalar_lea.vmem %s2265_s1, %s1463_s0 }
  0x35   : > { %v392_v4 = vld [vmem:[%s1973_s27] sm:$0xff] }
  0x36   : > { %v394_v5 = vld [vmem:[%s1973_s27 + $0x20] sm:$0xff]  ;;  %393 = vst [vmem:[%s1978_s10] sm:$0xff] %v392_v4 }
  0x37   : > { %v396_v6 = vld [vmem:[%s1973_s27 + $0x40] sm:$0xff]  ;;  %395 = vst [vmem:[%s1978_s10 + $0x8] sm:$0xff] %v394_v5 }
  0x38   : > { %397 = vst [vmem:[%s1978_s10 + $0x10] sm:$0xff] %v396_v6  ;;  %v398_v7 = vld [vmem:[%s1973_s27 + $0x60] sm:$0xff] }
  0x39   : > { %v400_v8 = vld [vmem:[%s1973_s27 + $0x80] sm:$0xff]  ;;  %399 = vst [vmem:[%s1978_s10 + $0x18] sm:$0xff] %v398_v7 }
  0x3a   : > { %v402_v9 = vld [vmem:[%s1973_s27 + $0xa0] sm:$0xff]  ;;  %401 = vst [vmem:[%s1978_s10 + $0x20] sm:$0xff] %v400_v8 }
  0x3b   : > { %403 = vst [vmem:[%s1978_s10 + $0x28] sm:$0xff] %v402_v9  ;;  %v404_v10 = vld [vmem:[%s1973_s27 + $0xc0] sm:$0xff] }
  0x3c   : > { %v406_v11 = vld [vmem:[%s1973_s27 + $0xe0] sm:$0xff]  ;;  %405 = vst [vmem:[%s1978_s10 + $0x30] sm:$0xff] %v404_v10 }
  0x3d   : > { %v408_v12 = vld [vmem:[%s1973_s27 + $0x100] sm:$0xff]  ;;  %407 = vst [vmem:[%s1978_s10 + $0x38] sm:$0xff] %v406_v11 }
  0x3e   : > { %409 = vst [vmem:[%s1978_s10 + $0x40] sm:$0xff] %v408_v12  ;;  %v410_v13 = vld [vmem:[%s1973_s27 + $0x120] sm:$0xff] }
  0x3f   : > { %v412_v14 = vld [vmem:[%s1973_s27 + $0x140] sm:$0xff]  ;;  %411 = vst [vmem:[%s1978_s10 + $0x48] sm:$0xff] %v410_v13 }
  0x40   : > { %v414_v15 = vld [vmem:[%s1973_s27 + $0x160] sm:$0xff]  ;;  %413 = vst [vmem:[%s1978_s10 + $0x50] sm:$0xff] %v412_v14 }
  0x41   : > { %415 = vst [vmem:[%s1978_s10 + $0x58] sm:$0xff] %v414_v15  ;;  %v416_v16 = vld [vmem:[%s1973_s27 + $0x180] sm:$0xff] }
  0x42   : > { %v418_v17 = vld [vmem:[%s1973_s27 + $0x1a0] sm:$0xff]  ;;  %417 = vst [vmem:[%s1978_s10 + $0x60] sm:$0xff] %v416_v16 }
  0x43   : > { %v420_v18 = vld [vmem:[%s1973_s27 + $0x1c0] sm:$0xff]  ;;  %419 = vst [vmem:[%s1978_s10 + $0x68] sm:$0xff] %v418_v17 }
  0x44   : > { %421 = vst [vmem:[%s1978_s10 + $0x70] sm:$0xff] %v420_v18  ;;  %v422_v19 = vld [vmem:[%s1973_s27 + $0x1e0] sm:$0xff] }
  0x45   : > { %v424_v20 = vld [vmem:[%s1973_s27 + $0x200] sm:$0xff]  ;;  %423 = vst [vmem:[%s1978_s10 + $0x78] sm:$0xff] %v422_v19 }
  0x46   : > { %v426_v21 = vld [vmem:[%s1973_s27 + $0x220] sm:$0xff]  ;;  %425 = vst [vmem:[%s1978_s10 + $0x80] sm:$0xff] %v424_v20 }
  0x47   : > { %427 = vst [vmem:[%s1978_s10 + $0x88] sm:$0xff] %v426_v21  ;;  %v428_v22 = vld [vmem:[%s1973_s27 + $0x240] sm:$0xff] }
  0x48   : > { %v430_v23 = vld [vmem:[%s1973_s27 + $0x260] sm:$0xff]  ;;  %429 = vst [vmem:[%s1978_s10 + $0x90] sm:$0xff] %v428_v22 }
  0x49   : > { %v432_v24 = vld [vmem:[%s1973_s27 + $0x280] sm:$0xff]  ;;  %431 = vst [vmem:[%s1978_s10 + $0x98] sm:$0xff] %v430_v23 }
  0x4a   : > { %433 = vst [vmem:[%s1978_s10 + $0xa0] sm:$0xff] %v432_v24  ;;  %v434_v25 = vld [vmem:[%s1973_s27 + $0x2a0] sm:$0xff] }
  0x4b   : > { %v436_v26 = vld [vmem:[%s1973_s27 + $0x2c0] sm:$0xff]  ;;  %435 = vst [vmem:[%s1978_s10 + $0xa8] sm:$0xff] %v434_v25 }
  0x4c   : > { %v438_v27 = vld [vmem:[%s1973_s27 + $0x2e0] sm:$0xff]  ;;  %437 = vst [vmem:[%s1978_s10 + $0xb0] sm:$0xff] %v436_v26 }
  0x4d   : > { %439 = vst [vmem:[%s1978_s10 + $0xb8] sm:$0xff] %v438_v27  ;;  %v440_v28 = vld [vmem:[%s1973_s27 + $0x300] sm:$0xff] }
  0x4e   : > { %v442_v29 = vld [vmem:[%s1973_s27 + $0x320] sm:$0xff]  ;;  %441 = vst [vmem:[%s1978_s10 + $0xc0] sm:$0xff] %v440_v28 }
  0x4f   : > { %v444_v30 = vld [vmem:[%s1973_s27 + $0x340] sm:$0xff]  ;;  %443 = vst [vmem:[%s1978_s10 + $0xc8] sm:$0xff] %v442_v29 }
  0x50   : > { %445 = vst [vmem:[%s1978_s10 + $0xd0] sm:$0xff] %v444_v30  ;;  %v446_v31 = vld [vmem:[%s1973_s27 + $0x360] sm:$0xff] }
  0x51   : > { %v448_v32 = vld [vmem:[%s1973_s27 + $0x380] sm:$0xff]  ;;  %447 = vst [vmem:[%s1978_s10 + $0xd8] sm:$0xff] %v446_v31 }
  0x52   : > { %v450_v33 = vld [vmem:[%s1973_s27 + $0x3a0] sm:$0xff]  ;;  %449 = vst [vmem:[%s1978_s10 + $0xe0] sm:$0xff] %v448_v32 }
  0x53   : > { %451 = vst [vmem:[%s1978_s10 + $0xe8] sm:$0xff] %v450_v33  ;;  %v452_v34 = vld [vmem:[%s1973_s27 + $0x3c0] sm:$0xff] }
  0x54   : > { %v454_v35 = vld [vmem:[%s1973_s27 + $0x3e0] sm:$0xff]  ;;  %453 = vst [vmem:[%s1978_s10 + $0xf0] sm:$0xff] %v452_v34 }
  0x55   : > { %v456_v36 = vld [vmem:[%s1973_s27 + $0x400] sm:$0xff]  ;;  %455 = vst [vmem:[%s1978_s10 + $0xf8] sm:$0xff] %v454_v35 }
  0x56   : > { %457 = vst [vmem:[%s1978_s10 + $0x100] sm:$0xff] %v456_v36  ;;  %v458_v37 = vld [vmem:[%s1973_s27 + $0x420] sm:$0xff] }
  0x57   : > { %v460_v38 = vld [vmem:[%s1973_s27 + $0x440] sm:$0xff]  ;;  %459 = vst [vmem:[%s1978_s10 + $0x108] sm:$0xff] %v458_v37 }
  0x58   : > { %v462_v39 = vld [vmem:[%s1973_s27 + $0x460] sm:$0xff]  ;;  %461 = vst [vmem:[%s1978_s10 + $0x110] sm:$0xff] %v460_v38 }
  0x59   : > { %463 = vst [vmem:[%s1978_s10 + $0x118] sm:$0xff] %v462_v39  ;;  %v464_v40 = vld [vmem:[%s1973_s27 + $0x480] sm:$0xff] }
  0x5a   : > { %v466_v41 = vld [vmem:[%s1973_s27 + $0x4a0] sm:$0xff]  ;;  %465 = vst [vmem:[%s1978_s10 + $0x120] sm:$0xff] %v464_v40 }
  0x5b   : > { %v468_v42 = vld [vmem:[%s1973_s27 + $0x4c0] sm:$0xff]  ;;  %467 = vst [vmem:[%s1978_s10 + $0x128] sm:$0xff] %v466_v41 }
  0x5c   : > { %469 = vst [vmem:[%s1978_s10 + $0x130] sm:$0xff] %v468_v42  ;;  %v470_v43 = vld [vmem:[%s1973_s27 + $0x4e0] sm:$0xff] }
  0x5d   : > { %v472_v44 = vld [vmem:[%s1973_s27 + $0x500] sm:$0xff]  ;;  %471 = vst [vmem:[%s1978_s10 + $0x138] sm:$0xff] %v470_v43 }
  0x5e   : > { %v474_v45 = vld [vmem:[%s1973_s27 + $0x520] sm:$0xff]  ;;  %473 = vst [vmem:[%s1978_s10 + $0x140] sm:$0xff] %v472_v44 }
  0x5f   : > { %475 = vst [vmem:[%s1978_s10 + $0x148] sm:$0xff] %v474_v45  ;;  %v476_v46 = vld [vmem:[%s1973_s27 + $0x540] sm:$0xff] }
  0x60   : > { %v478_v47 = vld [vmem:[%s1973_s27 + $0x560] sm:$0xff]  ;;  %477 = vst [vmem:[%s1978_s10 + $0x150] sm:$0xff] %v476_v46 }
  0x61   : > { %v480_v48 = vld [vmem:[%s1973_s27 + $0x580] sm:$0xff]  ;;  %479 = vst [vmem:[%s1978_s10 + $0x158] sm:$0xff] %v478_v47 }
  0x62   : > { %481 = vst [vmem:[%s1978_s10 + $0x160] sm:$0xff] %v480_v48  ;;  %v482_v49 = vld [vmem:[%s1973_s27 + $0x5a0] sm:$0xff] }
  0x63   : > { %v484_v50 = vld [vmem:[%s1973_s27 + $0x5c0] sm:$0xff]  ;;  %483 = vst [vmem:[%s1978_s10 + $0x168] sm:$0xff] %v482_v49 }
  0x64   : > { %v486_v51 = vld [vmem:[%s1973_s27 + $0x5e0] sm:$0xff]  ;;  %485 = vst [vmem:[%s1978_s10 + $0x170] sm:$0xff] %v484_v50 }
  0x65   : > { %487 = vst [vmem:[%s1978_s10 + $0x178] sm:$0xff] %v486_v51  ;;  %v488_v52 = vld [vmem:[%s1973_s27 + $0x600] sm:$0xff] }
  0x66   : > { %v490_v53 = vld [vmem:[%s1973_s27 + $0x620] sm:$0xff]  ;;  %489 = vst [vmem:[%s1978_s10 + $0x180] sm:$0xff] %v488_v52 }
  0x67   : > { %v492_v54 = vld [vmem:[%s1973_s27 + $0x640] sm:$0xff]  ;;  %491 = vst [vmem:[%s1978_s10 + $0x188] sm:$0xff] %v490_v53 }
  0x68   : > { %493 = vst [vmem:[%s1978_s10 + $0x190] sm:$0xff] %v492_v54  ;;  %v494_v55 = vld [vmem:[%s1973_s27 + $0x660] sm:$0xff] }
  0x69   : > { %v496_v56 = vld [vmem:[%s1973_s27 + $0x680] sm:$0xff]  ;;  %495 = vst [vmem:[%s1978_s10 + $0x198] sm:$0xff] %v494_v55 }
  0x6a   : > { %v498_v57 = vld [vmem:[%s1973_s27 + $0x6a0] sm:$0xff]  ;;  %497 = vst [vmem:[%s1978_s10 + $0x1a0] sm:$0xff] %v496_v56 }
  0x6b   : > { %499 = vst [vmem:[%s1978_s10 + $0x1a8] sm:$0xff] %v498_v57  ;;  %v500_v58 = vld [vmem:[%s1973_s27 + $0x6c0] sm:$0xff] }
  0x6c   : > { %v502_v59 = vld [vmem:[%s1973_s27 + $0x6e0] sm:$0xff]  ;;  %501 = vst [vmem:[%s1978_s10 + $0x1b0] sm:$0xff] %v500_v58 }
  0x6d   : > { %v504_v60 = vld [vmem:[%s1973_s27 + $0x700] sm:$0xff]  ;;  %503 = vst [vmem:[%s1978_s10 + $0x1b8] sm:$0xff] %v502_v59 }
  0x6e   : > { %505 = vst [vmem:[%s1978_s10 + $0x1c0] sm:$0xff] %v504_v60  ;;  %v506_v61 = vld [vmem:[%s1973_s27 + $0x720] sm:$0xff] }
  0x6f   : > { %v508_v62 = vld [vmem:[%s1973_s27 + $0x740] sm:$0xff]  ;;  %507 = vst [vmem:[%s1978_s10 + $0x1c8] sm:$0xff] %v506_v61 }
  0x70   : > { %v510_v63 = vld [vmem:[%s1973_s27 + $0x760] sm:$0xff]  ;;  %509 = vst [vmem:[%s1978_s10 + $0x1d0] sm:$0xff] %v508_v62 }
  0x71   : > { %511 = vst [vmem:[%s1978_s10 + $0x1d8] sm:$0xff] %v510_v63  ;;  %v512_v0 = vld [vmem:[%s1973_s27 + $0x780] sm:$0xff] }
  0x72   : > { %v514_v1 = vld [vmem:[%s1973_s27 + $0x7a0] sm:$0xff]  ;;  %513 = vst [vmem:[%s1978_s10 + $0x1e0] sm:$0xff] %v512_v0 }
  0x73   : > { %v516_v2 = vld [vmem:[%s1973_s27 + $0x7c0] sm:$0xff]  ;;  %515 = vst [vmem:[%s1978_s10 + $0x1e8] sm:$0xff] %v514_v1 }
  0x74   : > { %517 = vst [vmem:[%s1978_s10 + $0x1f0] sm:$0xff] %v516_v2  ;;  %v518_v3 = vld [vmem:[%s1973_s27 + $0x7e0] sm:$0xff] }
  0x75   : > { %519 = vst [vmem:[%s1978_s10 + $0x1f8] sm:$0xff] %v518_v3 }
  0x76 PF: > { %p1464_p0 = scmp.ge.s32.totalorder %s1830_s25, 1  ;;  %p524_p1 = scmp.lt.s32.totalorder %s1830_s25, 21 }
  0x78   : > { %p525_p2 = pnand %p1464_p0, %p524_p1 }
  0x79   : > { %s531_s0 = sand.u32 (!%p525_p2), 1, %s1806_s19   ;;  %s538_s28 = sand.u32 (!%p525_p2), 1, %s1798_s17  }
  0x7a   : > { %528 = sbr.rel (%p525_p2) target bundleno = 442 (0x1ba), region = 81  ;;  %s1465_s11 = sshll.u32 (!%p525_p2), %s531_s0, 5 }
  0x7b   : > { %s1466_s26 = sshll.u32 (!%p525_p2), %s538_s28, 9  ;;  %s559_s5 = sand.u32 (!%p525_p2), 1, %s1790_s15  }
  0x7c   : > { %s1468_s29 = sshll.u32 (!%p525_p2), %s1818_s22, 1  ;;  %s1467_s27 = sshll.u32 (!%p525_p2), %s559_s5, 4 }
  0x7d   : > { %p591_p3 = scmp.lt.s32.totalorder (!%p525_p2), %s1468_s29, 7  ;;  %s2121_s19 = scalar_lea.vmem (!%p525_p2), [#allocation3], %s1465_s11 }
  0x7e   : > { %s2123_s17 = scalar_lea.vmem (!%p525_p2), [#allocation4], %s1466_s26  ;;  %s2125_s15 = scalar_lea.vmem (!%p525_p2), [#allocation5], %s1467_s27 }
  0x7f   : > { %s2285_s29 = smov (!%p591_p3, %s1468_s29), 7  ;;  %p1470_p4 = scmp.ne.s32.totalorder %s1814_s21, 0 }
  0x80   : > { %s595_s9 = scalar_lea.vmem %s2253_s3, %s2285_s29  ;;  %s604_s1 = scalar_lea.vmem %s2254_s4, %s2285_s29 }
  0x81   : > { %609 = sbr.rel (%p1470_p4) target bundleno = 137 (0x89), region = 93 }
  0x86   : > { %v1832_v4 = vmov 0.0  }
  0x87   : > { %610 = vst [vmem:[#allocation2 + $0x10] sm:$0xff] %v1832_v4  ;;  %611 = vst [vmem:[#allocation2] sm:$0xff] %v1832_v4 }
  0x88   : > { %612 = vst [vmem:[#allocation2 + $0x18] sm:$0xff] %v1832_v4  ;;  %613 = vst [vmem:[#allocation2 + $0x8] sm:$0xff] %v1832_v4 }
  0x89 PF: > { %v1642_v5 = vld [vmem:[%s2123_s17 + $0x74] ss:$8 sps:$4 sm:$0xff]   ;;  %v1646_v7 = vld [vmem:[%s2123_s17 + $0x70] ss:$8 sps:$4 sm:$0xff]   ;;  %v1648_v9 = vld [vmem:[%s2123_s17 + $0x64] ss:$8 sps:$4 sm:$0xff]  }
  0x8a   : > { %v1644_v6 = vld [vmem:[%s2123_s17 + $0x174] ss:$8 sps:$4 sm:$0xff]   ;;  %1026 = vmatprep.subr.bf16.mxu0 %v1642_v5  ;;  %v1647_v8 = vld [vmem:[%s2123_s17 + $0x170] ss:$8 sps:$4 sm:$0xff]   ;;  %v1650_v10 = vld [vmem:[%s2123_s17 + $0x164] ss:$8 sps:$4 sm:$0xff]  }
  0x8b   : > { %1069 = vmatprep.subr.bf16.mxu1 %v1644_v6  ;;  %1027 = vmatpush1.bf16.msra.mxu0 %v1646_v7  ;;  %v1652_v11 = vld [vmem:[%s2123_s17 + $0x60] ss:$8 sps:$4 sm:$0xff]   ;;  %v1654_v13 = vld [vmem:[%s2123_s17 + $0x54] ss:$8 sps:$4 sm:$0xff]   ;;  %v1658_v15 = vld [vmem:[%s2123_s17 + $0x50] ss:$8 sps:$4 sm:$0xff]  }
  0x8c   : > { %1070 = vmatpush1.bf16.msra.mxu1 %v1647_v8  ;;  %1028 = vmatprep.subr.bf16.mxu0 %v1648_v9  ;;  %v1653_v12 = vld [vmem:[%s2123_s17 + $0x160] ss:$8 sps:$4 sm:$0xff]   ;;  %v1656_v14 = vld [vmem:[%s2123_s17 + $0x154] ss:$8 sps:$4 sm:$0xff]   ;;  %v1659_v16 = vld [vmem:[%s2123_s17 + $0x150] ss:$8 sps:$4 sm:$0xff]  }
  0x8d   : > { %1071 = vmatprep.subr.bf16.mxu1 %v1650_v10  ;;  %v1660_v17 = vld [vmem:[%s2123_s17 + $0x44] ss:$8 sps:$4 sm:$0xff]   ;;  %v1664_v19 = vld [vmem:[%s2123_s17 + $0x40] ss:$8 sps:$4 sm:$0xff]   ;;  %v1666_v21 = vld [vmem:[%s2123_s17 + $0x34] ss:$8 sps:$4 sm:$0xff]  }
  0x8e   : > { %v1662_v18 = vld [vmem:[%s2123_s17 + $0x144] ss:$8 sps:$4 sm:$0xff]   ;;  %v1665_v20 = vld [vmem:[%s2123_s17 + $0x140] ss:$8 sps:$4 sm:$0xff]   ;;  %v1668_v22 = vld [vmem:[%s2123_s17 + $0x134] ss:$8 sps:$4 sm:$0xff]  }
  0x8f   : > { %1029 = vmatpush1.bf16.msra.mxu0 %v1652_v11  ;;  %v1670_v23 = vld [vmem:[%s2123_s17 + $0x30] ss:$8 sps:$4 sm:$0xff]   ;;  %v1672_v25 = vld [vmem:[%s2123_s17 + $0x24] ss:$8 sps:$4 sm:$0xff]   ;;  %v1676_v27 = vld [vmem:[%s2123_s17 + $0x20] ss:$8 sps:$4 sm:$0xff]  }
  0x90   : > { %1072 = vmatpush1.bf16.msra.mxu1 %v1653_v12  ;;  %1030 = vmatprep.subr.bf16.mxu0 %v1654_v13  ;;  %v1671_v24 = vld [vmem:[%s2123_s17 + $0x130] ss:$8 sps:$4 sm:$0xff]   ;;  %v1674_v26 = vld [vmem:[%s2123_s17 + $0x124] ss:$8 sps:$4 sm:$0xff]   ;;  %v1677_v28 = vld [vmem:[%s2123_s17 + $0x120] ss:$8 sps:$4 sm:$0xff]  }
  0x91   : > { %1073 = vmatprep.subr.bf16.mxu1 %v1656_v14  ;;  %v1678_v29 = vld [vmem:[%s2123_s17 + $0x14] ss:$8 sps:$4 sm:$0xff]   ;;  %v1682_v31 = vld [vmem:[%s2123_s17 + $0x10] ss:$8 sps:$4 sm:$0xff]   ;;  %v1684_v33 = vld [vmem:[%s2123_s17 + $0x4] ss:$8 sps:$4 sm:$0xff]  }
  0x92   : > { %v1680_v30 = vld [vmem:[%s2123_s17 + $0x114] ss:$8 sps:$4 sm:$0xff]   ;;  %v1683_v32 = vld [vmem:[%s2123_s17 + $0x110] ss:$8 sps:$4 sm:$0xff]   ;;  %v1686_v34 = vld [vmem:[%s2123_s17 + $0x104] ss:$8 sps:$4 sm:$0xff]  }
  0x93   : > { %1031 = vmatpush1.bf16.msra.mxu0 %v1658_v15  ;;  %v1688_v35 = vld [vmem:[%s2123_s17] ss:$8 sps:$4 sm:$0xff]   ;;  %v1690_v37 = vld [vmem:[%s2123_s17 + $0xf4] ss:$8 sps:$4 sm:$0xff]   ;;  %v1694_v39 = vld [vmem:[%s2123_s17 + $0xf0] ss:$8 sps:$4 sm:$0xff]  }
  0x94   : > { %1074 = vmatpush1.bf16.msra.mxu1 %v1659_v16  ;;  %1032 = vmatprep.subr.bf16.mxu0 %v1660_v17  ;;  %v1689_v36 = vld [vmem:[%s2123_s17 + $0x100] ss:$8 sps:$4 sm:$0xff]   ;;  %v1692_v38 = vld [vmem:[%s2123_s17 + $0x1f4] ss:$8 sps:$4 sm:$0xff]   ;;  %v1695_v40 = vld [vmem:[%s2123_s17 + $0x1f0] ss:$8 sps:$4 sm:$0xff]  }
  0x95   : > { %1075 = vmatprep.subr.bf16.mxu1 %v1662_v18  ;;  %v1696_v41 = vld [vmem:[%s2123_s17 + $0xe4] ss:$8 sps:$4 sm:$0xff]   ;;  %v1700_v43 = vld [vmem:[%s2123_s17 + $0xe0] ss:$8 sps:$4 sm:$0xff]   ;;  %v1702_v45 = vld [vmem:[%s2123_s17 + $0xd4] ss:$8 sps:$4 sm:$0xff]  }
  0x96   : > { %v1698_v42 = vld [vmem:[%s2123_s17 + $0x1e4] ss:$8 sps:$4 sm:$0xff]   ;;  %v1701_v44 = vld [vmem:[%s2123_s17 + $0x1e0] ss:$8 sps:$4 sm:$0xff]   ;;  %v1704_v46 = vld [vmem:[%s2123_s17 + $0x1d4] ss:$8 sps:$4 sm:$0xff]  }
  0x97   : > { %1033 = vmatpush1.bf16.msra.mxu0 %v1664_v19  ;;  %v1706_v47 = vld [vmem:[%s2123_s17 + $0xd0] ss:$8 sps:$4 sm:$0xff]   ;;  %v1708_v49 = vld [vmem:[%s2123_s17 + $0xc4] ss:$8 sps:$4 sm:$0xff]   ;;  %v1712_v51 = vld [vmem:[%s2123_s17 + $0xc0] ss:$8 sps:$4 sm:$0xff]  }
  0x98   : > { %1076 = vmatpush1.bf16.msra.mxu1 %v1665_v20  ;;  %1034 = vmatprep.subr.bf16.mxu0 %v1666_v21  ;;  %v1707_v48 = vld [vmem:[%s2123_s17 + $0x1d0] ss:$8 sps:$4 sm:$0xff]   ;;  %v1710_v50 = vld [vmem:[%s2123_s17 + $0x1c4] ss:$8 sps:$4 sm:$0xff]   ;;  %v1713_v53 = vld [vmem:[%s2123_s17 + $0x1c0] ss:$8 sps:$4 sm:$0xff]  }
  0x99   : > { %1077 = vmatprep.subr.bf16.mxu1 %v1668_v22  ;;  %v1740_v52 = vld [vmem:[%s2121_s19 + $0x4] ss:$16 sps:$4 sm:$0xff]   ;;  %v1743_v56 = vld [vmem:[%s2121_s19 + $0xc] ss:$16 sps:$4 sm:$0xff]   ;;  %v1718_v57 = vld [vmem:[%s2123_s17 + $0xb0] ss:$8 sps:$4 sm:$0xff]  }
  0x9a   : > { %v1714_v54 = vld [vmem:[%s2123_s17 + $0xb4] ss:$8 sps:$4 sm:$0xff]   ;;  %1058 = vmatprep.mubr.bf16.mxu0 %v1740_v52  ;;  %1101 = vmatprep.mubr.bf16.mxu1 %v1743_v56  ;;  %v1719_v58 = vld [vmem:[%s2123_s17 + $0x1b0] ss:$8 sps:$4 sm:$0xff]   ;;  %v1720_v59 = vld [vmem:[%s2123_s17 + $0xa4] ss:$8 sps:$4 sm:$0xff]  }
  0x9b   : > { %1035 = vmatpush1.bf16.msra.mxu0 %v1670_v23  ;;  %v1716_v55 = vld [vmem:[%s2123_s17 + $0x1b4] ss:$8 sps:$4 sm:$0xff]   ;;  %v1722_v60 = vld [vmem:[%s2123_s17 + $0x1a4] ss:$8 sps:$4 sm:$0xff]   ;;  %v1724_v61 = vld [vmem:[%s2123_s17 + $0xa0] ss:$8 sps:$4 sm:$0xff]  }
  0x9c   : > { %1078 = vmatpush1.bf16.msra.mxu1 %v1671_v24  ;;  %1036 = vmatprep.subr.bf16.mxu0 %v1672_v25  ;;  %v1725_v62 = vld [vmem:[%s2123_s17 + $0x1a0] ss:$8 sps:$4 sm:$0xff]   ;;  %v1726_v63 = vld [vmem:[%s2123_s17 + $0x94] ss:$8 sps:$4 sm:$0xff]   ;;  %v1730_v1 = vld [vmem:[%s2123_s17 + $0x90] ss:$8 sps:$4 sm:$0xff]  }
  0x9d   : > { %1079 = vmatprep.subr.bf16.mxu1 %v1674_v26  ;;  %v1728_v0 = vld [vmem:[%s2123_s17 + $0x194] ss:$8 sps:$4 sm:$0xff]   ;;  %v1731_v2 = vld [vmem:[%s2123_s17 + $0x190] ss:$8 sps:$4 sm:$0xff]   ;;  %v1732_v3 = vld [vmem:[%s2123_s17 + $0x84] ss:$8 sps:$4 sm:$0xff]  }
  0x9e   : > { %v1734_v4 = vld [vmem:[%s2123_s17 + $0x184] ss:$8 sps:$4 sm:$0xff]   ;;  %v1736_v5 = vld [vmem:[%s2123_s17 + $0x80] ss:$8 sps:$4 sm:$0xff]   ;;  %v614_v10 = vld [vmem:[#allocation2 + $0x10] sm:$0xff]  ;;  %p1539_p5 = scmp.ne.s32.totalorder %s1814_s21, 4 }
  0x9f   : > { %1037 = vmatpush1.bf16.msra.mxu0 %v1676_v27  ;;  %v1737_v6 = vld [vmem:[%s2123_s17 + $0x180] ss:$8 sps:$4 sm:$0xff]   ;;  %v616_v19 = vld [vmem:[#allocation2 + $0x18] sm:$0xff] }
  0xa0   : > { %1080 = vmatpush1.bf16.msra.mxu1 %v1677_v28  ;;  %1038 = vmatprep.subr.bf16.mxu0 %v1678_v29  ;;  %v1738_v7 = vld [vmem:[%s2121_s19] ss:$16 sps:$4 sm:$0xff]   ;;  %v1741_v8 = vld [vmem:[%s2121_s19 + $0x8] ss:$16 sps:$4 sm:$0xff]  }
  0xa1   : > { %1081 = vmatprep.subr.bf16.mxu1 %v1680_v30  ;;  %v615_v14 = vld [vmem:[#allocation2] sm:$0xff]  ;;  %v617_v24 = vld [vmem:[#allocation2 + $0x8] sm:$0xff] }
  0xa3   : > { %1039 = vmatpush1.bf16.msra.mxu0 %v1682_v31 }
  0xa4   : > { %1082 = vmatpush1.bf16.msra.mxu1 %v1683_v32  ;;  %1040 = vmatprep.subr.bf16.mxu0 %v1684_v33 }
  0xa5   : > { %1083 = vmatprep.subr.bf16.mxu1 %v1686_v34 }
  0xa7   : > { %1041 = vmatpush1.bf16.msra.mxu0 %v1688_v35 }
  0xa8   : > { %1084 = vmatpush1.bf16.msra.mxu1 %v1689_v36  ;;  %1042 = vmatprep.subr.bf16.mxu0 %v1690_v37 }
  0xa9   : > { %1085 = vmatprep.subr.bf16.mxu1 %v1692_v38 }
  0xab   : > { %1043 = vmatpush2.bf16.msra.mxu0 %v1694_v39 }
  0xac   : > { %1086 = vmatpush2.bf16.msra.mxu1 %v1695_v40  ;;  %1044 = vmatprep.subr.bf16.mxu0 %v1696_v41 }
  0xad   : > { %1087 = vmatprep.subr.bf16.mxu1 %v1698_v42 }
  0xaf   : > { %1045 = vmatpush2.bf16.msra.mxu0 %v1700_v43 }
  0xb0   : > { %1088 = vmatpush2.bf16.msra.mxu1 %v1701_v44  ;;  %1046 = vmatprep.subr.bf16.mxu0 %v1702_v45 }
  0xb1   : > { %1089 = vmatprep.subr.bf16.mxu1 %v1704_v46 }
  0xb3   : > { %1047 = vmatpush2.bf16.msra.mxu0 %v1706_v47 }
  0xb4   : > { %1090 = vmatpush2.bf16.msra.mxu1 %v1707_v48  ;;  %1048 = vmatprep.subr.bf16.mxu0 %v1708_v49 }
  0xb5   : > { %1091 = vmatprep.subr.bf16.mxu1 %v1710_v50 }
  0xb7   : > { %1049 = vmatpush2.bf16.msra.mxu0 %v1712_v51 }
  0xb8   : > { %1092 = vmatpush2.bf16.msra.mxu1 %v1713_v53  ;;  %1050 = vmatprep.subr.bf16.mxu0 %v1714_v54 }
  0xb9   : > { %1093 = vmatprep.subr.bf16.mxu1 %v1716_v55 }
  0xbb   : > { %1051 = vmatpush2.bf16.msra.mxu0 %v1718_v57 }
  0xbc   : > { %1094 = vmatpush2.bf16.msra.mxu1 %v1719_v58  ;;  %1052 = vmatprep.subr.bf16.mxu0 %v1720_v59 }
  0xbd   : > { %1095 = vmatprep.subr.bf16.mxu1 %v1722_v60 }
  0xbf   : > { %1053 = vmatpush2.bf16.msra.mxu0 %v1724_v61 }
  0xc0   : > { %1096 = vmatpush2.bf16.msra.mxu1 %v1725_v62  ;;  %1054 = vmatprep.subr.bf16.mxu0 %v1726_v63 }
  0xc1   : > { %1097 = vmatprep.subr.bf16.mxu1 %v1728_v0 }
  0xc3   : > { %1055 = vmatpush2.bf16.msra.mxu0 %v1730_v1 }
  0xc4   : > { %1098 = vmatpush2.bf16.msra.mxu1 %v1731_v2  ;;  %1056 = vmatprep.subr.bf16.mxu0 %v1732_v3 }
  0xc5   : > { %1099 = vmatprep.subr.bf16.mxu1 %v1734_v4 }
  0xc7   : > { %1057 = vmatpush2.bf16.msra.mxu0 %v1736_v5 }
  0xc8   : > { %1100 = vmatpush2.bf16.msra.mxu1 %v1737_v6 }
  0xca   : > { %1059 = vmatmul.mubr.bf16.vlgmr.msra.gmra.mxu0 %v1738_v7 }
  0xcb   : > { %1102 = vmatmul.mubr.bf16.vlgmr.msra.gmra.mxu1 %v1741_v8 }
 0x18a   : > { %v1060_v9 = vpop.f32.mrf.mxu0 }
 0x18b   : > { %v1103_v11 = vpop.f32.mrf.mxu1 }
 0x18c   : > { %v1104_v12 = vadd.f32 %v1103_v11, %v1060_v9  ;;  %v1062_v13 = vpop.f32.mrf.mxu0 }
 0x18d   : > { %v1105_v15 = vpop.f32.mrf.mxu1 }
 0x18e   : > { %v1112_v16 = vadd.f32 %v1104_v12, %v614_v10  ;;  %v1106_v17 = vadd.f32 %v1105_v15, %v1062_v13  ;;  %v1064_v18 = vpop.f32.mrf.mxu0 }
 0x18f   : > { %v1107_v20 = vpop.f32.mrf.mxu1 }
 0x190   : > { %1116 = vst [vmem:[#allocation2 + $0x10] sm:$0xff] %v1112_v16  ;;  %v1113_v21 = vadd.f32 %v1106_v17, %v615_v14  ;;  %v1108_v22 = vadd.f32 %v1107_v20, %v1064_v18  ;;  %v1066_v23 = vpop.f32.mrf.mxu0 }
 0x191   : > { %v1109_v25 = vpop.f32.mrf.mxu1 }
 0x192   : > { %1117 = vst [vmem:[#allocation2] sm:$0xff] %v1113_v21  ;;  %v1114_v26 = vadd.f32 %v1108_v22, %v616_v19  ;;  %v1110_v27 = vadd.f32 %v1109_v25, %v1066_v23  ;;  %1123 = sbr.rel (%p1539_p5) target bundleno = 437 (0x1b5), region = 97 }
 0x194   : > { %1118 = vst [vmem:[#allocation2 + $0x18] sm:$0xff] %v1114_v26  ;;  %v1115_v28 = vadd.f32 %v1110_v27, %v617_v24 }
 0x196   : > { %1119 = vst [vmem:[#allocation2 + $0x8] sm:$0xff] %v1115_v28 }
 0x197   : > { %v1124_v29 = vld [vmem:[#allocation2 + $0x10] sm:$0xff]  ;;  %v1162_v46 = vlaneseq  ;;  %v1833_v50 = vmov 1966171168  }
 0x198   : > { %v1179_v33 = vmul.f32 %v1124_v29, %v1124_v29  ;;  %v1160_v51 = vunpack.c.l.s4 %v1833_v50 }
 0x199   : > { %v1125_v30 = vld [vmem:[#allocation2] sm:$0xff]  ;;  %v1163_v57 = vshrl.u32 %v1162_v46, 7  ;;  %vm1176_vm0 = vcmp.lt.s32.totalorder %v1162_v46, 256 }
 0x19a   : > { %v1549_v32 = vpack.c.bf16 %v1125_v30, %v1124_v29  ;;  %v1180_v34 = vmul.f32 %v1125_v30, %v1125_v30  ;;  %v1161_v61 = vunpack.c.0.s8 %v1160_v51 }
 0x19b   : > { %v1126_v31 = vld [vmem:[#allocation2 + $0x18] sm:$0xff] }
 0x19c   : > { %v1142_v36 = vadd.f32 %v1126_v31, %v1124_v29  ;;  %v1181_v39 = vmul.f32 %v1126_v31, %v1126_v31  ;;  %1140 = vst [vmem:[%s2125_s15] sm:$0xff] %v1549_v32  ;;  %v1164_v4 = vsub.s32 %v1161_v61, %v1163_v57 }
 0x19d   : > { %v1127_v35 = vld [vmem:[#allocation2 + $0x8] sm:$0xff] }
 0x19e   : > { %v1550_v37 = vpack.c.bf16 %v1127_v35, %v1126_v31  ;;  %v1149_v38 = vadd.f32 %v1127_v35, %v1125_v30  ;;  %v1182_v40 = vmul.f32 %v1127_v35, %v1127_v35  ;;  %v1143_v41 = vrot.slane %v1142_v36, 4 }
 0x19f   : > { %v1183_v43 = vadd.f32 %v1181_v39, %v1179_v33 }
 0x1a0   : > { %1141 = vst [vmem:[%s2125_s15 + $0x8] sm:$0xff] %v1550_v37  ;;  %v1150_v42 = vrot.slane %v1149_v38, 4  ;;  %v1190_v44 = vadd.f32 %v1182_v40, %v1180_v34  ;;  %v1144_v45 = vadd.f32 %v1143_v41, %v1142_v36 }
 0x1a1   : > { %v1184_v48 = vrot.slane %v1183_v43, 4 }
 0x1a2   : > { %v1151_v47 = vadd.f32 %v1150_v42, %v1149_v38  ;;  %v1191_v49 = vrot.slane %v1190_v44, 4  ;;  %v1145_v52 = vrot.slane %v1144_v45, 2 }
 0x1a3   : > { %v1185_v54 = vadd.f32 %v1184_v48, %v1183_v43 }
 0x1a4   : > { %v1152_v53 = vrot.slane %v1151_v47, 2  ;;  %v1192_v55 = vadd.f32 %v1191_v49, %v1190_v44  ;;  %v1146_v56 = vadd.f32 %v1145_v52, %v1144_v45 }
 0x1a5   : > { %v1186_v59 = vrot.slane %v1185_v54, 2 }
 0x1a6   : > { %v1153_v58 = vadd.f32 %v1152_v53, %v1151_v47  ;;  %v1193_v60 = vrot.slane %v1192_v55, 2  ;;  %v1147_v62 = vrot.slane %v1146_v56, 1 }
 0x1a7   : > { %v1187_v0 = vadd.f32 %v1186_v59, %v1185_v54 }
 0x1a8   : > { %v1154_v63 = vrot.slane %v1153_v58, 1  ;;  %v1194_v1 = vadd.f32 %v1193_v60, %v1192_v55  ;;  %v1148_v2 = vadd.f32 %v1147_v62, %v1146_v56 }
 0x1a9   : > { %v1188_v5 = vrot.slane %v1187_v0, 1 }
 0x1aa   : > { %v1155_v3 = vadd.f32 %v1154_v63, %v1153_v58  ;;  %v1195_v6 = vrot.slane %v1194_v1, 1 }
 0x1ab   : > { %v1189_v8 = vadd.f32 %v1188_v5, %v1187_v0 }
 0x1ac   : > { %v1158_v7 = vcombine.low %v1148_v2, %v1155_v3  ;;  %v1196_v9 = vadd.f32 %v1195_v6, %v1194_v1 }
 0x1ae   : > { %v1165_v10 = vrot.slane %v1158_v7, %v1164_v4  ;;  %v1199_v11 = vcombine.low %v1189_v8, %v1196_v9 }
 0x1b0   : > { %v1172_v12 = vrot.slane %v1165_v10, %v1164_v4  ;;  %v1206_v13 = vrot.slane %v1199_v11, %v1164_v4 }
 0x1b2   : > { %1178 = vst.msk [vmem:[%s595_s9] sm:$0x3] %vm1176_vm0, %v1172_v12  ;;  %v1213_v14 = vrot.slane %v1206_v13, %v1164_v4 }
 0x1b4   : > { %1215 = vst.msk [vmem:[%s604_s1] sm:$0x3] %vm1176_vm0, %v1213_v14 }
 0x1b5 PF: > { %1238 = sbr.rel (!%p1953_p12) target bundleno = 442 (0x1ba), region = 101  ;;  %s1551_s26 = sshll.u32 (%p1953_p12), %s1818_s22, 3  ;;  %v1275_v15 = vld [vmem:[%s2125_s15] sm:$0xff] (%p1953_p12)  ;;  %v1277_v16 = vld [vmem:[%s2125_s15 + $0x8] sm:$0xff] (%p1953_p12) }
 0x1b6   : > { %s1244_s6 = scalar_lea.vmem (%p1953_p12), %s2252_s2, %s1551_s26 }
 0x1b7   : > { %1276 = vst [vmem:[%s1244_s6] sm:$0xff] (%p1953_p12), %v1275_v15  ;;  %1278 = vst [vmem:[%s1244_s6 + $0x20] sm:$0xff] (%p1953_p12), %v1277_v16 }
 0x1ba PF: > { %s15_s25 = sadd.s32 1, %s1830_s25   ;;  %s2266_s1 = sld [smem:[#allocation6_spill]] }
 0x1bb   : > { %p12_p6 = scmp.ge.s32.totalorder %s15_s25, 22   ;;  %s2267_s14 = sld [smem:[#allocation7_spill]] }
 0x1bc   : > { %s2268_s15 = smov %s1794_s16  ;;  %s2269_s16 = smov %s1951_s13 }
 0x1bd   : > { %s2270_s17 = smov %s1802_s18  ;;  %s2271_s18 = smov %s1948_s12 }
 0x1be   : > { %s2272_s19 = smov %s1810_s20  ;;  %s2273_s20 = smov %s1934_s7 }
 0x1bf   : > { %s2274_s21 = smov %s1822_s23  ;;  %s2275_s22 = smov %s1826_s24 }
 0x1c0   : > { %s2276_s23 = smov %s2266_s1  ;;  %14 = sbr.rel (!%p12_p6) target bundleno = 9 (0x9), region = 202 }
 0x1c1   : > { %s2277_s24 = smov %s2267_s14 }

// kernel: resnet_forward.34
= control target key start
LH: loop header
LB: loop body
LE: loop exit
PB: predicated region body
PF: predicated region fallthrough
CT: control target
= control target key end

     0   :  { %v28_v0 = vlaneseq  ;;  %s184_s0 = inlined_call_operand.vmem [shape: bf16[16,512], index: 0, kind: input, shape index: {}]   ;;  %s185_s1 = inlined_call_operand.vmem [shape: f32[1,512], index: 1, kind: input, shape index: {}]   ;;  %s186_s2 = inlined_call_operand.vmem [shape: f32[1,512], index: 2, kind: input, shape index: {}]   ;;  %s187_s3 = inlined_call_operand.vmem [shape: bf16[16,512], index: 3, kind: output, shape index: {}]  }
   0x1   :  { %v14_v1 = vld [vmem:[%s184_s0] sm:$0xff]  ;;  %v15_v3 = vld [vmem:[%s184_s0 + $0x8] sm:$0xff]  ;;  %v16_v4 = vld [vmem:[%s184_s0 + $0x10] sm:$0xff] }
   0x2   :  { %v29_v2 = vshrl.u32 %v28_v0, 7  ;;  %v17_v5 = vld [vmem:[%s184_s0 + $0x18] sm:$0xff]  ;;  %v18_v6 = vunpack.c.l.bf16 %v14_v1  ;;  %v19_v7 = vunpack.c.h.bf16 %v14_v1  ;;  %v26_v8 = vld [vmem:[%s185_s1] sm:$0xf]  ;;  %v22_v10 = vunpack.c.l.bf16 %v16_v4 }
   0x3   :  { %v56_v9 = vld [vmem:[%s186_s2] sm:$0xf]  ;;  %v23_v11 = vunpack.c.h.bf16 %v16_v4  ;;  %v20_v16 = vunpack.c.l.bf16 %v15_v3  ;;  %v21_v17 = vunpack.c.h.bf16 %v15_v3  ;;  %v24_v18 = vunpack.c.l.bf16 %v17_v5 }
   0x4   :  { %v30_v12 = vsub.s32 0, %v29_v2  ;;  %v34_v13 = vsub.s32 1, %v29_v2  ;;  %v38_v14 = vsub.s32 2, %v29_v2  ;;  %v42_v15 = vsub.s32 3, %v29_v2 }
   0x5   :  { %v25_v19 = vunpack.c.h.bf16 %v17_v5 }
   0x6   :  { %v31_v20 = vrot.slane %v26_v8, %v30_v12  ;;  %v35_v21 = vrot.slane %v26_v8, %v34_v13  ;;  %v61_v22 = vrot.slane %v56_v9, %v30_v12  ;;  %v65_v23 = vrot.slane %v56_v9, %v34_v13 }
   0x7   :  { %v39_v24 = vrot.slane %v26_v8, %v38_v14  ;;  %v43_v25 = vrot.slane %v26_v8, %v42_v15  ;;  %v69_v26 = vrot.slane %v56_v9, %v38_v14  ;;  %v73_v27 = vrot.slane %v56_v9, %v42_v15 }
   0x8   :  { %v48_v28 = vmul.f32 %v31_v20, %v18_v6  ;;  %v49_v29 = vmul.f32 %v35_v21, %v19_v7  ;;  %v52_v30 = vmul.f32 %v31_v20, %v22_v10  ;;  %v53_v31 = vmul.f32 %v35_v21, %v23_v11 }
   0x9   :  { %v50_v32 = vmul.f32 %v39_v24, %v20_v16  ;;  %v51_v33 = vmul.f32 %v43_v25, %v21_v17  ;;  %v54_v34 = vmul.f32 %v39_v24, %v24_v18  ;;  %v55_v35 = vmul.f32 %v43_v25, %v25_v19 }
   0xa   :  { %v78_v36 = vadd.f32 %v61_v22, %v48_v28  ;;  %v79_v37 = vadd.f32 %v65_v23, %v49_v29  ;;  %v82_v38 = vadd.f32 %v61_v22, %v52_v30  ;;  %v83_v39 = vadd.f32 %v65_v23, %v53_v31 }
   0xb   :  { %v80_v40 = vadd.f32 %v69_v26, %v50_v32  ;;  %v81_v41 = vadd.f32 %v73_v27, %v51_v33  ;;  %v84_v42 = vadd.f32 %v69_v26, %v54_v34  ;;  %v85_v43 = vadd.f32 %v73_v27, %v55_v35 }
   0xc   :  { %v86_v44 = vmax.f32 %v78_v36, 0.0  ;;  %v87_v45 = vmax.f32 %v79_v37, 0.0  ;;  %v90_v46 = vmax.f32 %v82_v38, 0.0  ;;  %v91_v47 = vmax.f32 %v83_v39, 0.0 }
   0xd   :  { %v88_v48 = vmax.f32 %v80_v40, 0.0  ;;  %v89_v49 = vmax.f32 %v81_v41, 0.0  ;;  %v92_v50 = vmax.f32 %v84_v42, 0.0  ;;  %v93_v51 = vmax.f32 %v85_v43, 0.0 }
   0xe   :  { %v130_v52 = vpack.c.bf16 %v87_v45, %v86_v44  ;;  %v132_v53 = vpack.c.bf16 %v91_v47, %v90_v46 }
   0xf   :  { %v131_v54 = vpack.c.bf16 %v89_v49, %v88_v48  ;;  %v133_v55 = vpack.c.bf16 %v93_v51, %v92_v50 }
  0x10   :  { %118 = vst [vmem:[%s187_s3] sm:$0xff] %v130_v52  ;;  %120 = vst [vmem:[%s187_s3 + $0x10] sm:$0xff] %v132_v53 }
  0x11   :  { %119 = vst [vmem:[%s187_s3 + $0x8] sm:$0xff] %v131_v54  ;;  %121 = vst [vmem:[%s187_s3 + $0x18] sm:$0xff] %v133_v55 }

// kernel: resnet_forward.35
= control target key start
LH: loop header
LB: loop body
LE: loop exit
PB: predicated region body
PF: predicated region fallthrough
CT: control target
= control target key end

     0   :  { %s2250_s0 = inlined_call_operand.vmem [shape: bf16[16,4608], index: 0, kind: input, shape index: {}]   ;;  %s2251_s1 = inlined_call_operand.vmem [shape: bf16[4608,512], index: 1, kind: input, shape index: {}]   ;;  %s2252_s2 = inlined_call_operand.vmem [shape: bf16[16,512], index: 2, kind: output, shape index: {0}]   ;;  %s2253_s3 = inlined_call_operand.vmem [shape: f32[1,1,512], index: 3, kind: output, shape index: {1}]   ;;  %s2254_s4 = inlined_call_operand.vmem [shape: f32[1,1,512], index: 4, kind: output, shape index: {2}]  }
   0x1   :  { %2257 = sst [smem:[#allocation8_spill]] %s2250_s0 }
   0x2   :  { %2258 = sst [smem:[#allocation9_spill]] %s2251_s1 }
   0x3   :  { %s1859_s15 = smov 0   ;;  %s1861_s16 = smov 0  }
   0x4   :  { %s1863_s17 = smov 0   ;;  %s1865_s18 = smov 0  }
   0x5   :  { %s1867_s19 = smov 0   ;;  %s1869_s20 = smov 0  }
   0x6   :  { %s1871_s21 = smov 0   ;;  %s1873_s22 = smov 0  }
   0x7   :  { %s1875_s23 = smov 0   ;;  %s1877_s24 = smov 0  }
   0x8   :  { %s1879_s25 = smov 0  }
   0x9 LB: > { %s1452_s26 = sadd.s32 4294967295, %s1830_s25   ;;  %s27_s27 = sadd.s32 1, %s1822_s23  ;;  %s1830_s25 = sphi %s1879_s25, %s15_s25   ;;  %s1826_s24 = sphi %s1877_s24, %s2277_s24   ;;  %s1822_s23 = sphi %s1875_s23, %s2276_s23   ;;  %s1818_s22 = sphi %s1873_s22, %s2275_s22   ;;  %s1814_s21 = sphi %s1871_s21, %s2274_s21   ;;  %s1810_s20 = sphi %s1869_s20, %s2273_s20   ;;  %s1806_s19 = sphi %s1867_s19, %s2272_s19   ;;  %s1802_s18 = sphi %s1865_s18, %s2271_s18   ;;  %s1798_s17 = sphi %s1863_s17, %s2270_s17   ;;  %s1794_s16 = sphi %s1861_s16, %s2269_s16   ;;  %s1790_s15 = sphi %s1859_s15, %s2268_s15  }
   0xa   : > { %p28_p0 = scmp.ge.s32.totalorder %s27_s27, 9  ;;  %s30_s28 = sadd.s32 1, %s1826_s24 }
   0xb   : > { %s43_s29 = sadd.s32 1, %s1810_s20  ;;  %p50_p1 = scmp.ne.s32.totalorder %s1810_s20, %s1806_s19 }
   0xc   : > { %s2279_s27 = smov (%p28_p0, %s27_s27), 0  ;;  %s2281_s28 = smov (!%p28_p0, %s30_s28), %s1826_s24 }
   0xd   : > { %2259 = sst [smem:[#allocation6_spill]] %s2279_s27  ;;  %s39_s30 = ssub.s32 %s1822_s23, %s2279_s27 }
   0xe   : > { %p51_p2 = scmp.eq.s32.totalorder %s1830_s25, 0  ;;  %p32_p3 = scmp.ge.s32.totalorder %s2281_s28, 2 }
   0xf   : > { %p41_p4 = scmp.eq.s32.totalorder %s39_s30, 0  ;;  %s71_s6 = sadd.s32 1, %s1802_s18 }
  0x10   : > { %p1926_p5 = por %p51_p2, %p50_p1  ;;  %s2283_s28 = smov (%p32_p3, %s2281_s28), 0 }
  0x11   : > { %2261 = sst [smem:[#allocation7_spill]] %s2283_s28  ;;  %s67_s8 = ssub.s32 %s1826_s24, %s2283_s28 }
  0x12   : > { %s1934_s7 = scalar_select %p41_p4, %s1810_s20, %s43_s29  }
  0x13   : > { %p78_p6 = scmp.ne.s32.totalorder %s1802_s18, %s1798_s17  ;;  %s68_s9 = sor.u32 %s67_s8, %s39_s30 }
  0x14   : > { %p97_p7 = scmp.eq.s32.totalorder %s67_s8, 0  ;;  %p69_p8 = scmp.eq.s32.totalorder %s68_s9, 0 }
  0x15   : > { %p1940_p9 = por %p78_p6, %p51_p2  ;;  %s99_s11 = sadd.s32 1, %s1794_s16 }
  0x16   : > { %p109_p10 = scmp.ne.s32.totalorder %s1794_s16, %s1790_s15  ;;  %p110_p11 = scmp.eq.s32.totalorder %s1452_s26, 17 }
  0x17   : > { %s1948_s12 = scalar_select %p69_p8, %s1802_s18, %s71_s6  }
  0x18   : > { %s1951_s13 = scalar_select %p97_p7, %s1794_s16, %s99_s11  }
  0x19   : > { %p1953_p12 = por %p110_p11, %p109_p10  ;;  %p1455_p13 = scmp.ge.s32.totalorder %s1830_s25, 18 }
  0x1b   : > { %188 = sbr.rel (%p1455_p13) target bundleno = 86 (0x56), region = 16 }
  0x20   : > { %191 = sbr.rel (!%p1926_p5) target bundleno = 44 (0x2c), region = 20  ;;  %s193_s29 = sand.u32 (%p1926_p5), 1, %s1810_s20  }
  0x21   : > { %s1547_s30 = sshll.u32 (%p1926_p5), %s1822_s23, 4  ;;  %s1456_s8 = sshll.u32 (%p1926_p5), %s193_s29, 5 }
  0x22   : > { %s2264_s0 = sld [smem:[#allocation8_spill]] (%p1926_p5)  ;;  %s195_s26 = scalar_lea.vmem (%p1926_p5), [#allocation3], %s1456_s8 }
  0x28   : > { %s201_s11 = scalar_lea.vmem %s2264_s0, %s1547_s30 }
  0x29   : > { %v214_v0 = vld [vmem:[%s201_s11] sm:$0xff]  ;;  %v216_v1 = vld [vmem:[%s201_s11 + $0x8] sm:$0xff]  ;;  %v218_v2 = vld [vmem:[%s201_s11 + $0x90] sm:$0xff] }
  0x2a   : > { %215 = vst [vmem:[%s195_s26] sm:$0xff] %v214_v0  ;;  %217 = vst [vmem:[%s195_s26 + $0x8] sm:$0xff] %v216_v1  ;;  %v220_v3 = vld [vmem:[%s201_s11 + $0x98] sm:$0xff] }
  0x2b   : > { %219 = vst [vmem:[%s195_s26 + $0x10] sm:$0xff] %v218_v2  ;;  %221 = vst [vmem:[%s195_s26 + $0x18] sm:$0xff] %v220_v3 }
  0x2c PF: > { %227 = sbr.rel (!%p1940_p9) target bundleno = 86 (0x56), region = 43  ;;  %s229_s5 = sand.u32 (%p1940_p9), 1, %s1802_s18  }
  0x2d   : > { %s1461_s29 = sshll.u32 (%p1940_p9), %s1826_s24, 1  ;;  %s1459_s6 = sshll.u32 (%p1940_p9), %s229_s5, 9 }
  0x2e   : > { %s1548_s30 = sshll.u32 (%p1940_p9), %s1822_s23, 8  ;;  %s2265_s1 = sld [smem:[#allocation9_spill]] (%p1940_p9) }
  0x2f   : > { %s235_s9 = sadd.s32 (%p1940_p9), %s1548_s30, %s1461_s29  ;;  %s1978_s10 = scalar_lea.vmem (%p1940_p9), [#allocation4], %s1459_s6 }
  0x30   : > { %s1463_s0 = sshll.u32 (%p1940_p9), %s235_s9, 2 }
  0x34   : > { %s1973_s27 = scalar_lea.vmem %s2265_s1, %s1463_s0 }
  0x35   : > { %v392_v4 = vld [vmem:[%s1973_s27] sm:$0xff]  ;;  %v394_v5 = vld [vmem:[%s1973_s27 + $0x10] sm:$0xff] }
  0x36   : > { %v396_v6 = vld [vmem:[%s1973_s27 + $0x20] sm:$0xff]  ;;  %393 = vst [vmem:[%s1978_s10] sm:$0xff] %v392_v4  ;;  %395 = vst [vmem:[%s1978_s10 + $0x8] sm:$0xff] %v394_v5  ;;  %v398_v7 = vld [vmem:[%s1973_s27 + $0x30] sm:$0xff] }
  0x37   : > { %397 = vst [vmem:[%s1978_s10 + $0x10] sm:$0xff] %v396_v6  ;;  %v400_v8 = vld [vmem:[%s1973_s27 + $0x40] sm:$0xff]  ;;  %v402_v9 = vld [vmem:[%s1973_s27 + $0x50] sm:$0xff]  ;;  %399 = vst [vmem:[%s1978_s10 + $0x18] sm:$0xff] %v398_v7 }
  0x38   : > { %401 = vst [vmem:[%s1978_s10 + $0x20] sm:$0xff] %v400_v8  ;;  %403 = vst [vmem:[%s1978_s10 + $0x28] sm:$0xff] %v402_v9  ;;  %v404_v10 = vld [vmem:[%s1973_s27 + $0x60] sm:$0xff]  ;;  %v406_v11 = vld [vmem:[%s1973_s27 + $0x70] sm:$0xff] }
  0x39   : > { %v408_v12 = vld [vmem:[%s1973_s27 + $0x80] sm:$0xff]  ;;  %405 = vst [vmem:[%s1978_s10 + $0x30] sm:$0xff] %v404_v10  ;;  %407 = vst [vmem:[%s1978_s10 + $0x38] sm:$0xff] %v406_v11  ;;  %v410_v13 = vld [vmem:[%s1973_s27 + $0x90] sm:$0xff] }
  0x3a   : > { %409 = vst [vmem:[%s1978_s10 + $0x40] sm:$0xff] %v408_v12  ;;  %v412_v14 = vld [vmem:[%s1973_s27 + $0xa0] sm:$0xff]  ;;  %v414_v15 = vld [vmem:[%s1973_s27 + $0xb0] sm:$0xff]  ;;  %411 = vst [vmem:[%s1978_s10 + $0x48] sm:$0xff] %v410_v13 }
  0x3b   : > { %413 = vst [vmem:[%s1978_s10 + $0x50] sm:$0xff] %v412_v14  ;;  %415 = vst [vmem:[%s1978_s10 + $0x58] sm:$0xff] %v414_v15  ;;  %v416_v16 = vld [vmem:[%s1973_s27 + $0xc0] sm:$0xff]  ;;  %v418_v17 = vld [vmem:[%s1973_s27 + $0xd0] sm:$0xff] }
  0x3c   : > { %v420_v18 = vld [vmem:[%s1973_s27 + $0xe0] sm:$0xff]  ;;  %417 = vst [vmem:[%s1978_s10 + $0x60] sm:$0xff] %v416_v16  ;;  %419 = vst [vmem:[%s1978_s10 + $0x68] sm:$0xff] %v418_v17  ;;  %v422_v19 = vld [vmem:[%s1973_s27 + $0xf0] sm:$0xff] }
  0x3d   : > { %421 = vst [vmem:[%s1978_s10 + $0x70] sm:$0xff] %v420_v18  ;;  %v424_v20 = vld [vmem:[%s1973_s27 + $0x100] sm:$0xff]  ;;  %v426_v21 = vld [vmem:[%s1973_s27 + $0x110] sm:$0xff]  ;;  %423 = vst [vmem:[%s1978_s10 + $0x78] sm:$0xff] %v422_v19 }
  0x3e   : > { %425 = vst [vmem:[%s1978_s10 + $0x80] sm:$0xff] %v424_v20  ;;  %427 = vst [vmem:[%s1978_s10 + $0x88] sm:$0xff] %v426_v21  ;;  %v428_v22 = vld [vmem:[%s1973_s27 + $0x120] sm:$0xff]  ;;  %v430_v23 = vld [vmem:[%s1973_s27 + $0x130] sm:$0xff] }
  0x3f   : > { %v432_v24 = vld [vmem:[%s1973_s27 + $0x140] sm:$0xff]  ;;  %429 = vst [vmem:[%s1978_s10 + $0x90] sm:$0xff] %v428_v22  ;;  %431 = vst [vmem:[%s1978_s10 + $0x98] sm:$0xff] %v430_v23  ;;  %v434_v25 = vld [vmem:[%s1973_s27 + $0x150] sm:$0xff] }
  0x40   : > { %433 = vst [vmem:[%s1978_s10 + $0xa0] sm:$0xff] %v432_v24  ;;  %v436_v26 = vld [vmem:[%s1973_s27 + $0x160] sm:$0xff]  ;;  %v438_v27 = vld [vmem:[%s1973_s27 + $0x170] sm:$0xff]  ;;  %435 = vst [vmem:[%s1978_s10 + $0xa8] sm:$0xff] %v434_v25 }
  0x41   : > { %437 = vst [vmem:[%s1978_s10 + $0xb0] sm:$0xff] %v436_v26  ;;  %439 = vst [vmem:[%s1978_s10 + $0xb8] sm:$0xff] %v438_v27  ;;  %v440_v28 = vld [vmem:[%s1973_s27 + $0x180] sm:$0xff]  ;;  %v442_v29 = vld [vmem:[%s1973_s27 + $0x190] sm:$0xff] }
  0x42   : > { %v444_v30 = vld [vmem:[%s1973_s27 + $0x1a0] sm:$0xff]  ;;  %441 = vst [vmem:[%s1978_s10 + $0xc0] sm:$0xff] %v440_v28  ;;  %443 = vst [vmem:[%s1978_s10 + $0xc8] sm:$0xff] %v442_v29  ;;  %v446_v31 = vld [vmem:[%s1973_s27 + $0x1b0] sm:$0xff] }
  0x43   : > { %445 = vst [vmem:[%s1978_s10 + $0xd0] sm:$0xff] %v444_v30  ;;  %v448_v32 = vld [vmem:[%s1973_s27 + $0x1c0] sm:$0xff]  ;;  %v450_v33 = vld [vmem:[%s1973_s27 + $0x1d0] sm:$0xff]  ;;  %447 = vst [vmem:[%s1978_s10 + $0xd8] sm:$0xff] %v446_v31 }
  0x44   : > { %449 = vst [vmem:[%s1978_s10 + $0xe0] sm:$0xff] %v448_v32  ;;  %451 = vst [vmem:[%s1978_s10 + $0xe8] sm:$0xff] %v450_v33  ;;  %v452_v34 = vld [vmem:[%s1973_s27 + $0x1e0] sm:$0xff]  ;;  %v454_v35 = vld [vmem:[%s1973_s27 + $0x1f0] sm:$0xff] }
  0x45   : > { %v456_v36 = vld [vmem:[%s1973_s27 + $0x200] sm:$0xff]  ;;  %453 = vst [vmem:[%s1978_s10 + $0xf0] sm:$0xff] %v452_v34  ;;  %455 = vst [vmem:[%s1978_s10 + $0xf8] sm:$0xff] %v454_v35  ;;  %v458_v37 = vld [vmem:[%s1973_s27 + $0x210] sm:$0xff] }
  0x46   : > { %457 = vst [vmem:[%s1978_s10 + $0x100] sm:$0xff] %v456_v36  ;;  %v460_v38 = vld [vmem:[%s1973_s27 + $0x220] sm:$0xff]  ;;  %v462_v39 = vld [vmem:[%s1973_s27 + $0x230] sm:$0xff]  ;;  %459 = vst [vmem:[%s1978_s10 + $0x108] sm:$0xff] %v458_v37 }
  0x47   : > { %461 = vst [vmem:[%s1978_s10 + $0x110] sm:$0xff] %v460_v38  ;;  %463 = vst [vmem:[%s1978_s10 + $0x118] sm:$0xff] %v462_v39  ;;  %v464_v40 = vld [vmem:[%s1973_s27 + $0x240] sm:$0xff]  ;;  %v466_v41 = vld [vmem:[%s1973_s27 + $0x250] sm:$0xff] }
  0x48   : > { %v468_v42 = vld [vmem:[%s1973_s27 + $0x260] sm:$0xff]  ;;  %465 = vst [vmem:[%s1978_s10 + $0x120] sm:$0xff] %v464_v40  ;;  %467 = vst [vmem:[%s1978_s10 + $0x128] sm:$0xff] %v466_v41  ;;  %v470_v43 = vld [vmem:[%s1973_s27 + $0x270] sm:$0xff] }
  0x49   : > { %469 = vst [vmem:[%s1978_s10 + $0x130] sm:$0xff] %v468_v42  ;;  %v472_v44 = vld [vmem:[%s1973_s27 + $0x280] sm:$0xff]  ;;  %v474_v45 = vld [vmem:[%s1973_s27 + $0x290] sm:$0xff]  ;;  %471 = vst [vmem:[%s1978_s10 + $0x138] sm:$0xff] %v470_v43 }
  0x4a   : > { %473 = vst [vmem:[%s1978_s10 + $0x140] sm:$0xff] %v472_v44  ;;  %475 = vst [vmem:[%s1978_s10 + $0x148] sm:$0xff] %v474_v45  ;;  %v476_v46 = vld [vmem:[%s1973_s27 + $0x2a0] sm:$0xff]  ;;  %v478_v47 = vld [vmem:[%s1973_s27 + $0x2b0] sm:$0xff] }
  0x4b   : > { %v480_v48 = vld [vmem:[%s1973_s27 + $0x2c0] sm:$0xff]  ;;  %477 = vst [vmem:[%s1978_s10 + $0x150] sm:$0xff] %v476_v46  ;;  %479 = vst [vmem:[%s1978_s10 + $0x158] sm:$0xff] %v478_v47  ;;  %v482_v49 = vld [vmem:[%s1973_s27 + $0x2d0] sm:$0xff] }
  0x4c   : > { %481 = vst [vmem:[%s1978_s10 + $0x160] sm:$0xff] %v480_v48  ;;  %v484_v50 = vld [vmem:[%s1973_s27 + $0x2e0] sm:$0xff]  ;;  %v486_v51 = vld [vmem:[%s1973_s27 + $0x2f0] sm:$0xff]  ;;  %483 = vst [vmem:[%s1978_s10 + $0x168] sm:$0xff] %v482_v49 }
  0x4d   : > { %485 = vst [vmem:[%s1978_s10 + $0x170] sm:$0xff] %v484_v50  ;;  %487 = vst [vmem:[%s1978_s10 + $0x178] sm:$0xff] %v486_v51  ;;  %v488_v52 = vld [vmem:[%s1973_s27 + $0x300] sm:$0xff]  ;;  %v490_v53 = vld [vmem:[%s1973_s27 + $0x310] sm:$0xff] }
  0x4e   : > { %v492_v54 = vld [vmem:[%s1973_s27 + $0x320] sm:$0xff]  ;;  %489 = vst [vmem:[%s1978_s10 + $0x180] sm:$0xff] %v488_v52  ;;  %491 = vst [vmem:[%s1978_s10 + $0x188] sm:$0xff] %v490_v53  ;;  %v494_v55 = vld [vmem:[%s1973_s27 + $0x330] sm:$0xff] }
  0x4f   : > { %493 = vst [vmem:[%s1978_s10 + $0x190] sm:$0xff] %v492_v54  ;;  %v496_v56 = vld [vmem:[%s1973_s27 + $0x340] sm:$0xff]  ;;  %v498_v57 = vld [vmem:[%s1973_s27 + $0x350] sm:$0xff]  ;;  %495 = vst [vmem:[%s1978_s10 + $0x198] sm:$0xff] %v494_v55 }
  0x50   : > { %497 = vst [vmem:[%s1978_s10 + $0x1a0] sm:$0xff] %v496_v56  ;;  %499 = vst [vmem:[%s1978_s10 + $0x1a8] sm:$0xff] %v498_v57  ;;  %v500_v58 = vld [vmem:[%s1973_s27 + $0x360] sm:$0xff]  ;;  %v502_v59 = vld [vmem:[%s1973_s27 + $0x370] sm:$0xff] }
  0x51   : > { %v504_v60 = vld [vmem:[%s1973_s27 + $0x380] sm:$0xff]  ;;  %501 = vst [vmem:[%s1978_s10 + $0x1b0] sm:$0xff] %v500_v58  ;;  %503 = vst [vmem:[%s1978_s10 + $0x1b8] sm:$0xff] %v502_v59  ;;  %v506_v61 = vld [vmem:[%s1973_s27 + $0x390] sm:$0xff] }
  0x52   : > { %505 = vst [vmem:[%s1978_s10 + $0x1c0] sm:$0xff] %v504_v60  ;;  %v508_v62 = vld [vmem:[%s1973_s27 + $0x3a0] sm:$0xff]  ;;  %v510_v63 = vld [vmem:[%s1973_s27 + $0x3b0] sm:$0xff]  ;;  %507 = vst [vmem:[%s1978_s10 + $0x1c8] sm:$0xff] %v506_v61 }
  0x53   : > { %509 = vst [vmem:[%s1978_s10 + $0x1d0] sm:$0xff] %v508_v62  ;;  %511 = vst [vmem:[%s1978_s10 + $0x1d8] sm:$0xff] %v510_v63  ;;  %v512_v0 = vld [vmem:[%s1973_s27 + $0x3c0] sm:$0xff]  ;;  %v514_v1 = vld [vmem:[%s1973_s27 + $0x3d0] sm:$0xff] }
  0x54   : > { %v516_v2 = vld [vmem:[%s1973_s27 + $0x3e0] sm:$0xff]  ;;  %513 = vst [vmem:[%s1978_s10 + $0x1e0] sm:$0xff] %v512_v0  ;;  %515 = vst [vmem:[%s1978_s10 + $0x1e8] sm:$0xff] %v514_v1  ;;  %v518_v3 = vld [vmem:[%s1973_s27 + $0x3f0] sm:$0xff] }
  0x55   : > { %517 = vst [vmem:[%s1978_s10 + $0x1f0] sm:$0xff] %v516_v2  ;;  %519 = vst [vmem:[%s1978_s10 + $0x1f8] sm:$0xff] %v518_v3 }
  0x56 PF: > { %p1464_p0 = scmp.ge.s32.totalorder %s1830_s25, 1  ;;  %p524_p1 = scmp.lt.s32.totalorder %s1830_s25, 19 }
  0x58   : > { %p525_p2 = pnand %p1464_p0, %p524_p1 }
  0x59   : > { %s531_s0 = sand.u32 (!%p525_p2), 1, %s1806_s19   ;;  %s538_s28 = sand.u32 (!%p525_p2), 1, %s1798_s17  }
  0x5a   : > { %528 = sbr.rel (%p525_p2) target bundleno = 410 (0x19a), region = 81  ;;  %s1465_s11 = sshll.u32 (!%p525_p2), %s531_s0, 5 }
  0x5b   : > { %s1466_s26 = sshll.u32 (!%p525_p2), %s538_s28, 9  ;;  %s559_s5 = sand.u32 (!%p525_p2), 1, %s1790_s15  }
  0x5c   : > { %s1468_s29 = sshll.u32 (!%p525_p2), %s1818_s22, 1  ;;  %s1467_s27 = sshll.u32 (!%p525_p2), %s559_s5, 4 }
  0x5d   : > { %p591_p3 = scmp.lt.s32.totalorder (!%p525_p2), %s1468_s29, 3  ;;  %s2121_s19 = scalar_lea.vmem (!%p525_p2), [#allocation3], %s1465_s11 }
  0x5e   : > { %s2123_s17 = scalar_lea.vmem (!%p525_p2), [#allocation4], %s1466_s26  ;;  %s2125_s15 = scalar_lea.vmem (!%p525_p2), [#allocation5], %s1467_s27 }
  0x5f   : > { %s2285_s29 = smov (!%p591_p3, %s1468_s29), 3  ;;  %p1470_p4 = scmp.ne.s32.totalorder %s1814_s21, 0 }
  0x60   : > { %s595_s9 = scalar_lea.vmem %s2253_s3, %s2285_s29  ;;  %s604_s1 = scalar_lea.vmem %s2254_s4, %s2285_s29 }
  0x61   : > { %609 = sbr.rel (%p1470_p4) target bundleno = 105 (0x69), region = 93 }
  0x66   : > { %v1832_v4 = vmov 0.0  }
  0x67   : > { %610 = vst [vmem:[#allocation2 + $0x10] sm:$0xff] %v1832_v4  ;;  %611 = vst [vmem:[#allocation2] sm:$0xff] %v1832_v4 }
  0x68   : > { %612 = vst [vmem:[#allocation2 + $0x18] sm:$0xff] %v1832_v4  ;;  %613 = vst [vmem:[#allocation2 + $0x8] sm:$0xff] %v1832_v4 }
  0x69 PF: > { %v1642_v5 = vld [vmem:[%s2123_s17 + $0x74] ss:$8 sps:$4 sm:$0xff]   ;;  %v1646_v7 = vld [vmem:[%s2123_s17 + $0x70] ss:$8 sps:$4 sm:$0xff]   ;;  %v1648_v9 = vld [vmem:[%s2123_s17 + $0x64] ss:$8 sps:$4 sm:$0xff]  }
  0x6a   : > { %v1644_v6 = vld [vmem:[%s2123_s17 + $0x174] ss:$8 sps:$4 sm:$0xff]   ;;  %1026 = vmatprep.subr.bf16.mxu0 %v1642_v5  ;;  %v1647_v8 = vld [vmem:[%s2123_s17 + $0x170] ss:$8 sps:$4 sm:$0xff]   ;;  %v1650_v10 = vld [vmem:[%s2123_s17 + $0x164] ss:$8 sps:$4 sm:$0xff]  }
  0x6b   : > { %1069 = vmatprep.subr.bf16.mxu1 %v1644_v6  ;;  %1027 = vmatpush1.bf16.msra.mxu0 %v1646_v7  ;;  %v1652_v11 = vld [vmem:[%s2123_s17 + $0x60] ss:$8 sps:$4 sm:$0xff]   ;;  %v1654_v13 = vld [vmem:[%s2123_s17 + $0x54] ss:$8 sps:$4 sm:$0xff]   ;;  %v1658_v15 = vld [vmem:[%s2123_s17 + $0x50] ss:$8 sps:$4 sm:$0xff]  }
  0x6c   : > { %1070 = vmatpush1.bf16.msra.mxu1 %v1647_v8  ;;  %1028 = vmatprep.subr.bf16.mxu0 %v1648_v9  ;;  %v1653_v12 = vld [vmem:[%s2123_s17 + $0x160] ss:$8 sps:$4 sm:$0xff]   ;;  %v1656_v14 = vld [vmem:[%s2123_s17 + $0x154] ss:$8 sps:$4 sm:$0xff]   ;;  %v1659_v16 = vld [vmem:[%s2123_s17 + $0x150] ss:$8 sps:$4 sm:$0xff]  }
  0x6d   : > { %1071 = vmatprep.subr.bf16.mxu1 %v1650_v10  ;;  %v1660_v17 = vld [vmem:[%s2123_s17 + $0x44] ss:$8 sps:$4 sm:$0xff]   ;;  %v1664_v19 = vld [vmem:[%s2123_s17 + $0x40] ss:$8 sps:$4 sm:$0xff]   ;;  %v1666_v21 = vld [vmem:[%s2123_s17 + $0x34] ss:$8 sps:$4 sm:$0xff]  }
  0x6e   : > { %v1662_v18 = vld [vmem:[%s2123_s17 + $0x144] ss:$8 sps:$4 sm:$0xff]   ;;  %v1665_v20 = vld [vmem:[%s2123_s17 + $0x140] ss:$8 sps:$4 sm:$0xff]   ;;  %v1668_v22 = vld [vmem:[%s2123_s17 + $0x134] ss:$8 sps:$4 sm:$0xff]  }
  0x6f   : > { %1029 = vmatpush1.bf16.msra.mxu0 %v1652_v11  ;;  %v1670_v23 = vld [vmem:[%s2123_s17 + $0x30] ss:$8 sps:$4 sm:$0xff]   ;;  %v1672_v25 = vld [vmem:[%s2123_s17 + $0x24] ss:$8 sps:$4 sm:$0xff]   ;;  %v1676_v27 = vld [vmem:[%s2123_s17 + $0x20] ss:$8 sps:$4 sm:$0xff]  }
  0x70   : > { %1072 = vmatpush1.bf16.msra.mxu1 %v1653_v12  ;;  %1030 = vmatprep.subr.bf16.mxu0 %v1654_v13  ;;  %v1671_v24 = vld [vmem:[%s2123_s17 + $0x130] ss:$8 sps:$4 sm:$0xff]   ;;  %v1674_v26 = vld [vmem:[%s2123_s17 + $0x124] ss:$8 sps:$4 sm:$0xff]   ;;  %v1677_v28 = vld [vmem:[%s2123_s17 + $0x120] ss:$8 sps:$4 sm:$0xff]  }
  0x71   : > { %1073 = vmatprep.subr.bf16.mxu1 %v1656_v14  ;;  %v1678_v29 = vld [vmem:[%s2123_s17 + $0x14] ss:$8 sps:$4 sm:$0xff]   ;;  %v1682_v31 = vld [vmem:[%s2123_s17 + $0x10] ss:$8 sps:$4 sm:$0xff]   ;;  %v1684_v33 = vld [vmem:[%s2123_s17 + $0x4] ss:$8 sps:$4 sm:$0xff]  }
  0x72   : > { %v1680_v30 = vld [vmem:[%s2123_s17 + $0x114] ss:$8 sps:$4 sm:$0xff]   ;;  %v1683_v32 = vld [vmem:[%s2123_s17 + $0x110] ss:$8 sps:$4 sm:$0xff]   ;;  %v1686_v34 = vld [vmem:[%s2123_s17 + $0x104] ss:$8 sps:$4 sm:$0xff]  }
  0x73   : > { %1031 = vmatpush1.bf16.msra.mxu0 %v1658_v15  ;;  %v1688_v35 = vld [vmem:[%s2123_s17] ss:$8 sps:$4 sm:$0xff]   ;;  %v1690_v37 = vld [vmem:[%s2123_s17 + $0xf4] ss:$8 sps:$4 sm:$0xff]   ;;  %v1694_v39 = vld [vmem:[%s2123_s17 + $0xf0] ss:$8 sps:$4 sm:$0xff]  }
  0x74   : > { %1074 = vmatpush1.bf16.msra.mxu1 %v1659_v16  ;;  %1032 = vmatprep.subr.bf16.mxu0 %v1660_v17  ;;  %v1689_v36 = vld [vmem:[%s2123_s17 + $0x100] ss:$8 sps:$4 sm:$0xff]   ;;  %v1692_v38 = vld [vmem:[%s2123_s17 + $0x1f4] ss:$8 sps:$4 sm:$0xff]   ;;  %v1695_v40 = vld [vmem:[%s2123_s17 + $0x1f0] ss:$8 sps:$4 sm:$0xff]  }
  0x75   : > { %1075 = vmatprep.subr.bf16.mxu1 %v1662_v18  ;;  %v1696_v41 = vld [vmem:[%s2123_s17 + $0xe4] ss:$8 sps:$4 sm:$0xff]   ;;  %v1700_v43 = vld [vmem:[%s2123_s17 + $0xe0] ss:$8 sps:$4 sm:$0xff]   ;;  %v1702_v45 = vld [vmem:[%s2123_s17 + $0xd4] ss:$8 sps:$4 sm:$0xff]  }
  0x76   : > { %v1698_v42 = vld [vmem:[%s2123_s17 + $0x1e4] ss:$8 sps:$4 sm:$0xff]   ;;  %v1701_v44 = vld [vmem:[%s2123_s17 + $0x1e0] ss:$8 sps:$4 sm:$0xff]   ;;  %v1704_v46 = vld [vmem:[%s2123_s17 + $0x1d4] ss:$8 sps:$4 sm:$0xff]  }
  0x77   : > { %1033 = vmatpush1.bf16.msra.mxu0 %v1664_v19  ;;  %v1706_v47 = vld [vmem:[%s2123_s17 + $0xd0] ss:$8 sps:$4 sm:$0xff]   ;;  %v1708_v49 = vld [vmem:[%s2123_s17 + $0xc4] ss:$8 sps:$4 sm:$0xff]   ;;  %v1712_v51 = vld [vmem:[%s2123_s17 + $0xc0] ss:$8 sps:$4 sm:$0xff]  }
  0x78   : > { %1076 = vmatpush1.bf16.msra.mxu1 %v1665_v20  ;;  %1034 = vmatprep.subr.bf16.mxu0 %v1666_v21  ;;  %v1707_v48 = vld [vmem:[%s2123_s17 + $0x1d0] ss:$8 sps:$4 sm:$0xff]   ;;  %v1710_v50 = vld [vmem:[%s2123_s17 + $0x1c4] ss:$8 sps:$4 sm:$0xff]   ;;  %v1713_v53 = vld [vmem:[%s2123_s17 + $0x1c0] ss:$8 sps:$4 sm:$0xff]  }
  0x79   : > { %1077 = vmatprep.subr.bf16.mxu1 %v1668_v22  ;;  %v1740_v52 = vld [vmem:[%s2121_s19 + $0x4] ss:$16 sps:$4 sm:$0xff]   ;;  %v1743_v56 = vld [vmem:[%s2121_s19 + $0xc] ss:$16 sps:$4 sm:$0xff]   ;;  %v1718_v57 = vld [vmem:[%s2123_s17 + $0xb0] ss:$8 sps:$4 sm:$0xff]  }
  0x7a   : > { %v1714_v54 = vld [vmem:[%s2123_s17 + $0xb4] ss:$8 sps:$4 sm:$0xff]   ;;  %1058 = vmatprep.mubr.bf16.mxu0 %v1740_v52  ;;  %1101 = vmatprep.mubr.bf16.mxu1 %v1743_v56  ;;  %v1719_v58 = vld [vmem:[%s2123_s17 + $0x1b0] ss:$8 sps:$4 sm:$0xff]   ;;  %v1720_v59 = vld [vmem:[%s2123_s17 + $0xa4] ss:$8 sps:$4 sm:$0xff]  }
  0x7b   : > { %1035 = vmatpush1.bf16.msra.mxu0 %v1670_v23  ;;  %v1716_v55 = vld [vmem:[%s2123_s17 + $0x1b4] ss:$8 sps:$4 sm:$0xff]   ;;  %v1722_v60 = vld [vmem:[%s2123_s17 + $0x1a4] ss:$8 sps:$4 sm:$0xff]   ;;  %v1724_v61 = vld [vmem:[%s2123_s17 + $0xa0] ss:$8 sps:$4 sm:$0xff]  }
  0x7c   : > { %1078 = vmatpush1.bf16.msra.mxu1 %v1671_v24  ;;  %1036 = vmatprep.subr.bf16.mxu0 %v1672_v25  ;;  %v1725_v62 = vld [vmem:[%s2123_s17 + $0x1a0] ss:$8 sps:$4 sm:$0xff]   ;;  %v1726_v63 = vld [vmem:[%s2123_s17 + $0x94] ss:$8 sps:$4 sm:$0xff]   ;;  %v1730_v1 = vld [vmem:[%s2123_s17 + $0x90] ss:$8 sps:$4 sm:$0xff]  }
  0x7d   : > { %1079 = vmatprep.subr.bf16.mxu1 %v1674_v26  ;;  %v1728_v0 = vld [vmem:[%s2123_s17 + $0x194] ss:$8 sps:$4 sm:$0xff]   ;;  %v1731_v2 = vld [vmem:[%s2123_s17 + $0x190] ss:$8 sps:$4 sm:$0xff]   ;;  %v1732_v3 = vld [vmem:[%s2123_s17 + $0x84] ss:$8 sps:$4 sm:$0xff]  }
  0x7e   : > { %v1734_v4 = vld [vmem:[%s2123_s17 + $0x184] ss:$8 sps:$4 sm:$0xff]   ;;  %v1736_v5 = vld [vmem:[%s2123_s17 + $0x80] ss:$8 sps:$4 sm:$0xff]   ;;  %v614_v10 = vld [vmem:[#allocation2 + $0x10] sm:$0xff]  ;;  %p1539_p5 = scmp.ne.s32.totalorder %s1814_s21, 8 }
  0x7f   : > { %1037 = vmatpush1.bf16.msra.mxu0 %v1676_v27  ;;  %v1737_v6 = vld [vmem:[%s2123_s17 + $0x180] ss:$8 sps:$4 sm:$0xff]   ;;  %v616_v19 = vld [vmem:[#allocation2 + $0x18] sm:$0xff] }
  0x80   : > { %1080 = vmatpush1.bf16.msra.mxu1 %v1677_v28  ;;  %1038 = vmatprep.subr.bf16.mxu0 %v1678_v29  ;;  %v1738_v7 = vld [vmem:[%s2121_s19] ss:$16 sps:$4 sm:$0xff]   ;;  %v1741_v8 = vld [vmem:[%s2121_s19 + $0x8] ss:$16 sps:$4 sm:$0xff]  }
  0x81   : > { %1081 = vmatprep.subr.bf16.mxu1 %v1680_v30  ;;  %v615_v14 = vld [vmem:[#allocation2] sm:$0xff]  ;;  %v617_v24 = vld [vmem:[#allocation2 + $0x8] sm:$0xff] }
  0x83   : > { %1039 = vmatpush1.bf16.msra.mxu0 %v1682_v31 }
  0x84   : > { %1082 = vmatpush1.bf16.msra.mxu1 %v1683_v32  ;;  %1040 = vmatprep.subr.bf16.mxu0 %v1684_v33 }
  0x85   : > { %1083 = vmatprep.subr.bf16.mxu1 %v1686_v34 }
  0x87   : > { %1041 = vmatpush1.bf16.msra.mxu0 %v1688_v35 }
  0x88   : > { %1084 = vmatpush1.bf16.msra.mxu1 %v1689_v36  ;;  %1042 = vmatprep.subr.bf16.mxu0 %v1690_v37 }
  0x89   : > { %1085 = vmatprep.subr.bf16.mxu1 %v1692_v38 }
  0x8b   : > { %1043 = vmatpush2.bf16.msra.mxu0 %v1694_v39 }
  0x8c   : > { %1086 = vmatpush2.bf16.msra.mxu1 %v1695_v40  ;;  %1044 = vmatprep.subr.bf16.mxu0 %v1696_v41 }
  0x8d   : > { %1087 = vmatprep.subr.bf16.mxu1 %v1698_v42 }
  0x8f   : > { %1045 = vmatpush2.bf16.msra.mxu0 %v1700_v43 }
  0x90   : > { %1088 = vmatpush2.bf16.msra.mxu1 %v1701_v44  ;;  %1046 = vmatprep.subr.bf16.mxu0 %v1702_v45 }
  0x91   : > { %1089 = vmatprep.subr.bf16.mxu1 %v1704_v46 }
  0x93   : > { %1047 = vmatpush2.bf16.msra.mxu0 %v1706_v47 }
  0x94   : > { %1090 = vmatpush2.bf16.msra.mxu1 %v1707_v48  ;;  %1048 = vmatprep.subr.bf16.mxu0 %v1708_v49 }
  0x95   : > { %1091 = vmatprep.subr.bf16.mxu1 %v1710_v50 }
  0x97   : > { %1049 = vmatpush2.bf16.msra.mxu0 %v1712_v51 }
  0x98   : > { %1092 = vmatpush2.bf16.msra.mxu1 %v1713_v53  ;;  %1050 = vmatprep.subr.bf16.mxu0 %v1714_v54 }
  0x99   : > { %1093 = vmatprep.subr.bf16.mxu1 %v1716_v55 }
  0x9b   : > { %1051 = vmatpush2.bf16.msra.mxu0 %v1718_v57 }
  0x9c   : > { %1094 = vmatpush2.bf16.msra.mxu1 %v1719_v58  ;;  %1052 = vmatprep.subr.bf16.mxu0 %v1720_v59 }
  0x9d   : > { %1095 = vmatprep.subr.bf16.mxu1 %v1722_v60 }
  0x9f   : > { %1053 = vmatpush2.bf16.msra.mxu0 %v1724_v61 }
  0xa0   : > { %1096 = vmatpush2.bf16.msra.mxu1 %v1725_v62  ;;  %1054 = vmatprep.subr.bf16.mxu0 %v1726_v63 }
  0xa1   : > { %1097 = vmatprep.subr.bf16.mxu1 %v1728_v0 }
  0xa3   : > { %1055 = vmatpush2.bf16.msra.mxu0 %v1730_v1 }
  0xa4   : > { %1098 = vmatpush2.bf16.msra.mxu1 %v1731_v2  ;;  %1056 = vmatprep.subr.bf16.mxu0 %v1732_v3 }
  0xa5   : > { %1099 = vmatprep.subr.bf16.mxu1 %v1734_v4 }
  0xa7   : > { %1057 = vmatpush2.bf16.msra.mxu0 %v1736_v5 }
  0xa8   : > { %1100 = vmatpush2.bf16.msra.mxu1 %v1737_v6 }
  0xaa   : > { %1059 = vmatmul.mubr.bf16.vlgmr.msra.gmra.mxu0 %v1738_v7 }
  0xab   : > { %1102 = vmatmul.mubr.bf16.vlgmr.msra.gmra.mxu1 %v1741_v8 }
 0x16a   : > { %v1060_v9 = vpop.f32.mrf.mxu0 }
 0x16b   : > { %v1103_v11 = vpop.f32.mrf.mxu1 }
 0x16c   : > { %v1104_v12 = vadd.f32 %v1103_v11, %v1060_v9  ;;  %v1062_v13 = vpop.f32.mrf.mxu0 }
 0x16d   : > { %v1105_v15 = vpop.f32.mrf.mxu1 }
 0x16e   : > { %v1112_v16 = vadd.f32 %v1104_v12, %v614_v10  ;;  %v1106_v17 = vadd.f32 %v1105_v15, %v1062_v13  ;;  %v1064_v18 = vpop.f32.mrf.mxu0 }
 0x16f   : > { %v1107_v20 = vpop.f32.mrf.mxu1 }
 0x170   : > { %1116 = vst [vmem:[#allocation2 + $0x10] sm:$0xff] %v1112_v16  ;;  %v1113_v21 = vadd.f32 %v1106_v17, %v615_v14  ;;  %v1108_v22 = vadd.f32 %v1107_v20, %v1064_v18  ;;  %v1066_v23 = vpop.f32.mrf.mxu0 }
 0x171   : > { %v1109_v25 = vpop.f32.mrf.mxu1 }
 0x172   : > { %1117 = vst [vmem:[#allocation2] sm:$0xff] %v1113_v21  ;;  %v1114_v26 = vadd.f32 %v1108_v22, %v616_v19  ;;  %v1110_v27 = vadd.f32 %v1109_v25, %v1066_v23  ;;  %1123 = sbr.rel (%p1539_p5) target bundleno = 405 (0x195), region = 97 }
 0x174   : > { %1118 = vst [vmem:[#allocation2 + $0x18] sm:$0xff] %v1114_v26  ;;  %v1115_v28 = vadd.f32 %v1110_v27, %v617_v24 }
 0x176   : > { %1119 = vst [vmem:[#allocation2 + $0x8] sm:$0xff] %v1115_v28 }
 0x177   : > { %v1124_v29 = vld [vmem:[#allocation2 + $0x10] sm:$0xff]  ;;  %v1162_v46 = vlaneseq  ;;  %v1833_v50 = vmov 1966171168  }
 0x178   : > { %v1179_v33 = vmul.f32 %v1124_v29, %v1124_v29  ;;  %v1160_v51 = vunpack.c.l.s4 %v1833_v50 }
 0x179   : > { %v1125_v30 = vld [vmem:[#allocation2] sm:$0xff]  ;;  %v1163_v57 = vshrl.u32 %v1162_v46, 7  ;;  %vm1176_vm0 = vcmp.lt.s32.totalorder %v1162_v46, 256 }
 0x17a   : > { %v1549_v32 = vpack.c.bf16 %v1125_v30, %v1124_v29  ;;  %v1180_v34 = vmul.f32 %v1125_v30, %v1125_v30  ;;  %v1161_v61 = vunpack.c.0.s8 %v1160_v51 }
 0x17b   : > { %v1126_v31 = vld [vmem:[#allocation2 + $0x18] sm:$0xff] }
 0x17c   : > { %v1142_v36 = vadd.f32 %v1126_v31, %v1124_v29  ;;  %v1181_v39 = vmul.f32 %v1126_v31, %v1126_v31  ;;  %1140 = vst [vmem:[%s2125_s15] sm:$0xff] %v1549_v32  ;;  %v1164_v4 = vsub.s32 %v1161_v61, %v1163_v57 }
 0x17d   : > { %v1127_v35 = vld [vmem:[#allocation2 + $0x8] sm:$0xff] }
 0x17e   : > { %v1550_v37 = vpack.c.bf16 %v1127_v35, %v1126_v31  ;;  %v1149_v38 = vadd.f32 %v1127_v35, %v1125_v30  ;;  %v1182_v40 = vmul.f32 %v1127_v35, %v1127_v35  ;;  %v1143_v41 = vrot.slane %v1142_v36, 4 }
 0x17f   : > { %v1183_v43 = vadd.f32 %v1181_v39, %v1179_v33 }
 0x180   : > { %1141 = vst [vmem:[%s2125_s15 + $0x8] sm:$0xff] %v1550_v37  ;;  %v1150_v42 = vrot.slane %v1149_v38, 4  ;;  %v1190_v44 = vadd.f32 %v1182_v40, %v1180_v34  ;;  %v1144_v45 = vadd.f32 %v1143_v41, %v1142_v36 }
 0x181   : > { %v1184_v48 = vrot.slane %v1183_v43, 4 }
 0x182   : > { %v1151_v47 = vadd.f32 %v1150_v42, %v1149_v38  ;;  %v1191_v49 = vrot.slane %v1190_v44, 4  ;;  %v1145_v52 = vrot.slane %v1144_v45, 2 }
 0x183   : > { %v1185_v54 = vadd.f32 %v1184_v48, %v1183_v43 }
 0x184   : > { %v1152_v53 = vrot.slane %v1151_v47, 2  ;;  %v1192_v55 = vadd.f32 %v1191_v49, %v1190_v44  ;;  %v1146_v56 = vadd.f32 %v1145_v52, %v1144_v45 }
 0x185   : > { %v1186_v59 = vrot.slane %v1185_v54, 2 }
 0x186   : > { %v1153_v58 = vadd.f32 %v1152_v53, %v1151_v47  ;;  %v1193_v60 = vrot.slane %v1192_v55, 2  ;;  %v1147_v62 = vrot.slane %v1146_v56, 1 }
 0x187   : > { %v1187_v0 = vadd.f32 %v1186_v59, %v1185_v54 }
 0x188   : > { %v1154_v63 = vrot.slane %v1153_v58, 1  ;;  %v1194_v1 = vadd.f32 %v1193_v60, %v1192_v55  ;;  %v1148_v2 = vadd.f32 %v1147_v62, %v1146_v56 }
 0x189   : > { %v1188_v5 = vrot.slane %v1187_v0, 1 }
 0x18a   : > { %v1155_v3 = vadd.f32 %v1154_v63, %v1153_v58  ;;  %v1195_v6 = vrot.slane %v1194_v1, 1 }
 0x18b   : > { %v1189_v8 = vadd.f32 %v1188_v5, %v1187_v0 }
 0x18c   : > { %v1158_v7 = vcombine.low %v1148_v2, %v1155_v3  ;;  %v1196_v9 = vadd.f32 %v1195_v6, %v1194_v1 }
 0x18e   : > { %v1165_v10 = vrot.slane %v1158_v7, %v1164_v4  ;;  %v1199_v11 = vcombine.low %v1189_v8, %v1196_v9 }
 0x190   : > { %v1172_v12 = vrot.slane %v1165_v10, %v1164_v4  ;;  %v1206_v13 = vrot.slane %v1199_v11, %v1164_v4 }
 0x192   : > { %1178 = vst.msk [vmem:[%s595_s9] sm:$0x3] %vm1176_vm0, %v1172_v12  ;;  %v1213_v14 = vrot.slane %v1206_v13, %v1164_v4 }
 0x194   : > { %1215 = vst.msk [vmem:[%s604_s1] sm:$0x3] %vm1176_vm0, %v1213_v14 }
 0x195 PF: > { %1238 = sbr.rel (!%p1953_p12) target bundleno = 410 (0x19a), region = 101  ;;  %s1551_s26 = sshll.u32 (%p1953_p12), %s1818_s22, 3  ;;  %v1275_v15 = vld [vmem:[%s2125_s15] sm:$0xff] (%p1953_p12)  ;;  %v1277_v16 = vld [vmem:[%s2125_s15 + $0x8] sm:$0xff] (%p1953_p12) }
 0x196   : > { %s1244_s6 = scalar_lea.vmem (%p1953_p12), %s2252_s2, %s1551_s26 }
 0x197   : > { %1276 = vst [vmem:[%s1244_s6] sm:$0xff] (%p1953_p12), %v1275_v15  ;;  %1278 = vst [vmem:[%s1244_s6 + $0x10] sm:$0xff] (%p1953_p12), %v1277_v16 }
 0x19a PF: > { %s15_s25 = sadd.s32 1, %s1830_s25   ;;  %s2266_s1 = sld [smem:[#allocation6_spill]] }
 0x19b   : > { %p12_p6 = scmp.ge.s32.totalorder %s15_s25, 20   ;;  %s2267_s14 = sld [smem:[#allocation7_spill]] }
 0x19c   : > { %s2268_s15 = smov %s1794_s16  ;;  %s2269_s16 = smov %s1951_s13 }
 0x19d   : > { %s2270_s17 = smov %s1802_s18  ;;  %s2271_s18 = smov %s1948_s12 }
 0x19e   : > { %s2272_s19 = smov %s1810_s20  ;;  %s2273_s20 = smov %s1934_s7 }
 0x19f   : > { %s2274_s21 = smov %s1822_s23  ;;  %s2275_s22 = smov %s1826_s24 }
 0x1a0   : > { %s2276_s23 = smov %s2266_s1  ;;  %14 = sbr.rel (!%p12_p6) target bundleno = 9 (0x9), region = 202 }
 0x1a1   : > { %s2277_s24 = smov %s2267_s14 }

// kernel: resnet_forward.36
= control target key start
LH: loop header
LB: loop body
LE: loop exit
PB: predicated region body
PF: predicated region fallthrough
CT: control target
= control target key end

     0   :  { %v37_v0 = vlaneseq  ;;  %s306_s0 = inlined_call_operand.vmem [shape: bf16[16,512], index: 0, kind: input, shape index: {}]   ;;  %s307_s1 = inlined_call_operand.vmem [shape: bf16[16,512], index: 1, kind: input, shape index: {}]   ;;  %s308_s2 = inlined_call_operand.vmem [shape: f32[1,512], index: 2, kind: input, shape index: {}]   ;;  %s309_s3 = inlined_call_operand.vmem [shape: f32[1,512], index: 3, kind: input, shape index: {}]   ;;  %s310_s4 = inlined_call_operand.vmem [shape: f32[1,512], index: 4, kind: input, shape index: {}]   ;;  %s311_s5 = inlined_call_operand.vmem [shape: f32[1,512], index: 5, kind: input, shape index: {}]   ;;  %s312_s6 = inlined_call_operand.vmem [shape: bf16[16,512], index: 6, kind: output, shape index: {}]  }
   0x1   :  { %v23_v1 = vld [vmem:[%s306_s0] sm:$0xff]  ;;  %v24_v10 = vld [vmem:[%s306_s0 + $0x8] sm:$0xff]  ;;  %v25_v42 = vld [vmem:[%s306_s0 + $0x10] sm:$0xff] }
   0x2   :  { %v35_v2 = vld [vmem:[%s308_s2] sm:$0xf]  ;;  %v38_v3 = vshrl.u32 %v37_v0, 7  ;;  %v27_v5 = vunpack.c.l.bf16 %v23_v1  ;;  %v28_v6 = vunpack.c.h.bf16 %v23_v1  ;;  %v96_v11 = vld [vmem:[%s307_s1 + $0x8] sm:$0xff]  ;;  %v29_v16 = vunpack.c.l.bf16 %v24_v10  ;;  %v97_v47 = vld [vmem:[%s307_s1 + $0x10] sm:$0xff] }
   0x3   :  { %v95_v4 = vld [vmem:[%s307_s1] sm:$0xff]  ;;  %v30_v17 = vunpack.c.h.bf16 %v24_v10  ;;  %v101_v20 = vunpack.c.l.bf16 %v96_v11  ;;  %v102_v21 = vunpack.c.h.bf16 %v96_v11  ;;  %v31_v54 = vunpack.c.l.bf16 %v25_v42  ;;  %v26_v0 = vld [vmem:[%s306_s0 + $0x18] sm:$0xff] }
   0x4   :  { %v65_v7 = vld [vmem:[%s309_s3] sm:$0xf]  ;;  %v99_v8 = vunpack.c.l.bf16 %v95_v4  ;;  %v100_v9 = vunpack.c.h.bf16 %v95_v4  ;;  %v39_v12 = vsub.s32 0, %v38_v3  ;;  %v43_v13 = vsub.s32 1, %v38_v3  ;;  %v98_v1 = vld [vmem:[%s307_s1 + $0x18] sm:$0xff] }
   0x5   :  { %v107_v14 = vld [vmem:[%s310_s4] sm:$0xf]  ;;  %v47_v18 = vsub.s32 2, %v38_v3  ;;  %v51_v19 = vsub.s32 3, %v38_v3  ;;  %v32_v55 = vunpack.c.h.bf16 %v25_v42  ;;  %v103_v58 = vunpack.c.l.bf16 %v97_v47 }
   0x6   :  { %v145_v15 = vld [vmem:[%s311_s5] sm:$0xf]  ;;  %v40_v22 = vrot.slane %v35_v2, %v39_v12  ;;  %v44_v23 = vrot.slane %v35_v2, %v43_v13  ;;  %v70_v24 = vrot.slane %v65_v7, %v39_v12  ;;  %v74_v25 = vrot.slane %v65_v7, %v43_v13 }
   0x7   :  { %v112_v26 = vrot.slane %v107_v14, %v39_v12  ;;  %v116_v27 = vrot.slane %v107_v14, %v43_v13  ;;  %v150_v28 = vrot.slane %v145_v15, %v39_v12  ;;  %v154_v29 = vrot.slane %v145_v15, %v43_v13 }
   0x8   :  { %v57_v30 = vmul.f32 %v40_v22, %v27_v5  ;;  %v58_v31 = vmul.f32 %v44_v23, %v28_v6  ;;  %v48_v32 = vrot.slane %v35_v2, %v47_v18  ;;  %v52_v33 = vrot.slane %v35_v2, %v51_v19 }
   0x9   :  { %v129_v34 = vmul.f32 %v112_v26, %v99_v8  ;;  %v130_v35 = vmul.f32 %v116_v27, %v100_v9  ;;  %v78_v36 = vrot.slane %v65_v7, %v47_v18  ;;  %v82_v37 = vrot.slane %v65_v7, %v51_v19 }
   0xa   :  { %v87_v38 = vadd.f32 %v70_v24, %v57_v30  ;;  %v88_v39 = vadd.f32 %v74_v25, %v58_v31  ;;  %v59_v40 = vmul.f32 %v48_v32, %v29_v16  ;;  %v60_v41 = vmul.f32 %v52_v33, %v30_v17 }
   0xb   :  { %v120_v43 = vrot.slane %v107_v14, %v47_v18  ;;  %v124_v44 = vrot.slane %v107_v14, %v51_v19  ;;  %v158_v45 = vrot.slane %v145_v15, %v47_v18  ;;  %v162_v46 = vrot.slane %v145_v15, %v51_v19 }
   0xc   :  { %v137_v48 = vadd.f32 %v129_v34, %v87_v38  ;;  %v138_v49 = vadd.f32 %v130_v35, %v88_v39  ;;  %v89_v50 = vadd.f32 %v78_v36, %v59_v40  ;;  %v90_v51 = vadd.f32 %v82_v37, %v60_v41 }
   0xd   :  { %v131_v52 = vmul.f32 %v120_v43, %v101_v20  ;;  %v132_v53 = vmul.f32 %v124_v44, %v102_v21  ;;  %v104_v59 = vunpack.c.h.bf16 %v97_v47  ;;  %v61_v62 = vmul.f32 %v40_v22, %v31_v54 }
   0xe   :  { %v167_v56 = vadd.f32 %v150_v28, %v137_v48  ;;  %v168_v57 = vadd.f32 %v154_v29, %v138_v49  ;;  %v62_v63 = vmul.f32 %v44_v23, %v32_v55  ;;  %v133_v4 = vmul.f32 %v112_v26, %v103_v58 }
   0xf   :  { %v139_v60 = vadd.f32 %v131_v52, %v89_v50  ;;  %v140_v61 = vadd.f32 %v132_v53, %v90_v51  ;;  %v134_v5 = vmul.f32 %v116_v27, %v104_v59  ;;  %v91_v8 = vadd.f32 %v70_v24, %v61_v62 }
  0x10   :  { %v175_v2 = vmax.f32 %v167_v56, 0.0  ;;  %v176_v3 = vmax.f32 %v168_v57, 0.0  ;;  %v92_v9 = vadd.f32 %v74_v25, %v62_v63  ;;  %v33_v11 = vunpack.c.l.bf16 %v26_v0 }
  0x11   :  { %v169_v6 = vadd.f32 %v158_v45, %v139_v60  ;;  %v170_v7 = vadd.f32 %v162_v46, %v140_v61  ;;  %v34_v12 = vunpack.c.h.bf16 %v26_v0  ;;  %v105_v13 = vunpack.c.l.bf16 %v98_v1 }
  0x12   :  { %v219_v10 = vpack.c.bf16 %v176_v3, %v175_v2  ;;  %v141_v16 = vadd.f32 %v133_v4, %v91_v8  ;;  %v142_v17 = vadd.f32 %v134_v5, %v92_v9  ;;  %v63_v18 = vmul.f32 %v48_v32, %v33_v11 }
  0x13   :  { %v177_v14 = vmax.f32 %v169_v6, 0.0  ;;  %v178_v15 = vmax.f32 %v170_v7, 0.0  ;;  %v64_v19 = vmul.f32 %v52_v33, %v34_v12  ;;  %v106_v20 = vunpack.c.h.bf16 %v98_v1 }
  0x14   :  { %207 = vst [vmem:[%s312_s6] sm:$0xff] %v219_v10  ;;  %v135_v21 = vmul.f32 %v120_v43, %v105_v13  ;;  %v171_v23 = vadd.f32 %v150_v28, %v141_v16  ;;  %v172_v24 = vadd.f32 %v154_v29, %v142_v17  ;;  %v93_v25 = vadd.f32 %v78_v36, %v63_v18 }
  0x15   :  { %v220_v22 = vpack.c.bf16 %v178_v15, %v177_v14  ;;  %v94_v26 = vadd.f32 %v82_v37, %v64_v19  ;;  %v136_v27 = vmul.f32 %v124_v44, %v106_v20 }
  0x16   :  { %v179_v30 = vmax.f32 %v171_v23, 0.0  ;;  %v180_v31 = vmax.f32 %v172_v24, 0.0  ;;  %v143_v34 = vadd.f32 %v135_v21, %v93_v25 }
  0x17   :  { %208 = vst [vmem:[%s312_s6 + $0x8] sm:$0xff] %v220_v22  ;;  %v144_v35 = vadd.f32 %v136_v27, %v94_v26 }
  0x18   :  { %v221_v38 = vpack.c.bf16 %v180_v31, %v179_v30  ;;  %v173_v39 = vadd.f32 %v158_v45, %v143_v34 }
  0x19   :  { %v174_v32 = vadd.f32 %v162_v46, %v144_v35 }
  0x1a   :  { %209 = vst [vmem:[%s312_s6 + $0x10] sm:$0xff] %v221_v38  ;;  %v181_v28 = vmax.f32 %v173_v39, 0.0 }
  0x1b   :  { %v182_v29 = vmax.f32 %v174_v32, 0.0 }
  0x1d   :  { %v222_v33 = vpack.c.bf16 %v182_v29, %v181_v28 }
  0x1f   :  { %210 = vst [vmem:[%s312_s6 + $0x18] sm:$0xff] %v222_v33 }

// kernel: resnet_forward.37
= control target key start
LH: loop header
LB: loop body
LE: loop exit
PB: predicated region body
PF: predicated region fallthrough
CT: control target
= control target key end

     0   :  { %v117_v30 = vlaneseq  ;;  %vm245_vm0 = vcmask 1041409   ;;  %vm247_vm1 = vcmask 1042434   ;;  %vm249_vm2 = vcmask 1043459   ;;  %s861_s1 = inlined_call_operand.vmem [shape: f32[512,128], index: 1, kind: input, shape index: {}]   ;;  %s862_s0 = inlined_call_operand.vmem [shape: bf16[8,1,512], index: 0, kind: input, shape index: {}]   ;;  %s863_s2 = inlined_call_operand.vmem [shape: f32[1,128], index: 2, kind: input, shape index: {}]   ;;  %s864_s3 = inlined_call_operand.vmem [shape: f32[8,128], index: 3, kind: output, shape index: {}]  }
   0x1   :  { %v69_v0 = vld [vmem:[%s861_s1 + $0xf8] sm:$0xff]  ;;  %v68_v4 = vld [vmem:[%s861_s1 + $0xf0] sm:$0xff]  ;;  %v67_v8 = vld [vmem:[%s861_s1 + $0xe8] sm:$0xff]  ;;  %vm251_vm3 = vcmask 1044484   ;;  %vm253_vm4 = vcmask 1045509   ;;  %vm255_vm5 = vcmask 1046534  }
   0x2   :  { %v101_v1 = vld [vmem:[%s861_s1 + $0x1f8] sm:$0xff]  ;;  %449 = vmatprep.subr.mxu0 %v69_v0  ;;  %v100_v5 = vld [vmem:[%s861_s1 + $0x1f0] sm:$0xff]  ;;  %v99_v9 = vld [vmem:[%s861_s1 + $0x1e8] sm:$0xff]  ;;  %v653_v39 = vshrl.u32 %v117_v30, 7  ;;  %vm257_vm6 = vcmask 1047559  }
   0x3   :  { %v53_v2 = vld [vmem:[%s861_s1 + $0x78] sm:$0xff]  ;;  %484 = vmatprep.subr.mxu1 %v101_v1  ;;  %v52_v6 = vld [vmem:[%s861_s1 + $0x70] sm:$0xff]  ;;  %v51_v10 = vld [vmem:[%s861_s1 + $0x68] sm:$0xff] }
   0x4   :  { %v85_v3 = vld [vmem:[%s861_s1 + $0x178] sm:$0xff]  ;;  %450 = vmatpush3.msra.mxu0 %v53_v2  ;;  %v84_v7 = vld [vmem:[%s861_s1 + $0x170] sm:$0xff]  ;;  %v83_v11 = vld [vmem:[%s861_s1 + $0x168] sm:$0xff]  ;;  %v686_v50 = vsub.s32 2, %v653_v39  ;;  %v727_v2 = vsub.s32 6, %v653_v39 }
   0x5   :  { %485 = vmatpush3.msra.mxu1 %v85_v3  ;;  %451 = vmatprep.subr.mxu0 %v68_v4  ;;  %v66_v12 = vld [vmem:[%s861_s1 + $0xe0] sm:$0xff]  ;;  %v65_v16 = vld [vmem:[%s861_s1 + $0xd8] sm:$0xff]  ;;  %v64_v20 = vld [vmem:[%s861_s1 + $0xd0] sm:$0xff] }
   0x6   :  { %486 = vmatprep.subr.mxu1 %v100_v5  ;;  %452 = vmatpush3.msra.mxu0 %v52_v6  ;;  %v98_v13 = vld [vmem:[%s861_s1 + $0x1e0] sm:$0xff]  ;;  %v97_v17 = vld [vmem:[%s861_s1 + $0x1d8] sm:$0xff]  ;;  %v96_v21 = vld [vmem:[%s861_s1 + $0x1d0] sm:$0xff] }
   0x7   :  { %487 = vmatpush3.msra.mxu1 %v84_v7  ;;  %453 = vmatprep.subr.mxu0 %v67_v8  ;;  %v50_v14 = vld [vmem:[%s861_s1 + $0x60] sm:$0xff]  ;;  %v49_v18 = vld [vmem:[%s861_s1 + $0x58] sm:$0xff]  ;;  %v48_v22 = vld [vmem:[%s861_s1 + $0x50] sm:$0xff] }
   0x8   :  { %488 = vmatprep.subr.mxu1 %v99_v9  ;;  %v82_v15 = vld [vmem:[%s861_s1 + $0x160] sm:$0xff]  ;;  %454 = vmatpush3.msra.mxu0 %v51_v10  ;;  %v81_v19 = vld [vmem:[%s861_s1 + $0x158] sm:$0xff]  ;;  %v80_v23 = vld [vmem:[%s861_s1 + $0x150] sm:$0xff] }
   0x9   :  { %489 = vmatpush3.msra.mxu1 %v83_v11  ;;  %455 = vmatprep.subr.mxu0 %v66_v12  ;;  %v63_v24 = vld [vmem:[%s861_s1 + $0xc8] sm:$0xff]  ;;  %v62_v28 = vld [vmem:[%s861_s1 + $0xc0] sm:$0xff]  ;;  %v61_v33 = vld [vmem:[%s861_s1 + $0xb8] sm:$0xff] }
   0xa   :  { %490 = vmatprep.subr.mxu1 %v98_v13  ;;  %456 = vmatpush3.msra.mxu0 %v50_v14  ;;  %v95_v25 = vld [vmem:[%s861_s1 + $0x1c8] sm:$0xff]  ;;  %v94_v29 = vld [vmem:[%s861_s1 + $0x1c0] sm:$0xff]  ;;  %v93_v34 = vld [vmem:[%s861_s1 + $0x1b8] sm:$0xff] }
   0xb   :  { %491 = vmatpush3.msra.mxu1 %v82_v15  ;;  %457 = vmatprep.subr.mxu0 %v65_v16  ;;  %v47_v26 = vld [vmem:[%s861_s1 + $0x48] sm:$0xff]  ;;  %v46_v31 = vld [vmem:[%s861_s1 + $0x40] sm:$0xff]  ;;  %v45_v35 = vld [vmem:[%s861_s1 + $0x38] sm:$0xff] }
   0xc   :  { %492 = vmatprep.subr.mxu1 %v97_v17  ;;  %458 = vmatpush3.msra.mxu0 %v49_v18  ;;  %v79_v27 = vld [vmem:[%s861_s1 + $0x148] sm:$0xff]  ;;  %v78_v32 = vld [vmem:[%s861_s1 + $0x140] sm:$0xff]  ;;  %v77_v36 = vld [vmem:[%s861_s1 + $0x138] sm:$0xff] }
   0xd   :  { %493 = vmatpush3.msra.mxu1 %v81_v19  ;;  %459 = vmatprep.subr.mxu0 %v64_v20  ;;  %v60_v37 = vld [vmem:[%s861_s1 + $0xb0] sm:$0xff]  ;;  %v59_v42 = vld [vmem:[%s861_s1 + $0xa8] sm:$0xff]  ;;  %v58_v46 = vld [vmem:[%s861_s1 + $0xa0] sm:$0xff] }
   0xe   :  { %494 = vmatprep.subr.mxu1 %v96_v21  ;;  %460 = vmatpush3.msra.mxu0 %v48_v22  ;;  %v92_v38 = vld [vmem:[%s861_s1 + $0x1b0] sm:$0xff]  ;;  %v91_v43 = vld [vmem:[%s861_s1 + $0x1a8] sm:$0xff]  ;;  %v90_v47 = vld [vmem:[%s861_s1 + $0x1a0] sm:$0xff] }
   0xf   :  { %495 = vmatpush3.msra.mxu1 %v80_v23  ;;  %461 = vmatprep.subr.mxu0 %v63_v24  ;;  %v44_v40 = vld [vmem:[%s861_s1 + $0x30] sm:$0xff]  ;;  %v43_v44 = vld [vmem:[%s861_s1 + $0x28] sm:$0xff]  ;;  %v42_v48 = vld [vmem:[%s861_s1 + $0x20] sm:$0xff]  ;;  %v776_v23 = vsub.s32 0, %v653_v39 }
  0x10   :  { %496 = vmatprep.subr.mxu1 %v95_v25  ;;  %462 = vmatpush3.msra.mxu0 %v47_v26  ;;  %v76_v41 = vld [vmem:[%s861_s1 + $0x130] sm:$0xff]  ;;  %v75_v45 = vld [vmem:[%s861_s1 + $0x128] sm:$0xff]  ;;  %v74_v49 = vld [vmem:[%s861_s1 + $0x120] sm:$0xff] }
  0x11   :  { %497 = vmatpush3.msra.mxu1 %v79_v27  ;;  %463 = vmatprep.subr.mxu0 %v62_v28  ;;  %v431_v51 = vld [vmem:[%s862_s0] sm:$0xff]   ;;  %v446_v52 = vld [vmem:[%s862_s0 + $0x8] sm:$0xff]   ;;  %v447_v53 = vld [vmem:[%s862_s0 + $0x10] sm:$0xff]  }
  0x12   :  { %498 = vmatprep.subr.mxu1 %v94_v29  ;;  %464 = vmatpush3.msra.mxu0 %v46_v31  ;;  %v57_v54 = vld [vmem:[%s861_s1 + $0x98] sm:$0xff]  ;;  %v703_v56 = vunpack.c.l.bf16 %v431_v51  ;;  %v705_v57 = vunpack.c.h.bf16 %v431_v51  ;;  %v707_v58 = vunpack.c.l.bf16 %v446_v52  ;;  %v709_v59 = vunpack.c.h.bf16 %v446_v52  ;;  %v56_v3 = vld [vmem:[%s861_s1 + $0x90] sm:$0xff]  ;;  %v55_v13 = vld [vmem:[%s861_s1 + $0x88] sm:$0xff] }
  0x13   :  { %499 = vmatpush3.msra.mxu1 %v78_v32  ;;  %465 = vmatprep.subr.mxu0 %v61_v33  ;;  %v89_v55 = vld [vmem:[%s861_s1 + $0x198] sm:$0xff]  ;;  %v720_v63 = vunpack.c.l.bf16 %v447_v53  ;;  %v722_v0 = vunpack.c.h.bf16 %v447_v53  ;;  %v88_v4 = vld [vmem:[%s861_s1 + $0x190] sm:$0xff]  ;;  %v87_v14 = vld [vmem:[%s861_s1 + $0x188] sm:$0xff] }
  0x14   :  { %500 = vmatprep.subr.mxu1 %v93_v34  ;;  %466 = vmatpush3.msra.mxu0 %v45_v35  ;;  %v448_v60 = vld [vmem:[%s862_s0 + $0x18] sm:$0xff]   ;;  %v124_v6 = vrot.slane %v703_v56, %v686_v50  ;;  %v140_v7 = vrot.slane %v705_v57, %v686_v50  ;;  %v156_v8 = vrot.slane %v707_v58, %v686_v50  ;;  %v40_v9 = vld [vmem:[%s861_s1 + $0x10] sm:$0xff]  ;;  %v39_v18 = vld [vmem:[%s861_s1 + $0x8] sm:$0xff] }
  0x15   :  { %501 = vmatpush3.msra.mxu1 %v77_v36  ;;  %467 = vmatprep.subr.mxu0 %v60_v37  ;;  %v41_v61 = vld [vmem:[%s861_s1 + $0x18] sm:$0xff]  ;;  %v724_v1 = vunpack.c.l.bf16 %v448_v60  ;;  %v735_v5 = vunpack.c.h.bf16 %v448_v60  ;;  %v72_v10 = vld [vmem:[%s861_s1 + $0x110] sm:$0xff]  ;;  %v172_v11 = vrot.slane %v709_v59, %v686_v50  ;;  %v188_v12 = vrot.slane %v720_v63, %v686_v50  ;;  %v71_v19 = vld [vmem:[%s861_s1 + $0x108] sm:$0xff] }
  0x16   :  { %502 = vmatprep.subr.mxu1 %v92_v38  ;;  %468 = vmatpush3.msra.mxu0 %v44_v40  ;;  %v73_v62 = vld [vmem:[%s861_s1 + $0x118] sm:$0xff]  ;;  %v204_v15 = vrot.slane %v722_v0, %v686_v50  ;;  %v259_v17 = vsel %vm245_vm0, %v140_v7, %v124_v6  ;;  %v132_v21 = vrot.slane %v703_v56, %v727_v2  ;;  %v54_v24 = vld [vmem:[%s861_s1 + $0x80] sm:$0xff] }
  0x17   :  { %503 = vmatpush3.msra.mxu1 %v76_v41  ;;  %469 = vmatprep.subr.mxu0 %v59_v42  ;;  %v220_v16 = vrot.slane %v724_v1, %v686_v50  ;;  %v260_v20 = vsel %vm247_vm1, %v156_v8, %v259_v17  ;;  %v148_v22 = vrot.slane %v705_v57, %v727_v2  ;;  %v86_v25 = vld [vmem:[%s861_s1 + $0x180] sm:$0xff]  ;;  %v127_v41 = vsub.s32 4, %v653_v39 }
  0x18   :  { %504 = vmatprep.subr.mxu1 %v91_v43  ;;  %470 = vmatpush3.msra.mxu0 %v43_v44  ;;  %v236_v26 = vrot.slane %v735_v5, %v686_v50  ;;  %v261_v27 = vsel %vm249_vm2, %v172_v11, %v260_v20  ;;  %v164_v28 = vrot.slane %v707_v58, %v727_v2  ;;  %v38_v29 = vld [vmem:[%s861_s1] sm:$0xff] }
  0x19   :  { %505 = vmatpush3.msra.mxu1 %v75_v45  ;;  %471 = vmatprep.subr.mxu0 %v58_v46  ;;  %v262_v30 = vsel %vm251_vm3, %v188_v12, %v261_v27  ;;  %v70_v31 = vld [vmem:[%s861_s1 + $0x100] sm:$0xff]  ;;  %v180_v32 = vrot.slane %v709_v59, %v727_v2  ;;  %v196_v33 = vrot.slane %v720_v63, %v727_v2 }
  0x1a   :  { %506 = vmatprep.subr.mxu1 %v90_v47  ;;  %472 = vmatpush3.msra.mxu0 %v42_v48  ;;  %v263_v34 = vsel %vm253_vm4, %v204_v15, %v262_v30  ;;  %v212_v35 = vrot.slane %v722_v0, %v727_v2  ;;  %v228_v36 = vrot.slane %v724_v1, %v727_v2 }
  0x1b   :  { %507 = vmatpush3.msra.mxu1 %v74_v49  ;;  %473 = vmatprep.subr.mxu0 %v57_v54  ;;  %v264_v37 = vsel %vm255_vm5, %v220_v16, %v263_v34  ;;  %v273_v38 = vsel %vm245_vm0, %v148_v22, %v132_v21  ;;  %v120_v40 = vrot.slane %v703_v56, %v776_v23  ;;  %v429_v16 = vld [vmem:[%s863_s2] ss:$0 sm:$0xff] }
  0x1c   :  { %508 = vmatprep.subr.mxu1 %v89_v55  ;;  %474 = vmatpush3.msra.mxu0 %v41_v61  ;;  %v265_v42 = vsel %vm257_vm6, %v236_v26, %v264_v37  ;;  %v274_v43 = vsel %vm247_vm1, %v164_v28, %v273_v38  ;;  %v136_v44 = vrot.slane %v705_v57, %v776_v23 }
  0x1d   :  { %509 = vmatpush3.msra.mxu1 %v73_v62  ;;  %475 = vmatprep.subr.mxu0 %v56_v3  ;;  %v244_v45 = vrot.slane %v735_v5, %v727_v2  ;;  %v275_v46 = vsel %vm249_vm2, %v180_v32, %v274_v43  ;;  %v152_v47 = vrot.slane %v707_v58, %v776_v23 }
  0x1e   :  { %510 = vmatprep.subr.mxu1 %v88_v4  ;;  %476 = vmatpush3.msra.mxu0 %v40_v9  ;;  %v168_v39 = vrot.slane %v709_v59, %v776_v23  ;;  %v276_v48 = vsel %vm251_vm3, %v196_v33, %v275_v46  ;;  %v184_v49 = vrot.slane %v720_v63, %v776_v23 }
  0x1f   :  { %511 = vmatpush3.msra.mxu1 %v72_v10  ;;  %477 = vmatprep.subr.mxu0 %v55_v13  ;;  %v200_v50 = vrot.slane %v722_v0, %v776_v23  ;;  %v216_v51 = vrot.slane %v724_v1, %v776_v23  ;;  %v277_v52 = vsel %vm253_vm4, %v212_v35, %v276_v48 }
  0x20   :  { %512 = vmatprep.subr.mxu1 %v87_v14  ;;  %478 = vmatpush3.msra.mxu0 %v39_v18  ;;  %v246_v53 = vsel %vm245_vm0, %v136_v44, %v120_v40  ;;  %v128_v54 = vrot.slane %v703_v56, %v127_v41  ;;  %v144_v55 = vrot.slane %v705_v57, %v127_v41 }
  0x21   :  { %513 = vmatpush3.msra.mxu1 %v71_v19  ;;  %479 = vmatprep.subr.mxu0 %v54_v24  ;;  %v278_v60 = vsel %vm255_vm5, %v228_v36, %v277_v52  ;;  %v248_v61 = vsel %vm247_vm1, %v152_v47, %v246_v53  ;;  %v160_v62 = vrot.slane %v707_v58, %v127_v41 }
  0x22   :  { %514 = vmatprep.subr.mxu1 %v86_v25  ;;  %480 = vmatpush3.msra.mxu0 %v38_v29  ;;  %v176_v2 = vrot.slane %v709_v59, %v127_v41  ;;  %v279_v3 = vsel %vm257_vm6, %v244_v45, %v278_v60  ;;  %v232_v4 = vrot.slane %v735_v5, %v776_v23 }
  0x23   :  { %515 = vmatpush3.msra.mxu1 %v70_v31  ;;  %348 = vmatprep.mubr.f32.mxu0 %v265_v42  ;;  %v250_v6 = vsel %vm249_vm2, %v168_v39, %v248_v61  ;;  %v192_v7 = vrot.slane %v720_v63, %v127_v41  ;;  %v208_v57 = vrot.slane %v722_v0, %v127_v41 }
  0x24   :  { %418 = vmatprep.mubr.f32.mxu1 %v279_v3  ;;  %v252_v56 = vsel %vm251_vm3, %v184_v49, %v250_v6  ;;  %v266_v8 = vsel %vm245_vm0, %v144_v55, %v128_v54  ;;  %v224_v59 = vrot.slane %v724_v1, %v127_v41  ;;  %v240_v11 = vrot.slane %v735_v5, %v127_v41 }
  0x25   :  { %v254_v58 = vsel %vm253_vm4, %v200_v50, %v252_v56  ;;  %v267_v9 = vsel %vm247_vm1, %v160_v62, %v266_v8 }
  0x26   :  { %v256_v10 = vsel %vm255_vm5, %v216_v51, %v254_v58  ;;  %v268_v12 = vsel %vm249_vm2, %v176_v2, %v267_v9 }
  0x27   :  { %v258_v63 = vsel %vm257_vm6, %v232_v4, %v256_v10  ;;  %v269_v13 = vsel %vm251_vm3, %v192_v7, %v268_v12 }
  0x28   :  { %349 = vmatmul.mubr.f32.vlgmr.msra.gmra.mxu0 %v258_v63  ;;  %v270_v0 = vsel %vm253_vm4, %v208_v57, %v269_v13 }
  0x29   :  { %v271_v14 = vsel %vm255_vm5, %v224_v59, %v270_v0 }
  0x2a   :  { %v272_v15 = vsel %vm257_vm6, %v240_v11, %v271_v14 }
  0x2b   :  { %419 = vmatmul.mubr.f32.vlgmr.msra.gmra.mxu1 %v272_v15 }
  0xe8   :  { %v481_v1 = vpop.f32.mrf.mxu0 }
  0xea   :  { %v482_v5 = vpop.f32.mrf.mxu0 }
  0xeb   :  { %v516_v17 = vpop.f32.mrf.mxu1  ;;  %v483_v18 = vadd.f32 %v482_v5, %v481_v1 }
  0xed   :  { %v351_v19 = vadd.f32 %v483_v18, %v429_v16  ;;  %v517_v20 = vpop.f32.mrf.mxu1 }
  0xee   :  { %v518_v21 = vadd.f32 %v517_v20, %v516_v17 }
  0xf0   :  { %v421_v22 = vadd.f32 %v518_v21, %v351_v19 }
  0xf2   :  { %424 = vst [vmem:[%s864_s3] sm:$0xff] %v421_v22 }

</bundles_post_ra>
